<compile_context>
chip_gen: v5e
topology: v5e:2x2
jax: 0.10.0
libtpu: 0.0.40
codegen_flags: <defaults>
</compile_context>

<pallas_src>
import jax
import jax.numpy as jnp
from jax.experimental import pallas as pl
from jax.experimental.pallas import tpu as pltpu

LANE = 128


def _round_up(n, m):
    return ((n + m - 1) // m) * m


def mlp_kernel(x_ref,
               w1_ref, b1_ref,
               w2_ref, b2_ref,
               w3_ref, b3_ref,
               w4_ref, b4_ref,
               w5_ref, b5_ref,
               o_ref):
    # One batch tile per grid step. Weights are VMEM-resident (constant block index),
    # so each step is five native bf16 MXU matmuls with f32 accumulation, plus
    # f32 bias-add + ReLU on the VPU.
    def layer(h, w_ref, b_ref):
        y = jnp.dot(h.astype(jnp.bfloat16), w_ref[...],
                    preferred_element_type=jnp.float32)
        return jnp.maximum(y + b_ref[...], 0.0)

    h = x_ref[...]                      # (TM, 3072) f32
    h = layer(h, w1_ref, b1_ref)
    h = layer(h, w2_ref, b2_ref)
    h = layer(h, w3_ref, b3_ref)
    h = layer(h, w4_ref, b4_ref)
    h = layer(h, w5_ref, b5_ref)        # module applies ReLU after the classifier too
    o_ref[...] = h.astype(o_ref.dtype)  # (TM, 128) lane-dense store


def prepare_params(params):
    """Cast weights to bf16 (in_features, out_features); biases stay f32 (1, out).
    The final layer's output dim is zero-padded up to a multiple of 128 lanes."""
    prepped = []
    last = len(params) - 1
    for idx, (w, b) in enumerate(params):
        w = jnp.asarray(w, jnp.float32)
        b = jnp.asarray(b, jnp.float32).reshape(1, -1)
        if idx == last:
            pad = (-w.shape[1]) % LANE
            if pad:
                w = jnp.pad(w, ((0, 0), (0, pad)))
                b = jnp.pad(b, ((0, 0), (0, pad)))
        prepped.append((w.astype(jnp.bfloat16), b))
    return prepped


def simple_neural_network_forward(x_nchw, prepped, num_class, *, tm=256):
    """x_nchw: (B, 3, 32, 32) float32. prepped: output of prepare_params."""
    B = x_nchw.shape[0]
    x_flat = x_nchw.reshape(B, -1).astype(jnp.float32)   # (B, 3072), nn.Flatten order
    in_features = x_flat.shape[1]

    # Batch tile: 256 fills a v6e/v7x MXU push; clamp for small batches (>= 8 sublanes),
    # then pad the batch so the grid divides evenly.
    tm = min(tm, _round_up(B, 8))
    b_pad = _round_up(B, tm)
    if b_pad != B:
        x_flat = jnp.pad(x_flat, ((0, b_pad - B), (0, 0)))

    out_padded = prepped[-1][0].shape[1]                  # lane-aligned (multiple of 128)

    flat_args = [x_flat]
    in_specs = [pl.BlockSpec((tm, in_features), lambda i: (i, 0))]
    for (w, b) in prepped:
        flat_args.extend([w, b])
        # Constant block index -> weights/biases stay resident in VMEM across the batch grid.
        in_specs.append(pl.BlockSpec(w.shape, lambda i: (0, 0)))
        in_specs.append(pl.BlockSpec(b.shape, lambda i: (0, 0)))

    out = pl.pallas_call(
        mlp_kernel,
        out_shape=jax.ShapeDtypeStruct((b_pad, out_padded), jnp.float32),
        grid=(b_pad // tm,),
        in_specs=in_specs,
        out_specs=pl.BlockSpec((tm, out_padded), lambda i: (i, 0)),
        compiler_params=pltpu.CompilerParams(
            dimension_semantics=("parallel",),
            vmem_limit_bytes=32 << 20,
        ),
    )(*flat_args)

    return out[:B, :num_class]


def init_params(key, num_class=10):
    """Deterministic init matching the module's layer shapes (PyTorch-style U(-1/sqrt(fan_in))).
    W is (in_features, out_features) == torch weight.T; b is (1, out)."""
    dims = [(3 * 32 * 32, 256), (256, 512), (512, 1024), (1024, 512), (512, num_class)]
    params = []
    for (fan_in, fan_out) in dims:
        key, kw, kb = jax.random.split(key, 3)
        bound = 1.0 / jnp.sqrt(fan_in)
        w = jax.random.uniform(kw, (fan_in, fan_out), jnp.float32, -bound, bound)
        b = jax.random.uniform(kb, (1, fan_out), jnp.float32, -bound, bound)
        params.append((w, b))
    return params


def reference_forward(x_nchw, prepped, num_class):
    # Same numerics as the kernel: bf16-rounded activations/weights, f32 accumulation,
    # f32 bias-add + ReLU, final slice back to num_class.
    h = x_nchw.reshape(x_nchw.shape[0], -1).astype(jnp.float32)
    for (w, b) in prepped:
        h_bf = h.astype(jnp.bfloat16).astype(jnp.float32)
        w_f = w.astype(jnp.float32)
        h = jnp.maximum(jnp.dot(h_bf, w_f, preferred_element_type=jnp.float32) + b, 0.0)
    return h[:, :num_class]


if __name__ == "__main__":
    key = jax.random.PRNGKey(0)
    key, kx = jax.random.split(key)

    B, num_class = 2, 10
    x = jax.random.normal(kx, (B, 3, 32, 32), dtype=jnp.float32)

    params = init_params(key, num_class=num_class)
    prepped = prepare_params(params)

    out = simple_neural_network_forward(x, prepped, num_class)
    out = jax.block_until_ready(out)

    ref = reference_forward(x, prepped, num_class)
    assert out.shape == (B, num_class)
    assert jnp.allclose(out, ref, atol=5e-3, rtol=5e-3), (
        f"max abs diff {jnp.max(jnp.abs(out - ref))}")

    print("KERNEL_OK")
</pallas_src>

<mosaic_0001>
module attributes {stable_mosaic.version = 11 : i64} {
  func.func @mlp_kernel(%arg0: i32, %arg1: memref<8x3072xf32, #tpu.memory_space<vmem>>, %arg2: memref<3072x256xbf16, #tpu.memory_space<vmem>>, %arg3: memref<1x256xf32, #tpu.memory_space<vmem>>, %arg4: memref<256x512xbf16, #tpu.memory_space<vmem>>, %arg5: memref<1x512xf32, #tpu.memory_space<vmem>>, %arg6: memref<512x1024xbf16, #tpu.memory_space<vmem>>, %arg7: memref<1x1024xf32, #tpu.memory_space<vmem>>, %arg8: memref<1024x512xbf16, #tpu.memory_space<vmem>>, %arg9: memref<1x512xf32, #tpu.memory_space<vmem>>, %arg10: memref<512x128xbf16, #tpu.memory_space<vmem>>, %arg11: memref<1x128xf32, #tpu.memory_space<vmem>>, %arg12: memref<8x128xf32, #tpu.memory_space<vmem>>) attributes {dimension_semantics = [#tpu.dimension_semantics<parallel>], iteration_bounds = array<i64: 1>, scalar_prefetch = 0 : i64, scratch_operands = 0 : i64, tpu.core_type = #tpu.core_type<tc>, window_params = [{transform_indices = @transform_0, window_bounds = array<i64: 8, 3072>}, {pipeline_mode = #tpu.pipeline_mode<synchronous>, transform_indices = @transform_1, window_bounds = array<i64: 3072, 256>}, {pipeline_mode = #tpu.pipeline_mode<synchronous>, transform_indices = @transform_2, window_bounds = array<i64: 1, 256>}, {pipeline_mode = #tpu.pipeline_mode<synchronous>, transform_indices = @transform_3, window_bounds = array<i64: 256, 512>}, {pipeline_mode = #tpu.pipeline_mode<synchronous>, transform_indices = @transform_4, window_bounds = array<i64: 1, 512>}, {pipeline_mode = #tpu.pipeline_mode<synchronous>, transform_indices = @transform_5, window_bounds = array<i64: 512, 1024>}, {pipeline_mode = #tpu.pipeline_mode<synchronous>, transform_indices = @transform_6, window_bounds = array<i64: 1, 1024>}, {pipeline_mode = #tpu.pipeline_mode<synchronous>, transform_indices = @transform_7, window_bounds = array<i64: 1024, 512>}, {pipeline_mode = #tpu.pipeline_mode<synchronous>, transform_indices = @transform_8, window_bounds = array<i64: 1, 512>}, {pipeline_mode = #tpu.pipeline_mode<synchronous>, transform_indices = @transform_9, window_bounds = array<i64: 512, 128>}, {pipeline_mode = #tpu.pipeline_mode<synchronous>, transform_indices = @transform_10, window_bounds = array<i64: 1, 128>}, {transform_indices = @transform_11, window_bounds = array<i64: 8, 128>}]} {
    %c0 = arith.constant 0 : index
    %c0_0 = arith.constant 0 : index
    %0 = vector.load %arg1[%c0, %c0_0] : memref<8x3072xf32, #tpu.memory_space<vmem>>, vector<8x3072xf32>
    %1 = arith.truncf %0 : vector<8x3072xf32> to vector<8x3072xbf16>
    %c0_1 = arith.constant 0 : index
    %c0_2 = arith.constant 0 : index
    %2 = vector.load %arg2[%c0_1, %c0_2] : memref<3072x256xbf16, #tpu.memory_space<vmem>>, vector<3072x256xbf16>
    %cst = arith.constant dense<0.000000e+00> : vector<8x256xf32>
    %3 = tpu.matmul %1, %2, %cst {dimension_numbers = #tpu.dot_dimension_numbers<[1], [0], [0], [1], [0, 0, 1, 1], [], []>} : vector<8x3072xbf16>, vector<3072x256xbf16>, vector<8x256xf32> -> vector<8x256xf32>
    %c0_3 = arith.constant 0 : index
    %c0_4 = arith.constant 0 : index
    %4 = vector.load %arg3[%c0_3, %c0_4] : memref<1x256xf32, #tpu.memory_space<vmem>>, vector<1x256xf32>
    %5 = vector.broadcast %4 : vector<1x256xf32> to vector<8x256xf32>
    %6 = arith.addf %3, %5 : vector<8x256xf32>
    %cst_5 = arith.constant 0.000000e+00 : f32
    %7 = vector.broadcast %cst_5 : f32 to vector<8x256xf32>
    %8 = arith.maximumf %6, %7 : vector<8x256xf32>
    %9 = arith.truncf %8 : vector<8x256xf32> to vector<8x256xbf16>
    %c0_6 = arith.constant 0 : index
    %c0_7 = arith.constant 0 : index
    %10 = vector.load %arg4[%c0_6, %c0_7] : memref<256x512xbf16, #tpu.memory_space<vmem>>, vector<256x512xbf16>
    %cst_8 = arith.constant dense<0.000000e+00> : vector<8x512xf32>
    %11 = tpu.matmul %9, %10, %cst_8 {dimension_numbers = #tpu.dot_dimension_numbers<[1], [0], [0], [1], [0, 0, 1, 1], [], []>} : vector<8x256xbf16>, vector<256x512xbf16>, vector<8x512xf32> -> vector<8x512xf32>
    %c0_9 = arith.constant 0 : index
    %c0_10 = arith.constant 0 : index
    %12 = vector.load %arg5[%c0_9, %c0_10] : memref<1x512xf32, #tpu.memory_space<vmem>>, vector<1x512xf32>
    %13 = vector.broadcast %12 : vector<1x512xf32> to vector<8x512xf32>
    %14 = arith.addf %11, %13 : vector<8x512xf32>
    %cst_11 = arith.constant 0.000000e+00 : f32
    %15 = vector.broadcast %cst_11 : f32 to vector<8x512xf32>
    %16 = arith.maximumf %14, %15 : vector<8x512xf32>
    %17 = arith.truncf %16 : vector<8x512xf32> to vector<8x512xbf16>
    %c0_12 = arith.constant 0 : index
    %c0_13 = arith.constant 0 : index
    %18 = vector.load %arg6[%c0_12, %c0_13] : memref<512x1024xbf16, #tpu.memory_space<vmem>>, vector<512x1024xbf16>
    %cst_14 = arith.constant dense<0.000000e+00> : vector<8x1024xf32>
    %19 = tpu.matmul %17, %18, %cst_14 {dimension_numbers = #tpu.dot_dimension_numbers<[1], [0], [0], [1], [0, 0, 1, 1], [], []>} : vector<8x512xbf16>, vector<512x1024xbf16>, vector<8x1024xf32> -> vector<8x1024xf32>
    %c0_15 = arith.constant 0 : index
    %c0_16 = arith.constant 0 : index
    %20 = vector.load %arg7[%c0_15, %c0_16] : memref<1x1024xf32, #tpu.memory_space<vmem>>, vector<1x1024xf32>
    %21 = vector.broadcast %20 : vector<1x1024xf32> to vector<8x1024xf32>
    %22 = arith.addf %19, %21 : vector<8x1024xf32>
    %cst_17 = arith.constant 0.000000e+00 : f32
    %23 = vector.broadcast %cst_17 : f32 to vector<8x1024xf32>
    %24 = arith.maximumf %22, %23 : vector<8x1024xf32>
    %25 = arith.truncf %24 : vector<8x1024xf32> to vector<8x1024xbf16>
    %c0_18 = arith.constant 0 : index
    %c0_19 = arith.constant 0 : index
    %26 = vector.load %arg8[%c0_18, %c0_19] : memref<1024x512xbf16, #tpu.memory_space<vmem>>, vector<1024x512xbf16>
    %cst_20 = arith.constant dense<0.000000e+00> : vector<8x512xf32>
    %27 = tpu.matmul %25, %26, %cst_20 {dimension_numbers = #tpu.dot_dimension_numbers<[1], [0], [0], [1], [0, 0, 1, 1], [], []>} : vector<8x1024xbf16>, vector<1024x512xbf16>, vector<8x512xf32> -> vector<8x512xf32>
    %c0_21 = arith.constant 0 : index
    %c0_22 = arith.constant 0 : index
    %28 = vector.load %arg9[%c0_21, %c0_22] : memref<1x512xf32, #tpu.memory_space<vmem>>, vector<1x512xf32>
    %29 = vector.broadcast %28 : vector<1x512xf32> to vector<8x512xf32>
    %30 = arith.addf %27, %29 : vector<8x512xf32>
    %cst_23 = arith.constant 0.000000e+00 : f32
    %31 = vector.broadcast %cst_23 : f32 to vector<8x512xf32>
    %32 = arith.maximumf %30, %31 : vector<8x512xf32>
    %33 = arith.truncf %32 : vector<8x512xf32> to vector<8x512xbf16>
    %c0_24 = arith.constant 0 : index
    %c0_25 = arith.constant 0 : index
    %34 = vector.load %arg10[%c0_24, %c0_25] : memref<512x128xbf16, #tpu.memory_space<vmem>>, vector<512x128xbf16>
    %cst_26 = arith.constant dense<0.000000e+00> : vector<8x128xf32>
    %35 = tpu.matmul %33, %34, %cst_26 {dimension_numbers = #tpu.dot_dimension_numbers<[1], [0], [0], [1], [0, 0, 1, 1], [], []>} : vector<8x512xbf16>, vector<512x128xbf16>, vector<8x128xf32> -> vector<8x128xf32>
    %c0_27 = arith.constant 0 : index
    %c0_28 = arith.constant 0 : index
    %36 = vector.load %arg11[%c0_27, %c0_28] : memref<1x128xf32, #tpu.memory_space<vmem>>, vector<1x128xf32>
    %37 = vector.broadcast %36 : vector<1x128xf32> to vector<8x128xf32>
    %38 = arith.addf %35, %37 : vector<8x128xf32>
    %cst_29 = arith.constant 0.000000e+00 : f32
    %39 = vector.broadcast %cst_29 : f32 to vector<8x128xf32>
    %40 = arith.maximumf %38, %39 : vector<8x128xf32>
    %c0_30 = arith.constant 0 : index
    %c0_31 = arith.constant 0 : index
    %41 = vector.load %arg12[%c0_30, %c0_31] : memref<8x128xf32, #tpu.memory_space<vmem>>, vector<8x128xf32>
    tpu.vector_store %arg12[%c0_30, %c0_31], %40 {strides = array<i32>} : memref<8x128xf32, #tpu.memory_space<vmem>>, vector<8x128xf32>,
    return
  }
  func.func @transform_0(%arg0: i32) -> (i32, i32) {
    %c0_i32 = arith.constant 0 : i32
    %c0_i32_0 = arith.constant 0 : i32
    return %arg0, %c0_i32 : i32, i32
  }
  func.func @transform_1(%arg0: i32) -> (i32, i32) {
    %c0_i32 = arith.constant 0 : i32
    %c0_i32_0 = arith.constant 0 : i32
    %c0_i32_1 = arith.constant 0 : i32
    return %c0_i32, %c0_i32_0 : i32, i32
  }
  func.func @transform_2(%arg0: i32) -> (i32, i32) {
    %c0_i32 = arith.constant 0 : i32
    %c0_i32_0 = arith.constant 0 : i32
    %c0_i32_1 = arith.constant 0 : i32
    return %c0_i32, %c0_i32_0 : i32, i32
  }
  func.func @transform_3(%arg0: i32) -> (i32, i32) {
    %c0_i32 = arith.constant 0 : i32
    %c0_i32_0 = arith.constant 0 : i32
    %c0_i32_1 = arith.constant 0 : i32
    return %c0_i32, %c0_i32_0 : i32, i32
  }
  func.func @transform_4(%arg0: i32) -> (i32, i32) {
    %c0_i32 = arith.constant 0 : i32
    %c0_i32_0 = arith.constant 0 : i32
    %c0_i32_1 = arith.constant 0 : i32
    return %c0_i32, %c0_i32_0 : i32, i32
  }
  func.func @transform_5(%arg0: i32) -> (i32, i32) {
    %c0_i32 = arith.constant 0 : i32
    %c0_i32_0 = arith.constant 0 : i32
    %c0_i32_1 = arith.constant 0 : i32
    return %c0_i32, %c0_i32_0 : i32, i32
  }
  func.func @transform_6(%arg0: i32) -> (i32, i32) {
    %c0_i32 = arith.constant 0 : i32
    %c0_i32_0 = arith.constant 0 : i32
    %c0_i32_1 = arith.constant 0 : i32
    return %c0_i32, %c0_i32_0 : i32, i32
  }
  func.func @transform_7(%arg0: i32) -> (i32, i32) {
    %c0_i32 = arith.constant 0 : i32
    %c0_i32_0 = arith.constant 0 : i32
    %c0_i32_1 = arith.constant 0 : i32
    return %c0_i32, %c0_i32_0 : i32, i32
  }
  func.func @transform_8(%arg0: i32) -> (i32, i32) {
    %c0_i32 = arith.constant 0 : i32
    %c0_i32_0 = arith.constant 0 : i32
    %c0_i32_1 = arith.constant 0 : i32
    return %c0_i32, %c0_i32_0 : i32, i32
  }
  func.func @transform_9(%arg0: i32) -> (i32, i32) {
    %c0_i32 = arith.constant 0 : i32
    %c0_i32_0 = arith.constant 0 : i32
    %c0_i32_1 = arith.constant 0 : i32
    return %c0_i32, %c0_i32_0 : i32, i32
  }
  func.func @transform_10(%arg0: i32) -> (i32, i32) {
    %c0_i32 = arith.constant 0 : i32
    %c0_i32_0 = arith.constant 0 : i32
    %c0_i32_1 = arith.constant 0 : i32
    return %c0_i32, %c0_i32_0 : i32, i32
  }
  func.func @transform_11(%arg0: i32) -> (i32, i32) {
    %c0_i32 = arith.constant 0 : i32
    %c0_i32_0 = arith.constant 0 : i32
    return %arg0, %c0_i32 : i32, i32
  }
}

</mosaic_0001>

<bundles_post_ra>
// kernel: tpu_custom_call.1
= control target key start
LH: loop header
LB: loop body
LE: loop exit
PB: predicated region body
PF: predicated region fallthrough
CT: control target
= control target key end

     0   :  { %16 = vsyncpa [#allocation3], 0  ;;  %s13741_s0 = inlined_call_operand.hbm [shape: f32[8,3072], index: 0, kind: input, shape index: {}]   ;;  %s13742_s1 = inlined_call_operand.hbm [shape: bf16[3072,256], index: 1, kind: input, shape index: {}]   ;;  %s13743_s2 = inlined_call_operand.hbm [shape: f32[1,256], index: 2, kind: input, shape index: {}]   ;;  %s13744_s3 = inlined_call_operand.hbm [shape: bf16[256,512], index: 3, kind: input, shape index: {}]   ;;  %s13745_s4 = inlined_call_operand.hbm [shape: f32[1,512], index: 4, kind: input, shape index: {}]   ;;  %s13746_s5 = inlined_call_operand.hbm [shape: bf16[512,1024], index: 5, kind: input, shape index: {}]   ;;  %s13747_s6 = inlined_call_operand.hbm [shape: f32[1,1024], index: 6, kind: input, shape index: {}]   ;;  %s13748_s7 = inlined_call_operand.hbm [shape: bf16[1024,512], index: 7, kind: input, shape index: {}]   ;;  %s13749_s8 = inlined_call_operand.hbm [shape: f32[1,512], index: 8, kind: input, shape index: {}]   ;;  %s13750_s9 = inlined_call_operand.hbm [shape: bf16[512,128], index: 9, kind: input, shape index: {}]   ;;  %s13751_s10 = inlined_call_operand.hbm [shape: f32[1,128], index: 10, kind: input, shape index: {}]   ;;  %s13752_s11 = inlined_call_operand.hbm [shape: f32[8,128], index: 11, kind: output, shape index: {}]  }
   0x1   :  { %17 = vsyncpa [#allocation6], 0 }
   0x2   :  { %18 = vsyncpa [#allocation9], 0 }
   0x3   :  { %19 = vsyncpa [#allocation12], 0 }
   0x4   :  { %20 = vsyncpa [#allocation15], 0 }
   0x5   :  { %21 = vsyncpa [#allocation18], 0  ;;  %s38_s19 = sshll.u32 %s13742_s1, 4  ;;  %s39_s19 = int_to_ptr.hbm [resolvable:$true] %s38_s19 }
   0x6   :  { %22 = vsyncpa [#allocation4], 0  ;;  %s13268_s20 = smov [#allocation5]   ;;  %s62_s24 = sshll.u32 %s13744_s3, 4  ;;  %s63_s24 = int_to_ptr.hbm [resolvable:$true] %s62_s24 }
   0x7   :  { %s40_s21 = sshll.u32 %s13268_s20, 4  ;;  %s13269_s25 = smov 128   ;;  %s41_s21 = int_to_ptr.vmem [resolvable:$true] %s40_s21 }
   0x8   :  { %s13270_s26 = smov 8   ;;  %s13271_s27 = smov [#allocation8]  }
   0x9   :  { %46 = dma.hbm_to_vmem [thread:$0]  %s39_s19, 49152, %s41_s21, [#allocation6], %s13269_s25, %s13269_s25, %s13270_s26  }
   0xa   :  { %s64_s28 = sshll.u32 %s13271_s27, 4  ;;  %s13272_s29 = smov 256   ;;  %s65_s28 = int_to_ptr.vmem [resolvable:$true] %s64_s28 }
   0xb   :  { %s13273_s30 = smov 16   ;;  %s86_s13 = sshll.u32 %s13746_s5, 4  ;;  %s87_s13 = int_to_ptr.hbm [resolvable:$true] %s86_s13 }
   0xc   :  { %70 = dma.hbm_to_vmem [thread:$0]  %s63_s24, 8192, %s65_s28, [#allocation9], %s13272_s29, %s13272_s29, %s13273_s30  }
   0xd   :  { %s13274_s14 = smov [#allocation11]   ;;  %s110_s17 = sshll.u32 %s13748_s7, 4  ;;  %s111_s17 = int_to_ptr.hbm [resolvable:$true] %s110_s17 }
   0xe   :  { %s88_s15 = sshll.u32 %s13274_s14, 4  ;;  %s13275_s18 = smov 512   ;;  %s89_s15 = int_to_ptr.vmem [resolvable:$true] %s88_s15 }
   0xf   :  { %s13276_s19 = smov 32   ;;  %s13277_s20 = smov [#allocation14]  }
  0x10   :  { %94 = dma.hbm_to_vmem [thread:$0]  %s87_s13, 32768, %s89_s15, [#allocation12], %s13275_s18, %s13275_s18, %s13276_s19  }
  0x11   :  { %s112_s21 = sshll.u32 %s13277_s20, 4  ;;  %s134_s24 = sshll.u32 %s13750_s9, 4  ;;  %s113_s21 = int_to_ptr.vmem [resolvable:$true] %s112_s21  ;;  %s135_s24 = int_to_ptr.hbm [resolvable:$true] %s134_s24 }
  0x12   :  { %118 = dma.hbm_to_vmem [thread:$0]  %s111_s17, 32768, %s113_s21, [#allocation15], %s13272_s29, %s13272_s29, %s13273_s30  }
  0x13   :  { %s13278_s5 = smov [#allocation17]   ;;  %s28_s7 = sshll.u32 %s13741_s0, 4  ;;  %s29_s7 = int_to_ptr.hbm [resolvable:$true] %s28_s7 }
  0x14   :  { %s136_s25 = sshll.u32 %s13278_s5, 4  ;;  %s13279_s28 = smov 64   ;;  %s137_s25 = int_to_ptr.vmem [resolvable:$true] %s136_s25 }
  0x15   :  { %s13280_s1 = smov 4   ;;  %s13281_s12 = smov [#allocation2]  }
  0x16   :  { %142 = dma.hbm_to_vmem [thread:$0]  %s135_s24, 4096, %s137_s25, [#allocation18], %s13279_s28, %s13279_s28, %s13280_s1  }
  0x17   :  { %s30_s13 = sshll.u32 %s13281_s12, 4  ;;  %s52_s9 = sshll.u32 %s13743_s2, 4  ;;  %s31_s13 = int_to_ptr.vmem [resolvable:$true] %s30_s13  ;;  %s53_s9 = int_to_ptr.hbm [resolvable:$true] %s52_s9 }
  0x18   :  { %33 = dma.hbm_to_vmem [thread:$0]  %s29_s7, 3072, %s31_s13, [#allocation3]  }
  0x19   :  { %s76_s16 = sshll.u32 %s13745_s4, 4  ;;  %s13282_s3 = smov [#allocation7]   ;;  %s77_s16 = int_to_ptr.hbm [resolvable:$true] %s76_s16 }
  0x1a   :  { %s54_s17 = sshll.u32 %s13282_s3, 4  ;;  %s13283_s0 = smov [#allocation10]   ;;  %s55_s17 = int_to_ptr.vmem [resolvable:$true] %s54_s17 }
  0x1b   :  { %57 = dma.hbm_to_vmem [thread:$0]  %s53_s9, 32, %s55_s17, [#allocation6]  }
  0x1c   :  { %s78_s18 = sshll.u32 %s13283_s0, 4  ;;  %s100_s21 = sshll.u32 %s13747_s6, 4  ;;  %s79_s18 = int_to_ptr.vmem [resolvable:$true] %s78_s18  ;;  %s101_s21 = int_to_ptr.hbm [resolvable:$true] %s100_s21 }
  0x1d   :  { %81 = dma.hbm_to_vmem [thread:$0]  %s77_s16, 64, %s79_s18, [#allocation9]  }
  0x1e   :  { %s124_s23 = sshll.u32 %s13749_s8, 4  ;;  %s13284_s24 = smov [#allocation13]   ;;  %s125_s23 = int_to_ptr.hbm [resolvable:$true] %s124_s23 }
  0x1f   :  { %s102_s4 = sshll.u32 %s13284_s24, 4  ;;  %s13285_s5 = smov [#allocation16]   ;;  %s103_s4 = int_to_ptr.vmem [resolvable:$true] %s102_s4 }
  0x20   :  { %105 = dma.hbm_to_vmem [thread:$0]  %s101_s21, 128, %s103_s4, [#allocation12]  }
  0x21   :  { %s126_s25 = sshll.u32 %s13285_s5, 4  ;;  %s148_s7 = sshll.u32 %s13751_s10, 4  ;;  %s127_s25 = int_to_ptr.vmem [resolvable:$true] %s126_s25  ;;  %s149_s7 = int_to_ptr.hbm [resolvable:$true] %s148_s7 }
  0x22   :  { %129 = dma.hbm_to_vmem [thread:$0]  %s125_s23, 64, %s127_s25, [#allocation15]  }
  0x23   :  { %s13286_s6 = smov [#allocation19]  }
  0x24   :  { %s150_s28 = sshll.u32 %s13286_s6, 4  ;;  %s151_s28 = int_to_ptr.vmem [resolvable:$true] %s150_s28 }
  0x25   :  { %153 = dma.hbm_to_vmem [thread:$0]  %s149_s7, 16, %s151_s28, [#allocation18]  }
  0x26   :  { %13254 = dma.done.wait [#allocation3], 3072  }
  0x27   :  { %13255 = vsyncadd [#allocation3], 4294964224 }
  0x28   :  { %13256 = dma.done.wait [#allocation6], 49184  }
  0x29   :  { %13257 = vsyncadd [#allocation6], 4294918112 }
  0x2a   :  { %13258 = dma.done.wait [#allocation9], 8256  }
  0x2b   :  { %13259 = vsyncadd [#allocation9], 4294959040 }
  0x2c   :  { %13260 = dma.done.wait [#allocation12], 32896  }
  0x2d   :  { %13261 = vsyncadd [#allocation12], 4294934400 }
  0x2e   :  { %13262 = dma.done.wait [#allocation15], 32832  }
  0x2f   :  { %13263 = vsyncadd [#allocation15], 4294934464 }
  0x30   :  { %13264 = dma.done.wait [#allocation18], 4112  }
  0x31   :  { %13265 = vsyncadd [#allocation18], 4294963184  ;;  %v8040_v0 = vld [vmem:[#allocation5 + $0x70] sm:$0xf]  ;;  %v11965_v1 = vld [vmem:[#allocation5 + $0x74] sm:$0xf0] }
  0x32   :  { %v8104_v2 = vld [vmem:[#allocation5 + $0xf0] sm:$0xf]  ;;  %v8041_v3 = vor.u32 %v11965_v1, %v8040_v0  ;;  %v11981_v4 = vld [vmem:[#allocation5 + $0xf4] sm:$0xf0]  ;;  %v8032_v11 = vld [vmem:[#allocation5 + $0x60] sm:$0xf] }
  0x33   :  { %v8168_v5 = vld [vmem:[#allocation5 + $0x170] sm:$0xf]  ;;  %v11997_v6 = vld [vmem:[#allocation5 + $0x174] sm:$0xf0]  ;;  %v8105_v7 = vor.u32 %v11981_v4, %v8104_v2  ;;  %v11963_v13 = vld [vmem:[#allocation5 + $0x64] sm:$0xf0] }
  0x34   :  { %v8169_v8 = vor.u32 %v11997_v6, %v8168_v5  ;;  %v8232_v9 = vld [vmem:[#allocation5 + $0x1f0] sm:$0xf]  ;;  %v12013_v10 = vld [vmem:[#allocation5 + $0x1f4] sm:$0xf0]  ;;  %2556 = vmatpush.bf16.msra.mxu0 %v8041_v3  ;;  %v8096_v14 = vld [vmem:[#allocation5 + $0xe0] sm:$0xf]  ;;  %v8033_v16 = vor.u32 %v11963_v13, %v8032_v11 }
  0x35   :  { %v8233_v12 = vor.u32 %v12013_v10, %v8232_v9  ;;  %v11979_v15 = vld [vmem:[#allocation5 + $0xe4] sm:$0xf0]  ;;  %2569 = vmatpush.bf16.msra.mxu1 %v8105_v7  ;;  %v8160_v18 = vld [vmem:[#allocation5 + $0x160] sm:$0xf]  ;;  %v8024_v23 = vld [vmem:[#allocation5 + $0x50] sm:$0xf] }
  0x36   :  { %2582 = vmatpush.bf16.msra.mxu2 %v8169_v8  ;;  %v8097_v17 = vor.u32 %v11979_v15, %v8096_v14  ;;  %v11995_v19 = vld [vmem:[#allocation5 + $0x164] sm:$0xf0]  ;;  %v8224_v20 = vld [vmem:[#allocation5 + $0x1e0] sm:$0xf]  ;;  %v11961_v24 = vld [vmem:[#allocation5 + $0x54] sm:$0xf0] }
  0x37   :  { %2595 = vmatpush.bf16.msra.mxu3 %v8233_v12  ;;  %v8161_v21 = vor.u32 %v11995_v19, %v8160_v18  ;;  %v12011_v22 = vld [vmem:[#allocation5 + $0x1e4] sm:$0xf0]  ;;  %v8088_v26 = vld [vmem:[#allocation5 + $0xd0] sm:$0xf]  ;;  %v11977_v27 = vld [vmem:[#allocation5 + $0xd4] sm:$0xf0]  ;;  %v8025_v29 = vor.u32 %v11961_v24, %v8024_v23 }
  0x38   :  { %v8225_v25 = vor.u32 %v12011_v22, %v8224_v20  ;;  %v8152_v28 = vld [vmem:[#allocation5 + $0x150] sm:$0xf]  ;;  %2557 = vmatpush.bf16.msra.mxu0 %v8033_v16  ;;  %v11993_v30 = vld [vmem:[#allocation5 + $0x154] sm:$0xf0]  ;;  %v8089_v33 = vor.u32 %v11977_v27, %v8088_v26  ;;  %v8016_v35 = vld [vmem:[#allocation5 + $0x40] sm:$0xf] }
  0x39   :  { %v8216_v31 = vld [vmem:[#allocation5 + $0x1d0] sm:$0xf]  ;;  %v12009_v32 = vld [vmem:[#allocation5 + $0x1d4] sm:$0xf0]  ;;  %2570 = vmatpush.bf16.msra.mxu1 %v8097_v17  ;;  %v8153_v34 = vor.u32 %v11993_v30, %v8152_v28  ;;  %v11959_v36 = vld [vmem:[#allocation5 + $0x44] sm:$0xf0] }
  0x3a   :  { %2583 = vmatpush.bf16.msra.mxu2 %v8161_v21  ;;  %v8080_v37 = vld [vmem:[#allocation5 + $0xc0] sm:$0xf]  ;;  %v8217_v38 = vor.u32 %v12009_v32, %v8216_v31  ;;  %v11975_v39 = vld [vmem:[#allocation5 + $0xc4] sm:$0xf0]  ;;  %v8017_v44 = vor.u32 %v11959_v36, %v8016_v35  ;;  %v8008_v47 = vld [vmem:[#allocation5 + $0x30] sm:$0xf] }
  0x3b   :  { %2596 = vmatpush.bf16.msra.mxu3 %v8225_v25  ;;  %v8144_v40 = vld [vmem:[#allocation5 + $0x140] sm:$0xf]  ;;  %v11991_v41 = vld [vmem:[#allocation5 + $0x144] sm:$0xf0]  ;;  %v8081_v45 = vor.u32 %v11975_v39, %v8080_v37  ;;  %v11957_v48 = vld [vmem:[#allocation5 + $0x34] sm:$0xf0] }
  0x3c   :  { %v8208_v42 = vld [vmem:[#allocation5 + $0x1c0] sm:$0xf]  ;;  %v12007_v43 = vld [vmem:[#allocation5 + $0x1c4] sm:$0xf0]  ;;  %2558 = vmatpush.bf16.msra.mxu0 %v8025_v29  ;;  %v8145_v46 = vor.u32 %v11991_v41, %v8144_v40  ;;  %v8072_v49 = vld [vmem:[#allocation5 + $0xb0] sm:$0xf]  ;;  %v8009_v56 = vor.u32 %v11957_v48, %v8008_v47 }
  0x3d   :  { %2571 = vmatpush.bf16.msra.mxu1 %v8089_v33  ;;  %v8209_v50 = vor.u32 %v12007_v43, %v8208_v42  ;;  %v11973_v51 = vld [vmem:[#allocation5 + $0xb4] sm:$0xf0]  ;;  %v8136_v52 = vld [vmem:[#allocation5 + $0x130] sm:$0xf]  ;;  %v8000_v59 = vld [vmem:[#allocation5 + $0x20] sm:$0xf] }
  0x3e   :  { %2584 = vmatpush.bf16.msra.mxu2 %v8153_v34  ;;  %v11989_v53 = vld [vmem:[#allocation5 + $0x134] sm:$0xf0]  ;;  %v8200_v54 = vld [vmem:[#allocation5 + $0x1b0] sm:$0xf]  ;;  %v8073_v57 = vor.u32 %v11973_v51, %v8072_v49  ;;  %v11955_v60 = vld [vmem:[#allocation5 + $0x24] sm:$0xf0] }
  0x3f   :  { %2597 = vmatpush.bf16.msra.mxu3 %v8217_v38  ;;  %v12005_v55 = vld [vmem:[#allocation5 + $0x1b4] sm:$0xf0]  ;;  %v8137_v58 = vor.u32 %v11989_v53, %v8136_v52  ;;  %v8064_v61 = vld [vmem:[#allocation5 + $0xa0] sm:$0xf]  ;;  %v11971_v63 = vld [vmem:[#allocation5 + $0xa4] sm:$0xf0]  ;;  %v8001_v4 = vor.u32 %v11955_v60, %v8000_v59 }
  0x40   :  { %2559 = vmatpush.bf16.msra.mxu0 %v8017_v44  ;;  %v8201_v62 = vor.u32 %v12005_v55, %v8200_v54  ;;  %v8128_v0 = vld [vmem:[#allocation5 + $0x120] sm:$0xf]  ;;  %v11987_v1 = vld [vmem:[#allocation5 + $0x124] sm:$0xf0]  ;;  %v8065_v5 = vor.u32 %v11971_v63, %v8064_v61  ;;  %v7992_v7 = vld [vmem:[#allocation5 + $0x10] sm:$0xf] }
  0x41   :  { %2572 = vmatpush.bf16.msra.mxu1 %v8081_v45  ;;  %v8192_v2 = vld [vmem:[#allocation5 + $0x1a0] sm:$0xf]  ;;  %v12003_v3 = vld [vmem:[#allocation5 + $0x1a4] sm:$0xf0]  ;;  %v8129_v6 = vor.u32 %v11987_v1, %v8128_v0  ;;  %v11953_v8 = vld [vmem:[#allocation5 + $0x14] sm:$0xf0] }
  0x42   :  { %2585 = vmatpush.bf16.msra.mxu2 %v8145_v46  ;;  %v8056_v9 = vld [vmem:[#allocation5 + $0x90] sm:$0xf]  ;;  %v8193_v10 = vor.u32 %v12003_v3, %v8192_v2  ;;  %v11969_v11 = vld [vmem:[#allocation5 + $0x94] sm:$0xf0]  ;;  %v7993_v16 = vor.u32 %v11953_v8, %v7992_v7  ;;  %v7984_v17 = vld [vmem:[#allocation5] sm:$0xf] }
  0x43   :  { %2598 = vmatpush.bf16.msra.mxu3 %v8209_v50  ;;  %v8120_v12 = vld [vmem:[#allocation5 + $0x110] sm:$0xf]  ;;  %v11985_v13 = vld [vmem:[#allocation5 + $0x114] sm:$0xf0]  ;;  %v11951_v18 = vld [vmem:[#allocation5 + $0x4] sm:$0xf0]  ;;  %v8057_v19 = vor.u32 %v11969_v11, %v8056_v9 }
  0x44   :  { %2560 = vmatpush.bf16.msra.mxu0 %v8009_v56  ;;  %v8184_v14 = vld [vmem:[#allocation5 + $0x190] sm:$0xf]  ;;  %v12001_v15 = vld [vmem:[#allocation5 + $0x194] sm:$0xf0]  ;;  %v8121_v20 = vor.u32 %v11985_v13, %v8120_v12  ;;  %v8048_v21 = vld [vmem:[#allocation5 + $0x80] sm:$0xf]  ;;  %v7985_v31 = vor.u32 %v11951_v18, %v7984_v17 }
  0x45   :  { %2573 = vmatpush.bf16.msra.mxu1 %v8073_v57  ;;  %v11967_v22 = vld [vmem:[#allocation5 + $0x84] sm:$0xf0]  ;;  %v8112_v23 = vld [vmem:[#allocation5 + $0x100] sm:$0xf]  ;;  %v8185_v24 = vor.u32 %v12001_v15, %v8184_v14  ;;  %v8296_v28 = vld [vmem:[#allocation5 + $0x270] sm:$0xf] }
  0x46   :  { %2586 = vmatpush.bf16.msra.mxu2 %v8137_v58  ;;  %v11983_v25 = vld [vmem:[#allocation5 + $0x104] sm:$0xf0]  ;;  %v8176_v26 = vld [vmem:[#allocation5 + $0x180] sm:$0xf]  ;;  %v12029_v29 = vld [vmem:[#allocation5 + $0x274] sm:$0xf0]  ;;  %v8049_v35 = vor.u32 %v11967_v22, %v8048_v21 }
  0x47   :  { %2599 = vmatpush.bf16.msra.mxu3 %v8201_v62  ;;  %v11999_v27 = vld [vmem:[#allocation5 + $0x184] sm:$0xf0]  ;;  %v8360_v30 = vld [vmem:[#allocation5 + $0x2f0] sm:$0xf]  ;;  %v12045_v32 = vld [vmem:[#allocation5 + $0x2f4] sm:$0xf0]  ;;  %v8113_v36 = vor.u32 %v11983_v25, %v8112_v23  ;;  %v8297_v40 = vor.u32 %v12029_v29, %v8296_v28 }
  0x48   :  { %2561 = vmatpush.bf16.msra.mxu0 %v8001_v4  ;;  %v8424_v33 = vld [vmem:[#allocation5 + $0x370] sm:$0xf]  ;;  %v12061_v34 = vld [vmem:[#allocation5 + $0x374] sm:$0xf0]  ;;  %v8177_v39 = vor.u32 %v11999_v27, %v8176_v26  ;;  %v8361_v41 = vor.u32 %v12045_v32, %v8360_v30  ;;  %v8288_v43 = vld [vmem:[#allocation5 + $0x260] sm:$0xf] }
  0x49   :  { %2574 = vmatpush.bf16.msra.mxu1 %v8065_v5  ;;  %v8488_v37 = vld [vmem:[#allocation5 + $0x3f0] sm:$0xf]  ;;  %v12077_v38 = vld [vmem:[#allocation5 + $0x3f4] sm:$0xf0]  ;;  %v8425_v42 = vor.u32 %v12061_v34, %v8424_v33  ;;  %v12027_v44 = vld [vmem:[#allocation5 + $0x264] sm:$0xf0] }
  0x4a   :  { %2587 = vmatpush.bf16.msra.mxu2 %v8129_v6  ;;  %v8352_v45 = vld [vmem:[#allocation5 + $0x2e0] sm:$0xf]  ;;  %v8489_v46 = vor.u32 %v12077_v38, %v8488_v37  ;;  %v12043_v47 = vld [vmem:[#allocation5 + $0x2e4] sm:$0xf0]  ;;  %v8289_v52 = vor.u32 %v12027_v44, %v8288_v43  ;;  %v8280_v53 = vld [vmem:[#allocation5 + $0x250] sm:$0xf] }
  0x4b   :  { %2600 = vmatpush.bf16.msra.mxu3 %v8193_v10  ;;  %v8416_v48 = vld [vmem:[#allocation5 + $0x360] sm:$0xf]  ;;  %v12059_v49 = vld [vmem:[#allocation5 + $0x364] sm:$0xf0]  ;;  %v8353_v54 = vor.u32 %v12043_v47, %v8352_v45  ;;  %v12025_v56 = vld [vmem:[#allocation5 + $0x254] sm:$0xf0] }
  0x4c   :  { %2562 = vmatpush.bf16.msra.mxu0 %v7993_v16  ;;  %v8480_v50 = vld [vmem:[#allocation5 + $0x3e0] sm:$0xf]  ;;  %v12075_v51 = vld [vmem:[#allocation5 + $0x3e4] sm:$0xf0]  ;;  %v8417_v55 = vor.u32 %v12059_v49, %v8416_v48  ;;  %v8344_v57 = vld [vmem:[#allocation5 + $0x2d0] sm:$0xf]  ;;  %v8281_v0 = vor.u32 %v12025_v56, %v8280_v53 }
  0x4d   :  { %2575 = vmatpush.bf16.msra.mxu1 %v8057_v19  ;;  %v12041_v58 = vld [vmem:[#allocation5 + $0x2d4] sm:$0xf0]  ;;  %v8481_v59 = vor.u32 %v12075_v51, %v8480_v50  ;;  %v8408_v60 = vld [vmem:[#allocation5 + $0x350] sm:$0xf]  ;;  %v8272_v2 = vld [vmem:[#allocation5 + $0x240] sm:$0xf] }
  0x4e   :  { %2588 = vmatpush.bf16.msra.mxu2 %v8121_v20  ;;  %v12057_v61 = vld [vmem:[#allocation5 + $0x354] sm:$0xf0]  ;;  %v8472_v62 = vld [vmem:[#allocation5 + $0x3d0] sm:$0xf]  ;;  %v8345_v1 = vor.u32 %v12041_v58, %v8344_v57  ;;  %v198_v4 = vld [vmem:[#allocation2] sm:$0xff]  ;;  %s13287_s8 = smov [#allocation20]  }
  0x4f   :  { %2601 = vmatpush.bf16.msra.mxu3 %v8185_v24  ;;  %v12073_v63 = vld [vmem:[#allocation5 + $0x3d4] sm:$0xf0]  ;;  %v200_v3 = vld [vmem:[#allocation2 + $0x10] sm:$0xff]  ;;  %v8409_v5 = vor.u32 %v12057_v61, %v8408_v60  ;;  %v12023_v6 = vld [vmem:[#allocation5 + $0x244] sm:$0xf0]  ;;  %v13383_v9 = vpack.c.bf16 %v198_v4, %v198_v4  ;;  %s7965_s10 = sshll.u32 %s13287_s8, 4  ;;  %s7966_s10 = int_to_ptr.vmem [resolvable:$true] %s7965_s10 }
  0x50   :  { %2563 = vmatpush.bf16.msra.mxu0 %v7985_v31  ;;  %v8336_v7 = vld [vmem:[#allocation5 + $0x2c0] sm:$0xf]  ;;  %v13381_v8 = vpack.c.bf16 %v200_v3, %v200_v3  ;;  %v201_v10 = vld [vmem:[#allocation2 + $0x18] sm:$0xff]  ;;  %v8473_v11 = vor.u32 %v12073_v63, %v8472_v62  ;;  %v12039_v12 = vld [vmem:[#allocation5 + $0x2c4] sm:$0xf0]  ;;  %v8273_v18 = vor.u32 %v12023_v6, %v8272_v2  ;;  %s7967_s13 = sshll.u32 %s13752_s11, 4  ;;  %s7968_s13 = int_to_ptr.hbm [resolvable:$true] %s7967_s13 }
  0x51   :  { %2576 = vmatpush.bf16.msra.mxu1 %v8049_v35  ;;  %v8400_v13 = vld [vmem:[#allocation5 + $0x340] sm:$0xf]  ;;  %v12055_v14 = vld [vmem:[#allocation5 + $0x344] sm:$0xf0]  ;;  %v13385_v15 = vpack.c.bf16 %v201_v10, %v201_v10  ;;  %v8337_v20 = vor.u32 %v12039_v12, %v8336_v7  ;;  %v8264_v22 = vld [vmem:[#allocation5 + $0x230] sm:$0xf] }
  0x52   :  { %2589 = vmatpush.bf16.msra.mxu2 %v8113_v36  ;;  %v8464_v16 = vld [vmem:[#allocation5 + $0x3c0] sm:$0xf]  ;;  %v12071_v17 = vld [vmem:[#allocation5 + $0x3c4] sm:$0xf0]  ;;  %v8401_v21 = vor.u32 %v12055_v14, %v8400_v13  ;;  %v12021_v23 = vld [vmem:[#allocation5 + $0x234] sm:$0xf0] }
  0x53   :  { %2602 = vmatpush.bf16.msra.mxu3 %v8177_v39  ;;  %2564 = vmatmul.bf16.vlgmr.msra.gmra.mxu0 %v13383_v9  ;;  %v199_v19 = vld [vmem:[#allocation2 + $0x8] sm:$0xff]  ;;  %v8328_v24 = vld [vmem:[#allocation5 + $0x2b0] sm:$0xf]  ;;  %v8465_v26 = vor.u32 %v12071_v17, %v8464_v16  ;;  %v12037_v27 = vld [vmem:[#allocation5 + $0x2b4] sm:$0xf0]  ;;  %v8265_v32 = vor.u32 %v12021_v23, %v8264_v22 }
  0x54   :  { %2608 = vmatpush.bf16.msrb.mxu0 %v8297_v40  ;;  %v13390_v25 = vpack.c.bf16 %v199_v19, %v199_v19  ;;  %v8392_v28 = vld [vmem:[#allocation5 + $0x330] sm:$0xf]  ;;  %v12053_v29 = vld [vmem:[#allocation5 + $0x334] sm:$0xf0]  ;;  %v8329_v33 = vor.u32 %v12037_v27, %v8328_v24  ;;  %v8256_v35 = vld [vmem:[#allocation5 + $0x220] sm:$0xf] }
  0x55   :  { %2621 = vmatpush.bf16.msrb.mxu1 %v8361_v41  ;;  %2590 = vmatmul.bf16.vlgmr.msra.gmra.mxu2 %v13381_v8  ;;  %v8456_v30 = vld [vmem:[#allocation5 + $0x3b0] sm:$0xf]  ;;  %v12069_v31 = vld [vmem:[#allocation5 + $0x3b4] sm:$0xf0]  ;;  %v8393_v34 = vor.u32 %v12053_v29, %v8392_v28  ;;  %v12019_v36 = vld [vmem:[#allocation5 + $0x224] sm:$0xf0] }
  0x56   :  { %2634 = vmatpush.bf16.msrb.mxu2 %v8425_v42  ;;  %2603 = vmatmul.bf16.vlgmr.msra.gmra.mxu3 %v13385_v15  ;;  %v8320_v37 = vld [vmem:[#allocation5 + $0x2a0] sm:$0xf]  ;;  %v8457_v38 = vor.u32 %v12069_v31, %v8456_v30  ;;  %v12035_v39 = vld [vmem:[#allocation5 + $0x2a4] sm:$0xf0]  ;;  %v8257_v44 = vor.u32 %v12019_v36, %v8256_v35  ;;  %v8248_v47 = vld [vmem:[#allocation5 + $0x210] sm:$0xf] }
  0x57   :  { %2647 = vmatpush.bf16.msrb.mxu3 %v8489_v46  ;;  %2577 = vmatmul.bf16.vlgmr.msra.gmra.mxu1 %v13390_v25  ;;  %v8384_v40 = vld [vmem:[#allocation5 + $0x320] sm:$0xf]  ;;  %v12051_v41 = vld [vmem:[#allocation5 + $0x324] sm:$0xf0]  ;;  %v8321_v45 = vor.u32 %v12035_v39, %v8320_v37  ;;  %v12017_v48 = vld [vmem:[#allocation5 + $0x214] sm:$0xf0] }
  0x58   :  { %2609 = vmatpush.bf16.msrb.mxu0 %v8289_v52  ;;  %v8448_v42 = vld [vmem:[#allocation5 + $0x3a0] sm:$0xf]  ;;  %v12067_v43 = vld [vmem:[#allocation5 + $0x3a4] sm:$0xf0]  ;;  %v8385_v46 = vor.u32 %v12051_v41, %v8384_v40  ;;  %v8312_v49 = vld [vmem:[#allocation5 + $0x290] sm:$0xf]  ;;  %v8249_v56 = vor.u32 %v12017_v48, %v8248_v47 }
  0x59   :  { %2622 = vmatpush.bf16.msrb.mxu1 %v8353_v54  ;;  %v8449_v50 = vor.u32 %v12067_v43, %v8448_v42  ;;  %v12033_v51 = vld [vmem:[#allocation5 + $0x294] sm:$0xf0]  ;;  %v8376_v52 = vld [vmem:[#allocation5 + $0x310] sm:$0xf]  ;;  %v8240_v57 = vld [vmem:[#allocation5 + $0x200] sm:$0xf] }
  0x5a   :  { %2635 = vmatpush.bf16.msrb.mxu2 %v8417_v55  ;;  %v12049_v53 = vld [vmem:[#allocation5 + $0x314] sm:$0xf0]  ;;  %v8440_v54 = vld [vmem:[#allocation5 + $0x390] sm:$0xf]  ;;  %v12015_v58 = vld [vmem:[#allocation5 + $0x204] sm:$0xf0] }
  0x5b   :  { %2648 = vmatpush.bf16.msrb.mxu3 %v8481_v59  ;;  %v12065_v55 = vld [vmem:[#allocation5 + $0x394] sm:$0xf0]  ;;  %v8313_v59 = vor.u32 %v12033_v51, %v8312_v49  ;;  %v8377_v60 = vor.u32 %v12049_v53, %v8376_v52  ;;  %v8304_v61 = vld [vmem:[#allocation5 + $0x280] sm:$0xf]  ;;  %v12031_v62 = vld [vmem:[#allocation5 + $0x284] sm:$0xf0]  ;;  %v8241_v7 = vor.u32 %v12015_v58, %v8240_v57 }
  0x5c   :  { %2610 = vmatpush.bf16.msrb.mxu0 %v8281_v0  ;;  %v8368_v63 = vld [vmem:[#allocation5 + $0x300] sm:$0xf]  ;;  %v8441_v0 = vor.u32 %v12065_v55, %v8440_v54  ;;  %v12063_v3 = vld [vmem:[#allocation5 + $0x384] sm:$0xf0]  ;;  %v8552_v4 = vld [vmem:[#allocation5 + $0x470] sm:$0xf]  ;;  %v8305_v13 = vor.u32 %v12031_v62, %v8304_v61 }
  0x5d   :  { %2623 = vmatpush.bf16.msrb.mxu1 %v8345_v1  ;;  %v12047_v1 = vld [vmem:[#allocation5 + $0x304] sm:$0xf0]  ;;  %v8432_v2 = vld [vmem:[#allocation5 + $0x380] sm:$0xf]  ;;  %v8616_v6 = vld [vmem:[#allocation5 + $0x4f0] sm:$0xf] }
  0x5e   :  { %2636 = vmatpush.bf16.msrb.mxu2 %v8409_v5  ;;  %v12093_v5 = vld [vmem:[#allocation5 + $0x474] sm:$0xf0]  ;;  %v8369_v14 = vor.u32 %v12047_v1, %v8368_v63  ;;  %v8744_v16 = vld [vmem:[#allocation5 + $0x5f0] sm:$0xf]  ;;  %v8433_v19 = vor.u32 %v12063_v3, %v8432_v2  ;;  %v202_v22 = vld [vmem:[#allocation2 + $0x20] sm:$0xff] }
  0x5f   :  { %2649 = vmatpush.bf16.msrb.mxu3 %v8473_v11  ;;  %v12109_v10 = vld [vmem:[#allocation5 + $0x4f4] sm:$0xf0]  ;;  %v8680_v11 = vld [vmem:[#allocation5 + $0x570] sm:$0xf]  ;;  %v12091_v27 = vld [vmem:[#allocation5 + $0x464] sm:$0xf0]  ;;  %v13395_v37 = vpack.c.bf16 %v202_v22, %v202_v22 }
  0x60   :  { %2611 = vmatpush.bf16.msrb.mxu0 %v8273_v18  ;;  %v12125_v12 = vld [vmem:[#allocation5 + $0x574] sm:$0xf0]  ;;  %v204_v18 = vld [vmem:[#allocation2 + $0x30] sm:$0xff]  ;;  %v8617_v24 = vor.u32 %v12109_v10, %v8616_v6  ;;  %v8608_v28 = vld [vmem:[#allocation5 + $0x4e0] sm:$0xf] }
  0x61   :  { %2624 = vmatpush.bf16.msrb.mxu1 %v8337_v20  ;;  %v12141_v17 = vld [vmem:[#allocation5 + $0x5f4] sm:$0xf0]  ;;  %v8553_v20 = vor.u32 %v12093_v5, %v8552_v4  ;;  %v203_v29 = vld [vmem:[#allocation2 + $0x28] sm:$0xff]  ;;  %v8736_v35 = vld [vmem:[#allocation5 + $0x5e0] sm:$0xf] }
  0x62   :  { %2637 = vmatpush.bf16.msrb.mxu2 %v8401_v21  ;;  %v8544_v21 = vld [vmem:[#allocation5 + $0x460] sm:$0xf]  ;;  %v205_v23 = vld [vmem:[#allocation2 + $0x38] sm:$0xff]  ;;  %v8745_v30 = vor.u32 %v12141_v17, %v8744_v16  ;;  %v12107_v31 = vld [vmem:[#allocation5 + $0x4e4] sm:$0xf0]  ;;  %v13399_v40 = vpack.c.bf16 %v203_v29, %v203_v29 }
  0x63   :  { %2650 = vmatpush.bf16.msrb.mxu3 %v8465_v26  ;;  %v8681_v26 = vor.u32 %v12125_v12, %v8680_v11  ;;  %v12139_v36 = vld [vmem:[#allocation5 + $0x5e4] sm:$0xf0]  ;;  %v8545_v39 = vor.u32 %v12091_v27, %v8544_v21  ;;  %v8609_v41 = vor.u32 %v12107_v31, %v8608_v28  ;;  %v8536_v43 = vld [vmem:[#allocation5 + $0x450] sm:$0xf]  ;;  %v12105_v47 = vld [vmem:[#allocation5 + $0x4d4] sm:$0xf0] }
  0x64   :  { %2612 = vmatpush.bf16.msrb.mxu0 %v8265_v32  ;;  %v8672_v32 = vld [vmem:[#allocation5 + $0x560] sm:$0xf]  ;;  %v8664_v48 = vld [vmem:[#allocation5 + $0x550] sm:$0xf]  ;;  %v12121_v49 = vld [vmem:[#allocation5 + $0x554] sm:$0xf0] }
  0x65   :  { %2625 = vmatpush.bf16.msrb.mxu1 %v8329_v33  ;;  %v12123_v33 = vld [vmem:[#allocation5 + $0x564] sm:$0xf0]  ;;  %v12137_v51 = vld [vmem:[#allocation5 + $0x5d4] sm:$0xf0]  ;;  %v8665_v54 = vor.u32 %v12121_v49, %v8664_v48  ;;  %v8528_v55 = vld [vmem:[#allocation5 + $0x440] sm:$0xf] }
  0x66   :  { %2638 = vmatpush.bf16.msrb.mxu2 %v8393_v34  ;;  %v13393_v34 = vpack.c.bf16 %v204_v18, %v204_v18  ;;  %v8673_v42 = vor.u32 %v12123_v33, %v8672_v32  ;;  %v8592_v57 = vld [vmem:[#allocation5 + $0x4c0] sm:$0xf]  ;;  %v12119_v61 = vld [vmem:[#allocation5 + $0x544] sm:$0xf0]  ;;  %v8520_v3 = vld [vmem:[#allocation5 + $0x430] sm:$0xf] }
  0x67   :  { %2651 = vmatpush.bf16.msrb.mxu3 %v8457_v38  ;;  %v13397_v38 = vpack.c.bf16 %v205_v23, %v205_v23  ;;  %v8720_v62 = vld [vmem:[#allocation5 + $0x5c0] sm:$0xf]  ;;  %v12135_v63 = vld [vmem:[#allocation5 + $0x5c4] sm:$0xf0]  ;;  %v12085_v4 = vld [vmem:[#allocation5 + $0x434] sm:$0xf0] }
  0x68   :  { %2613 = vmatpush.bf16.msrb.mxu0 %v8257_v44  ;;  %v12089_v44 = vld [vmem:[#allocation5 + $0x454] sm:$0xf0]  ;;  %v8584_v5 = vld [vmem:[#allocation5 + $0x4b0] sm:$0xf]  ;;  %v8721_v6 = vor.u32 %v12135_v63, %v8720_v62  ;;  %v8512_v18 = vld [vmem:[#allocation5 + $0x420] sm:$0xf] }
  0x69   :  { %2626 = vmatpush.bf16.msrb.mxu1 %v8321_v45  ;;  %v8600_v45 = vld [vmem:[#allocation5 + $0x4d0] sm:$0xf]  ;;  %v8537_v52 = vor.u32 %v12089_v44, %v8536_v43  ;;  %v12117_v11 = vld [vmem:[#allocation5 + $0x534] sm:$0xf0]  ;;  %v12099_v22 = vld [vmem:[#allocation5 + $0x4a4] sm:$0xf0] }
  0x6a   :  { %2639 = vmatpush.bf16.msrb.mxu2 %v8385_v46  ;;  %v8737_v46 = vor.u32 %v12139_v36, %v8736_v35  ;;  %v8601_v53 = vor.u32 %v12105_v47, %v8600_v45  ;;  %v8648_v10 = vld [vmem:[#allocation5 + $0x530] sm:$0xf]  ;;  %v8640_v23 = vld [vmem:[#allocation5 + $0x520] sm:$0xf]  ;;  %v12131_v27 = vld [vmem:[#allocation5 + $0x5a4] sm:$0xf0] }
  0x6b   :  { %2652 = vmatpush.bf16.msrb.mxu3 %v8449_v50  ;;  %v8728_v50 = vld [vmem:[#allocation5 + $0x5d0] sm:$0xf]  ;;  %v8649_v17 = vor.u32 %v12117_v11, %v8648_v10  ;;  %v12081_v32 = vld [vmem:[#allocation5 + $0x414] sm:$0xf0]  ;;  %v8496_v45 = vld [vmem:[#allocation5 + $0x400] sm:$0xf] }
  0x6c   :  { %2614 = vmatpush.bf16.msrb.mxu0 %v8249_v56  ;;  %v12087_v56 = vld [vmem:[#allocation5 + $0x444] sm:$0xf0]  ;;  %v8729_v58 = vor.u32 %v12137_v51, %v8728_v50  ;;  %v8712_v12 = vld [vmem:[#allocation5 + $0x5b0] sm:$0xf]  ;;  %v12097_v36 = vld [vmem:[#allocation5 + $0x494] sm:$0xf0] }
  0x6d   :  { %2627 = vmatpush.bf16.msrb.mxu1 %v8313_v59  ;;  %v12103_v59 = vld [vmem:[#allocation5 + $0x4c4] sm:$0xf0]  ;;  %v8504_v31 = vld [vmem:[#allocation5 + $0x410] sm:$0xf]  ;;  %v12129_v43 = vld [vmem:[#allocation5 + $0x594] sm:$0xf0] }
  0x6e   :  { %2640 = vmatpush.bf16.msrb.mxu2 %v8377_v60  ;;  %v8656_v60 = vld [vmem:[#allocation5 + $0x540] sm:$0xf]  ;;  %v8593_v1 = vor.u32 %v12103_v59, %v8592_v57  ;;  %v8568_v33 = vld [vmem:[#allocation5 + $0x490] sm:$0xf]  ;;  %v8505_v44 = vor.u32 %v12081_v32, %v8504_v31  ;;  %v12095_v50 = vld [vmem:[#allocation5 + $0x484] sm:$0xf0] }
  0x6f   :  { %2653 = vmatpush.bf16.msrb.mxu3 %v8441_v0  ;;  %v8529_v0 = vor.u32 %v12087_v56, %v8528_v55  ;;  %v8657_v2 = vor.u32 %v12119_v61, %v8656_v60  ;;  %v8560_v47 = vld [vmem:[#allocation5 + $0x480] sm:$0xf]  ;;  %v8569_v48 = vor.u32 %v12097_v36, %v8568_v33  ;;  %v12127_v55 = vld [vmem:[#allocation5 + $0x584] sm:$0xf0]  ;;  %v8808_v56 = vld [vmem:[#allocation5 + $0x670] sm:$0xf] }
  0x70   :  { %2615 = vmatpush.bf16.msrb.mxu0 %v8241_v7  ;;  %v12101_v7 = vld [vmem:[#allocation5 + $0x4b4] sm:$0xf0]  ;;  %v8624_v51 = vld [vmem:[#allocation5 + $0x500] sm:$0xf]  ;;  %v8936_v61 = vld [vmem:[#allocation5 + $0x770] sm:$0xf]  ;;  %v8561_v63 = vor.u32 %v12095_v50, %v8560_v47 }
  0x71   :  { %2628 = vmatpush.bf16.msrb.mxu1 %v8305_v13  ;;  %v12133_v13 = vld [vmem:[#allocation5 + $0x5b4] sm:$0xf0]  ;;  %v8585_v16 = vor.u32 %v12101_v7, %v8584_v5  ;;  %v207_v7 = vld [vmem:[#allocation2 + $0x48] sm:$0xff]  ;;  %v8792_v31 = vld [vmem:[#allocation5 + $0x650] sm:$0xf] }
  0x72   :  { %2641 = vmatpush.bf16.msrb.mxu2 %v8369_v14  ;;  %v8521_v14 = vor.u32 %v12085_v4, %v8520_v3  ;;  %v8713_v21 = vor.u32 %v12133_v13, %v8712_v12  ;;  %v12157_v57 = vld [vmem:[#allocation5 + $0x674] sm:$0xf0]  ;;  %v206_v3 = vld [vmem:[#allocation2 + $0x40] sm:$0xff]  ;;  %v8856_v33 = vld [vmem:[#allocation5 + $0x6d0] sm:$0xf] }
  0x73   :  { %2654 = vmatpush.bf16.msrb.mxu3 %v8433_v19  ;;  %2616 = vmatmul.bf16.vlgmr.msrb.gmra.mxu0 %v13395_v37  ;;  %v12083_v19 = vld [vmem:[#allocation5 + $0x424] sm:$0xf0]  ;;  %v12173_v60 = vld [vmem:[#allocation5 + $0x6f4] sm:$0xf0]  ;;  %v8809_v5 = vor.u32 %v12157_v57, %v8808_v56  ;;  %v8800_v13 = vld [vmem:[#allocation5 + $0x660] sm:$0xf] }
  0x74   :  { %2660 = vmatpush.bf16.msra.mxu0 %v8553_v20  ;;  %2629 = vmatmul.bf16.vlgmr.msrb.gmra.mxu1 %v13399_v40  ;;  %v8576_v20 = vld [vmem:[#allocation5 + $0x4a0] sm:$0xf]  ;;  %v8513_v28 = vor.u32 %v12083_v19, %v8512_v18  ;;  %v12189_v62 = vld [vmem:[#allocation5 + $0x774] sm:$0xf0]  ;;  %v13405_v18 = vpack.c.bf16 %v206_v3, %v206_v3  ;;  %v12171_v19 = vld [vmem:[#allocation5 + $0x6e4] sm:$0xf0] }
  0x75   :  { %2673 = vmatpush.bf16.msra.mxu1 %v8617_v24  ;;  %2642 = vmatmul.bf16.vlgmr.msrb.gmra.mxu2 %v13393_v34  ;;  %v12115_v24 = vld [vmem:[#allocation5 + $0x524] sm:$0xf0]  ;;  %v8577_v29 = vor.u32 %v12099_v22, %v8576_v20  ;;  %v209_v10 = vld [vmem:[#allocation2 + $0x58] sm:$0xff]  ;;  %v8937_v12 = vor.u32 %v12189_v62, %v8936_v61  ;;  %v8928_v20 = vld [vmem:[#allocation5 + $0x760] sm:$0xf] }
  0x76   :  { %2686 = vmatpush.bf16.msra.mxu2 %v8681_v26  ;;  %2655 = vmatmul.bf16.vlgmr.msrb.gmra.mxu3 %v13397_v38  ;;  %v8704_v26 = vld [vmem:[#allocation5 + $0x5a0] sm:$0xf]  ;;  %v12153_v32 = vld [vmem:[#allocation5 + $0x654] sm:$0xf0]  ;;  %v8840_v61 = vld [vmem:[#allocation5 + $0x6b0] sm:$0xf] }
  0x77   :  { %2699 = vmatpush.bf16.msra.mxu3 %v8745_v30  ;;  %v8641_v30 = vor.u32 %v12115_v24, %v8640_v23  ;;  %v8705_v35 = vor.u32 %v12131_v27, %v8704_v26  ;;  %v13409_v23 = vpack.c.bf16 %v207_v7, %v207_v7  ;;  %v8992_v24 = vld [vmem:[#allocation5 + $0x7e0] sm:$0xf]  ;;  %v12203_v26 = vld [vmem:[#allocation5 + $0x7e4] sm:$0xf0]  ;;  %v13411_v27 = vpack.c.bf16 %v209_v10, %v209_v10  ;;  %v12169_v36 = vld [vmem:[#allocation5 + $0x6d4] sm:$0xf0] }
  0x78   :  { %2661 = vmatpush.bf16.msra.mxu0 %v8545_v39  ;;  %v8632_v39 = vld [vmem:[#allocation5 + $0x510] sm:$0xf]  ;;  %v8784_v47 = vld [vmem:[#allocation5 + $0x640] sm:$0xf]  ;;  %v12197_v3 = vld [vmem:[#allocation5 + $0x7b4] sm:$0xf0] }
  0x79   :  { %2674 = vmatpush.bf16.msra.mxu1 %v8609_v41  ;;  %v12113_v41 = vld [vmem:[#allocation5 + $0x514] sm:$0xf0]  ;;  %v8768_v7 = vld [vmem:[#allocation5 + $0x620] sm:$0xf]  ;;  %v12147_v10 = vld [vmem:[#allocation5 + $0x624] sm:$0xf0] }
  0x7a   :  { %2687 = vmatpush.bf16.msra.mxu2 %v8673_v42  ;;  %v8696_v42 = vld [vmem:[#allocation5 + $0x590] sm:$0xf]  ;;  %v8633_v49 = vor.u32 %v12113_v41, %v8632_v39  ;;  %v12185_v41 = vld [vmem:[#allocation5 + $0x754] sm:$0xf0] }
  0x7b   :  { %2700 = vmatpush.bf16.msra.mxu3 %v8737_v46  ;;  %v12079_v46 = vld [vmem:[#allocation5 + $0x404] sm:$0xf0]  ;;  %v8920_v39 = vld [vmem:[#allocation5 + $0x750] sm:$0xf] }
  0x7c   :  { %2662 = vmatpush.bf16.msra.mxu0 %v8537_v52  ;;  %v12111_v52 = vld [vmem:[#allocation5 + $0x504] sm:$0xf0]  ;;  %v8497_v59 = vor.u32 %v12079_v46, %v8496_v45  ;;  %v8857_v45 = vor.u32 %v12169_v36, %v8856_v33  ;;  %v8921_v46 = vor.u32 %v12185_v41, %v8920_v39  ;;  %v12177_v33 = vld [vmem:[#allocation5 + $0x714] sm:$0xf0]  ;;  %v8752_v41 = vld [vmem:[#allocation5 + $0x600] sm:$0xf] }
  0x7d   :  { %2675 = vmatpush.bf16.msra.mxu1 %v8601_v53  ;;  %v8697_v53 = vor.u32 %v12129_v43, %v8696_v42  ;;  %v8984_v42 = vld [vmem:[#allocation5 + $0x7d0] sm:$0xf]  ;;  %v12201_v43 = vld [vmem:[#allocation5 + $0x7d4] sm:$0xf0] }
  0x7e   :  { %2688 = vmatpush.bf16.msra.mxu2 %v8665_v54  ;;  %v8688_v54 = vld [vmem:[#allocation5 + $0x580] sm:$0xf]  ;;  %v8985_v50 = vor.u32 %v12201_v43, %v8984_v42  ;;  %v12193_v36 = vld [vmem:[#allocation5 + $0x794] sm:$0xf0]  ;;  %v12143_v42 = vld [vmem:[#allocation5 + $0x604] sm:$0xf0] }
  0x7f   :  { %2701 = vmatpush.bf16.msra.mxu3 %v8729_v58  ;;  %v8872_v58 = vld [vmem:[#allocation5 + $0x6f0] sm:$0xf]  ;;  %v8689_v4 = vor.u32 %v12127_v55, %v8688_v54  ;;  %v8976_v54 = vld [vmem:[#allocation5 + $0x7c0] sm:$0xf]  ;;  %v12199_v55 = vld [vmem:[#allocation5 + $0x7c4] sm:$0xf0] }
  0x80   :  { %2663 = vmatpush.bf16.msra.mxu0 %v8529_v0  ;;  %v8625_v0 = vor.u32 %v12111_v52, %v8624_v51  ;;  %v8873_v11 = vor.u32 %v12173_v60, %v8872_v58  ;;  %v12167_v51 = vld [vmem:[#allocation5 + $0x6c4] sm:$0xf0]  ;;  %v8912_v52 = vld [vmem:[#allocation5 + $0x740] sm:$0xf]  ;;  %v12149_v60 = vld [vmem:[#allocation5 + $0x634] sm:$0xf0]  ;;  %v8977_v62 = vor.u32 %v12199_v55, %v8976_v54  ;;  %v8753_v55 = vor.u32 %v12143_v42, %v8752_v41 }
  0x81   :  { %2676 = vmatpush.bf16.msra.mxu1 %v8593_v1  ;;  %v9000_v1 = vld [vmem:[#allocation5 + $0x7f0] sm:$0xf]  ;;  %v12249_v41 = vld [vmem:[#allocation5 + $0x954] sm:$0xf0] }
  0x82   :  { %2689 = vmatpush.bf16.msra.mxu2 %v8657_v2  ;;  %v12205_v2 = vld [vmem:[#allocation5 + $0x7f4] sm:$0xf0]  ;;  %v9128_v54 = vld [vmem:[#allocation5 + $0x8f0] sm:$0xf] }
  0x83   :  { %2702 = vmatpush.bf16.msra.mxu3 %v8721_v6  ;;  %v208_v6 = vld [vmem:[#allocation2 + $0x50] sm:$0xff] }
  0x84   :  { %2664 = vmatpush.bf16.msra.mxu0 %v8521_v14  ;;  %v12155_v14 = vld [vmem:[#allocation5 + $0x664] sm:$0xf0]  ;;  %v13407_v22 = vpack.c.bf16 %v208_v6, %v208_v6  ;;  %v9240_v42 = vld [vmem:[#allocation5 + $0x9d0] sm:$0xf] }
  0x85   :  { %2677 = vmatpush.bf16.msra.mxu1 %v8585_v16  ;;  %v8864_v16 = vld [vmem:[#allocation5 + $0x6e0] sm:$0xf] }
  0x86   :  { %2690 = vmatpush.bf16.msra.mxu2 %v8649_v17  ;;  %v9001_v17 = vor.u32 %v12205_v2, %v9000_v1  ;;  %v12181_v1 = vld [vmem:[#allocation5 + $0x734] sm:$0xf0]  ;;  %v8968_v2 = vld [vmem:[#allocation5 + $0x7b0] sm:$0xf] }
  0x87   :  { %2703 = vmatpush.bf16.msra.mxu3 %v8713_v21  ;;  %v12187_v21 = vld [vmem:[#allocation5 + $0x764] sm:$0xf0] }
  0x88   :  { %2665 = vmatpush.bf16.msra.mxu0 %v8513_v28  ;;  %v8801_v28 = vor.u32 %v12155_v14, %v8800_v13  ;;  %v12163_v13 = vld [vmem:[#allocation5 + $0x6a4] sm:$0xf0]  ;;  %v8896_v14 = vld [vmem:[#allocation5 + $0x720] sm:$0xf] }
  0x89   :  { %2678 = vmatpush.bf16.msra.mxu1 %v8577_v29  ;;  %v8865_v29 = vor.u32 %v12171_v19, %v8864_v16  ;;  %v12179_v16 = vld [vmem:[#allocation5 + $0x724] sm:$0xf0] }
  0x8a   :  { %2691 = vmatpush.bf16.msra.mxu2 %v8641_v30  ;;  %v8929_v30 = vor.u32 %v12187_v21, %v8928_v20  ;;  %v12195_v19 = vld [vmem:[#allocation5 + $0x7a4] sm:$0xf0]  ;;  %v8769_v20 = vor.u32 %v12147_v10, %v8768_v7  ;;  %v9056_v7 = vld [vmem:[#allocation5 + $0x860] sm:$0xf] }
  0x8b   :  { %2704 = vmatpush.bf16.msra.mxu3 %v8705_v35  ;;  %v8993_v35 = vor.u32 %v12203_v26, %v8992_v24  ;;  %v8897_v24 = vor.u32 %v12179_v16, %v8896_v14  ;;  %v8760_v26 = vld [vmem:[#allocation5 + $0x610] sm:$0xf]  ;;  %v12219_v10 = vld [vmem:[#allocation5 + $0x864] sm:$0xf0]  ;;  %v9184_v16 = vld [vmem:[#allocation5 + $0x960] sm:$0xf] }
  0x8c   :  { %2666 = vmatpush.bf16.msra.mxu0 %v8505_v44  ;;  %v8793_v44 = vor.u32 %v12153_v32, %v8792_v31  ;;  %v12161_v31 = vld [vmem:[#allocation5 + $0x694] sm:$0xf0]  ;;  %v8888_v32 = vld [vmem:[#allocation5 + $0x710] sm:$0xf]  ;;  %v12235_v14 = vld [vmem:[#allocation5 + $0x8e4] sm:$0xf0] }
  0x8d   :  { %2679 = vmatpush.bf16.msra.mxu1 %v8569_v48  ;;  %v12151_v48 = vld [vmem:[#allocation5 + $0x644] sm:$0xf0] }
  0x8e   :  { %2692 = vmatpush.bf16.msra.mxu2 %v8633_v49  ;;  %v8848_v49 = vld [vmem:[#allocation5 + $0x6c0] sm:$0xf]  ;;  %v8785_v56 = vor.u32 %v12151_v48, %v8784_v47 }
  0x8f   :  { %2705 = vmatpush.bf16.msra.mxu3 %v8697_v53  ;;  %v12183_v53 = vld [vmem:[#allocation5 + $0x744] sm:$0xf0]  ;;  %v8849_v57 = vor.u32 %v12167_v51, %v8848_v49  ;;  %v8880_v47 = vld [vmem:[#allocation5 + $0x700] sm:$0xf] }
  0x90   :  { %2667 = vmatpush.bf16.msra.mxu0 %v8497_v59  ;;  %v8913_v58 = vor.u32 %v12183_v53, %v8912_v52  ;;  %v8776_v59 = vld [vmem:[#allocation5 + $0x630] sm:$0xf]  ;;  %v12175_v49 = vld [vmem:[#allocation5 + $0x704] sm:$0xf0]  ;;  %v12221_v53 = vld [vmem:[#allocation5 + $0x874] sm:$0xf0] }
  0x91   :  { %2680 = vmatpush.bf16.msra.mxu1 %v8561_v63  ;;  %v12165_v63 = vld [vmem:[#allocation5 + $0x6b4] sm:$0xf0]  ;;  %v12191_v51 = vld [vmem:[#allocation5 + $0x784] sm:$0xf0]  ;;  %v9064_v52 = vld [vmem:[#allocation5 + $0x870] sm:$0xf] }
  0x92   :  { %2693 = vmatpush.bf16.msra.mxu2 %v8625_v0  ;;  %v8904_v0 = vld [vmem:[#allocation5 + $0x730] sm:$0xf] }
  0x93   :  { %2706 = vmatpush.bf16.msra.mxu3 %v8689_v4  ;;  %2668 = vmatmul.bf16.vlgmr.msra.gmra.mxu0 %v13405_v18  ;;  %v8777_v4 = vor.u32 %v12149_v60, %v8776_v59  ;;  %v8905_v6 = vor.u32 %v12181_v1, %v8904_v0  ;;  %v8881_v60 = vor.u32 %v12175_v49, %v8880_v47  ;;  %v9040_v47 = vld [vmem:[#allocation5 + $0x840] sm:$0xf] }
  0x94   :  { %2712 = vmatpush.bf16.msrb.mxu0 %v8809_v5  ;;  %2681 = vmatmul.bf16.vlgmr.msra.gmra.mxu1 %v13409_v23  ;;  %v8841_v5 = vor.u32 %v12165_v63, %v8840_v61  ;;  %v9256_v61 = vld [vmem:[#allocation5 + $0x9f0] sm:$0xf]  ;;  %v210_v63 = vld [vmem:[#allocation2 + $0x60] sm:$0xff]  ;;  %v9065_v1 = vor.u32 %v12221_v53, %v9064_v52  ;;  %v12247_v53 = vld [vmem:[#allocation5 + $0x944] sm:$0xf0] }
  0x95   :  { %2725 = vmatpush.bf16.msrb.mxu1 %v8873_v11  ;;  %2694 = vmatmul.bf16.vlgmr.msra.gmra.mxu2 %v13407_v22  ;;  %v8832_v11 = vld [vmem:[#allocation5 + $0x6a0] sm:$0xf] }
  0x96   :  { %2738 = vmatpush.bf16.msrb.mxu2 %v8937_v12  ;;  %2707 = vmatmul.bf16.vlgmr.msra.gmra.mxu3 %v13411_v27  ;;  %v8969_v12 = vor.u32 %v12197_v3, %v8968_v2  ;;  %v8833_v21 = vor.u32 %v12163_v13, %v8832_v11  ;;  %v212_v2 = vld [vmem:[#allocation2 + $0x70] sm:$0xff]  ;;  %v211_v3 = vld [vmem:[#allocation2 + $0x68] sm:$0xff]  ;;  %v9120_v11 = vld [vmem:[#allocation5 + $0x8e0] sm:$0xf]  ;;  %v13417_v13 = vpack.c.bf16 %v210_v63, %v210_v63 }
  0x97   :  { %2751 = vmatpush.bf16.msrb.mxu3 %v9001_v17  ;;  %v8960_v17 = vld [vmem:[#allocation5 + $0x7a0] sm:$0xf]  ;;  %v12229_v63 = vld [vmem:[#allocation5 + $0x8b4] sm:$0xf0] }
  0x98   :  { %2713 = vmatpush.bf16.msrb.mxu0 %v8801_v28  ;;  %v12145_v28 = vld [vmem:[#allocation5 + $0x614] sm:$0xf0]  ;;  %v9104_v49 = vld [vmem:[#allocation5 + $0x8c0] sm:$0xf] }
  0x99   :  { %2726 = vmatpush.bf16.msrb.mxu1 %v8865_v29  ;;  %v8824_v29 = vld [vmem:[#allocation5 + $0x690] sm:$0xf]  ;;  %v8761_v39 = vor.u32 %v12145_v28, %v8760_v26  ;;  %v9057_v28 = vor.u32 %v12219_v10, %v9056_v7  ;;  %v9168_v52 = vld [vmem:[#allocation5 + $0x940] sm:$0xf]  ;;  %v12211_v10 = vld [vmem:[#allocation5 + $0x824] sm:$0xf0] }
  0x9a   :  { %2739 = vmatpush.bf16.msrb.mxu2 %v8929_v30  ;;  %v8961_v30 = vor.u32 %v12195_v19, %v8960_v17  ;;  %v8825_v43 = vor.u32 %v12161_v31, %v8824_v29  ;;  %v12251_v17 = vld [vmem:[#allocation5 + $0x964] sm:$0xf0]  ;;  %v13419_v19 = vpack.c.bf16 %v212_v2, %v212_v2  ;;  %v9121_v29 = vor.u32 %v12235_v14, %v9120_v11  ;;  %v9048_v31 = vld [vmem:[#allocation5 + $0x850] sm:$0xf]  ;;  %v9024_v7 = vld [vmem:[#allocation5 + $0x820] sm:$0xf] }
  0x9b   :  { %2752 = vmatpush.bf16.msrb.mxu3 %v8993_v35  ;;  %v8952_v35 = vld [vmem:[#allocation5 + $0x790] sm:$0xf]  ;;  %v9088_v11 = vld [vmem:[#allocation5 + $0x8a0] sm:$0xf]  ;;  %v12227_v14 = vld [vmem:[#allocation5 + $0x8a4] sm:$0xf0] }
  0x9c   :  { %2714 = vmatpush.bf16.msrb.mxu0 %v8793_v44  ;;  %v8889_v44 = vor.u32 %v12177_v33, %v8888_v32  ;;  %v8953_v48 = vor.u32 %v12193_v36, %v8952_v35  ;;  %v12217_v32 = vld [vmem:[#allocation5 + $0x854] sm:$0xf0]  ;;  %v9112_v33 = vld [vmem:[#allocation5 + $0x8d0] sm:$0xf] }
  0x9d   :  { %2727 = vmatpush.bf16.msrb.mxu1 %v8857_v45  ;;  %v8816_v45 = vld [vmem:[#allocation5 + $0x680] sm:$0xf]  ;;  %v12233_v36 = vld [vmem:[#allocation5 + $0x8d4] sm:$0xf0]  ;;  %v9224_v2 = vld [vmem:[#allocation5 + $0x9b0] sm:$0xf] }
  0x9e   :  { %2740 = vmatpush.bf16.msrb.mxu2 %v8921_v46  ;;  %v12159_v46 = vld [vmem:[#allocation5 + $0x684] sm:$0xf0] }
  0x9f   :  { %2753 = vmatpush.bf16.msrb.mxu3 %v8985_v50  ;;  %v8944_v50 = vld [vmem:[#allocation5 + $0x780] sm:$0xf]  ;;  %v8817_v59 = vor.u32 %v12159_v46, %v8816_v45  ;;  %v9113_v45 = vor.u32 %v12233_v36, %v9112_v33  ;;  %v9080_v33 = vld [vmem:[#allocation5 + $0x890] sm:$0xf]  ;;  %v12225_v36 = vld [vmem:[#allocation5 + $0x894] sm:$0xf0] }
  0xa0   :  { %2715 = vmatpush.bf16.msrb.mxu0 %v8785_v56  ;;  %v12237_v56 = vld [vmem:[#allocation5 + $0x8f4] sm:$0xf0]  ;;  %v8945_v0 = vor.u32 %v12191_v51, %v8944_v50  ;;  %v12231_v51 = vld [vmem:[#allocation5 + $0x8c4] sm:$0xf0] }
  0xa1   :  { %2728 = vmatpush.bf16.msrb.mxu1 %v8849_v57  ;;  %v9192_v57 = vld [vmem:[#allocation5 + $0x970] sm:$0xf] }
  0xa2   :  { %2741 = vmatpush.bf16.msrb.mxu2 %v8913_v58  ;;  %v12253_v58 = vld [vmem:[#allocation5 + $0x974] sm:$0xf0] }
  0xa3   :  { %2754 = vmatpush.bf16.msrb.mxu3 %v8977_v62  ;;  %v12269_v62 = vld [vmem:[#allocation5 + $0x9f4] sm:$0xf0] }
  0xa4   :  { %2716 = vmatpush.bf16.msrb.mxu0 %v8777_v4  ;;  %v213_v4 = vld [vmem:[#allocation2 + $0x78] sm:$0xff] }
  0xa5   :  { %2729 = vmatpush.bf16.msrb.mxu1 %v8841_v5  ;;  %v9129_v5 = vor.u32 %v12237_v56, %v9128_v54  ;;  %v13423_v26 = vpack.c.bf16 %v213_v4, %v213_v4  ;;  %v9232_v54 = vld [vmem:[#allocation5 + $0x9c0] sm:$0xf] }
  0xa6   :  { %2742 = vmatpush.bf16.msrb.mxu2 %v8905_v6  ;;  %v9193_v6 = vor.u32 %v12253_v58, %v9192_v57  ;;  %v9105_v57 = vor.u32 %v12231_v51, %v9104_v49  ;;  %v9169_v58 = vor.u32 %v12247_v53, %v9168_v52  ;;  %v9072_v49 = vld [vmem:[#allocation5 + $0x880] sm:$0xf]  ;;  %v12239_v53 = vld [vmem:[#allocation5 + $0x904] sm:$0xf0] }
  0xa7   :  { %2755 = vmatpush.bf16.msrb.mxu3 %v8969_v12  ;;  %v9257_v12 = vor.u32 %v12269_v62, %v9256_v61  ;;  %v9096_v61 = vld [vmem:[#allocation5 + $0x8b0] sm:$0xf]  ;;  %v9136_v51 = vld [vmem:[#allocation5 + $0x900] sm:$0xf] }
  0xa8   :  { %2717 = vmatpush.bf16.msrb.mxu0 %v8769_v20  ;;  %v13421_v20 = vpack.c.bf16 %v211_v3, %v211_v3  ;;  %v12261_v3 = vld [vmem:[#allocation5 + $0x9b4] sm:$0xf0] }
  0xa9   :  { %2730 = vmatpush.bf16.msrb.mxu1 %v8833_v21  ;;  %v9248_v21 = vld [vmem:[#allocation5 + $0x9e0] sm:$0xf] }
  0xaa   :  { %2743 = vmatpush.bf16.msrb.mxu2 %v8897_v24  ;;  %v12267_v24 = vld [vmem:[#allocation5 + $0x9e4] sm:$0xf0] }
  0xab   :  { %2756 = vmatpush.bf16.msrb.mxu3 %v8961_v30  ;;  %v9185_v30 = vor.u32 %v12251_v17, %v9184_v16  ;;  %v9249_v35 = vor.u32 %v12267_v24, %v9248_v21  ;;  %v9152_v16 = vld [vmem:[#allocation5 + $0x920] sm:$0xf]  ;;  %v12243_v17 = vld [vmem:[#allocation5 + $0x924] sm:$0xf0] }
  0xac   :  { %2718 = vmatpush.bf16.msrb.mxu0 %v8761_v39  ;;  %v9176_v39 = vld [vmem:[#allocation5 + $0x950] sm:$0xf]  ;;  %v9216_v21 = vld [vmem:[#allocation5 + $0x9a0] sm:$0xf]  ;;  %v12259_v24 = vld [vmem:[#allocation5 + $0x9a4] sm:$0xf0] }
  0xad   :  { %2731 = vmatpush.bf16.msrb.mxu1 %v8825_v43  ;;  %v12265_v43 = vld [vmem:[#allocation5 + $0x9d4] sm:$0xf0]  ;;  %v9177_v46 = vor.u32 %v12249_v41, %v9176_v39  ;;  %v9144_v39 = vld [vmem:[#allocation5 + $0x910] sm:$0xf] }
  0xae   :  { %2744 = vmatpush.bf16.msrb.mxu2 %v8889_v44  ;;  %v9049_v44 = vor.u32 %v12217_v32, %v9048_v31  ;;  %v9241_v50 = vor.u32 %v12265_v43, %v9240_v42  ;;  %v9016_v31 = vld [vmem:[#allocation5 + $0x810] sm:$0xf]  ;;  %v12209_v32 = vld [vmem:[#allocation5 + $0x814] sm:$0xf0] }
  0xaf   :  { %2757 = vmatpush.bf16.msrb.mxu3 %v8953_v48  ;;  %v12215_v48 = vld [vmem:[#allocation5 + $0x844] sm:$0xf0]  ;;  %v12241_v41 = vld [vmem:[#allocation5 + $0x914] sm:$0xf0]  ;;  %v9208_v42 = vld [vmem:[#allocation5 + $0x990] sm:$0xf] }
  0xb0   :  { %2719 = vmatpush.bf16.msrb.mxu0 %v8753_v55  ;;  %v12263_v55 = vld [vmem:[#allocation5 + $0x9c4] sm:$0xf0]  ;;  %v9041_v56 = vor.u32 %v12215_v48, %v9040_v47  ;;  %v12257_v43 = vld [vmem:[#allocation5 + $0x994] sm:$0xf0]  ;;  %v9081_v47 = vor.u32 %v12225_v36, %v9080_v33  ;;  %v9145_v48 = vor.u32 %v12241_v41, %v9144_v39  ;;  %v9504_v33 = vld [vmem:[#allocation5 + $0xbe0] sm:$0xf] }
  0xb1   :  { %2732 = vmatpush.bf16.msrb.mxu1 %v8817_v59  ;;  %v9032_v59 = vld [vmem:[#allocation5 + $0x830] sm:$0xf]  ;;  %v9233_v62 = vor.u32 %v12263_v55, %v9232_v54  ;;  %v9209_v52 = vor.u32 %v12257_v43, %v9208_v42  ;;  %v9200_v54 = vld [vmem:[#allocation5 + $0x980] sm:$0xf]  ;;  %v12255_v55 = vld [vmem:[#allocation5 + $0x984] sm:$0xf0] }
  0xb2   :  { %2745 = vmatpush.bf16.msrb.mxu2 %v8881_v60  ;;  %v12213_v60 = vld [vmem:[#allocation5 + $0x834] sm:$0xf0]  ;;  %v9304_v43 = vld [vmem:[#allocation5 + $0xa50] sm:$0xf] }
  0xb3   :  { %2758 = vmatpush.bf16.msrb.mxu3 %v8945_v0  ;;  %2720 = vmatmul.bf16.vlgmr.msrb.gmra.mxu0 %v13417_v13  ;;  %v9160_v0 = vld [vmem:[#allocation5 + $0x930] sm:$0xf]  ;;  %v9033_v4 = vor.u32 %v12213_v60, %v9032_v59  ;;  %v12301_v60 = vld [vmem:[#allocation5 + $0xaf4] sm:$0xf0] }
  0xb4   :  { %2764 = vmatpush.bf16.msra.mxu0 %v9065_v1  ;;  %2733 = vmatmul.bf16.vlgmr.msrb.gmra.mxu1 %v13421_v20  ;;  %v12245_v1 = vld [vmem:[#allocation5 + $0x934] sm:$0xf0] }
  0xb5   :  { %2777 = vmatpush.bf16.msra.mxu1 %v9129_v5  ;;  %2746 = vmatmul.bf16.vlgmr.msrb.gmra.mxu2 %v13419_v19  ;;  %v9097_v5 = vor.u32 %v12229_v63, %v9096_v61  ;;  %v9448_v61 = vld [vmem:[#allocation5 + $0xb70] sm:$0xf] }
  0xb6   :  { %2790 = vmatpush.bf16.msra.mxu2 %v9193_v6  ;;  %2759 = vmatmul.bf16.vlgmr.msrb.gmra.mxu3 %v13423_v26  ;;  %v9161_v6 = vor.u32 %v12245_v1, %v9160_v0  ;;  %v9137_v0 = vor.u32 %v12239_v53, %v9136_v51  ;;  %v9512_v1 = vld [vmem:[#allocation5 + $0xbf0] sm:$0xf]  ;;  %v12329_v51 = vld [vmem:[#allocation5 + $0xbd4] sm:$0xf0]  ;;  %v9296_v53 = vld [vmem:[#allocation5 + $0xa40] sm:$0xf] }
  0xb7   :  { %2803 = vmatpush.bf16.msra.mxu3 %v9257_v12  ;;  %v9225_v12 = vor.u32 %v12261_v3, %v9224_v2  ;;  %v12333_v2 = vld [vmem:[#allocation5 + $0xbf4] sm:$0xf0]  ;;  %v214_v3 = vld [vmem:[#allocation2 + $0x80] sm:$0xff] }
  0xb8   :  { %2765 = vmatpush.bf16.msra.mxu0 %v9057_v28  ;;  %v9025_v28 = vor.u32 %v12211_v10, %v9024_v7  ;;  %v215_v7 = vld [vmem:[#allocation2 + $0x88] sm:$0xff]  ;;  %v217_v10 = vld [vmem:[#allocation2 + $0x98] sm:$0xff] }
  0xb9   :  { %2778 = vmatpush.bf16.msra.mxu1 %v9121_v29  ;;  %v9089_v29 = vor.u32 %v12227_v14, %v9088_v11  ;;  %v9312_v14 = vld [vmem:[#allocation5 + $0xa60] sm:$0xf]  ;;  %v13435_v36 = vpack.c.bf16 %v217_v10, %v217_v10 }
  0xba   :  { %2791 = vmatpush.bf16.msra.mxu2 %v9185_v30  ;;  %v9153_v30 = vor.u32 %v12243_v17, %v9152_v16  ;;  %v12283_v16 = vld [vmem:[#allocation5 + $0xa64] sm:$0xf0]  ;;  %v9376_v17 = vld [vmem:[#allocation5 + $0xae0] sm:$0xf] }
  0xbb   :  { %2804 = vmatpush.bf16.msra.mxu3 %v9249_v35  ;;  %v9217_v35 = vor.u32 %v12259_v24, %v9216_v21  ;;  %v9513_v21 = vor.u32 %v12333_v2, %v9512_v1  ;;  %v13429_v24 = vpack.c.bf16 %v214_v3, %v214_v3  ;;  %v9313_v39 = vor.u32 %v12283_v16, %v9312_v14  ;;  %v9288_v2 = vld [vmem:[#allocation5 + $0xa30] sm:$0xf]  ;;  %v12309_v14 = vld [vmem:[#allocation5 + $0xb34] sm:$0xf0] }
  0xbc   :  { %2766 = vmatpush.bf16.msra.mxu0 %v9049_v44  ;;  %v9017_v44 = vor.u32 %v12209_v32, %v9016_v31  ;;  %v13433_v32 = vpack.c.bf16 %v215_v7, %v215_v7  ;;  %v9480_v16 = vld [vmem:[#allocation5 + $0xbb0] sm:$0xf] }
  0xbd   :  { %2779 = vmatpush.bf16.msra.mxu1 %v9113_v45  ;;  %v9008_v45 = vld [vmem:[#allocation5 + $0x800] sm:$0xf] }
  0xbe   :  { %2792 = vmatpush.bf16.msra.mxu2 %v9177_v46  ;;  %v12207_v46 = vld [vmem:[#allocation5 + $0x804] sm:$0xf0] }
  0xbf   :  { %2805 = vmatpush.bf16.msra.mxu3 %v9241_v50  ;;  %v12223_v50 = vld [vmem:[#allocation5 + $0x884] sm:$0xf0]  ;;  %v9009_v59 = vor.u32 %v12207_v46, %v9008_v45  ;;  %v9368_v45 = vld [vmem:[#allocation5 + $0xad0] sm:$0xf] }
  0xc0   :  { %2767 = vmatpush.bf16.msra.mxu0 %v9041_v56  ;;  %v9320_v56 = vld [vmem:[#allocation5 + $0xa70] sm:$0xf]  ;;  %v9073_v63 = vor.u32 %v12223_v50, %v9072_v49  ;;  %v12313_v49 = vld [vmem:[#allocation5 + $0xb54] sm:$0xf0] }
  0xc1   :  { %2780 = vmatpush.bf16.msra.mxu1 %v9105_v57  ;;  %v12285_v57 = vld [vmem:[#allocation5 + $0xa74] sm:$0xf0]  ;;  %v9496_v50 = vld [vmem:[#allocation5 + $0xbd0] sm:$0xf] }
  0xc2   :  { %2793 = vmatpush.bf16.msra.mxu2 %v9169_v58  ;;  %v9384_v58 = vld [vmem:[#allocation5 + $0xaf0] sm:$0xf] }
  0xc3   :  { %2806 = vmatpush.bf16.msra.mxu3 %v9233_v62  ;;  %v12317_v62 = vld [vmem:[#allocation5 + $0xb74] sm:$0xf0]  ;;  %v9385_v11 = vor.u32 %v12301_v60, %v9384_v58  ;;  %v12295_v58 = vld [vmem:[#allocation5 + $0xac4] sm:$0xf0]  ;;  %v9424_v60 = vld [vmem:[#allocation5 + $0xb40] sm:$0xf] }
  0xc4   :  { %2768 = vmatpush.bf16.msra.mxu0 %v9033_v4  ;;  %v9201_v4 = vor.u32 %v12255_v55, %v9200_v54 }
  0xc5   :  { %2781 = vmatpush.bf16.msra.mxu1 %v9097_v5  ;;  %v9321_v5 = vor.u32 %v12285_v57, %v9320_v56  ;;  %v12279_v56 = vld [vmem:[#allocation5 + $0xa44] sm:$0xf0]  ;;  %v9360_v57 = vld [vmem:[#allocation5 + $0xac0] sm:$0xf] }
  0xc6   :  { %2794 = vmatpush.bf16.msra.mxu2 %v9161_v6  ;;  %v216_v6 = vld [vmem:[#allocation2 + $0x90] sm:$0xff]  ;;  %v9297_v1 = vor.u32 %v12279_v56, %v9296_v53  ;;  %v9361_v3 = vor.u32 %v12295_v58, %v9360_v57  ;;  %v12273_v53 = vld [vmem:[#allocation5 + $0xa14] sm:$0xf0] }
  0xc7   :  { %2807 = vmatpush.bf16.msra.mxu3 %v9225_v12  ;;  %v9449_v12 = vor.u32 %v12317_v62, %v9448_v61  ;;  %v13431_v31 = vpack.c.bf16 %v216_v6, %v216_v6  ;;  %v12311_v61 = vld [vmem:[#allocation5 + $0xb44] sm:$0xf0]  ;;  %v630_v62 = vld [vmem:[#allocation7] sm:$0x3]  ;;  %v9352_v6 = vld [vmem:[#allocation5 + $0xab0] sm:$0xf] }
  0xc8   :  { %2769 = vmatpush.bf16.msra.mxu0 %v9025_v28  ;;  %v12299_v28 = vld [vmem:[#allocation5 + $0xae4] sm:$0xf0]  ;;  %v632_v7 = vperm.slane %v630_v62, 0  ;;  %v12289_v57 = vld [vmem:[#allocation5 + $0xa94] sm:$0xf0] }
  0xc9   :  { %2782 = vmatpush.bf16.msra.mxu1 %v9089_v29  ;;  %v9440_v29 = vld [vmem:[#allocation5 + $0xb60] sm:$0xf]  ;;  %v9377_v41 = vor.u32 %v12299_v28, %v9376_v17  ;;  %v12325_v17 = vld [vmem:[#allocation5 + $0xbb4] sm:$0xf0]  ;;  %v9400_v58 = vld [vmem:[#allocation5 + $0xb10] sm:$0xf] }
  0xca   :  { %2795 = vmatpush.bf16.msra.mxu2 %v9153_v30  ;;  %v12315_v30 = vld [vmem:[#allocation5 + $0xb64] sm:$0xf0]  ;;  %v12321_v62 = vld [vmem:[#allocation5 + $0xb94] sm:$0xf0] }
  0xcb   :  { %2808 = vmatpush.bf16.msra.mxu3 %v9217_v35  ;;  %v12331_v35 = vld [vmem:[#allocation5 + $0xbe4] sm:$0xf0]  ;;  %v9441_v42 = vor.u32 %v12315_v30, %v9440_v29 }
  0xcc   :  { %2770 = vmatpush.bf16.msra.mxu0 %v9017_v44  ;;  %v12281_v44 = vld [vmem:[#allocation5 + $0xa54] sm:$0xf0]  ;;  %v9505_v46 = vor.u32 %v12331_v35, %v9504_v33  ;;  %v9280_v33 = vld [vmem:[#allocation5 + $0xa20] sm:$0xf]  ;;  %v12275_v35 = vld [vmem:[#allocation5 + $0xa24] sm:$0xf0] }
  0xcd   :  { %2783 = vmatpush.bf16.msra.mxu1 %v9081_v47  ;;  %v12297_v47 = vld [vmem:[#allocation5 + $0xad4] sm:$0xf0] }
  0xce   :  { %2796 = vmatpush.bf16.msra.mxu2 %v9145_v48  ;;  %v9432_v48 = vld [vmem:[#allocation5 + $0xb50] sm:$0xf]  ;;  %v9369_v54 = vor.u32 %v12297_v47, %v9368_v45  ;;  %v12307_v45 = vld [vmem:[#allocation5 + $0xb24] sm:$0xf0] }
  0xcf   :  { %2809 = vmatpush.bf16.msra.mxu3 %v9209_v52  ;;  %v9305_v52 = vor.u32 %v12281_v44, %v9304_v43  ;;  %v9433_v55 = vor.u32 %v12313_v49, %v9432_v48  ;;  %v12291_v43 = vld [vmem:[#allocation5 + $0xaa4] sm:$0xf0]  ;;  %v9408_v44 = vld [vmem:[#allocation5 + $0xb20] sm:$0xf]  ;;  %v9281_v48 = vor.u32 %v12275_v35, %v9280_v33  ;;  %v8106_v35 = vld [vmem:[#allocation5 + $0xf8] sm:$0xf0] }
  0xd0   :  { %2771 = vmatpush.bf16.msra.mxu0 %v9009_v59  ;;  %v9497_v59 = vor.u32 %v12329_v51, %v9496_v50  ;;  %v2565_v28 = vpop.f32.mrf.mxu0  ;;  %v12323_v47 = vld [vmem:[#allocation5 + $0xba4] sm:$0xf0]  ;;  %v9409_v51 = vor.u32 %v12307_v45, %v9408_v44  ;;  %v12012_v45 = vld [vmem:[#allocation5 + $0x1f4] sm:$0xf] }
  0xd1   :  { %2784 = vmatpush.bf16.msra.mxu1 %v9073_v63  ;;  %v9488_v63 = vld [vmem:[#allocation5 + $0xbc0] sm:$0xf] }
  0xd2   :  { %2797 = vmatpush.bf16.msra.mxu2 %v9137_v0  ;;  %v12327_v0 = vld [vmem:[#allocation5 + $0xbc4] sm:$0xf0] }
  0xd3   :  { %2810 = vmatpush.bf16.msra.mxu3 %v9201_v4  ;;  %2772 = vmatmul.bf16.vlgmr.msra.gmra.mxu0 %v13429_v24  ;;  %v9425_v4 = vor.u32 %v12311_v61, %v9424_v60  ;;  %v9489_v10 = vor.u32 %v12327_v0, %v9488_v63  ;;  %v9464_v61 = vld [vmem:[#allocation5 + $0xb90] sm:$0xf] }
  0xd4   :  { %2816 = vmatpush.bf16.msrb.mxu0 %v9321_v5  ;;  %2785 = vmatmul.bf16.vlgmr.msra.gmra.mxu1 %v13433_v32  ;;  %v12277_v5 = vld [vmem:[#allocation5 + $0xa34] sm:$0xf0]  ;;  %v2578_v49 = vpop.f32.mrf.mxu1 }
  0xd5   :  { %2829 = vmatpush.bf16.msrb.mxu1 %v9385_v11  ;;  %2798 = vmatmul.bf16.vlgmr.msra.gmra.mxu2 %v13431_v31  ;;  %v12293_v11 = vld [vmem:[#allocation5 + $0xab4] sm:$0xf0] }
  0xd6   :  { %2842 = vmatpush.bf16.msrb.mxu2 %v9449_v12  ;;  %2811 = vmatmul.bf16.vlgmr.msra.gmra.mxu3 %v13435_v36  ;;  %v9416_v12 = vld [vmem:[#allocation5 + $0xb30] sm:$0xf]  ;;  %v9353_v29 = vor.u32 %v12293_v11, %v9352_v6  ;;  %v9392_v11 = vld [vmem:[#allocation5 + $0xb00] sm:$0xf] }
  0xd7   :  { %2855 = vmatpush.bf16.msrb.mxu3 %v9513_v21  ;;  %v9289_v21 = vor.u32 %v12277_v5, %v9288_v2  ;;  %v9417_v30 = vor.u32 %v12309_v14, %v9416_v12  ;;  %v9264_v2 = vld [vmem:[#allocation5 + $0xa00] sm:$0xf]  ;;  %v9465_v14 = vor.u32 %v12321_v62, %v9464_v61  ;;  %v8098_v62 = vld [vmem:[#allocation5 + $0xe8] sm:$0xf0] }
  0xd8   :  { %2817 = vmatpush.bf16.msrb.mxu0 %v9313_v39  ;;  %v9344_v39 = vld [vmem:[#allocation5 + $0xaa0] sm:$0xf]  ;;  %v2591_v60 = vpop.f32.mrf.mxu2 }
  0xd9   :  { %2830 = vmatpush.bf16.msrb.mxu1 %v9377_v41  ;;  %v2566_v41 = vadd.f32 %v2565_v28, %v632_v7  ;;  %v9345_v50 = vor.u32 %v12291_v43, %v9344_v39  ;;  %v2604_v0 = vpop.f32.mrf.mxu3  ;;  %v9328_v7 = vld [vmem:[#allocation5 + $0xa80] sm:$0xf]  ;;  %v11964_v28 = vld [vmem:[#allocation5 + $0x74] sm:$0xf] }
  0xda   :  { %2843 = vmatpush.bf16.msrb.mxu2 %v9441_v42  ;;  %v9481_v42 = vor.u32 %v12325_v17, %v9480_v16  ;;  %v12303_v16 = vld [vmem:[#allocation5 + $0xb04] sm:$0xf0]  ;;  %v9456_v17 = vld [vmem:[#allocation5 + $0xb80] sm:$0xf]  ;;  %v11996_v39 = vld [vmem:[#allocation5 + $0x174] sm:$0xf] }
  0xdb   :  { %2856 = vmatpush.bf16.msrb.mxu3 %v9505_v46  ;;  %v9472_v46 = vld [vmem:[#allocation5 + $0xba0] sm:$0xf]  ;;  %v9393_v44 = vor.u32 %v12303_v16, %v9392_v11  ;;  %v11960_v11 = vld [vmem:[#allocation5 + $0x54] sm:$0xf] }
  0xdc   :  { %2818 = vmatpush.bf16.msrb.mxu0 %v9305_v52  ;;  %v9272_v52 = vld [vmem:[#allocation5 + $0xa10] sm:$0xf]  ;;  %v9473_v56 = vor.u32 %v12323_v47, %v9472_v46  ;;  %v8234_v46 = vld [vmem:[#allocation5 + $0x1f8] sm:$0xf0]  ;;  %v218_v47 = vld [vmem:[#allocation2 + $0xa0] sm:$0xff] }
  0xdd   :  { %2831 = vmatpush.bf16.msrb.mxu1 %v9369_v54  ;;  %v9336_v54 = vld [vmem:[#allocation5 + $0xa90] sm:$0xf]  ;;  %v13443_v61 = vpack.c.bf16 %v218_v47, %v218_v47  ;;  %v11976_v16 = vld [vmem:[#allocation5 + $0xd4] sm:$0xf]  ;;  %v11990_v47 = vld [vmem:[#allocation5 + $0x144] sm:$0xf] }
  0xde   :  { %2844 = vmatpush.bf16.msrb.mxu2 %v9433_v55  ;;  %v2579_v55 = vadd.f32 %v2578_v49, %v2566_v41  ;;  %v9337_v5 = vor.u32 %v12289_v57, %v9336_v54  ;;  %v8170_v41 = vld [vmem:[#allocation5 + $0x178] sm:$0xf0]  ;;  %v8034_v57 = vld [vmem:[#allocation5 + $0x68] sm:$0xf0] }
  0xdf   :  { %2857 = vmatpush.bf16.msrb.mxu3 %v9497_v59  ;;  %v12305_v59 = vld [vmem:[#allocation5 + $0xb14] sm:$0xf0] }
  0xe0   :  { %2819 = vmatpush.bf16.msrb.mxu0 %v9297_v1  ;;  %v2592_v63 = vadd.f32 %v2591_v60, %v2579_v55  ;;  %v9273_v1 = vor.u32 %v12273_v53, %v9272_v52  ;;  %v9401_v6 = vor.u32 %v12305_v59, %v9400_v58  ;;  %v221_v52 = vld [vmem:[#allocation2 + $0xb8] sm:$0xff]  ;;  %v2593_v53 = vpop.f32.mrf.mxu2  ;;  %v8173_v55 = vor.u32 %v11996_v39, %v8170_v41  ;;  %v11978_v58 = vld [vmem:[#allocation5 + $0xe4] sm:$0xf] }
  0xe1   :  { %2832 = vmatpush.bf16.msrb.mxu1 %v9361_v3  ;;  %v12271_v3 = vld [vmem:[#allocation5 + $0xa04] sm:$0xf0]  ;;  %v2606_v59 = vpop.f32.mrf.mxu3  ;;  %v8237_v60 = vor.u32 %v12012_v45, %v8234_v46  ;;  %v8082_v46 = vld [vmem:[#allocation5 + $0xc8] sm:$0xf0] }
  0xe2   :  { %2845 = vmatpush.bf16.msrb.mxu2 %v9425_v4  ;;  %v2567_v4 = vpop.f32.mrf.mxu0  ;;  %v13441_v12 = vadd.f32 %v2604_v0, %v2592_v63  ;;  %v9265_v33 = vor.u32 %v12271_v3, %v9264_v2  ;;  %v11994_v63 = vld [vmem:[#allocation5 + $0x164] sm:$0xf]  ;;  %v8162_v0 = vld [vmem:[#allocation5 + $0x168] sm:$0xf0] }
  0xe3   :  { %2858 = vmatpush.bf16.msrb.mxu3 %v9489_v10  ;;  %v12287_v10 = vld [vmem:[#allocation5 + $0xa84] sm:$0xf0]  ;;  %v12010_v3 = vld [vmem:[#allocation5 + $0x1e4] sm:$0xf]  ;;  %v8226_v4 = vld [vmem:[#allocation5 + $0x1e8] sm:$0xf0] }
  0xe4   :  { %2820 = vmatpush.bf16.msrb.mxu0 %v9289_v21  ;;  %v12319_v21 = vld [vmem:[#allocation5 + $0xb84] sm:$0xf0]  ;;  %v9329_v43 = vor.u32 %v12287_v10, %v9328_v7  ;;  %v8101_v7 = vor.u32 %v11978_v58, %v8098_v62  ;;  %v8165_v10 = vor.u32 %v11994_v63, %v8162_v0  ;;  %v8074_v62 = vld [vmem:[#allocation5 + $0xb8] sm:$0xf0]  ;;  %v11988_v63 = vld [vmem:[#allocation5 + $0x134] sm:$0xf] }
  0xe5   :  { %2833 = vmatpush.bf16.msrb.mxu1 %v9353_v29  ;;  %v8042_v29 = vld [vmem:[#allocation5 + $0x78] sm:$0xf0] }
  0xe6   :  { %2846 = vmatpush.bf16.msrb.mxu2 %v9417_v30  ;;  %v11980_v30 = vld [vmem:[#allocation5 + $0xf4] sm:$0xf]  ;;  %v8045_v49 = vor.u32 %v11964_v28, %v8042_v29  ;;  %v8154_v29 = vld [vmem:[#allocation5 + $0x158] sm:$0xf0] }
  0xe7   :  { %2859 = vmatpush.bf16.msrb.mxu3 %v9481_v42  ;;  %v2580_v42 = vpop.f32.mrf.mxu1  ;;  %v8109_v54 = vor.u32 %v11980_v30, %v8106_v35  ;;  %v11992_v28 = vld [vmem:[#allocation5 + $0x154] sm:$0xf]  ;;  %v8138_v0 = vld [vmem:[#allocation5 + $0x138] sm:$0xf0] }
  0xe8   :  { %2821 = vmatpush.bf16.msrb.mxu0 %v9281_v48  ;;  %v9457_v48 = vor.u32 %v12319_v21, %v9456_v17  ;;  %v8229_v17 = vor.u32 %v12010_v3, %v8226_v4  ;;  %v8090_v21 = vld [vmem:[#allocation5 + $0xd8] sm:$0xf0]  ;;  %v12008_v30 = vld [vmem:[#allocation5 + $0x1d4] sm:$0xf]  ;;  %v8157_v41 = vor.u32 %v11992_v28, %v8154_v29  ;;  %v11958_v42 = vld [vmem:[#allocation5 + $0x44] sm:$0xf] }
  0xe9   :  { %2834 = vmatpush.bf16.msrb.mxu1 %v9345_v50  ;;  %v220_v50 = vld [vmem:[#allocation2 + $0xb0] sm:$0xff]  ;;  %v8093_v39 = vor.u32 %v11976_v16, %v8090_v21  ;;  %v8202_v4 = vld [vmem:[#allocation5 + $0x1b8] sm:$0xf0]  ;;  %v8002_v16 = vld [vmem:[#allocation5 + $0x28] sm:$0xf0] }
  0xea   :  { %2847 = vmatpush.bf16.msrb.mxu2 %v9409_v51  ;;  %v219_v51 = vld [vmem:[#allocation2 + $0xa8] sm:$0xff]  ;;  %v12004_v3 = vld [vmem:[#allocation5 + $0x1b4] sm:$0xf]  ;;  %v11986_v29 = vld [vmem:[#allocation5 + $0x124] sm:$0xf] }
  0xeb   :  { %2860 = vmatpush.bf16.msrb.mxu3 %v9473_v56  ;;  %v11962_v56 = vld [vmem:[#allocation5 + $0x64] sm:$0xf]  ;;  %v13447_v2 = vpack.c.bf16 %v219_v51, %v219_v51  ;;  %v8066_v28 = vld [vmem:[#allocation5 + $0xa8] sm:$0xf0] }
  0xec   :  { %2822 = vmatpush.bf16.msrb.mxu0 %v9273_v1  ;;  %v13445_v1 = vpack.c.bf16 %v220_v50, %v220_v50  ;;  %v8210_v50 = vld [vmem:[#allocation5 + $0x1c8] sm:$0xf0] }
  0xed   :  { %2835 = vmatpush.bf16.msrb.mxu1 %v9337_v5  ;;  %v13449_v5 = vpack.c.bf16 %v221_v52, %v221_v52 }
  0xee   :  { %2848 = vmatpush.bf16.msrb.mxu2 %v9401_v6  ;;  %v8037_v6 = vor.u32 %v11962_v56, %v8034_v57  ;;  %v8010_v56 = vld [vmem:[#allocation5 + $0x38] sm:$0xf0]  ;;  %v11972_v57 = vld [vmem:[#allocation5 + $0xb4] sm:$0xf] }
  0xef   :  { %2861 = vmatpush.bf16.msrb.mxu3 %v9465_v14  ;;  %v8026_v14 = vld [vmem:[#allocation5 + $0x58] sm:$0xf0] }
  0xf0   :  { %2823 = vmatpush.bf16.msrb.mxu0 %v9265_v33  ;;  %v8218_v33 = vld [vmem:[#allocation5 + $0x1d8] sm:$0xf0]  ;;  %v8029_v35 = vor.u32 %v11960_v11, %v8026_v14  ;;  %v2617_v52 = vpop.f32.mrf.mxu0  ;;  %v8141_v11 = vor.u32 %v11988_v63, %v8138_v0  ;;  %v11954_v14 = vld [vmem:[#allocation5 + $0x24] sm:$0xf]  ;;  %v8050_v0 = vld [vmem:[#allocation5 + $0x88] sm:$0xf0] }
  0xf1   :  { %2836 = vmatpush.bf16.msrb.mxu1 %v9329_v43  ;;  %v8018_v43 = vld [vmem:[#allocation5 + $0x48] sm:$0xf0]  ;;  %v8221_v45 = vor.u32 %v12008_v30, %v8218_v33  ;;  %v2618_v58 = vadd.f32 %v2617_v52, %v13441_v12  ;;  %v2630_v59 = vpop.f32.mrf.mxu1  ;;  %v8205_v12 = vor.u32 %v12004_v3, %v8202_v4  ;;  %v8058_v52 = vld [vmem:[#allocation5 + $0x98] sm:$0xf0]  ;;  %v11966_v63 = vld [vmem:[#allocation5 + $0x84] sm:$0xf] }
  0xf2   :  { %2849 = vmatpush.bf16.msrb.mxu2 %v9393_v44  ;;  %v11974_v44 = vld [vmem:[#allocation5 + $0xc4] sm:$0xf]  ;;  %v8021_v51 = vor.u32 %v11958_v42, %v8018_v43  ;;  %v8130_v30 = vld [vmem:[#allocation5 + $0x128] sm:$0xf0]  ;;  %v8005_v42 = vor.u32 %v11954_v14, %v8002_v16  ;;  %v12028_v16 = vld [vmem:[#allocation5 + $0x274] sm:$0xf] }
  0xf3   :  { %2862 = vmatpush.bf16.msrb.mxu3 %v9457_v48  ;;  %2824 = vmatmul.bf16.vlgmr.msrb.gmra.mxu0 %v13443_v61  ;;  %v8146_v48 = vld [vmem:[#allocation5 + $0x148] sm:$0xf0]  ;;  %v8085_v53 = vor.u32 %v11974_v44, %v8082_v46  ;;  %v8133_v46 = vor.u32 %v11986_v29, %v8130_v30  ;;  %v11982_v3 = vld [vmem:[#allocation5 + $0x104] sm:$0xf]  ;;  %v12060_v29 = vld [vmem:[#allocation5 + $0x374] sm:$0xf] }
  0xf4   :  { %2868 = vmatpush.bf16.msra.mxu0 %v8045_v49  ;;  %2837 = vmatmul.bf16.vlgmr.msrb.gmra.mxu1 %v13447_v2  ;;  %v12006_v49 = vld [vmem:[#allocation5 + $0x1c4] sm:$0xf]  ;;  %v8426_v30 = vld [vmem:[#allocation5 + $0x378] sm:$0xf0] }
  0xf5   :  { %2881 = vmatpush.bf16.msra.mxu1 %v8109_v54  ;;  %2850 = vmatmul.bf16.vlgmr.msrb.gmra.mxu2 %v13445_v1  ;;  %v8149_v54 = vor.u32 %v11990_v47, %v8146_v48  ;;  %v11952_v47 = vld [vmem:[#allocation5 + $0x14] sm:$0xf]  ;;  %v7994_v48 = vld [vmem:[#allocation5 + $0x18] sm:$0xf0] }
  0xf6   :  { %2894 = vmatpush.bf16.msra.mxu2 %v8173_v55  ;;  %2863 = vmatmul.bf16.vlgmr.msrb.gmra.mxu3 %v13449_v5  ;;  %v11956_v55 = vld [vmem:[#allocation5 + $0x34] sm:$0xf] }
  0xf7   :  { %2907 = vmatpush.bf16.msra.mxu3 %v8237_v60  ;;  %v8213_v60 = vor.u32 %v12006_v49, %v8210_v50  ;;  %v11968_v49 = vld [vmem:[#allocation5 + $0x94] sm:$0xf] }
  0xf8   :  { %2869 = vmatpush.bf16.msra.mxu0 %v8037_v6  ;;  %v2631_v6 = vadd.f32 %v2630_v59, %v2618_v58  ;;  %v2643_v21 = vpop.f32.mrf.mxu2  ;;  %v2619_v44 = vpop.f32.mrf.mxu0  ;;  %v11950_v58 = vld [vmem:[#allocation5 + $0x4] sm:$0xf]  ;;  %v7986_v59 = vld [vmem:[#allocation5 + $0x8] sm:$0xf0] }
  0xf9   :  { %2882 = vmatpush.bf16.msra.mxu1 %v8101_v7  ;;  %v8013_v7 = vor.u32 %v11956_v55, %v8010_v56  ;;  %v2632_v50 = vpop.f32.mrf.mxu1  ;;  %v12000_v55 = vld [vmem:[#allocation5 + $0x194] sm:$0xf]  ;;  %v8186_v56 = vld [vmem:[#allocation5 + $0x198] sm:$0xf0] }
  0xfa   :  { %2895 = vmatpush.bf16.msra.mxu2 %v8165_v10  ;;  %v8077_v10 = vor.u32 %v11972_v57, %v8074_v62  ;;  %v2644_v33 = vadd.f32 %v2643_v21, %v2631_v6  ;;  %v7997_v57 = vor.u32 %v11952_v47, %v7994_v48  ;;  %v8189_v6 = vor.u32 %v12000_v55, %v8186_v56  ;;  %v12044_v21 = vld [vmem:[#allocation5 + $0x2f4] sm:$0xf]  ;;  %v12026_v47 = vld [vmem:[#allocation5 + $0x264] sm:$0xf]  ;;  %v8290_v48 = vld [vmem:[#allocation5 + $0x268] sm:$0xf0] }
  0xfb   :  { %2908 = vmatpush.bf16.msra.mxu3 %v8229_v17  ;;  %v11970_v17 = vld [vmem:[#allocation5 + $0xa4] sm:$0xf]  ;;  %v8482_v55 = vld [vmem:[#allocation5 + $0x3e8] sm:$0xf0]  ;;  %v8293_v56 = vor.u32 %v12026_v47, %v8290_v48  ;;  %v8330_v48 = vld [vmem:[#allocation5 + $0x2b8] sm:$0xf0] }
  0xfc   :  { %2870 = vmatpush.bf16.msra.mxu0 %v8029_v35  ;;  %v2656_v35 = vpop.f32.mrf.mxu3 }
  0xfd   :  { %2883 = vmatpush.bf16.msra.mxu1 %v8093_v39  ;;  %v12002_v39 = vld [vmem:[#allocation5 + $0x1a4] sm:$0xf]  ;;  %v13456_v43 = vadd.f32 %v2656_v35, %v2644_v33  ;;  %v8053_v33 = vor.u32 %v11966_v63, %v8050_v0  ;;  %v8346_v0 = vld [vmem:[#allocation5 + $0x2d8] sm:$0xf0] }
  0xfe   :  { %2896 = vmatpush.bf16.msra.mxu2 %v8157_v41  ;;  %v8194_v41 = vld [vmem:[#allocation5 + $0x1a8] sm:$0xf0] }
  0xff   :  { %2909 = vmatpush.bf16.msra.mxu3 %v8221_v45  ;;  %v8069_v45 = vor.u32 %v11970_v17, %v8066_v28  ;;  %v8298_v17 = vld [vmem:[#allocation5 + $0x278] sm:$0xf0] }
 0x100   :  { %2871 = vmatpush.bf16.msra.mxu0 %v8021_v51  ;;  %v8197_v51 = vor.u32 %v12002_v39, %v8194_v41  ;;  %v2645_v4 = vpop.f32.mrf.mxu2  ;;  %v8362_v28 = vld [vmem:[#allocation5 + $0x2f8] sm:$0xf0]  ;;  %v12076_v39 = vld [vmem:[#allocation5 + $0x3f4] sm:$0xf]  ;;  %v8301_v44 = vor.u32 %v12028_v16, %v8298_v17  ;;  %v12022_v16 = vld [vmem:[#allocation5 + $0x244] sm:$0xf] }
 0x101   :  { %2884 = vmatpush.bf16.msra.mxu1 %v8085_v53  ;;  %v11984_v53 = vld [vmem:[#allocation5 + $0x114] sm:$0xf]  ;;  %v8490_v41 = vld [vmem:[#allocation5 + $0x3f8] sm:$0xf0]  ;;  %v8274_v17 = vld [vmem:[#allocation5 + $0x248] sm:$0xf0] }
 0x102   :  { %2897 = vmatpush.bf16.msra.mxu2 %v8149_v54  ;;  %v8122_v54 = vld [vmem:[#allocation5 + $0x118] sm:$0xf0]  ;;  %v8493_v50 = vor.u32 %v12076_v39, %v8490_v41 }
 0x103   :  { %2910 = vmatpush.bf16.msra.mxu3 %v8213_v60  ;;  %v8061_v60 = vor.u32 %v11968_v49, %v8058_v52  ;;  %v8125_v62 = vor.u32 %v11984_v53, %v8122_v54  ;;  %v12042_v49 = vld [vmem:[#allocation5 + $0x2e4] sm:$0xf]  ;;  %v8418_v53 = vld [vmem:[#allocation5 + $0x368] sm:$0xf0]  ;;  %v8410_v4 = vld [vmem:[#allocation5 + $0x358] sm:$0xf0] }
 0x104   :  { %2872 = vmatpush.bf16.msra.mxu0 %v8013_v7  ;;  %v8114_v7 = vld [vmem:[#allocation5 + $0x108] sm:$0xf0]  ;;  %v2658_v14 = vpop.f32.mrf.mxu3  ;;  %v12058_v52 = vld [vmem:[#allocation5 + $0x364] sm:$0xf] }
 0x105   :  { %2885 = vmatpush.bf16.msra.mxu1 %v8077_v10  ;;  %v11998_v10 = vld [vmem:[#allocation5 + $0x184] sm:$0xf]  ;;  %v8117_v35 = vor.u32 %v11982_v3, %v8114_v7  ;;  %v12056_v3 = vld [vmem:[#allocation5 + $0x354] sm:$0xf]  ;;  %v8474_v7 = vld [vmem:[#allocation5 + $0x3d8] sm:$0xf0] }
 0x106   :  { %2898 = vmatpush.bf16.msra.mxu2 %v8141_v11  ;;  %v8178_v11 = vld [vmem:[#allocation5 + $0x188] sm:$0xf0]  ;;  %v12074_v54 = vld [vmem:[#allocation5 + $0x3e4] sm:$0xf]  ;;  %v8413_v14 = vor.u32 %v12056_v3, %v8410_v4 }
 0x107   :  { %2911 = vmatpush.bf16.msra.mxu3 %v8205_v12  ;;  %v7989_v12 = vor.u32 %v11950_v58, %v7986_v59  ;;  %v8421_v58 = vor.u32 %v12058_v52, %v8418_v53  ;;  %v12024_v59 = vld [vmem:[#allocation5 + $0x254] sm:$0xf]  ;;  %v8485_v63 = vor.u32 %v12074_v54, %v8482_v55  ;;  %v8458_v52 = vld [vmem:[#allocation5 + $0x3b8] sm:$0xf0]  ;;  %v12018_v55 = vld [vmem:[#allocation5 + $0x224] sm:$0xf] }
 0x108   :  { %2873 = vmatpush.bf16.msra.mxu0 %v8005_v42  ;;  %v8181_v42 = vor.u32 %v11998_v10, %v8178_v11  ;;  %v12066_v4 = vld [vmem:[#allocation5 + $0x3a4] sm:$0xf] }
 0x109   :  { %2886 = vmatpush.bf16.msra.mxu1 %v8069_v45  ;;  %v8365_v45 = vor.u32 %v12044_v21, %v8362_v28  ;;  %v12038_v21 = vld [vmem:[#allocation5 + $0x2c4] sm:$0xf] }
 0x10a   :  { %2899 = vmatpush.bf16.msra.mxu2 %v8133_v46  ;;  %v8429_v46 = vor.u32 %v12060_v29, %v8426_v30  ;;  %v12054_v28 = vld [vmem:[#allocation5 + $0x344] sm:$0xf]  ;;  %v8402_v29 = vld [vmem:[#allocation5 + $0x348] sm:$0xf0] }
 0x10b   :  { %2912 = vmatpush.bf16.msra.mxu3 %v8197_v51  ;;  %v8354_v51 = vld [vmem:[#allocation5 + $0x2e8] sm:$0xf0]  ;;  %v8405_v41 = vor.u32 %v12054_v28, %v8402_v29  ;;  %v8314_v29 = vld [vmem:[#allocation5 + $0x298] sm:$0xf0] }
 0x10c   :  { %2874 = vmatpush.bf16.msra.mxu0 %v7997_v57  ;;  %v8357_v57 = vor.u32 %v12042_v49, %v8354_v51  ;;  %v12052_v49 = vld [vmem:[#allocation5 + $0x334] sm:$0xf] }
 0x10d   :  { %2887 = vmatpush.bf16.msra.mxu1 %v8061_v60  ;;  %v8282_v60 = vld [vmem:[#allocation5 + $0x258] sm:$0xf0]  ;;  %v12068_v51 = vld [vmem:[#allocation5 + $0x3b4] sm:$0xf] }
 0x10e   :  { %2900 = vmatpush.bf16.msra.mxu2 %v8125_v62  ;;  %v12040_v62 = vld [vmem:[#allocation5 + $0x2d4] sm:$0xf]  ;;  %v8285_v10 = vor.u32 %v12024_v59, %v8282_v60  ;;  %v8322_v60 = vld [vmem:[#allocation5 + $0x2a8] sm:$0xf0] }
 0x10f   :  { %2913 = vmatpush.bf16.msra.mxu3 %v8189_v6  ;;  %v12072_v6 = vld [vmem:[#allocation5 + $0x3d4] sm:$0xf]  ;;  %v8349_v11 = vor.u32 %v12040_v62, %v8346_v0  ;;  %v12050_v62 = vld [vmem:[#allocation5 + $0x324] sm:$0xf] }
 0x110   :  { %2875 = vmatpush.bf16.msra.mxu0 %v7989_v12  ;;  %v8477_v12 = vor.u32 %v12072_v6, %v8474_v7  ;;  %v2669_v30 = vpop.f32.mrf.mxu0  ;;  %v8450_v6 = vld [vmem:[#allocation5 + $0x3a8] sm:$0xf0] }
 0x111   :  { %2888 = vmatpush.bf16.msra.mxu1 %v8053_v33  ;;  %v8466_v33 = vld [vmem:[#allocation5 + $0x3c8] sm:$0xf0]  ;;  %v8453_v28 = vor.u32 %v12066_v4, %v8450_v6 }
 0x112   :  { %2901 = vmatpush.bf16.msra.mxu2 %v8117_v35  ;;  %v8277_v35 = vor.u32 %v12022_v16, %v8274_v17 }
 0x113   :  { %2914 = vmatpush.bf16.msra.mxu3 %v8181_v42  ;;  %2876 = vmatmul.bf16.vlgmr.msra.gmra.mxu0 %v13383_v9  ;;  %v12070_v9 = vld [vmem:[#allocation5 + $0x3c4] sm:$0xf]  ;;  %v12020_v42 = vld [vmem:[#allocation5 + $0x234] sm:$0xf] }
 0x114   :  { %2920 = vmatpush.bf16.msrb.mxu0 %v8301_v44  ;;  %2889 = vmatmul.bf16.vlgmr.msra.gmra.mxu1 %v13390_v25  ;;  %v2682_v25 = vpop.f32.mrf.mxu1  ;;  %v8266_v44 = vld [vmem:[#allocation5 + $0x238] sm:$0xf0] }
 0x115   :  { %2933 = vmatpush.bf16.msrb.mxu1 %v8365_v45  ;;  %2902 = vmatmul.bf16.vlgmr.msra.gmra.mxu2 %v13381_v8  ;;  %v8338_v8 = vld [vmem:[#allocation5 + $0x2c8] sm:$0xf0]  ;;  %v12036_v45 = vld [vmem:[#allocation5 + $0x2b4] sm:$0xf]  ;;  %v8269_v53 = vor.u32 %v12020_v42, %v8266_v44  ;;  %v12030_v44 = vld [vmem:[#allocation5 + $0x284] sm:$0xf] }
 0x116   :  { %2946 = vmatpush.bf16.msrb.mxu2 %v8429_v46  ;;  %2915 = vmatmul.bf16.vlgmr.msra.gmra.mxu3 %v13385_v15  ;;  %v2670_v15 = vadd.f32 %v2669_v30, %v13456_v43  ;;  %v8341_v39 = vor.u32 %v12038_v21, %v8338_v8  ;;  %v8469_v46 = vor.u32 %v12070_v9, %v8466_v33  ;;  %v12016_v21 = vld [vmem:[#allocation5 + $0x214] sm:$0xf]  ;;  %v8378_v9 = vld [vmem:[#allocation5 + $0x318] sm:$0xf0] }
 0x117   :  { %2959 = vmatpush.bf16.msrb.mxu3 %v8493_v50  ;;  %v8394_v50 = vld [vmem:[#allocation5 + $0x338] sm:$0xf0]  ;;  %v8333_v43 = vor.u32 %v12036_v45, %v8330_v48  ;;  %v12032_v8 = vld [vmem:[#allocation5 + $0x294] sm:$0xf]  ;;  %v8306_v45 = vld [vmem:[#allocation5 + $0x288] sm:$0xf0] }
 0x118   :  { %2921 = vmatpush.bf16.msrb.mxu0 %v8293_v56  ;;  %v2683_v47 = vadd.f32 %v2682_v25, %v2670_v15  ;;  %v8397_v54 = vor.u32 %v12052_v49, %v8394_v50  ;;  %v8258_v56 = vld [vmem:[#allocation5 + $0x228] sm:$0xf0]  ;;  %v2695_v59 = vpop.f32.mrf.mxu2  ;;  %v2671_v7 = vpop.f32.mrf.mxu0  ;;  %v12048_v30 = vld [vmem:[#allocation5 + $0x314] sm:$0xf]  ;;  %v8442_v15 = vld [vmem:[#allocation5 + $0x398] sm:$0xf0] }
 0x119   :  { %2934 = vmatpush.bf16.msrb.mxu1 %v8357_v57  ;;  %v12034_v57 = vld [vmem:[#allocation5 + $0x2a4] sm:$0xf]  ;;  %v2708_v3 = vpop.f32.mrf.mxu3  ;;  %v12064_v33 = vld [vmem:[#allocation5 + $0x394] sm:$0xf]  ;;  %v8381_v42 = vor.u32 %v12048_v30, %v8378_v9  ;;  %v8370_v48 = vld [vmem:[#allocation5 + $0x308] sm:$0xf0] }
 0x11a   :  { %2947 = vmatpush.bf16.msrb.mxu2 %v8421_v58  ;;  %v8461_v58 = vor.u32 %v12068_v51, %v8458_v52  ;;  %v2696_v0 = vadd.f32 %v2695_v59, %v2683_v47  ;;  %v8325_v16 = vor.u32 %v12034_v57, %v8322_v60  ;;  %v12014_v25 = vld [vmem:[#allocation5 + $0x204] sm:$0xf]  ;;  %v8445_v47 = vor.u32 %v12064_v33, %v8442_v15  ;;  %v8434_v50 = vld [vmem:[#allocation5 + $0x388] sm:$0xf0]  ;;  %v12092_v52 = vld [vmem:[#allocation5 + $0x474] sm:$0xf] }
 0x11b   :  { %2960 = vmatpush.bf16.msrb.mxu3 %v8485_v63  ;;  %v8386_v63 = vld [vmem:[#allocation5 + $0x328] sm:$0xf0]  ;;  %v12062_v49 = vld [vmem:[#allocation5 + $0x384] sm:$0xf]  ;;  %v12124_v57 = vld [vmem:[#allocation5 + $0x574] sm:$0xf]  ;;  %v8309_v59 = vor.u32 %v12030_v44, %v8306_v45 }
 0x11c   :  { %2922 = vmatpush.bf16.msrb.mxu0 %v8285_v10  ;;  %v8261_v10 = vor.u32 %v12018_v55, %v8258_v56  ;;  %v8389_v17 = vor.u32 %v12050_v62, %v8386_v63  ;;  %v8618_v56 = vld [vmem:[#allocation5 + $0x4f8] sm:$0xf0]  ;;  %v12140_v62 = vld [vmem:[#allocation5 + $0x5f4] sm:$0xf]  ;;  %v12090_v7 = vld [vmem:[#allocation5 + $0x464] sm:$0xf] }
 0x11d   :  { %2935 = vmatpush.bf16.msrb.mxu1 %v8349_v11  ;;  %v2684_v11 = vpop.f32.mrf.mxu1  ;;  %v8746_v63 = vld [vmem:[#allocation5 + $0x5f8] sm:$0xf0]  ;;  %v12088_v33 = vld [vmem:[#allocation5 + $0x454] sm:$0xf] }
 0x11e   :  { %2948 = vmatpush.bf16.msrb.mxu2 %v8413_v14  ;;  %v13463_v14 = vadd.f32 %v2708_v3, %v2696_v0  ;;  %v8437_v0 = vor.u32 %v12062_v49, %v8434_v50  ;;  %v12106_v11 = vld [vmem:[#allocation5 + $0x4e4] sm:$0xf]  ;;  %v8538_v15 = vld [vmem:[#allocation5 + $0x458] sm:$0xf0]  ;;  %v12136_v44 = vld [vmem:[#allocation5 + $0x5d4] sm:$0xf] }
 0x11f   :  { %2961 = vmatpush.bf16.msrb.mxu3 %v8477_v12  ;;  %v8250_v12 = vld [vmem:[#allocation5 + $0x218] sm:$0xf0]  ;;  %v12086_v49 = vld [vmem:[#allocation5 + $0x444] sm:$0xf]  ;;  %v8530_v50 = vld [vmem:[#allocation5 + $0x448] sm:$0xf0] }
 0x120   :  { %2923 = vmatpush.bf16.msrb.mxu0 %v8277_v35  ;;  %v8253_v35 = vor.u32 %v12016_v21, %v8250_v12  ;;  %v2697_v51 = vpop.f32.mrf.mxu2  ;;  %v12122_v21 = vld [vmem:[#allocation5 + $0x564] sm:$0xf]  ;;  %v8674_v12 = vld [vmem:[#allocation5 + $0x568] sm:$0xf0]  ;;  %v8730_v45 = vld [vmem:[#allocation5 + $0x5d8] sm:$0xf0] }
 0x121   :  { %2936 = vmatpush.bf16.msrb.mxu1 %v8341_v39  ;;  %v8242_v39 = vld [vmem:[#allocation5 + $0x208] sm:$0xf0]  ;;  %v8677_v9 = vor.u32 %v12122_v21, %v8674_v12  ;;  %v8733_v51 = vor.u32 %v12136_v44, %v8730_v45  ;;  %v12098_v12 = vld [vmem:[#allocation5 + $0x4a4] sm:$0xf] }
 0x122   :  { %2949 = vmatpush.bf16.msrb.mxu2 %v8405_v41  ;;  %v8317_v41 = vor.u32 %v12032_v8, %v8314_v29  ;;  %v8245_v55 = vor.u32 %v12014_v25, %v8242_v39  ;;  %v12138_v8 = vld [vmem:[#allocation5 + $0x5e4] sm:$0xf]  ;;  %v8602_v39 = vld [vmem:[#allocation5 + $0x4d8] sm:$0xf0]  ;;  %v8514_v21 = vld [vmem:[#allocation5 + $0x428] sm:$0xf0] }
 0x123   :  { %2962 = vmatpush.bf16.msrb.mxu3 %v8469_v46  ;;  %v12046_v46 = vld [vmem:[#allocation5 + $0x304] sm:$0xf] }
 0x124   :  { %2924 = vmatpush.bf16.msrb.mxu0 %v8269_v53  ;;  %v8554_v53 = vld [vmem:[#allocation5 + $0x478] sm:$0xf0]  ;;  %v8373_v60 = vor.u32 %v12046_v46, %v8370_v48  ;;  %v8541_v46 = vor.u32 %v12088_v33, %v8538_v15 }
 0x125   :  { %2937 = vmatpush.bf16.msrb.mxu1 %v8333_v43  ;;  %v12108_v43 = vld [vmem:[#allocation5 + $0x4f4] sm:$0xf]  ;;  %v8557_v3 = vor.u32 %v12092_v52, %v8554_v53  ;;  %v8594_v52 = vld [vmem:[#allocation5 + $0x4c8] sm:$0xf0]  ;;  %v12118_v53 = vld [vmem:[#allocation5 + $0x544] sm:$0xf] }
 0x126   :  { %2950 = vmatpush.bf16.msrb.mxu2 %v8397_v54  ;;  %v2710_v54 = vpop.f32.mrf.mxu3  ;;  %v8621_v4 = vor.u32 %v12108_v43, %v8618_v56  ;;  %v8658_v43 = vld [vmem:[#allocation5 + $0x548] sm:$0xf0]  ;;  %v8533_v56 = vor.u32 %v12086_v49, %v8530_v50  ;;  %v12096_v49 = vld [vmem:[#allocation5 + $0x494] sm:$0xf] }
 0x127   :  { %2963 = vmatpush.bf16.msrb.mxu3 %v8461_v58  ;;  %v8682_v58 = vld [vmem:[#allocation5 + $0x578] sm:$0xf0] }
 0x128   :  { %2925 = vmatpush.bf16.msrb.mxu0 %v8261_v10  ;;  %v8685_v6 = vor.u32 %v12124_v57, %v8682_v58  ;;  %v8546_v10 = vld [vmem:[#allocation5 + $0x468] sm:$0xf0]  ;;  %v8661_v58 = vor.u32 %v12118_v53, %v8658_v43  ;;  %v12128_v53 = vld [vmem:[#allocation5 + $0x594] sm:$0xf]  ;;  %v8698_v43 = vld [vmem:[#allocation5 + $0x598] sm:$0xf0] }
 0x129   :  { %2938 = vmatpush.bf16.msrb.mxu1 %v8325_v16  ;;  %v8749_v16 = vor.u32 %v12140_v62, %v8746_v63  ;;  %v8549_v29 = vor.u32 %v12090_v7, %v8546_v10  ;;  %v12100_v62 = vld [vmem:[#allocation5 + $0x4b4] sm:$0xf]  ;;  %v8714_v10 = vld [vmem:[#allocation5 + $0x5b8] sm:$0xf0] }
 0x12a   :  { %2951 = vmatpush.bf16.msrb.mxu2 %v8389_v17  ;;  %v8610_v17 = vld [vmem:[#allocation5 + $0x4e8] sm:$0xf0]  ;;  %v12132_v7 = vld [vmem:[#allocation5 + $0x5b4] sm:$0xf] }
 0x12b   :  { %2964 = vmatpush.bf16.msrb.mxu3 %v8453_v28  ;;  %v8738_v28 = vld [vmem:[#allocation5 + $0x5e8] sm:$0xf0]  ;;  %v8613_v30 = vor.u32 %v12106_v11, %v8610_v17  ;;  %v12082_v17 = vld [vmem:[#allocation5 + $0x424] sm:$0xf] }
 0x12c   :  { %2926 = vmatpush.bf16.msrb.mxu0 %v8253_v35  ;;  %v12104_v35 = vld [vmem:[#allocation5 + $0x4d4] sm:$0xf]  ;;  %v8741_v25 = vor.u32 %v12138_v8, %v8738_v28  ;;  %v8717_v8 = vor.u32 %v12132_v7, %v8714_v10 }
 0x12d   :  { %2939 = vmatpush.bf16.msrb.mxu1 %v8317_v41  ;;  %v12120_v41 = vld [vmem:[#allocation5 + $0x554] sm:$0xf] }
 0x12e   :  { %2952 = vmatpush.bf16.msrb.mxu2 %v8381_v42  ;;  %v8666_v42 = vld [vmem:[#allocation5 + $0x558] sm:$0xf0] }
 0x12f   :  { %2965 = vmatpush.bf16.msrb.mxu3 %v8445_v47  ;;  %v8605_v47 = vor.u32 %v12104_v35, %v8602_v39  ;;  %v8669_v48 = vor.u32 %v12120_v41, %v8666_v42  ;;  %v12130_v35 = vld [vmem:[#allocation5 + $0x5a4] sm:$0xf]  ;;  %v8517_v41 = vor.u32 %v12082_v17, %v8514_v21 }
 0x130   :  { %2927 = vmatpush.bf16.msrb.mxu0 %v8245_v55  ;;  %v2721_v54 = vpop.f32.mrf.mxu0  ;;  %v8722_v55 = vld [vmem:[#allocation5 + $0x5c8] sm:$0xf0] }
 0x131   :  { %2940 = vmatpush.bf16.msrb.mxu1 %v8309_v59  ;;  %v12084_v59 = vld [vmem:[#allocation5 + $0x434] sm:$0xf] }
 0x132   :  { %2953 = vmatpush.bf16.msrb.mxu2 %v8373_v60  ;;  %v8522_v60 = vld [vmem:[#allocation5 + $0x438] sm:$0xf0] }
 0x133   :  { %2966 = vmatpush.bf16.msrb.mxu3 %v8437_v0  ;;  %2928 = vmatmul.bf16.vlgmr.msrb.gmra.mxu0 %v13395_v37  ;;  %v12134_v37 = vld [vmem:[#allocation5 + $0x5c4] sm:$0xf]  ;;  %v8525_v11 = vor.u32 %v12084_v59, %v8522_v60  ;;  %v8701_v59 = vor.u32 %v12128_v53, %v8698_v43  ;;  %v8626_v60 = vld [vmem:[#allocation5 + $0x508] sm:$0xf0]  ;;  %v8858_v53 = vld [vmem:[#allocation5 + $0x6d8] sm:$0xf0] }
 0x134   :  { %2972 = vmatpush.bf16.msra.mxu0 %v8557_v3  ;;  %2941 = vmatmul.bf16.vlgmr.msrb.gmra.mxu1 %v13399_v40  ;;  %v2734_v40 = vpop.f32.mrf.mxu1  ;;  %v8725_v63 = vor.u32 %v12134_v37, %v8722_v55  ;;  %v8586_v3 = vld [vmem:[#allocation5 + $0x4b8] sm:$0xf0]  ;;  %v12078_v37 = vld [vmem:[#allocation5 + $0x404] sm:$0xf]  ;;  %v8498_v55 = vld [vmem:[#allocation5 + $0x408] sm:$0xf0] }
 0x135   :  { %2985 = vmatpush.bf16.msra.mxu1 %v8621_v4  ;;  %2954 = vmatmul.bf16.vlgmr.msrb.gmra.mxu2 %v13393_v34  ;;  %v12102_v34 = vld [vmem:[#allocation5 + $0x4c4] sm:$0xf]  ;;  %v12116_v4 = vld [vmem:[#allocation5 + $0x534] sm:$0xf]  ;;  %v8501_v10 = vor.u32 %v12078_v37, %v8498_v55  ;;  %v8986_v55 = vld [vmem:[#allocation5 + $0x7d8] sm:$0xf0] }
 0x136   :  { %2998 = vmatpush.bf16.msra.mxu2 %v8685_v6  ;;  %2967 = vmatmul.bf16.vlgmr.msrb.gmra.mxu3 %v13397_v38  ;;  %v2722_v38 = vadd.f32 %v2721_v54, %v13463_v14  ;;  %v8597_v57 = vor.u32 %v12102_v34, %v8594_v52  ;;  %v8650_v6 = vld [vmem:[#allocation5 + $0x538] sm:$0xf0]  ;;  %v8589_v14 = vor.u32 %v12100_v62, %v8586_v3  ;;  %v12126_v62 = vld [vmem:[#allocation5 + $0x584] sm:$0xf]  ;;  %v12156_v3 = vld [vmem:[#allocation5 + $0x674] sm:$0xf] }
 0x137   :  { %3011 = vmatpush.bf16.msra.mxu3 %v8749_v16  ;;  %v8653_v16 = vor.u32 %v12116_v4, %v8650_v6  ;;  %v8570_v34 = vld [vmem:[#allocation5 + $0x498] sm:$0xf0]  ;;  %v12172_v6 = vld [vmem:[#allocation5 + $0x6f4] sm:$0xf] }
 0x138   :  { %2973 = vmatpush.bf16.msra.mxu0 %v8549_v29  ;;  %v2735_v0 = vadd.f32 %v2734_v40, %v2722_v38  ;;  %v2747_v28 = vpop.f32.mrf.mxu2  ;;  %v8578_v29 = vld [vmem:[#allocation5 + $0x4a8] sm:$0xf0]  ;;  %v2723_v39 = vpop.f32.mrf.mxu0  ;;  %v8634_v52 = vld [vmem:[#allocation5 + $0x518] sm:$0xf0]  ;;  %v8573_v38 = vor.u32 %v12096_v49, %v8570_v34  ;;  %v12094_v40 = vld [vmem:[#allocation5 + $0x484] sm:$0xf] }
 0x139   :  { %2986 = vmatpush.bf16.msra.mxu1 %v8613_v30  ;;  %v12114_v30 = vld [vmem:[#allocation5 + $0x524] sm:$0xf]  ;;  %v2760_v15 = vpop.f32.mrf.mxu3  ;;  %v8581_v45 = vor.u32 %v12098_v12, %v8578_v29  ;;  %v8810_v4 = vld [vmem:[#allocation5 + $0x678] sm:$0xf0]  ;;  %v12204_v12 = vld [vmem:[#allocation5 + $0x7f4] sm:$0xf] }
 0x13a   :  { %2999 = vmatpush.bf16.msra.mxu2 %v8677_v9  ;;  %v8642_v9 = vld [vmem:[#allocation5 + $0x528] sm:$0xf0]  ;;  %v2748_v33 = vadd.f32 %v2747_v28, %v2735_v0  ;;  %v8813_v29 = vor.u32 %v12156_v3, %v8810_v4  ;;  %v8794_v34 = vld [vmem:[#allocation5 + $0x658] sm:$0xf0]  ;;  %v12184_v43 = vld [vmem:[#allocation5 + $0x754] sm:$0xf] }
 0x13b   :  { %3012 = vmatpush.bf16.msra.mxu3 %v8741_v25  ;;  %v8706_v25 = vld [vmem:[#allocation5 + $0x5a8] sm:$0xf0]  ;;  %v12200_v37 = vld [vmem:[#allocation5 + $0x7d4] sm:$0xf] }
 0x13c   :  { %2974 = vmatpush.bf16.msra.mxu0 %v8541_v46  ;;  %v2736_v42 = vpop.f32.mrf.mxu1  ;;  %v13470_v44 = vadd.f32 %v2760_v15, %v2748_v33  ;;  %v8645_v46 = vor.u32 %v12114_v30, %v8642_v9  ;;  %v8709_v50 = vor.u32 %v12130_v35, %v8706_v25  ;;  %v12154_v33 = vld [vmem:[#allocation5 + $0x664] sm:$0xf]  ;;  %v8802_v15 = vld [vmem:[#allocation5 + $0x668] sm:$0xf0] }
 0x13d   :  { %2987 = vmatpush.bf16.msra.mxu1 %v8605_v47  ;;  %v12080_v47 = vld [vmem:[#allocation5 + $0x414] sm:$0xf]  ;;  %v12170_v35 = vld [vmem:[#allocation5 + $0x6e4] sm:$0xf]  ;;  %v8866_v39 = vld [vmem:[#allocation5 + $0x6e8] sm:$0xf0] }
 0x13e   :  { %3000 = vmatpush.bf16.msra.mxu2 %v8669_v48  ;;  %v8506_v48 = vld [vmem:[#allocation5 + $0x418] sm:$0xf0]  ;;  %v8930_v42 = vld [vmem:[#allocation5 + $0x768] sm:$0xf0] }
 0x13f   :  { %3013 = vmatpush.bf16.msra.mxu3 %v8733_v51  ;;  %v12112_v51 = vld [vmem:[#allocation5 + $0x514] sm:$0xf]  ;;  %v8509_v54 = vor.u32 %v12080_v47, %v8506_v48  ;;  %v8805_v47 = vor.u32 %v12154_v33, %v8802_v15  ;;  %v8869_v48 = vor.u32 %v12170_v35, %v8866_v39  ;;  %v12146_v33 = vld [vmem:[#allocation5 + $0x624] sm:$0xf]  ;;  %v8770_v15 = vld [vmem:[#allocation5 + $0x628] sm:$0xf0] }
 0x140   :  { %2975 = vmatpush.bf16.msra.mxu0 %v8533_v56  ;;  %v8637_v56 = vor.u32 %v12112_v51, %v8634_v52  ;;  %v2749_v0 = vpop.f32.mrf.mxu2  ;;  %v12168_v51 = vld [vmem:[#allocation5 + $0x6d4] sm:$0xf]  ;;  %v12162_v35 = vld [vmem:[#allocation5 + $0x6a4] sm:$0xf] }
 0x141   :  { %2988 = vmatpush.bf16.msra.mxu1 %v8597_v57  ;;  %v8562_v57 = vld [vmem:[#allocation5 + $0x488] sm:$0xf0]  ;;  %v2762_v7 = vpop.f32.mrf.mxu3 }
 0x142   :  { %3001 = vmatpush.bf16.msra.mxu2 %v8661_v58  ;;  %v12110_v58 = vld [vmem:[#allocation5 + $0x504] sm:$0xf]  ;;  %v8565_v17 = vor.u32 %v12094_v40, %v8562_v57  ;;  %v8978_v0 = vld [vmem:[#allocation5 + $0x7c8] sm:$0xf0] }
 0x143   :  { %3014 = vmatpush.bf16.msra.mxu3 %v8725_v63  ;;  %v8690_v63 = vld [vmem:[#allocation5 + $0x588] sm:$0xf0]  ;;  %v8629_v21 = vor.u32 %v12110_v58, %v8626_v60  ;;  %v12150_v57 = vld [vmem:[#allocation5 + $0x644] sm:$0xf] }
 0x144   :  { %2976 = vmatpush.bf16.msra.mxu0 %v8525_v11  ;;  %v8874_v11 = vld [vmem:[#allocation5 + $0x6f8] sm:$0xf0]  ;;  %v8693_v28 = vor.u32 %v12126_v62, %v8690_v63  ;;  %v12166_v58 = vld [vmem:[#allocation5 + $0x6c4] sm:$0xf]  ;;  %v8850_v60 = vld [vmem:[#allocation5 + $0x6c8] sm:$0xf0] }
 0x145   :  { %2989 = vmatpush.bf16.msra.mxu1 %v8589_v14  ;;  %v12188_v14 = vld [vmem:[#allocation5 + $0x774] sm:$0xf]  ;;  %v8877_v30 = vor.u32 %v12172_v6, %v8874_v11  ;;  %v12182_v62 = vld [vmem:[#allocation5 + $0x744] sm:$0xf]  ;;  %v8853_v6 = vor.u32 %v12166_v58, %v8850_v60  ;;  %v8778_v11 = vld [vmem:[#allocation5 + $0x638] sm:$0xf0] }
 0x146   :  { %3002 = vmatpush.bf16.msra.mxu2 %v8653_v16  ;;  %v8938_v16 = vld [vmem:[#allocation5 + $0x778] sm:$0xf0]  ;;  %v12142_v60 = vld [vmem:[#allocation5 + $0x604] sm:$0xf] }
 0x147   :  { %3015 = vmatpush.bf16.msra.mxu3 %v8717_v8  ;;  %v9002_v8 = vld [vmem:[#allocation5 + $0x7f8] sm:$0xf0]  ;;  %v8941_v9 = vor.u32 %v12188_v14, %v8938_v16  ;;  %v12164_v14 = vld [vmem:[#allocation5 + $0x6b4] sm:$0xf] }
 0x148   :  { %2977 = vmatpush.bf16.msra.mxu0 %v8517_v41  ;;  %v9005_v25 = vor.u32 %v12204_v12, %v9002_v8  ;;  %v12186_v41 = vld [vmem:[#allocation5 + $0x764] sm:$0xf]  ;;  %v12180_v12 = vld [vmem:[#allocation5 + $0x734] sm:$0xf]  ;;  %v8906_v8 = vld [vmem:[#allocation5 + $0x738] sm:$0xf0] }
 0x149   :  { %2990 = vmatpush.bf16.msra.mxu1 %v8581_v45  ;;  %v12202_v45 = vld [vmem:[#allocation5 + $0x7e4] sm:$0xf]  ;;  %v8933_v49 = vor.u32 %v12186_v41, %v8930_v42  ;;  %v8834_v41 = vld [vmem:[#allocation5 + $0x6a8] sm:$0xf0]  ;;  %v8954_v58 = vld [vmem:[#allocation5 + $0x798] sm:$0xf0] }
 0x14a   :  { %3003 = vmatpush.bf16.msra.mxu2 %v8645_v46  ;;  %v8994_v46 = vld [vmem:[#allocation5 + $0x7e8] sm:$0xf0]  ;;  %v12178_v42 = vld [vmem:[#allocation5 + $0x724] sm:$0xf] }
 0x14b   :  { %3016 = vmatpush.bf16.msra.mxu3 %v8709_v50  ;;  %v12152_v50 = vld [vmem:[#allocation5 + $0x654] sm:$0xf]  ;;  %v8997_v52 = vor.u32 %v12202_v45, %v8994_v46  ;;  %v8898_v45 = vld [vmem:[#allocation5 + $0x728] sm:$0xf0] }
 0x14c   :  { %2978 = vmatpush.bf16.msra.mxu0 %v8509_v54  ;;  %v8922_v54 = vld [vmem:[#allocation5 + $0x758] sm:$0xf0] }
 0x14d   :  { %2991 = vmatpush.bf16.msra.mxu1 %v8573_v38  ;;  %v8797_v38 = vor.u32 %v12152_v50, %v8794_v34  ;;  %v8925_v40 = vor.u32 %v12184_v43, %v8922_v54  ;;  %v8773_v34 = vor.u32 %v12146_v33, %v8770_v15  ;;  %v8901_v43 = vor.u32 %v12178_v42, %v8898_v45  ;;  %v12144_v54 = vld [vmem:[#allocation5 + $0x614] sm:$0xf]  ;;  %v12234_v42 = vld [vmem:[#allocation5 + $0x8e4] sm:$0xf] }
 0x14e   :  { %3004 = vmatpush.bf16.msra.mxu2 %v8637_v56  ;;  %v8861_v56 = vor.u32 %v12168_v51, %v8858_v53  ;;  %v8837_v53 = vor.u32 %v12162_v35, %v8834_v41  ;;  %v9058_v41 = vld [vmem:[#allocation5 + $0x868] sm:$0xf0] }
 0x14f   :  { %3017 = vmatpush.bf16.msra.mxu3 %v8701_v59  ;;  %v8989_v59 = vor.u32 %v12200_v37, %v8986_v55  ;;  %v8762_v37 = vld [vmem:[#allocation5 + $0x618] sm:$0xf0]  ;;  %v12160_v55 = vld [vmem:[#allocation5 + $0x694] sm:$0xf] }
 0x150   :  { %2979 = vmatpush.bf16.msra.mxu0 %v8501_v10  ;;  %v2773_v63 = vpop.f32.mrf.mxu0  ;;  %v12148_v10 = vld [vmem:[#allocation5 + $0x634] sm:$0xf] }
 0x151   :  { %2992 = vmatpush.bf16.msra.mxu1 %v8565_v17  ;;  %v2786_v4 = vpop.f32.mrf.mxu1 }
 0x152   :  { %3005 = vmatpush.bf16.msra.mxu2 %v8629_v21  ;;  %v8842_v21 = vld [vmem:[#allocation5 + $0x6b8] sm:$0xf0] }
 0x153   :  { %3018 = vmatpush.bf16.msra.mxu3 %v8693_v28  ;;  %2980 = vmatmul.bf16.vlgmr.msra.gmra.mxu0 %v13405_v18  ;;  %v8786_v18 = vld [vmem:[#allocation5 + $0x648] sm:$0xf0]  ;;  %v12196_v28 = vld [vmem:[#allocation5 + $0x7b4] sm:$0xf] }
 0x154   :  { %3024 = vmatpush.bf16.msrb.mxu0 %v8813_v29  ;;  %2993 = vmatmul.bf16.vlgmr.msra.gmra.mxu1 %v13409_v23  ;;  %v12198_v23 = vld [vmem:[#allocation5 + $0x7c4] sm:$0xf]  ;;  %v8789_v3 = vor.u32 %v12150_v57, %v8786_v18  ;;  %v8970_v29 = vld [vmem:[#allocation5 + $0x7b8] sm:$0xf0]  ;;  %v12192_v18 = vld [vmem:[#allocation5 + $0x794] sm:$0xf] }
 0x155   :  { %3037 = vmatpush.bf16.msrb.mxu1 %v8877_v30  ;;  %3006 = vmatmul.bf16.vlgmr.msra.gmra.mxu2 %v13407_v22  ;;  %v8914_v22 = vld [vmem:[#allocation5 + $0x748] sm:$0xf0]  ;;  %v8981_v16 = vor.u32 %v12198_v23, %v8978_v0  ;;  %v8781_v30 = vor.u32 %v12148_v10, %v8778_v11  ;;  %v8890_v57 = vld [vmem:[#allocation5 + $0x718] sm:$0xf0]  ;;  %v12158_v23 = vld [vmem:[#allocation5 + $0x684] sm:$0xf] }
 0x156   :  { %3050 = vmatpush.bf16.msrb.mxu2 %v8941_v9  ;;  %3019 = vmatmul.bf16.vlgmr.msra.gmra.mxu3 %v13411_v27  ;;  %v2774_v27 = vadd.f32 %v2773_v63, %v13470_v44  ;;  %v8917_v7 = vor.u32 %v12182_v62, %v8914_v22  ;;  %v8845_v44 = vor.u32 %v12164_v14, %v8842_v21  ;;  %v8754_v62 = vld [vmem:[#allocation5 + $0x608] sm:$0xf0]  ;;  %v12220_v11 = vld [vmem:[#allocation5 + $0x874] sm:$0xf]  ;;  %v9066_v14 = vld [vmem:[#allocation5 + $0x878] sm:$0xf0] }
 0x157   :  { %3063 = vmatpush.bf16.msrb.mxu3 %v9005_v25  ;;  %v8909_v9 = vor.u32 %v12180_v12, %v8906_v8  ;;  %v8973_v25 = vor.u32 %v12196_v28, %v8970_v29  ;;  %v8818_v0 = vld [vmem:[#allocation5 + $0x688] sm:$0xf0]  ;;  %v8757_v21 = vor.u32 %v12142_v60, %v8754_v62  ;;  %v9130_v12 = vld [vmem:[#allocation5 + $0x8f8] sm:$0xf0]  ;;  %v12252_v8 = vld [vmem:[#allocation5 + $0x974] sm:$0xf]  ;;  %v9069_v15 = vor.u32 %v12220_v11, %v9066_v14 }
 0x158   :  { %3025 = vmatpush.bf16.msrb.mxu0 %v8805_v47  ;;  %v2787_v17 = vadd.f32 %v2786_v4, %v2774_v27  ;;  %v2799_v39 = vpop.f32.mrf.mxu2  ;;  %v2775_v50 = vpop.f32.mrf.mxu0  ;;  %v12174_v27 = vld [vmem:[#allocation5 + $0x704] sm:$0xf]  ;;  %v8882_v4 = vld [vmem:[#allocation5 + $0x708] sm:$0xf0]  ;;  %v9194_v28 = vld [vmem:[#allocation5 + $0x978] sm:$0xf0]  ;;  %v8821_v29 = vor.u32 %v12158_v23, %v8818_v0 }
 0x159   :  { %3038 = vmatpush.bf16.msrb.mxu1 %v8869_v48  ;;  %v2812_v47 = vpop.f32.mrf.mxu3  ;;  %v12194_v48 = vld [vmem:[#allocation5 + $0x7a4] sm:$0xf]  ;;  %v2788_v51 = vpop.f32.mrf.mxu1  ;;  %v9250_v50 = vld [vmem:[#allocation5 + $0x9e8] sm:$0xf0]  ;;  %v12212_v11 = vld [vmem:[#allocation5 + $0x834] sm:$0xf] }
 0x15a   :  { %3051 = vmatpush.bf16.msrb.mxu2 %v8933_v49  ;;  %v2800_v46 = vadd.f32 %v2799_v39, %v2787_v17  ;;  %v8962_v49 = vld [vmem:[#allocation5 + $0x7a8] sm:$0xf0]  ;;  %v12218_v39 = vld [vmem:[#allocation5 + $0x864] sm:$0xf]  ;;  %v9034_v14 = vld [vmem:[#allocation5 + $0x838] sm:$0xf0] }
 0x15b   :  { %3064 = vmatpush.bf16.msrb.mxu3 %v8997_v52  ;;  %v12214_v62 = vld [vmem:[#allocation5 + $0x844] sm:$0xf]  ;;  %v9106_v23 = vld [vmem:[#allocation5 + $0x8c8] sm:$0xf0] }
 0x15c   :  { %3026 = vmatpush.bf16.msrb.mxu0 %v8797_v38  ;;  %v13477_v52 = vadd.f32 %v2812_v47, %v2800_v46  ;;  %v8965_v38 = vor.u32 %v12194_v48, %v8962_v49  ;;  %v9122_v46 = vld [vmem:[#allocation5 + $0x8e8] sm:$0xf0]  ;;  %v12250_v47 = vld [vmem:[#allocation5 + $0x964] sm:$0xf] }
 0x15d   :  { %3039 = vmatpush.bf16.msrb.mxu1 %v8861_v56  ;;  %v8826_v56 = vld [vmem:[#allocation5 + $0x698] sm:$0xf0]  ;;  %v9186_v48 = vld [vmem:[#allocation5 + $0x968] sm:$0xf0]  ;;  %v12266_v49 = vld [vmem:[#allocation5 + $0x9e4] sm:$0xf]  ;;  %v9125_v51 = vor.u32 %v12234_v42, %v9122_v46 }
 0x15e   :  { %3052 = vmatpush.bf16.msrb.mxu2 %v8925_v40  ;;  %v12176_v40 = vld [vmem:[#allocation5 + $0x714] sm:$0xf]  ;;  %v8829_v22 = vor.u32 %v12160_v55, %v8826_v56  ;;  %v9253_v55 = vor.u32 %v12266_v49, %v9250_v50  ;;  %v12246_v0 = vld [vmem:[#allocation5 + $0x944] sm:$0xf]  ;;  %v9218_v49 = vld [vmem:[#allocation5 + $0x9a8] sm:$0xf0] }
 0x15f   :  { %3065 = vmatpush.bf16.msrb.mxu3 %v8989_v59  ;;  %v8765_v59 = vor.u32 %v12144_v54, %v8762_v37  ;;  %v8893_v63 = vor.u32 %v12176_v40, %v8890_v57  ;;  %v9050_v54 = vld [vmem:[#allocation5 + $0x858] sm:$0xf0]  ;;  %v12232_v37 = vld [vmem:[#allocation5 + $0x8d4] sm:$0xf]  ;;  %v12242_v42 = vld [vmem:[#allocation5 + $0x924] sm:$0xf] }
 0x160   :  { %3027 = vmatpush.bf16.msrb.mxu0 %v8789_v3  ;;  %v8957_v3 = vor.u32 %v12192_v18, %v8954_v58  ;;  %v2801_v10 = vpop.f32.mrf.mxu2  ;;  %v12248_v56 = vld [vmem:[#allocation5 + $0x954] sm:$0xf]  ;;  %v9178_v40 = vld [vmem:[#allocation5 + $0x958] sm:$0xf0] }
 0x161   :  { %3040 = vmatpush.bf16.msrb.mxu1 %v8853_v6  ;;  %v12190_v6 = vld [vmem:[#allocation5 + $0x784] sm:$0xf]  ;;  %v2814_v17 = vpop.f32.mrf.mxu3  ;;  %v12264_v57 = vld [vmem:[#allocation5 + $0x9d4] sm:$0xf]  ;;  %v9242_v18 = vld [vmem:[#allocation5 + $0x9d8] sm:$0xf0]  ;;  %v9181_v60 = vor.u32 %v12248_v56, %v9178_v40 }
 0x162   :  { %3053 = vmatpush.bf16.msrb.mxu2 %v8917_v7  ;;  %v8946_v7 = vld [vmem:[#allocation5 + $0x788] sm:$0xf0]  ;;  %v9082_v40 = vld [vmem:[#allocation5 + $0x898] sm:$0xf0] }
 0x163   :  { %3066 = vmatpush.bf16.msrb.mxu3 %v8981_v16  ;;  %v12236_v16 = vld [vmem:[#allocation5 + $0x8f4] sm:$0xf]  ;;  %v8949_v33 = vor.u32 %v12190_v6, %v8946_v7 }
 0x164   :  { %3028 = vmatpush.bf16.msrb.mxu0 %v8781_v30  ;;  %v8885_v30 = vor.u32 %v12174_v27, %v8882_v4  ;;  %v9133_v35 = vor.u32 %v12236_v16, %v9130_v12  ;;  %v12228_v16 = vld [vmem:[#allocation5 + $0x8b4] sm:$0xf]  ;;  %v9098_v12 = vld [vmem:[#allocation5 + $0x8b8] sm:$0xf0] }
 0x165   :  { %3041 = vmatpush.bf16.msrb.mxu1 %v8845_v44  ;;  %v12268_v44 = vld [vmem:[#allocation5 + $0x9f4] sm:$0xf] }
 0x166   :  { %3054 = vmatpush.bf16.msrb.mxu2 %v8909_v9  ;;  %v9258_v9 = vld [vmem:[#allocation5 + $0x9f8] sm:$0xf0] }
 0x167   :  { %3067 = vmatpush.bf16.msrb.mxu3 %v8973_v25  ;;  %v9197_v25 = vor.u32 %v12252_v8, %v9194_v28  ;;  %v9261_v45 = vor.u32 %v12268_v44, %v9258_v9  ;;  %v12244_v8 = vld [vmem:[#allocation5 + $0x934] sm:$0xf]  ;;  %v9162_v28 = vld [vmem:[#allocation5 + $0x938] sm:$0xf0]  ;;  %v9037_v44 = vor.u32 %v12212_v11, %v9034_v14 }
 0x168   :  { %3029 = vmatpush.bf16.msrb.mxu0 %v8773_v34  ;;  %v9061_v34 = vor.u32 %v12218_v39, %v9058_v41  ;;  %v9165_v9 = vor.u32 %v12244_v8, %v9162_v28  ;;  %v9090_v41 = vld [vmem:[#allocation5 + $0x8a8] sm:$0xf0]  ;;  %v12332_v28 = vld [vmem:[#allocation5 + $0xbf4] sm:$0xf] }
 0x169   :  { %3042 = vmatpush.bf16.msrb.mxu1 %v8837_v53  ;;  %v9189_v53 = vor.u32 %v12250_v47, %v9186_v48  ;;  %v12258_v48 = vld [vmem:[#allocation5 + $0x9a4] sm:$0xf] }
 0x16a   :  { %3055 = vmatpush.bf16.msrb.mxu2 %v8901_v43  ;;  %v12216_v43 = vld [vmem:[#allocation5 + $0x854] sm:$0xf]  ;;  %v9221_v56 = vor.u32 %v12258_v48, %v9218_v49 }
 0x16b   :  { %3068 = vmatpush.bf16.msrb.mxu3 %v8965_v38  ;;  %v9114_v38 = vld [vmem:[#allocation5 + $0x8d8] sm:$0xf0]  ;;  %v9053_v58 = vor.u32 %v12216_v43, %v9050_v54 }
 0x16c   :  { %3030 = vmatpush.bf16.msrb.mxu0 %v8765_v59  ;;  %v9117_v59 = vor.u32 %v12232_v37, %v9114_v38  ;;  %v12208_v37 = vld [vmem:[#allocation5 + $0x814] sm:$0xf] }
 0x16d   :  { %3043 = vmatpush.bf16.msrb.mxu1 %v8829_v22  ;;  %v12230_v22 = vld [vmem:[#allocation5 + $0x8c4] sm:$0xf]  ;;  %v12224_v38 = vld [vmem:[#allocation5 + $0x894] sm:$0xf] }
 0x16e   :  { %3056 = vmatpush.bf16.msrb.mxu2 %v8893_v63  ;;  %v9245_v63 = vor.u32 %v12264_v57, %v9242_v18  ;;  %v9109_v7 = vor.u32 %v12230_v22, %v9106_v23  ;;  %v12240_v57 = vld [vmem:[#allocation5 + $0x914] sm:$0xf]  ;;  %v9146_v18 = vld [vmem:[#allocation5 + $0x918] sm:$0xf0]  ;;  %v9085_v22 = vor.u32 %v12224_v38, %v9082_v40  ;;  %v12222_v23 = vld [vmem:[#allocation5 + $0x884] sm:$0xf] }
 0x16f   :  { %3069 = vmatpush.bf16.msrb.mxu3 %v8957_v3  ;;  %v9234_v3 = vld [vmem:[#allocation5 + $0x9c8] sm:$0xf0]  ;;  %v12328_v38 = vld [vmem:[#allocation5 + $0xbd4] sm:$0xf] }
 0x170   :  { %3031 = vmatpush.bf16.msrb.mxu0 %v8757_v21  ;;  %v2825_v27 = vpop.f32.mrf.mxu0 }
 0x171   :  { %3044 = vmatpush.bf16.msrb.mxu1 %v8821_v29  ;;  %v2838_v6 = vpop.f32.mrf.mxu1  ;;  %v12260_v29 = vld [vmem:[#allocation5 + $0x9b4] sm:$0xf] }
 0x172   :  { %3057 = vmatpush.bf16.msrb.mxu2 %v8885_v30  ;;  %v9226_v30 = vld [vmem:[#allocation5 + $0x9b8] sm:$0xf0] }
 0x173   :  { %3070 = vmatpush.bf16.msrb.mxu3 %v8949_v33  ;;  %3032 = vmatmul.bf16.vlgmr.msrb.gmra.mxu0 %v13417_v13  ;;  %v9042_v13 = vld [vmem:[#allocation5 + $0x848] sm:$0xf0]  ;;  %v12210_v33 = vld [vmem:[#allocation5 + $0x824] sm:$0xf] }
 0x174   :  { %3076 = vmatpush.bf16.msra.mxu0 %v9069_v15  ;;  %3045 = vmatmul.bf16.vlgmr.msrb.gmra.mxu1 %v13421_v20  ;;  %v12262_v20 = vld [vmem:[#allocation5 + $0x9c4] sm:$0xf]  ;;  %v9045_v4 = vor.u32 %v12214_v62, %v9042_v13  ;;  %v9026_v15 = vld [vmem:[#allocation5 + $0x828] sm:$0xf0] }
 0x175   :  { %3089 = vmatpush.bf16.msra.mxu1 %v9133_v35  ;;  %3058 = vmatmul.bf16.vlgmr.msrb.gmra.mxu2 %v13419_v19  ;;  %v9170_v19 = vld [vmem:[#allocation5 + $0x948] sm:$0xf0]  ;;  %v9237_v17 = vor.u32 %v12262_v20, %v9234_v3  ;;  %v12226_v35 = vld [vmem:[#allocation5 + $0x8a4] sm:$0xf] }
 0x176   :  { %3102 = vmatpush.bf16.msra.mxu2 %v9197_v25  ;;  %3071 = vmatmul.bf16.vlgmr.msrb.gmra.mxu3 %v13423_v26  ;;  %v2826_v26 = vadd.f32 %v2825_v27, %v13477_v52  ;;  %v9173_v10 = vor.u32 %v12246_v0, %v9170_v19  ;;  %v9101_v52 = vor.u32 %v12228_v16, %v9098_v12  ;;  %v12206_v62 = vld [vmem:[#allocation5 + $0x804] sm:$0xf]  ;;  %v9010_v13 = vld [vmem:[#allocation5 + $0x808] sm:$0xf0]  ;;  %v9386_v16 = vld [vmem:[#allocation5 + $0xaf8] sm:$0xf0] }
 0x177   :  { %3115 = vmatpush.bf16.msra.mxu3 %v9261_v45  ;;  %v9229_v25 = vor.u32 %v12260_v29, %v9226_v30  ;;  %v9154_v45 = vld [vmem:[#allocation5 + $0x928] sm:$0xf0]  ;;  %v9093_v43 = vor.u32 %v12226_v35, %v9090_v41  ;;  %v12238_v19 = vld [vmem:[#allocation5 + $0x904] sm:$0xf]  ;;  %v9013_v14 = vor.u32 %v12206_v62, %v9010_v13  ;;  %v9514_v29 = vld [vmem:[#allocation5 + $0xbf8] sm:$0xf0] }
 0x178   :  { %3077 = vmatpush.bf16.msra.mxu0 %v9061_v34  ;;  %v2839_v21 = vadd.f32 %v2838_v6, %v2826_v26  ;;  %v2851_v39 = vpop.f32.mrf.mxu2  ;;  %v2827_v50 = vpop.f32.mrf.mxu0  ;;  %v9029_v34 = vor.u32 %v12210_v33, %v9026_v15  ;;  %v9157_v54 = vor.u32 %v12242_v42, %v9154_v45  ;;  %v9074_v0 = vld [vmem:[#allocation5 + $0x888] sm:$0xf0]  ;;  %v12254_v3 = vld [vmem:[#allocation5 + $0x984] sm:$0xf]  ;;  %v12284_v6 = vld [vmem:[#allocation5 + $0xa74] sm:$0xf] }
 0x179   :  { %3090 = vmatpush.bf16.msra.mxu1 %v9125_v51  ;;  %v2864_v47 = vpop.f32.mrf.mxu3  ;;  %v2840_v51 = vpop.f32.mrf.mxu1  ;;  %v9138_v20 = vld [vmem:[#allocation5 + $0x908] sm:$0xf0]  ;;  %v9077_v12 = vor.u32 %v12222_v23, %v9074_v0  ;;  %v12282_v33 = vld [vmem:[#allocation5 + $0xa64] sm:$0xf]  ;;  %v12280_v50 = vld [vmem:[#allocation5 + $0xa54] sm:$0xf] }
 0x17a   :  { %3103 = vmatpush.bf16.msra.mxu2 %v9189_v53  ;;  %v2852_v46 = vadd.f32 %v2851_v39, %v2839_v21  ;;  %v9202_v26 = vld [vmem:[#allocation5 + $0x988] sm:$0xf0]  ;;  %v9450_v21 = vld [vmem:[#allocation5 + $0xb78] sm:$0xf0]  ;;  %v9141_v8 = vor.u32 %v12238_v19, %v9138_v20  ;;  %v12298_v35 = vld [vmem:[#allocation5 + $0xae4] sm:$0xf] }
 0x17b   :  { %3116 = vmatpush.bf16.msra.mxu3 %v9253_v55  ;;  %v9018_v55 = vld [vmem:[#allocation5 + $0x818] sm:$0xf0]  ;;  %v9205_v30 = vor.u32 %v12254_v3, %v9202_v26  ;;  %v9314_v15 = vld [vmem:[#allocation5 + $0xa68] sm:$0xf0]  ;;  %v12314_v41 = vld [vmem:[#allocation5 + $0xb64] sm:$0xf] }
 0x17c   :  { %3078 = vmatpush.bf16.msra.mxu0 %v9053_v58  ;;  %v13484_v53 = vadd.f32 %v2864_v47, %v2852_v46  ;;  %v12256_v58 = vld [vmem:[#allocation5 + $0x994] sm:$0xf]  ;;  %v9378_v39 = vld [vmem:[#allocation5 + $0xae8] sm:$0xf0]  ;;  %v12330_v45 = vld [vmem:[#allocation5 + $0xbe4] sm:$0xf]  ;;  %v9317_v47 = vor.u32 %v12282_v33, %v9314_v15 }
 0x17d   :  { %3091 = vmatpush.bf16.msra.mxu1 %v9117_v59  ;;  %v9210_v59 = vld [vmem:[#allocation5 + $0x998] sm:$0xf0]  ;;  %v9442_v42 = vld [vmem:[#allocation5 + $0xb68] sm:$0xf0]  ;;  %v9381_v48 = vor.u32 %v12298_v35, %v9378_v39  ;;  %v12296_v51 = vld [vmem:[#allocation5 + $0xad4] sm:$0xf] }
 0x17e   :  { %3104 = vmatpush.bf16.msra.mxu2 %v9181_v60  ;;  %v9021_v60 = vor.u32 %v12208_v37, %v9018_v55  ;;  %v9213_v27 = vor.u32 %v12256_v58, %v9210_v59  ;;  %v9506_v46 = vld [vmem:[#allocation5 + $0xbe8] sm:$0xf0]  ;;  %v9445_v49 = vor.u32 %v12314_v41, %v9442_v42  ;;  %v12312_v37 = vld [vmem:[#allocation5 + $0xb54] sm:$0xf]  ;;  %v9434_v55 = vld [vmem:[#allocation5 + $0xb58] sm:$0xf0] }
 0x17f   :  { %3117 = vmatpush.bf16.msra.mxu3 %v9245_v63  ;;  %v9149_v63 = vor.u32 %v12240_v57, %v9146_v18  ;;  %v12278_v57 = vld [vmem:[#allocation5 + $0xa44] sm:$0xf]  ;;  %v9437_v58 = vor.u32 %v12312_v37, %v9434_v55  ;;  %v9490_v23 = vld [vmem:[#allocation5 + $0xbc8] sm:$0xf0]  ;;  %v12276_v20 = vld [vmem:[#allocation5 + $0xa34] sm:$0xf] }
 0x180   :  { %3079 = vmatpush.bf16.msra.mxu0 %v9045_v4  ;;  %v2853_v4 = vpop.f32.mrf.mxu2  ;;  %v12294_v59 = vld [vmem:[#allocation5 + $0xac4] sm:$0xf]  ;;  %v9290_v3 = vld [vmem:[#allocation5 + $0xa38] sm:$0xf0]  ;;  %v12292_v26 = vld [vmem:[#allocation5 + $0xab4] sm:$0xf] }
 0x181   :  { %3092 = vmatpush.bf16.msra.mxu1 %v9109_v7  ;;  %v9322_v7 = vld [vmem:[#allocation5 + $0xa78] sm:$0xf0]  ;;  %v2866_v11 = vpop.f32.mrf.mxu3  ;;  %v9346_v33 = vld [vmem:[#allocation5 + $0xaa8] sm:$0xf0]  ;;  %v12306_v15 = vld [vmem:[#allocation5 + $0xb24] sm:$0xf] }
 0x182   :  { %3105 = vmatpush.bf16.msra.mxu2 %v9173_v10  ;;  %v12300_v10 = vld [vmem:[#allocation5 + $0xaf4] sm:$0xf]  ;;  %v9410_v35 = vld [vmem:[#allocation5 + $0xb28] sm:$0xf0]  ;;  %v12322_v41 = vld [vmem:[#allocation5 + $0xba4] sm:$0xf] }
 0x183   :  { %3118 = vmatpush.bf16.msra.mxu3 %v9237_v17  ;;  %v12316_v17 = vld [vmem:[#allocation5 + $0xb74] sm:$0xf]  ;;  %v9474_v42 = vld [vmem:[#allocation5 + $0xba8] sm:$0xf0]  ;;  %v9338_v37 = vld [vmem:[#allocation5 + $0xa98] sm:$0xf0] }
 0x184   :  { %3080 = vmatpush.bf16.msra.mxu0 %v9037_v44  ;;  %v9325_v44 = vor.u32 %v12284_v6, %v9322_v7  ;;  %v12308_v11 = vld [vmem:[#allocation5 + $0xb34] sm:$0xf] }
 0x185   :  { %3093 = vmatpush.bf16.msra.mxu1 %v9101_v52  ;;  %v9389_v52 = vor.u32 %v12300_v10, %v9386_v16  ;;  %v9354_v10 = vld [vmem:[#allocation5 + $0xab8] sm:$0xf0]  ;;  %v12324_v16 = vld [vmem:[#allocation5 + $0xbb4] sm:$0xf] }
 0x186   :  { %3106 = vmatpush.bf16.msra.mxu2 %v9165_v9  ;;  %v9453_v9 = vor.u32 %v12316_v17, %v9450_v21  ;;  %v9482_v17 = vld [vmem:[#allocation5 + $0xbb8] sm:$0xf0]  ;;  %v12304_v55 = vld [vmem:[#allocation5 + $0xb14] sm:$0xf] }
 0x187   :  { %3119 = vmatpush.bf16.msra.mxu3 %v9229_v25  ;;  %v9517_v25 = vor.u32 %v12332_v28, %v9514_v29  ;;  %v12274_v29 = vld [vmem:[#allocation5 + $0xa24] sm:$0xf] }
 0x188   :  { %3081 = vmatpush.bf16.msra.mxu0 %v9029_v34  ;;  %v9306_v34 = vld [vmem:[#allocation5 + $0xa58] sm:$0xf0] }
 0x189   :  { %3094 = vmatpush.bf16.msra.mxu1 %v9093_v43  ;;  %v9509_v43 = vor.u32 %v12330_v45, %v9506_v46  ;;  %v9309_v40 = vor.u32 %v12280_v50, %v9306_v34  ;;  %v12272_v50 = vld [vmem:[#allocation5 + $0xa14] sm:$0xf]  ;;  %v9274_v34 = vld [vmem:[#allocation5 + $0xa18] sm:$0xf0] }
 0x18a   :  { %3107 = vmatpush.bf16.msra.mxu2 %v9157_v54  ;;  %v9370_v54 = vld [vmem:[#allocation5 + $0xad8] sm:$0xf0] }
 0x18b   :  { %3120 = vmatpush.bf16.msra.mxu3 %v9221_v56  ;;  %v9498_v56 = vld [vmem:[#allocation5 + $0xbd8] sm:$0xf0]  ;;  %v9373_v18 = vor.u32 %v12296_v51, %v9370_v54  ;;  %v12288_v51 = vld [vmem:[#allocation5 + $0xa94] sm:$0xf]  ;;  %v9477_v54 = vor.u32 %v12322_v41, %v9474_v42 }
 0x18c   :  { %3082 = vmatpush.bf16.msra.mxu0 %v9021_v60  ;;  %v12963_v60 = vld [vmem:[#allocation7] sm:$0x3]  ;;  %v9501_v13 = vor.u32 %v12328_v38, %v9498_v56  ;;  %v9402_v38 = vld [vmem:[#allocation5 + $0xb18] sm:$0xf0]  ;;  %v12320_v56 = vld [vmem:[#allocation5 + $0xb94] sm:$0xf] }
 0x18d   :  { %3095 = vmatpush.bf16.msra.mxu1 %v9085_v22  ;;  %v633_v62 = vperm.slane %v12963_v60, 1  ;;  %v12310_v22 = vld [vmem:[#allocation5 + $0xb44] sm:$0xf]  ;;  %v12348_v41 = vld [vmem:[#allocation8 + $0x6c] sm:$0xf0] }
 0x18e   :  { %3108 = vmatpush.bf16.msra.mxu2 %v9149_v63  ;;  %v12326_v63 = vld [vmem:[#allocation5 + $0xbc4] sm:$0xf] }
 0x18f   :  { %3121 = vmatpush.bf16.msra.mxu3 %v9213_v27  ;;  %v9493_v7 = vor.u32 %v12326_v63, %v9490_v23  ;;  %v12286_v60 = vld [vmem:[#allocation5 + $0xa84] sm:$0xf] }
 0x190   :  { %3083 = vmatpush.bf16.msra.mxu0 %v9013_v14  ;;  %v2877_v0 = vpop.f32.mrf.mxu0  ;;  %v9418_v14 = vld [vmem:[#allocation5 + $0xb38] sm:$0xf0]  ;;  %v12318_v63 = vld [vmem:[#allocation5 + $0xb84] sm:$0xf] }
 0x191   :  { %3096 = vmatpush.bf16.msra.mxu1 %v9077_v12  ;;  %v2878_v4 = vadd.f32 %v2877_v0, %v633_v62  ;;  %v2890_v6 = vpop.f32.mrf.mxu1  ;;  %v9293_v12 = vor.u32 %v12276_v20, %v9290_v3  ;;  %v9421_v28 = vor.u32 %v12308_v11, %v9418_v14  ;;  %v9330_v62 = vld [vmem:[#allocation5 + $0xa88] sm:$0xf0]  ;;  %v9632_v0 = vld [vmem:[#allocation8 + $0xe0] sm:$0xf]  ;;  %v12362_v20 = vld [vmem:[#allocation8 + $0xe4] sm:$0xf] }
 0x192   :  { %3109 = vmatpush.bf16.msra.mxu2 %v9141_v8  ;;  %v9357_v8 = vor.u32 %v12292_v26, %v9354_v10  ;;  %v9634_v3 = vld [vmem:[#allocation8 + $0xf0] sm:$0xf0]  ;;  %v9333_v26 = vor.u32 %v12286_v60, %v9330_v62  ;;  %v9616_v11 = vld [vmem:[#allocation8 + $0xc0] sm:$0xf]  ;;  %v12360_v14 = vld [vmem:[#allocation8 + $0xcc] sm:$0xf0] }
 0x193   :  { %3122 = vmatpush.bf16.msra.mxu3 %v9205_v30  ;;  %3084 = vmatmul.bf16.vlgmr.msra.gmra.mxu0 %v13429_v24  ;;  %v9298_v24 = vld [vmem:[#allocation5 + $0xa48] sm:$0xf0]  ;;  %v2891_v21 = vadd.f32 %v2890_v6, %v2878_v4  ;;  %v9637_v10 = vor.u32 %v12362_v20, %v9634_v3  ;;  %v3180_v3 = vmax.f32 %v13484_v53, 0.0 }
 0x194   :  { %3128 = vmatpush.bf16.msrb.mxu0 %v9325_v44  ;;  %3097 = vmatmul.bf16.vlgmr.msra.gmra.mxu1 %v13433_v32  ;;  %v9426_v32 = vld [vmem:[#allocation5 + $0xb48] sm:$0xf0]  ;;  %v12290_v44 = vld [vmem:[#allocation5 + $0xaa4] sm:$0xf] }
 0x195   :  { %3141 = vmatpush.bf16.msrb.mxu1 %v9389_v52  ;;  %3110 = vmatmul.bf16.vlgmr.msra.gmra.mxu2 %v13431_v31  ;;  %v9362_v31 = vld [vmem:[#allocation5 + $0xac8] sm:$0xf0]  ;;  %v9429_v27 = vor.u32 %v12310_v22, %v9426_v32  ;;  %v12302_v22 = vld [vmem:[#allocation5 + $0xb04] sm:$0xf] }
 0x196   :  { %3154 = vmatpush.bf16.msrb.mxu2 %v9453_v9  ;;  %3123 = vmatmul.bf16.vlgmr.msra.gmra.mxu3 %v13435_v36  ;;  %v9301_v36 = vor.u32 %v12278_v57, %v9298_v24  ;;  %v9365_v19 = vor.u32 %v12294_v59, %v9362_v31  ;;  %v9282_v30 = vld [vmem:[#allocation5 + $0xa28] sm:$0xf0]  ;;  %v9485_v9 = vor.u32 %v12324_v16, %v9482_v17  ;;  %v12358_v16 = vld [vmem:[#allocation8 + $0xc4] sm:$0xf]  ;;  %v9618_v17 = vld [vmem:[#allocation8 + $0xd0] sm:$0xf0] }
 0x197   :  { %3167 = vmatpush.bf16.msrb.mxu3 %v9517_v25  ;;  %v9285_v45 = vor.u32 %v12274_v29, %v9282_v30  ;;  %v9277_v57 = vor.u32 %v12272_v50, %v9274_v34  ;;  %v9405_v24 = vor.u32 %v12304_v55, %v9402_v38  ;;  %v9266_v59 = vld [vmem:[#allocation5 + $0xa08] sm:$0xf0]  ;;  %v12354_v29 = vld [vmem:[#allocation8 + $0xa4] sm:$0xf]  ;;  %v9602_v30 = vld [vmem:[#allocation8 + $0xb0] sm:$0xf0] }
 0x198   :  { %3129 = vmatpush.bf16.msrb.mxu0 %v9317_v47  ;;  %v2903_v52 = vpop.f32.mrf.mxu2  ;;  %v2879_v47 = vpop.f32.mrf.mxu0  ;;  %v9394_v32 = vld [vmem:[#allocation5 + $0xb08] sm:$0xf0]  ;;  %v9552_v50 = vld [vmem:[#allocation8 + $0x40] sm:$0xf]  ;;  %v12344_v34 = vld [vmem:[#allocation8 + $0x4c] sm:$0xf0] }
 0x199   :  { %3142 = vmatpush.bf16.msrb.mxu1 %v9381_v48  ;;  %v2904_v25 = vadd.f32 %v2903_v52, %v2891_v21  ;;  %v2916_v39 = vpop.f32.mrf.mxu3  ;;  %v9349_v48 = vor.u32 %v12290_v44, %v9346_v33  ;;  %v9397_v4 = vor.u32 %v12302_v22, %v9394_v32  ;;  %v9617_v21 = vor.u32 %v12360_v14, %v9616_v11  ;;  %v12352_v33 = vld [vmem:[#allocation8 + $0x8c] sm:$0xf0]  ;;  %v12334_v22 = vld [vmem:[#allocation8 + $0x4] sm:$0xf]  ;;  %v12359_v11 = vld [vmem:[#allocation8 + $0xcc] sm:$0xf] }
 0x19a   :  { %3155 = vmatpush.bf16.msrb.mxu2 %v9445_v49  ;;  %v9413_v49 = vor.u32 %v12306_v15, %v9410_v35  ;;  %v9605_v52 = vor.u32 %v12354_v29, %v9602_v30  ;;  %v12350_v15 = vld [vmem:[#allocation8 + $0x84] sm:$0xf]  ;;  %v9586_v35 = vld [vmem:[#allocation8 + $0x90] sm:$0xf0]  ;;  %v9553_v38 = vor.u32 %v12344_v34, %v9552_v50  ;;  %v9626_v14 = vld [vmem:[#allocation8 + $0xd8] sm:$0xf0] }
 0x19b   :  { %3168 = vmatpush.bf16.msrb.mxu3 %v9509_v43  ;;  %v13490_v46 = vadd.f32 %v2916_v39, %v2904_v25  ;;  %v2892_v43 = vpop.f32.mrf.mxu1  ;;  %v9589_v39 = vor.u32 %v12350_v15, %v9586_v35  ;;  %v12355_v53 = vld [vmem:[#allocation8 + $0xac] sm:$0xf]  ;;  %v9562_v34 = vld [vmem:[#allocation8 + $0x58] sm:$0xf0] }
 0x19c   :  { %3130 = vmatpush.bf16.msrb.mxu0 %v9309_v40  ;;  %v9466_v40 = vld [vmem:[#allocation5 + $0xb98] sm:$0xf0]  ;;  %v12342_v43 = vld [vmem:[#allocation8 + $0x44] sm:$0xf]  ;;  %v12343_v50 = vld [vmem:[#allocation8 + $0x4c] sm:$0xf] }
 0x19d   :  { %3143 = vmatpush.bf16.msrb.mxu1 %v9373_v18  ;;  %v12270_v18 = vld [vmem:[#allocation5 + $0xa04] sm:$0xf]  ;;  %v9469_v31 = vor.u32 %v12320_v56, %v9466_v40 }
 0x19e   :  { %3156 = vmatpush.bf16.msrb.mxu2 %v9437_v58  ;;  %v9341_v58 = vor.u32 %v12288_v51, %v9338_v37 }
 0x19f   :  { %3169 = vmatpush.bf16.msrb.mxu3 %v9501_v13 }
 0x1a0   :  { %3131 = vmatpush.bf16.msrb.mxu0 %v9301_v36  ;;  %v2905_v13 = vpop.f32.mrf.mxu2  ;;  %v9458_v36 = vld [vmem:[#allocation5 + $0xb88] sm:$0xf0] }
 0x1a1   :  { %3144 = vmatpush.bf16.msrb.mxu1 %v9365_v19  ;;  %v2918_v23 = vpop.f32.mrf.mxu3  ;;  %v12364_v19 = vld [vmem:[#allocation8 + $0xec] sm:$0xf0]  ;;  %v9461_v6 = vor.u32 %v12318_v63, %v9458_v36  ;;  %v9520_v13 = vld [vmem:[#allocation8] sm:$0xf]  ;;  %v9522_v63 = vld [vmem:[#allocation8 + $0x10] sm:$0xf0] }
 0x1a2   :  { %3157 = vmatpush.bf16.msrb.mxu2 %v9429_v27  ;;  %v9269_v27 = vor.u32 %v12270_v18, %v9266_v59  ;;  %v12340_v18 = vld [vmem:[#allocation8 + $0x2c] sm:$0xf0]  ;;  %v9538_v59 = vld [vmem:[#allocation8 + $0x30] sm:$0xf0]  ;;  %v9640_v23 = vld [vmem:[#allocation8 + $0xe8] sm:$0xf] }
 0x1a3   :  { %3170 = vmatpush.bf16.msrb.mxu3 %v9493_v7  ;;  %v9633_v7 = vor.u32 %v12364_v19, %v9632_v0  ;;  %v12365_v36 = vld [vmem:[#allocation8 + $0xf4] sm:$0xf0]  ;;  %v12363_v19 = vld [vmem:[#allocation8 + $0xec] sm:$0xf] }
 0x1a4   :  { %3132 = vmatpush.bf16.msrb.mxu0 %v9293_v12  ;;  %v9621_v12 = vor.u32 %v12358_v16, %v9618_v17  ;;  %v13498_v16 = vpack.c.bf16 %v3180_v3, %v3180_v3 }
 0x1a5   :  { %3145 = vmatpush.bf16.msrb.mxu1 %v9357_v8  ;;  %v9600_v8 = vld [vmem:[#allocation8 + $0xa0] sm:$0xf] }
 0x1a6   :  { %3158 = vmatpush.bf16.msrb.mxu2 %v9421_v28  ;;  %v12356_v28 = vld [vmem:[#allocation8 + $0xac] sm:$0xf0] }
 0x1a7   :  { %3171 = vmatpush.bf16.msrb.mxu3 %v9485_v9  ;;  %v9601_v44 = vor.u32 %v12356_v28, %v9600_v8  ;;  %v9584_v9 = vld [vmem:[#allocation8 + $0x80] sm:$0xf]  ;;  %v12357_v8 = vld [vmem:[#allocation8 + $0xb4] sm:$0xf0]  ;;  %v9610_v28 = vld [vmem:[#allocation8 + $0xb8] sm:$0xf0] }
 0x1a8   :  { %3133 = vmatpush.bf16.msrb.mxu0 %v9285_v45  ;;  %v12346_v45 = vld [vmem:[#allocation8 + $0x64] sm:$0xf]  ;;  %v9613_v30 = vor.u32 %v12355_v53, %v9610_v28  ;;  %v9730_v53 = vld [vmem:[#allocation8 + $0x1b0] sm:$0xf0] }
 0x1a9   :  { %3146 = vmatpush.bf16.msrb.mxu1 %v9349_v48 }
 0x1aa   :  { %3159 = vmatpush.bf16.msrb.mxu2 %v9413_v49 }
 0x1ab   :  { %3172 = vmatpush.bf16.msrb.mxu3 %v9477_v54  ;;  %v9554_v54 = vld [vmem:[#allocation8 + $0x50] sm:$0xf0] }
 0x1ac   :  { %3134 = vmatpush.bf16.msrb.mxu0 %v9277_v57  ;;  %v9536_v57 = vld [vmem:[#allocation8 + $0x20] sm:$0xf] }
 0x1ad   :  { %3147 = vmatpush.bf16.msrb.mxu1 %v9341_v58  ;;  %v9537_v60 = vor.u32 %v12340_v18, %v9536_v57  ;;  %v12339_v18 = vld [vmem:[#allocation8 + $0x2c] sm:$0xf] }
 0x1ae   :  { %3160 = vmatpush.bf16.msrb.mxu2 %v9405_v24  ;;  %v12338_v24 = vld [vmem:[#allocation8 + $0x24] sm:$0xf] }
 0x1af   :  { %3173 = vmatpush.bf16.msrb.mxu3 %v9469_v31  ;;  %v9541_v62 = vor.u32 %v12338_v24, %v9538_v59  ;;  %v12336_v31 = vld [vmem:[#allocation8 + $0xc] sm:$0xf0] }
 0x1b0   :  { %3135 = vmatpush.bf16.msrb.mxu0 %v9269_v27  ;;  %v2929_v25 = vpop.f32.mrf.mxu0  ;;  %v9642_v27 = vld [vmem:[#allocation8 + $0xf8] sm:$0xf0]  ;;  %v9521_v20 = vor.u32 %v12336_v31, %v9520_v13  ;;  %v12335_v13 = vld [vmem:[#allocation8 + $0xc] sm:$0xf] }
 0x1b1   :  { %3148 = vmatpush.bf16.msrb.mxu1 %v9333_v26  ;;  %v2942_v42 = vpop.f32.mrf.mxu1  ;;  %v9525_v26 = vor.u32 %v12334_v22, %v9522_v63  ;;  %v9530_v31 = vld [vmem:[#allocation8 + $0x18] sm:$0xf0] }
 0x1b2   :  { %3161 = vmatpush.bf16.msrb.mxu2 %v9397_v4  ;;  %v9641_v4 = vor.u32 %v12365_v36, %v9640_v23  ;;  %v9533_v23 = vor.u32 %v12335_v13, %v9530_v31  ;;  %v9760_v36 = vld [vmem:[#allocation8 + $0x1e0] sm:$0xf]  ;;  %v12397_v13 = vld [vmem:[#allocation8 + $0x1f4] sm:$0xf0]  ;;  %v12395_v31 = vld [vmem:[#allocation8 + $0x1ec] sm:$0xf] }
 0x1b3   :  { %3174 = vmatpush.bf16.msrb.mxu3 %v9461_v6  ;;  %3136 = vmatmul.bf16.vlgmr.msrb.gmra.mxu0 %v13443_v61  ;;  %v9585_v61 = vor.u32 %v12352_v33, %v9584_v9  ;;  %v9645_v6 = vor.u32 %v12363_v19, %v9642_v27  ;;  %v12351_v9 = vld [vmem:[#allocation8 + $0x8c] sm:$0xf]  ;;  %v9594_v33 = vld [vmem:[#allocation8 + $0x98] sm:$0xf0]  ;;  %v12394_v19 = vld [vmem:[#allocation8 + $0x1e4] sm:$0xf] }
 0x1b4   :  { %3578 = vmatpush.bf16.msra.mxu0 %v9633_v7  ;;  %3149 = vmatmul.bf16.vlgmr.msrb.gmra.mxu1 %v13447_v2  ;;  %v9568_v2 = vld [vmem:[#allocation8 + $0x60] sm:$0xf]  ;;  %v9624_v7 = vld [vmem:[#allocation8 + $0xc8] sm:$0xf] }
 0x1b5   :  { %3162 = vmatmul.bf16.vlgmr.msrb.gmra.mxu2 %v13445_v1  ;;  %v2930_v1 = vadd.f32 %v2929_v25, %v13490_v46  ;;  %v9569_v48 = vor.u32 %v12348_v41, %v9568_v2  ;;  %v9557_v46 = vor.u32 %v12342_v43, %v9554_v54  ;;  %v9597_v25 = vor.u32 %v12351_v9, %v9594_v33  ;;  %v9576_v2 = vld [vmem:[#allocation8 + $0x68] sm:$0xf]  ;;  %v12349_v41 = vld [vmem:[#allocation8 + $0x74] sm:$0xf0]  ;;  %v12384_v9 = vld [vmem:[#allocation8 + $0x18c] sm:$0xf0] }
 0x1b6   :  { %3604 = vmatpush.bf16.msra.mxu2 %v9637_v10  ;;  %3175 = vmatmul.bf16.vlgmr.msrb.gmra.mxu3 %v13449_v5  ;;  %v9570_v5 = vld [vmem:[#allocation8 + $0x70] sm:$0xf0]  ;;  %v12361_v10 = vld [vmem:[#allocation8 + $0xd4] sm:$0xf0]  ;;  %v12382_v33 = vld [vmem:[#allocation8 + $0x184] sm:$0xf] }
 0x1b7   :  { %v2943_v47 = vadd.f32 %v2942_v42, %v2930_v1  ;;  %v9573_v49 = vor.u32 %v12346_v45, %v9570_v5  ;;  %v9625_v17 = vor.u32 %v12361_v10, %v9624_v7  ;;  %v12347_v1 = vld [vmem:[#allocation8 + $0x6c] sm:$0xf]  ;;  %v9578_v42 = vld [vmem:[#allocation8 + $0x78] sm:$0xf0]  ;;  %v9577_v5 = vor.u32 %v12349_v41, %v9576_v2  ;;  %v12392_v7 = vld [vmem:[#allocation8 + $0x1cc] sm:$0xf0] }
 0x1b8   :  { %3579 = vmatpush.bf16.msra.mxu0 %v9617_v21  ;;  %v2955_v51 = vpop.f32.mrf.mxu2  ;;  %v2931_v40 = vpop.f32.mrf.mxu0  ;;  %v9629_v21 = vor.u32 %v12359_v11, %v9626_v14  ;;  %v12390_v10 = vld [vmem:[#allocation8 + $0x1c4] sm:$0xf]  ;;  %v9746_v14 = vld [vmem:[#allocation8 + $0x1d0] sm:$0xf0] }
 0x1b9   :  { %v2956_v37 = vadd.f32 %v2955_v51, %v2943_v47  ;;  %v2968_v55 = vpop.f32.mrf.mxu3  ;;  %v2944_v58 = vpop.f32.mrf.mxu1  ;;  %v9581_v47 = vor.u32 %v12347_v1, %v9578_v42  ;;  %v12341_v40 = vld [vmem:[#allocation8 + $0x34] sm:$0xf0]  ;;  %v12378_v41 = vld [vmem:[#allocation8 + $0x164] sm:$0xf]  ;;  %v9698_v1 = vld [vmem:[#allocation8 + $0x170] sm:$0xf0] }
 0x1ba   :  { %3605 = vmatpush.bf16.msra.mxu2 %v9621_v12  ;;  %v9608_v12 = vld [vmem:[#allocation8 + $0xa8] sm:$0xf]  ;;  %v9546_v58 = vld [vmem:[#allocation8 + $0x38] sm:$0xf0] }
 0x1bb   :  { %v2969_v56 = vadd.f32 %v2968_v55, %v2956_v37  ;;  %v9609_v29 = vor.u32 %v12357_v8, %v9608_v12  ;;  %v9549_v59 = vor.u32 %v12339_v18, %v9546_v58  ;;  %v12386_v12 = vld [vmem:[#allocation8 + $0x1a4] sm:$0xf]  ;;  %v12368_v18 = vld [vmem:[#allocation8 + $0x10c] sm:$0xf0] }
 0x1bc   :  { %3580 = vmatpush.bf16.msra.mxu0 %v9601_v44  ;;  %v9592_v44 = vld [vmem:[#allocation8 + $0x88] sm:$0xf]  ;;  %v12366_v58 = vld [vmem:[#allocation8 + $0x104] sm:$0xf] }
 0x1be   :  { %3606 = vmatpush.bf16.msra.mxu2 %v9605_v52  ;;  %v12353_v52 = vld [vmem:[#allocation8 + $0x94] sm:$0xf0] }
 0x1bf   :  { %v9593_v35 = vor.u32 %v12353_v52, %v9592_v44  ;;  %v9712_v52 = vld [vmem:[#allocation8 + $0x180] sm:$0xf] }
 0x1c0   :  { %3581 = vmatpush.bf16.msra.mxu0 %v9585_v61  ;;  %v2957_v32 = vpop.f32.mrf.mxu2 }
 0x1c1   :  { %v2970_v0 = vpop.f32.mrf.mxu3 }
 0x1c2   :  { %3607 = vmatpush.bf16.msra.mxu2 %v9589_v39  ;;  %v12396_v0 = vld [vmem:[#allocation8 + $0x1ec] sm:$0xf0] }
 0x1c3   :  { %v9761_v27 = vor.u32 %v12396_v0, %v9760_v36  ;;  %v9752_v36 = vld [vmem:[#allocation8 + $0x1c8] sm:$0xf]  ;;  %v12393_v0 = vld [vmem:[#allocation8 + $0x1d4] sm:$0xf0] }
 0x1c4   :  { %3582 = vmatpush.bf16.msra.mxu0 %v9569_v48  ;;  %v9560_v48 = vld [vmem:[#allocation8 + $0x48] sm:$0xf] }
 0x1c5   :  { %3591 = vmatpush.bf16.msra.mxu1 %v9761_v27 }
 0x1c6   :  { %3608 = vmatpush.bf16.msra.mxu2 %v9573_v49  ;;  %v12345_v49 = vld [vmem:[#allocation8 + $0x54] sm:$0xf0] }
 0x1c7   :  { %v9561_v37 = vor.u32 %v12345_v49, %v9560_v48  ;;  %v12374_v48 = vld [vmem:[#allocation8 + $0x144] sm:$0xf]  ;;  %v9682_v49 = vld [vmem:[#allocation8 + $0x150] sm:$0xf0] }
 0x1c8   :  { %3583 = vmatpush.bf16.msra.mxu0 %v9553_v38  ;;  %v9565_v38 = vor.u32 %v12343_v50, %v9562_v34 }
 0x1ca   :  { %3609 = vmatpush.bf16.msra.mxu2 %v9557_v46 }
 0x1cc   :  { %3584 = vmatpush.bf16.msra.mxu0 %v9537_v60  ;;  %v9528_v60 = vld [vmem:[#allocation8 + $0x8] sm:$0xf] }
 0x1ce   :  { %3610 = vmatpush.bf16.msra.mxu2 %v9541_v62  ;;  %v12337_v62 = vld [vmem:[#allocation8 + $0x14] sm:$0xf0] }
 0x1cf   :  { %v9529_v32 = vor.u32 %v12337_v62, %v9528_v60  ;;  %v9768_v62 = vld [vmem:[#allocation8 + $0x1e8] sm:$0xf] }
 0x1d0   :  { %3585 = vmatpush.bf16.msra.mxu0 %v9521_v20  ;;  %v2981_v15 = vpop.f32.mrf.mxu0  ;;  %v9762_v20 = vld [vmem:[#allocation8 + $0x1f0] sm:$0xf0] }
 0x1d1   :  { %v2982_v61 = vadd.f32 %v2981_v15, %v2969_v56  ;;  %v2994_v39 = vpop.f32.mrf.mxu1  ;;  %v9544_v56 = vld [vmem:[#allocation8 + $0x28] sm:$0xf]  ;;  %v9765_v3 = vor.u32 %v12394_v19, %v9762_v20  ;;  %v12391_v19 = vld [vmem:[#allocation8 + $0x1cc] sm:$0xf]  ;;  %v9753_v20 = vor.u32 %v12393_v0, %v9752_v36 }
 0x1d2   :  { %3611 = vmatpush.bf16.msra.mxu2 %v9525_v26  ;;  %v9545_v24 = vor.u32 %v12341_v40, %v9544_v56 }
 0x1d3   :  { %3586 = vmatmul.bf16.vlgmr.msra.gmra.mxu0 %v13498_v16  ;;  %v2995_v45 = vadd.f32 %v2994_v39, %v2982_v61  ;;  %3617 = vmatpush.bf16.msra.mxu3 %v9765_v3  ;;  %v9714_v61 = vld [vmem:[#allocation8 + $0x190] sm:$0xf0]  ;;  %v12380_v39 = vld [vmem:[#allocation8 + $0x16c] sm:$0xf0]  ;;  %v9754_v3 = vld [vmem:[#allocation8 + $0x1d8] sm:$0xf0] }
 0x1d4   :  { %3630 = vmatpush.bf16.msrb.mxu0 %v9641_v4  ;;  %v9717_v2 = vor.u32 %v12382_v33, %v9714_v61 }
 0x1d5   :  { %3612 = vmatmul.bf16.vlgmr.msra.gmra.mxu2 %v13498_v16 }
 0x1d6   :  { %3656 = vmatpush.bf16.msrb.mxu2 %v9645_v6  ;;  %v9744_v6 = vld [vmem:[#allocation8 + $0x1c0] sm:$0xf] }
 0x1d7   :  { %v9745_v11 = vor.u32 %v12392_v7, %v9744_v6  ;;  %v9757_v6 = vor.u32 %v12391_v19, %v9754_v3  ;;  %v9736_v7 = vld [vmem:[#allocation8 + $0x1a8] sm:$0xf] }
 0x1d8   :  { %3631 = vmatpush.bf16.msrb.mxu0 %v9625_v17  ;;  %v3007_v51 = vpop.f32.mrf.mxu2  ;;  %v2983_v55 = vpop.f32.mrf.mxu0  ;;  %v9749_v17 = vor.u32 %v12390_v10, %v9746_v14  ;;  %v12389_v10 = vld [vmem:[#allocation8 + $0x1b4] sm:$0xf0] }
 0x1d9   :  { %v3008_v43 = vadd.f32 %v3007_v51, %v2995_v45  ;;  %v3020_v54 = vpop.f32.mrf.mxu3  ;;  %v2996_v46 = vpop.f32.mrf.mxu1  ;;  %3592 = vmatpush.bf16.msra.mxu1 %v9745_v11  ;;  %v9701_v45 = vor.u32 %v12378_v41, %v9698_v1  ;;  %v12370_v55 = vld [vmem:[#allocation8 + $0x124] sm:$0xf]  ;;  %v12387_v11 = vld [vmem:[#allocation8 + $0x1ac] sm:$0xf]  ;;  %v9737_v14 = vor.u32 %v12389_v10, %v9736_v7  ;;  %v9706_v41 = vld [vmem:[#allocation8 + $0x178] sm:$0xf0] }
 0x1da   :  { %3657 = vmatpush.bf16.msrb.mxu2 %v9629_v21  ;;  %3618 = vmatpush.bf16.msra.mxu3 %v9749_v17  ;;  %v12388_v21 = vld [vmem:[#allocation8 + $0x1ac] sm:$0xf0]  ;;  %v9648_v46 = vld [vmem:[#allocation8 + $0x100] sm:$0xf]  ;;  %v9738_v17 = vld [vmem:[#allocation8 + $0x1b8] sm:$0xf0] }
 0x1db   :  { %v13502_v57 = vadd.f32 %v3020_v54, %v3008_v43  ;;  %v9685_v43 = vor.u32 %v12374_v48, %v9682_v49  ;;  %v9664_v54 = vld [vmem:[#allocation8 + $0x120] sm:$0xf]  ;;  %v9688_v1 = vld [vmem:[#allocation8 + $0x148] sm:$0xf] }
 0x1dc   :  { %3632 = vmatpush.bf16.msrb.mxu0 %v9609_v29  ;;  %v9733_v29 = vor.u32 %v12386_v12, %v9730_v53 }
 0x1de   :  { %3658 = vmatpush.bf16.msrb.mxu2 %v9613_v30  ;;  %3619 = vmatpush.bf16.msra.mxu3 %v9733_v29  ;;  %v9720_v29 = vld [vmem:[#allocation8 + $0x188] sm:$0xf] }
 0x1e0   :  { %3633 = vmatpush.bf16.msrb.mxu0 %v9593_v35  ;;  %v3009_v22 = vpop.f32.mrf.mxu2  ;;  %v9713_v35 = vor.u32 %v12384_v9, %v9712_v52  ;;  %v12383_v52 = vld [vmem:[#allocation8 + $0x18c] sm:$0xf] }
 0x1e1   :  { %v3022_v63 = vpop.f32.mrf.mxu3  ;;  %v9769_v22 = vor.u32 %v12397_v13, %v9768_v62 }
 0x1e2   :  { %3659 = vmatpush.bf16.msrb.mxu2 %v9597_v25  ;;  %v9696_v25 = vld [vmem:[#allocation8 + $0x160] sm:$0xf]  ;;  %3620 = vmatpush.bf16.msra.mxu3 %v9717_v2  ;;  %v12379_v2 = vld [vmem:[#allocation8 + $0x16c] sm:$0xf] }
 0x1e3   :  { %v9697_v42 = vor.u32 %v12380_v39, %v9696_v25  ;;  %v9704_v25 = vld [vmem:[#allocation8 + $0x168] sm:$0xf]  ;;  %v12381_v39 = vld [vmem:[#allocation8 + $0x174] sm:$0xf0] }
 0x1e4   :  { %3634 = vmatpush.bf16.msrb.mxu0 %v9577_v5  ;;  %v9680_v5 = vld [vmem:[#allocation8 + $0x140] sm:$0xf] }
 0x1e6   :  { %3660 = vmatpush.bf16.msrb.mxu2 %v9581_v47  ;;  %v12376_v47 = vld [vmem:[#allocation8 + $0x14c] sm:$0xf0]  ;;  %3621 = vmatpush.bf16.msra.mxu3 %v9701_v45  ;;  %v9709_v45 = vor.u32 %v12379_v2, %v9706_v41  ;;  %v10512_v2 = vld [vmem:[#allocation11 + $0x5c0] sm:$0xf] }
 0x1e7   :  { %v9681_v51 = vor.u32 %v12376_v47, %v9680_v5  ;;  %v12375_v5 = vld [vmem:[#allocation8 + $0x14c] sm:$0xf]  ;;  %v9690_v47 = vld [vmem:[#allocation8 + $0x158] sm:$0xf0] }
 0x1e8   :  { %3635 = vmatpush.bf16.msrb.mxu0 %v9561_v37  ;;  %v12372_v37 = vld [vmem:[#allocation8 + $0x12c] sm:$0xf0] }
 0x1e9   :  { %v9665_v56 = vor.u32 %v12372_v37, %v9664_v54  ;;  %v12371_v54 = vld [vmem:[#allocation8 + $0x12c] sm:$0xf]  ;;  %v9674_v37 = vld [vmem:[#allocation8 + $0x138] sm:$0xf0] }
 0x1ea   :  { %3661 = vmatpush.bf16.msrb.mxu2 %v9565_v38  ;;  %v9666_v38 = vld [vmem:[#allocation8 + $0x130] sm:$0xf0]  ;;  %3622 = vmatpush.bf16.msra.mxu3 %v9685_v43 }
 0x1eb   :  { %v9669_v40 = vor.u32 %v12370_v55, %v9666_v38  ;;  %v9677_v38 = vor.u32 %v12371_v54, %v9674_v37  ;;  %v12570_v54 = vld [vmem:[#allocation11 + $0x55c] sm:$0xf0] }
 0x1ec   :  { %3636 = vmatpush.bf16.msrb.mxu0 %v9545_v24  ;;  %v9650_v24 = vld [vmem:[#allocation8 + $0x110] sm:$0xf0] }
 0x1ed   :  { %v9653_v60 = vor.u32 %v12366_v58, %v9650_v24 }
 0x1ee   :  { %3662 = vmatpush.bf16.msrb.mxu2 %v9549_v59  ;;  %v9649_v59 = vor.u32 %v12368_v18, %v9648_v46  ;;  %3623 = vmatpush.bf16.msra.mxu3 %v9669_v40  ;;  %v12369_v40 = vld [vmem:[#allocation8 + $0x114] sm:$0xf0]  ;;  %v12367_v46 = vld [vmem:[#allocation8 + $0x10c] sm:$0xf]  ;;  %v9658_v18 = vld [vmem:[#allocation8 + $0x118] sm:$0xf0] }
 0x1f0   :  { %3637 = vmatpush.bf16.msrb.mxu0 %v9529_v32  ;;  %v13506_v26 = vpop.f32.mrf.mxu0  ;;  %v9770_v32 = vld [vmem:[#allocation8 + $0x1f8] sm:$0xf0] }
 0x1f1   :  { %v13508_v4 = vpop.f32.mrf.mxu1  ;;  %v9773_v63 = vor.u32 %v12395_v31, %v9770_v32 }
 0x1f2   :  { %3663 = vmatpush.bf16.msrb.mxu2 %v9533_v23  ;;  %3624 = vmatpush.bf16.msra.mxu3 %v9653_v60 }
 0x1f3   :  { %3638 = vmatmul.bf16.vlgmr.msrb.gmra.mxu0 %v13498_v16 }
 0x1f5   :  { %3664 = vmatmul.bf16.vlgmr.msrb.gmra.mxu2 %v13498_v16  ;;  %v9728_v16 = vld [vmem:[#allocation8 + $0x1a0] sm:$0xf] }
 0x1f6   :  { %v9729_v8 = vor.u32 %v12388_v21, %v9728_v16  ;;  %3669 = vmatpush.bf16.msrb.mxu3 %v9773_v63  ;;  %v9741_v16 = vor.u32 %v12387_v11, %v9738_v17  ;;  %v3034_v21 = vadd.f32 %v13506_v26, %v13502_v57  ;;  %v9705_v26 = vor.u32 %v12381_v39, %v9704_v25  ;;  %v12458_v17 = vld [vmem:[#allocation11 + $0x1dc] sm:$0xf0] }
 0x1f7   :  { %v10192_v25 = vld [vmem:[#allocation11 + $0x340] sm:$0xf] }
 0x1f8   :  { %v13510_v28 = vpop.f32.mrf.mxu2  ;;  %v3035_v44 = vpop.f32.mrf.mxu0  ;;  %3593 = vmatpush.bf16.msra.mxu1 %v9729_v8  ;;  %v3047_v61 = vadd.f32 %v13508_v4, %v3034_v21  ;;  %v9693_v4 = vor.u32 %v12375_v5, %v9690_v47  ;;  %v12506_v39 = vld [vmem:[#allocation11 + $0x35c] sm:$0xf0] }
 0x1f9   :  { %v13512_v30 = vpop.f32.mrf.mxu3  ;;  %v3048_v15 = vpop.f32.mrf.mxu1  ;;  %v12385_v44 = vld [vmem:[#allocation8 + $0x194] sm:$0xf0]  ;;  %v12434_v5 = vld [vmem:[#allocation11 + $0x11c] sm:$0xf0]  ;;  %v10193_v47 = vor.u32 %v12506_v39, %v10192_v25  ;;  %v12454_v25 = vld [vmem:[#allocation11 + $0x1c4] sm:$0xf] }
 0x1fa   :  { %3670 = vmatpush.bf16.msrb.mxu3 %v9757_v6  ;;  %v9721_v33 = vor.u32 %v12385_v44, %v9720_v29  ;;  %v9722_v15 = vld [vmem:[#allocation8 + $0x198] sm:$0xf0]  ;;  %v3060_v57 = vadd.f32 %v13510_v28, %v3047_v61  ;;  %v10224_v44 = vld [vmem:[#allocation11 + $0x380] sm:$0xf]  ;;  %v10002_v39 = vld [vmem:[#allocation11 + $0x1e0] sm:$0xf0] }
 0x1fc   :  { %3594 = vmatpush.bf16.msra.mxu1 %v9713_v35  ;;  %v9725_v35 = vor.u32 %v12383_v52, %v9722_v15  ;;  %v3073_v43 = vadd.f32 %v13512_v30, %v3060_v57  ;;  %v9936_v15 = vld [vmem:[#allocation11 + $0x140] sm:$0xf] }
 0x1fd   :  { %v12586_v57 = vld [vmem:[#allocation11 + $0x5dc] sm:$0xf0] }
 0x1fe   :  { %3671 = vmatpush.bf16.msrb.mxu3 %v9741_v16  ;;  %v9968_v16 = vld [vmem:[#allocation11 + $0x180] sm:$0xf] }
 0x200   :  { %v3061_v50 = vpop.f32.mrf.mxu2  ;;  %3595 = vmatpush.bf16.msra.mxu1 %v9697_v42  ;;  %v12377_v42 = vld [vmem:[#allocation8 + $0x154] sm:$0xf0] }
 0x201   :  { %v3074_v34 = vpop.f32.mrf.mxu3  ;;  %v9689_v49 = vor.u32 %v12377_v42, %v9688_v1  ;;  %v10480_v1 = vld [vmem:[#allocation11 + $0x580] sm:$0xf] }
 0x202   :  { %3672 = vmatpush.bf16.msrb.mxu3 %v9725_v35  ;;  %v9672_v34 = vld [vmem:[#allocation8 + $0x128] sm:$0xf]  ;;  %v12442_v35 = vld [vmem:[#allocation11 + $0x15c] sm:$0xf0] }
 0x203   :  { %v9937_v41 = vor.u32 %v12442_v35, %v9936_v15  ;;  %v12578_v42 = vld [vmem:[#allocation11 + $0x59c] sm:$0xf0] }
 0x204   :  { %3596 = vmatpush.bf16.msra.mxu1 %v9681_v51  ;;  %v12373_v51 = vld [vmem:[#allocation8 + $0x134] sm:$0xf0]  ;;  %v9776_v15 = vld [vmem:[#allocation11] sm:$0xf] }
 0x205   :  { %v9673_v55 = vor.u32 %v12373_v51, %v9672_v34  ;;  %v12650_v34 = vld [vmem:[#allocation11 + $0x7dc] sm:$0xf0] }
 0x206   :  { %3673 = vmatpush.bf16.msrb.mxu3 %v9709_v45  ;;  %v9904_v45 = vld [vmem:[#allocation11 + $0x100] sm:$0xf] }
 0x207   :  { %v9905_v37 = vor.u32 %v12434_v5, %v9904_v45  ;;  %v10258_v5 = vld [vmem:[#allocation11 + $0x3e0] sm:$0xf0] }
 0x208   :  { %3597 = vmatpush.bf16.msra.mxu1 %v9665_v56  ;;  %v9656_v56 = vld [vmem:[#allocation8 + $0x108] sm:$0xf] }
 0x209   :  { %v9657_v24 = vor.u32 %v12369_v40, %v9656_v56  ;;  %v12426_v56 = vld [vmem:[#allocation11 + $0xdc] sm:$0xf0] }
 0x20a   :  { %3674 = vmatpush.bf16.msrb.mxu3 %v9693_v4  ;;  %v12498_v4 = vld [vmem:[#allocation11 + $0x31c] sm:$0xf0] }
 0x20c   :  { %3598 = vmatpush.bf16.msra.mxu1 %v9649_v59  ;;  %v9661_v59 = vor.u32 %v12367_v46, %v9658_v18  ;;  %v10128_v46 = vld [vmem:[#allocation11 + $0x2c0] sm:$0xf] }
 0x20e   :  { %3675 = vmatpush.bf16.msrb.mxu3 %v9677_v38  ;;  %v9872_v38 = vld [vmem:[#allocation11 + $0xc0] sm:$0xf] }
 0x210   :  { %3643 = vmatpush.bf16.msrb.mxu1 %v9769_v22  ;;  %v3085_v23 = vpop.f32.mrf.mxu0 }
 0x211   :  { %v3098_v27 = vpop.f32.mrf.mxu1  ;;  %v3086_v28 = vadd.f32 %v3085_v23, %v3073_v43  ;;  %v10448_v43 = vld [vmem:[#allocation11 + $0x540] sm:$0xf] }
 0x212   :  { %3676 = vmatpush.bf16.msrb.mxu3 %v9661_v59  ;;  %v10449_v18 = vor.u32 %v12570_v54, %v10448_v43  ;;  %v10416_v59 = vld [vmem:[#allocation11 + $0x500] sm:$0xf]  ;;  %v9970_v54 = vld [vmem:[#allocation11 + $0x1a0] sm:$0xf0] }
 0x213   :  { %v3099_v58 = vadd.f32 %v3098_v27, %v3086_v28  ;;  %v10736_v28 = vld [vmem:[#allocation11 + $0x780] sm:$0xf] }
 0x214   :  { %3644 = vmatpush.bf16.msrb.mxu1 %v9753_v20 }
 0x218   :  { %v3111_v12 = vpop.f32.mrf.mxu2  ;;  %3645 = vmatpush.bf16.msrb.mxu1 %v9737_v14  ;;  %v3087_v53 = vpop.f32.mrf.mxu0  ;;  %v10000_v14 = vld [vmem:[#allocation11 + $0x1c0] sm:$0xf] }
 0x219   :  { %v3124_v8 = vpop.f32.mrf.mxu3  ;;  %v3100_v9 = vpop.f32.mrf.mxu1  ;;  %v3112_v60 = vadd.f32 %v3111_v12, %v3099_v58  ;;  %v10001_v21 = vor.u32 %v12458_v17, %v10000_v14  ;;  %v12450_v12 = vld [vmem:[#allocation11 + $0x19c] sm:$0xf0] }
 0x21a   :  { %v12522_v53 = vld [vmem:[#allocation11 + $0x3dc] sm:$0xf0]  ;;  %v9969_v9 = vor.u32 %v12450_v12, %v9968_v16 }
 0x21b   :  { %v3125_v30 = vadd.f32 %v3124_v8, %v3112_v60  ;;  %v10256_v8 = vld [vmem:[#allocation11 + $0x3c0] sm:$0xf]  ;;  %5244 = vmatpush.bf16.msra.mxu0 %v10001_v21 }
 0x21c   :  { %3646 = vmatpush.bf16.msrb.mxu1 %v9721_v33  ;;  %v10257_v29 = vor.u32 %v12522_v53, %v10256_v8  ;;  %v12514_v33 = vld [vmem:[#allocation11 + $0x39c] sm:$0xf0] }
 0x21d   :  { %v10225_v61 = vor.u32 %v12514_v33, %v10224_v44  ;;  %v12490_v58 = vld [vmem:[#allocation11 + $0x2dc] sm:$0xf0] }
 0x21e   :  { %v12562_v60 = vld [vmem:[#allocation11 + $0x51c] sm:$0xf0] }
 0x21f   :  { %5245 = vmatpush.bf16.msra.mxu0 %v9969_v9  ;;  %v9808_v14 = vld [vmem:[#allocation11 + $0x40] sm:$0xf] }
 0x220   :  { %v3113_v48 = vpop.f32.mrf.mxu2  ;;  %3647 = vmatpush.bf16.msrb.mxu1 %v9705_v26  ;;  %v10513_v26 = vor.u32 %v12586_v57, %v10512_v2  ;;  %v12410_v17 = vld [vmem:[#allocation11 + $0x5c] sm:$0xf0] }
 0x221   :  { %v3126_v50 = vpop.f32.mrf.mxu3  ;;  %v10481_v48 = vor.u32 %v12578_v42, %v10480_v1  ;;  %v10064_v21 = vld [vmem:[#allocation11 + $0x240] sm:$0xf]  ;;  %v9809_v33 = vor.u32 %v12410_v17, %v9808_v14  ;;  %v12518_v42 = vld [vmem:[#allocation11 + $0x3c4] sm:$0xf] }
 0x222   :  { %5270 = vmatpush.bf16.msra.mxu2 %v10513_v26  ;;  %v10160_v50 = vld [vmem:[#allocation11 + $0x300] sm:$0xf]  ;;  %v9906_v14 = vld [vmem:[#allocation11 + $0x120] sm:$0xf0] }
 0x223   :  { %5246 = vmatpush.bf16.msra.mxu0 %v9937_v41  ;;  %v10161_v40 = vor.u32 %v12498_v4, %v10160_v50  ;;  %v12474_v8 = vld [vmem:[#allocation11 + $0x25c] sm:$0xf0] }
 0x224   :  { %3648 = vmatpush.bf16.msrb.mxu1 %v9689_v49  ;;  %v10768_v49 = vld [vmem:[#allocation11 + $0x7c0] sm:$0xf]  ;;  %v10065_v2 = vor.u32 %v12474_v8, %v10064_v21  ;;  %v10162_v21 = vld [vmem:[#allocation11 + $0x320] sm:$0xf0] }
 0x225   :  { %v10769_v51 = vor.u32 %v12650_v34, %v10768_v49  ;;  %v12546_v44 = vld [vmem:[#allocation11 + $0x49c] sm:$0xf0]  ;;  %v10005_v34 = vor.u32 %v12454_v25, %v10002_v39  ;;  %v12486_v25 = vld [vmem:[#allocation11 + $0x2c4] sm:$0xf] }
 0x226   :  { %5271 = vmatpush.bf16.msra.mxu2 %v10481_v48  ;;  %v12618_v9 = vld [vmem:[#allocation11 + $0x6dc] sm:$0xf0]  ;;  %v10130_v39 = vld [vmem:[#allocation11 + $0x2e0] sm:$0xf0] }
 0x227   :  { %5247 = vmatpush.bf16.msra.mxu0 %v9905_v37  ;;  %v10032_v41 = vld [vmem:[#allocation11 + $0x200] sm:$0xf]  ;;  %v10261_v37 = vor.u32 %v12518_v42, %v10258_v5  ;;  %v9810_v42 = vld [vmem:[#allocation11 + $0x60] sm:$0xf0] }
 0x228   :  { %3649 = vmatpush.bf16.msrb.mxu1 %v9673_v55  ;;  %v12642_v55 = vld [vmem:[#allocation11 + $0x79c] sm:$0xf0] }
 0x229   :  { %v12466_v1 = vld [vmem:[#allocation11 + $0x21c] sm:$0xf0] }
 0x22a   :  { %5272 = vmatpush.bf16.msra.mxu2 %v10449_v18  ;;  %v12538_v48 = vld [vmem:[#allocation11 + $0x45c] sm:$0xf0]  ;;  %v10033_v43 = vor.u32 %v12466_v1, %v10032_v41  ;;  %v12582_v18 = vld [vmem:[#allocation11 + $0x5c4] sm:$0xf] }
 0x22b   :  { %v10608_v50 = vld [vmem:[#allocation11 + $0x680] sm:$0xf]  ;;  %v12406_v1 = vld [vmem:[#allocation11 + $0x44] sm:$0xf] }
 0x22c   :  { %3650 = vmatpush.bf16.msrb.mxu1 %v9657_v24  ;;  %v10737_v24 = vor.u32 %v12642_v55, %v10736_v28  ;;  %v12610_v4 = vld [vmem:[#allocation11 + $0x69c] sm:$0xf0]  ;;  %v12510_v28 = vld [vmem:[#allocation11 + $0x384] sm:$0xf]  ;;  %v9813_v5 = vor.u32 %v12406_v1, %v9810_v42  ;;  %v10008_v1 = vld [vmem:[#allocation11 + $0x1c8] sm:$0xf] }
 0x22d   :  { %v10226_v55 = vld [vmem:[#allocation11 + $0x3a0] sm:$0xf0]  ;;  %v12459_v42 = vld [vmem:[#allocation11 + $0x1e4] sm:$0xf0] }
 0x230   :  { %v3137_v62 = vpop.f32.mrf.mxu0 }
 0x231   :  { %v3150_v13 = vpop.f32.mrf.mxu1  ;;  %v3138_v31 = vadd.f32 %v3137_v62, %v3125_v30  ;;  %v10704_v30 = vld [vmem:[#allocation11 + $0x740] sm:$0xf]  ;;  %v9873_v62 = vor.u32 %v12426_v56, %v9872_v38  ;;  %v10609_v56 = vor.u32 %v12610_v4, %v10608_v50  ;;  %v10098_v50 = vld [vmem:[#allocation11 + $0x2a0] sm:$0xf0] }
 0x232   :  { %v12638_v4 = vld [vmem:[#allocation11 + $0x784] sm:$0xf] }
 0x233   :  { %v3151_v22 = vadd.f32 %v3150_v13, %v3138_v31  ;;  %v12634_v13 = vld [vmem:[#allocation11 + $0x75c] sm:$0xf0]  ;;  %5248 = vmatpush.bf16.msra.mxu0 %v9873_v62  ;;  %v12438_v62 = vld [vmem:[#allocation11 + $0x144] sm:$0xf] }
 0x234   :  { %v9840_v31 = vld [vmem:[#allocation11 + $0x80] sm:$0xf] }
 0x238   :  { %v3163_v32 = vpop.f32.mrf.mxu2  ;;  %v3139_v36 = vpop.f32.mrf.mxu0 }
 0x239   :  { %v3164_v63 = vadd.f32 %v3163_v32, %v3151_v22  ;;  %v3176_v23 = vpop.f32.mrf.mxu3  ;;  %v3152_v0 = vpop.f32.mrf.mxu1  ;;  %v12418_v22 = vld [vmem:[#allocation11 + $0x9c] sm:$0xf0]  ;;  %v10129_v32 = vor.u32 %v12490_v58, %v10128_v46  ;;  %v10514_v58 = vld [vmem:[#allocation11 + $0x5e0] sm:$0xf0] }
 0x23a   :  { %v12482_v0 = vld [vmem:[#allocation11 + $0x29c] sm:$0xf0] }
 0x23b   :  { %v3177_v19 = vadd.f32 %v3176_v23, %v3164_v63  ;;  %v10096_v63 = vld [vmem:[#allocation11 + $0x280] sm:$0xf]  ;;  %v10417_v23 = vor.u32 %v12562_v60, %v10416_v59 }
 0x23c   :  { %v10097_v16 = vor.u32 %v12482_v0, %v10096_v63  ;;  %v12530_v46 = vld [vmem:[#allocation11 + $0x41c] sm:$0xf0]  ;;  %v10194_v63 = vld [vmem:[#allocation11 + $0x360] sm:$0xf0] }
 0x23d   :  { %v3181_v20 = vmax.f32 %v3177_v19, 0.0  ;;  %v10705_v19 = vor.u32 %v12634_v13, %v10704_v30  ;;  %5273 = vmatpush.bf16.msra.mxu2 %v10417_v23  ;;  %v12602_v59 = vld [vmem:[#allocation11 + $0x65c] sm:$0xf0]  ;;  %v9938_v13 = vld [vmem:[#allocation11 + $0x160] sm:$0xf0]  ;;  %v10517_v23 = vor.u32 %v12582_v18, %v10514_v58 }
 0x23e   :  { %v12630_v18 = vld [vmem:[#allocation11 + $0x744] sm:$0xf] }
 0x23f   :  { %v3183_v27 = vpack.c.bf16 %v3181_v20, %v3181_v20  ;;  %v10384_v20 = vld [vmem:[#allocation11 + $0x4c0] sm:$0xf] }
 0x240   :  { %v3165_v3 = vpop.f32.mrf.mxu2 }
 0x241   :  { %v3178_v6 = vpop.f32.mrf.mxu3  ;;  %3599 = vmatmul.bf16.vlgmr.msra.gmra.mxu1 %v3183_v27  ;;  %3625 = vmatmul.bf16.vlgmr.msra.gmra.mxu3 %v3183_v27  ;;  %v10672_v3 = vld [vmem:[#allocation11 + $0x700] sm:$0xf] }
 0x242   :  { %5257 = vmatpush.bf16.msra.mxu1 %v10257_v29  ;;  %5283 = vmatpush.bf16.msra.mxu3 %v10769_v51  ;;  %v12626_v6 = vld [vmem:[#allocation11 + $0x71c] sm:$0xf0]  ;;  %v12446_v51 = vld [vmem:[#allocation11 + $0x184] sm:$0xf] }
 0x243   :  { %v10673_v53 = vor.u32 %v12626_v6, %v10672_v3  ;;  %v10352_v29 = vld [vmem:[#allocation11 + $0x480] sm:$0xf]  ;;  %v9973_v30 = vor.u32 %v12446_v51, %v9970_v54  ;;  %v9941_v6 = vor.u32 %v12438_v62, %v9938_v13  ;;  %v10738_v51 = vld [vmem:[#allocation11 + $0x7a0] sm:$0xf0] }
 0x244   :  { %v10353_v57 = vor.u32 %v12546_v44, %v10352_v29  ;;  %v12594_v3 = vld [vmem:[#allocation11 + $0x61c] sm:$0xf0]  ;;  %v12422_v29 = vld [vmem:[#allocation11 + $0xc4] sm:$0xf] }
 0x245   :  { %v9874_v44 = vld [vmem:[#allocation11 + $0xe0] sm:$0xf0] }
 0x246   :  { %5258 = vmatpush.bf16.msra.mxu1 %v10225_v61  ;;  %5284 = vmatpush.bf16.msra.mxu3 %v10737_v24  ;;  %v12402_v61 = vld [vmem:[#allocation11 + $0x1c] sm:$0xf0]  ;;  %v12398_v54 = vld [vmem:[#allocation11 + $0x4] sm:$0xf] }
 0x247   :  { %v9777_v49 = vor.u32 %v12402_v61, %v9776_v15  ;;  %v10576_v24 = vld [vmem:[#allocation11 + $0x640] sm:$0xf]  ;;  %v9842_v15 = vld [vmem:[#allocation11 + $0xa0] sm:$0xf0] }
 0x248   :  { %v10577_v0 = vor.u32 %v12602_v59, %v10576_v24  ;;  %v10706_v24 = vld [vmem:[#allocation11 + $0x760] sm:$0xf0] }
 0x249   :  { %v10709_v59 = vor.u32 %v12630_v18, %v10706_v24  ;;  %v12462_v13 = vld [vmem:[#allocation11 + $0x204] sm:$0xf]  ;;  %v12435_v24 = vld [vmem:[#allocation11 + $0x124] sm:$0xf0] }
 0x24a   :  { %5259 = vmatpush.bf16.msra.mxu1 %v10193_v47  ;;  %5285 = vmatpush.bf16.msra.mxu3 %v10705_v19  ;;  %v10320_v47 = vld [vmem:[#allocation11 + $0x440] sm:$0xf]  ;;  %v12574_v19 = vld [vmem:[#allocation11 + $0x584] sm:$0xf] }
 0x24b   :  { %v10321_v38 = vor.u32 %v12538_v48, %v10320_v47  ;;  %v10450_v47 = vld [vmem:[#allocation11 + $0x560] sm:$0xf0] }
 0x24e   :  { %5260 = vmatpush.bf16.msra.mxu1 %v10161_v40  ;;  %5286 = vmatpush.bf16.msra.mxu3 %v10673_v53  ;;  %v10288_v40 = vld [vmem:[#allocation11 + $0x400] sm:$0xf] }
 0x250   :  { %v13519_v7 = vpop.f32.mrf.mxu0 }
 0x251   :  { %3651 = vmatmul.bf16.vlgmr.msrb.gmra.mxu1 %v3183_v27  ;;  %3677 = vmatmul.bf16.vlgmr.msrb.gmra.mxu3 %v3183_v27  ;;  %v12554_v27 = vld [vmem:[#allocation11 + $0x4dc] sm:$0xf0] }
 0x252   :  { %5261 = vmatpush.bf16.msra.mxu1 %v10129_v32  ;;  %v10385_v12 = vor.u32 %v12554_v27, %v10384_v20  ;;  %v12502_v32 = vld [vmem:[#allocation11 + $0x344] sm:$0xf]  ;;  %v10544_v27 = vld [vmem:[#allocation11 + $0x600] sm:$0xf] }
 0x253   :  { %v10482_v20 = vld [vmem:[#allocation11 + $0x5a0] sm:$0xf0]  ;;  %v10197_v17 = vor.u32 %v12502_v32, %v10194_v63  ;;  %v10545_v8 = vor.u32 %v12594_v3, %v10544_v27 }
 0x254   :  { %5274 = vmatpush.bf16.msra.mxu2 %v10385_v12  ;;  %v10485_v12 = vor.u32 %v12574_v19, %v10482_v20  ;;  %v10674_v63 = vld [vmem:[#allocation11 + $0x720] sm:$0xf0] }
 0x255   :  { %v10354_v19 = vld [vmem:[#allocation11 + $0x4a0] sm:$0xf0] }
 0x256   :  { %5262 = vmatpush.bf16.msra.mxu1 %v10097_v16  ;;  %v12494_v16 = vld [vmem:[#allocation11 + $0x304] sm:$0xf] }
 0x257   :  { %v12614_v27 = vld [vmem:[#allocation11 + $0x6c4] sm:$0xf] }
 0x258   :  { %v13521_v10 = vpop.f32.mrf.mxu2  ;;  %v3589_v11 = vpop.f32.mrf.mxu0  ;;  %5275 = vmatpush.bf16.msra.mxu2 %v10353_v57  ;;  %v10133_v57 = vor.u32 %v12486_v25, %v10130_v39  ;;  %v10642_v3 = vld [vmem:[#allocation11 + $0x6e0] sm:$0xf0] }
 0x259   :  { %v9841_v11 = vor.u32 %v12418_v22, %v9840_v31  ;;  %v10229_v31 = vor.u32 %v12510_v28, %v10226_v55  ;;  %v10289_v22 = vor.u32 %v12530_v46, %v10288_v40  ;;  %v12558_v28 = vld [vmem:[#allocation11 + $0x504] sm:$0xf] }
 0x25a   :  { %5263 = vmatpush.bf16.msra.mxu1 %v10065_v2  ;;  %v12646_v2 = vld [vmem:[#allocation11 + $0x7c4] sm:$0xf] }
 0x25b   :  { %5249 = vmatpush.bf16.msra.mxu0 %v9841_v11  ;;  %v12430_v11 = vld [vmem:[#allocation11 + $0x104] sm:$0xf] }
 0x25c   :  { %5276 = vmatpush.bf16.msra.mxu2 %v10321_v38  ;;  %v9909_v53 = vor.u32 %v12430_v11, %v9906_v14  ;;  %v10418_v38 = vld [vmem:[#allocation11 + $0x520] sm:$0xf0] }
 0x25d   :  { %v12470_v40 = vld [vmem:[#allocation11 + $0x244] sm:$0xf] }
 0x25e   :  { %5264 = vmatpush.bf16.msra.mxu1 %v10033_v43  ;;  %v10741_v43 = vor.u32 %v12638_v4, %v10738_v51  ;;  %v10066_v46 = vld [vmem:[#allocation11 + $0x260] sm:$0xf0]  ;;  %v10264_v51 = vld [vmem:[#allocation11 + $0x3c8] sm:$0xf] }
 0x25f   :  { %5250 = vmatpush.bf16.msra.mxu0 %v9809_v33  ;;  %v12414_v33 = vld [vmem:[#allocation11 + $0x84] sm:$0xf]  ;;  %v10069_v58 = vor.u32 %v12470_v40, %v10066_v46  ;;  %v10232_v40 = vld [vmem:[#allocation11 + $0x388] sm:$0xf] }
 0x260   :  { %v3615_v52 = vpop.f32.mrf.mxu2  ;;  %5277 = vmatpush.bf16.msra.mxu2 %v10289_v22  ;;  %v9845_v61 = vor.u32 %v12414_v33, %v9842_v15  ;;  %v12622_v22 = vld [vmem:[#allocation11 + $0x704] sm:$0xf]  ;;  %v13527_v33 = vld [vmem:[#allocation10] sm:$0xf]  ;;  %v12515_v46 = vld [vmem:[#allocation11 + $0x3a4] sm:$0xf0] }
 0x261   :  { %v10640_v52 = vld [vmem:[#allocation11 + $0x6c0] sm:$0xf]  ;;  %v12534_v11 = vld [vmem:[#allocation11 + $0x444] sm:$0xf]  ;;  %v3250_v25 = vperm.slane %v13527_v33, 0 }
 0x262   :  { %v10641_v45 = vor.u32 %v12618_v9, %v10640_v52  ;;  %5309 = vmatpush.bf16.msrb.mxu1 %v10261_v37  ;;  %v10165_v52 = vor.u32 %v12494_v16, %v10162_v21  ;;  %v9877_v9 = vor.u32 %v12422_v29, %v9874_v44  ;;  %v9778_v37 = vld [vmem:[#allocation11 + $0x20] sm:$0xf0] }
 0x263   :  { %5251 = vmatpush.bf16.msra.mxu0 %v9777_v49  ;;  %v12478_v49 = vld [vmem:[#allocation11 + $0x284] sm:$0xf]  ;;  %v9781_v55 = vor.u32 %v12398_v54, %v9778_v37 }
 0x264   :  { %5287 = vmatpush.bf16.msra.mxu3 %v10641_v45  ;;  %5322 = vmatpush.bf16.msrb.mxu2 %v10517_v23  ;;  %v12566_v45 = vld [vmem:[#allocation11 + $0x544] sm:$0xf]  ;;  %v10677_v23 = vor.u32 %v12622_v22, %v10674_v63  ;;  %v9880_v63 = vld [vmem:[#allocation11 + $0xc8] sm:$0xf] }
 0x265   :  { %v10453_v48 = vor.u32 %v12566_v45, %v10450_v47  ;;  %v10322_v14 = vld [vmem:[#allocation11 + $0x460] sm:$0xf0] }
 0x266   :  { %5310 = vmatpush.bf16.msrb.mxu1 %v10229_v31  ;;  %v10034_v31 = vld [vmem:[#allocation11 + $0x220] sm:$0xf0] }
 0x267   :  { %5296 = vmatpush.bf16.msrb.mxu0 %v10005_v34  ;;  %v10101_v34 = vor.u32 %v12478_v49, %v10098_v50  ;;  %v10037_v32 = vor.u32 %v12462_v13, %v10034_v31  ;;  %v12606_v16 = vld [vmem:[#allocation11 + $0x684] sm:$0xf]  ;;  %v9976_v49 = vld [vmem:[#allocation11 + $0x188] sm:$0xf]  ;;  %v3253_v31 = vperm.slane %v13527_v33, 3 }
 0x268   :  { %5288 = vmatpush.bf16.msra.mxu3 %v10609_v56  ;;  %5323 = vmatpush.bf16.msrb.mxu2 %v10485_v12  ;;  %v10421_v56 = vor.u32 %v12558_v28, %v10418_v38  ;;  %v10610_v21 = vld [vmem:[#allocation11 + $0x6a0] sm:$0xf0]  ;;  %v12451_v50 = vld [vmem:[#allocation11 + $0x1a4] sm:$0xf0] }
 0x269   :  { %v10613_v12 = vor.u32 %v12606_v16, %v10610_v21  ;;  %v12598_v44 = vld [vmem:[#allocation11 + $0x644] sm:$0xf]  ;;  %v9977_v54 = vor.u32 %v12451_v50, %v9976_v49  ;;  %v9944_v28 = vld [vmem:[#allocation11 + $0x148] sm:$0xf] }
 0x26a   :  { %5311 = vmatpush.bf16.msrb.mxu1 %v10197_v17  ;;  %v10325_v17 = vor.u32 %v12534_v11, %v10322_v14  ;;  %v12590_v15 = vld [vmem:[#allocation11 + $0x604] sm:$0xf]  ;;  %v12507_v13 = vld [vmem:[#allocation11 + $0x364] sm:$0xf0] }
 0x26b   :  { %5297 = vmatpush.bf16.msrb.mxu0 %v9973_v30  ;;  %v10386_v30 = vld [vmem:[#allocation11 + $0x4e0] sm:$0xf0]  ;;  %v12499_v11 = vld [vmem:[#allocation11 + $0x324] sm:$0xf0] }
 0x26c   :  { %5289 = vmatpush.bf16.msra.mxu3 %v10577_v0  ;;  %5324 = vmatpush.bf16.msrb.mxu2 %v10453_v48  ;;  %v12542_v0 = vld [vmem:[#allocation11 + $0x484] sm:$0xf]  ;;  %v12483_v49 = vld [vmem:[#allocation11 + $0x2a4] sm:$0xf0] }
 0x26d   :  { %v10357_v20 = vor.u32 %v12542_v0, %v10354_v19  ;;  %v12427_v0 = vld [vmem:[#allocation11 + $0xe4] sm:$0xf0] }
 0x26e   :  { %5312 = vmatpush.bf16.msrb.mxu1 %v10165_v52  ;;  %v10578_v52 = vld [vmem:[#allocation11 + $0x660] sm:$0xf0]  ;;  %v10520_v19 = vld [vmem:[#allocation11 + $0x5c8] sm:$0xf]  ;;  %v9881_v14 = vor.u32 %v12427_v0, %v9880_v63  ;;  %v9978_v63 = vld [vmem:[#allocation11 + $0x1a8] sm:$0xf0] }
 0x26f   :  { %5298 = vmatpush.bf16.msrb.mxu0 %v9941_v6  ;;  %v10645_v6 = vor.u32 %v12614_v27, %v10642_v3  ;;  %v10744_v50 = vld [vmem:[#allocation11 + $0x788] sm:$0xf] }
 0x270   :  { %v13523_v36 = vpop.f32.mrf.mxu0  ;;  %5290 = vmatpush.bf16.msra.mxu3 %v10545_v8  ;;  %5325 = vmatpush.bf16.msrb.mxu2 %v10421_v56  ;;  %v12526_v8 = vld [vmem:[#allocation11 + $0x404] sm:$0xf]  ;;  %v3252_v56 = vperm.slane %v13527_v33, 2  ;;  %v12467_v0 = vld [vmem:[#allocation11 + $0x224] sm:$0xf0] }
 0x272   :  { %5313 = vmatpush.bf16.msrb.mxu1 %v10133_v57 }
 0x273   :  { %5299 = vmatpush.bf16.msrb.mxu0 %v9909_v53  ;;  %v10290_v53 = vld [vmem:[#allocation11 + $0x420] sm:$0xf0] }
 0x274   :  { %v10293_v29 = vor.u32 %v12526_v8, %v10290_v53  ;;  %v10488_v8 = vld [vmem:[#allocation11 + $0x588] sm:$0xf] }
 0x275   :  { %v12579_v53 = vld [vmem:[#allocation11 + $0x5a4] sm:$0xf0] }
 0x276   :  { %5314 = vmatpush.bf16.msrb.mxu1 %v10101_v34 }
 0x277   :  { %5300 = vmatpush.bf16.msrb.mxu0 %v9877_v9  ;;  %v10581_v9 = vor.u32 %v12598_v44, %v10578_v52  ;;  %v10136_v52 = vld [vmem:[#allocation11 + $0x2c8] sm:$0xf] }
 0x278   :  { %v13525_v35 = vpop.f32.mrf.mxu2  ;;  %v3641_v26 = vpop.f32.mrf.mxu0 }
 0x279   :  { %v10770_v26 = vld [vmem:[#allocation11 + $0x7e0] sm:$0xf0]  ;;  %v3666_v16 = vadd.f32 %v13525_v35, %v3253_v31 }
 0x27a   :  { %v10773_v41 = vor.u32 %v12646_v2, %v10770_v26  ;;  %5315 = vmatpush.bf16.msrb.mxu1 %v10069_v58  ;;  %v3588_v2 = vadd.f32 %v13519_v7, %v3250_v25  ;;  %v3251_v26 = vperm.slane %v13527_v33, 1  ;;  %v12523_v7 = vld [vmem:[#allocation11 + $0x3e4] sm:$0xf0] }
 0x27b   :  { %5301 = vmatpush.bf16.msrb.mxu0 %v9845_v61  ;;  %v10546_v61 = vld [vmem:[#allocation11 + $0x620] sm:$0xf0]  ;;  %v10265_v38 = vor.u32 %v12523_v7, %v10264_v51  ;;  %v9912_v58 = vld [vmem:[#allocation11 + $0x108] sm:$0xf] }
 0x27c   :  { %5335 = vmatpush.bf16.msrb.mxu3 %v10773_v41  ;;  %v10549_v39 = vor.u32 %v12590_v15, %v10546_v61  ;;  %v3614_v47 = vadd.f32 %v13521_v10, %v3251_v26  ;;  %v12491_v33 = vld [vmem:[#allocation11 + $0x2e4] sm:$0xf0] }
 0x27d   :  { %v10776_v15 = vld [vmem:[#allocation11 + $0x7c8] sm:$0xf] }
 0x27e   :  { %5316 = vmatpush.bf16.msrb.mxu1 %v10037_v32  ;;  %v9913_v32 = vor.u32 %v12435_v24, %v9912_v58  ;;  %v12651_v61 = vld [vmem:[#allocation11 + $0x7e4] sm:$0xf0] }
 0x27f   :  { %5302 = vmatpush.bf16.msrb.mxu0 %v9813_v5  ;;  %v10009_v5 = vor.u32 %v12459_v42, %v10008_v1  ;;  %v12571_v1 = vld [vmem:[#allocation11 + $0x564] sm:$0xf0]  ;;  %v10137_v42 = vor.u32 %v12491_v33, %v10136_v52  ;;  %v10234_v33 = vld [vmem:[#allocation11 + $0x3a8] sm:$0xf0] }
 0x280   :  { %v3667_v60 = vpop.f32.mrf.mxu2  ;;  %5336 = vmatpush.bf16.msrb.mxu3 %v10741_v43  ;;  %v9784_v7 = vld [vmem:[#allocation11 + $0x8] sm:$0xf] }
 0x281   :  { %v12550_v60 = vld [vmem:[#allocation11 + $0x4c4] sm:$0xf]  ;;  %v10712_v58 = vld [vmem:[#allocation11 + $0x748] sm:$0xf] }
 0x282   :  { %v10389_v62 = vor.u32 %v12550_v60, %v10386_v30  ;;  %v10233_v60 = vor.u32 %v12515_v46, %v10232_v40  ;;  %v3640_v30 = vadd.f32 %v13523_v36, %v3252_v56  ;;  %v12455_v56 = vld [vmem:[#allocation11 + $0x1cc] sm:$0xf]  ;;  %v10072_v46 = vld [vmem:[#allocation11 + $0x248] sm:$0xf] }
 0x283   :  { %5303 = vmatpush.bf16.msrb.mxu0 %v9781_v55  ;;  %v12443_v55 = vld [vmem:[#allocation11 + $0x164] sm:$0xf0]  ;;  %v10010_v40 = vld [vmem:[#allocation11 + $0x1e8] sm:$0xf0] }
 0x284   :  { %5337 = vmatpush.bf16.msrb.mxu3 %v10709_v59  ;;  %5326 = vmatpush.bf16.msrb.mxu2 %v10389_v62  ;;  %v9945_v18 = vor.u32 %v12443_v55, %v9944_v28  ;;  %v10200_v62 = vld [vmem:[#allocation11 + $0x348] sm:$0xf] }
 0x285   :  { %v10201_v27 = vor.u32 %v12507_v13, %v10200_v62  ;;  %v12635_v24 = vld [vmem:[#allocation11 + $0x764] sm:$0xf0] }
 0x286   :  { %v10392_v62 = vld [vmem:[#allocation11 + $0x4c8] sm:$0xf] }
 0x287   :  { %v12555_v13 = vld [vmem:[#allocation11 + $0x4e4] sm:$0xf0] }
 0x288   :  { %5338 = vmatpush.bf16.msrb.mxu3 %v10677_v23  ;;  %5327 = vmatpush.bf16.msrb.mxu2 %v10357_v20  ;;  %v12587_v20 = vld [vmem:[#allocation11 + $0x5e4] sm:$0xf0] }
 0x289   :  { %v10521_v36 = vor.u32 %v12587_v20, %v10520_v19  ;;  %v10680_v19 = vld [vmem:[#allocation11 + $0x708] sm:$0xf] }
 0x28a   :  { %v12627_v20 = vld [vmem:[#allocation11 + $0x724] sm:$0xf0] }
 0x28c   :  { %5339 = vmatpush.bf16.msrb.mxu3 %v10645_v6  ;;  %5328 = vmatpush.bf16.msrb.mxu2 %v10325_v17  ;;  %v10168_v6 = vld [vmem:[#allocation11 + $0x308] sm:$0xf] }
 0x28d   :  { %v9848_v17 = vld [vmem:[#allocation11 + $0x88] sm:$0xf]  ;;  %v10169_v44 = vor.u32 %v12499_v11, %v10168_v6  ;;  %v10266_v6 = vld [vmem:[#allocation11 + $0x3e8] sm:$0xf0] }
 0x290   :  { %5340 = vmatpush.bf16.msrb.mxu3 %v10613_v12  ;;  %5329 = vmatpush.bf16.msrb.mxu2 %v10293_v29  ;;  %v12419_v12 = vld [vmem:[#allocation11 + $0xa4] sm:$0xf0] }
 0x291   :  { %v9849_v25 = vor.u32 %v12419_v12, %v9848_v17  ;;  %v12439_v12 = vld [vmem:[#allocation11 + $0x14c] sm:$0xf] }
 0x294   :  { %5341 = vmatpush.bf16.msrb.mxu3 %v10581_v9 }
 0x298   :  { %5342 = vmatpush.bf16.msrb.mxu3 %v10549_v39  ;;  %v10489_v39 = vor.u32 %v12579_v53, %v10488_v8  ;;  %v9946_v8 = vld [vmem:[#allocation11 + $0x168] sm:$0xf0] }
 0x2be   :  { %v3600_v57 = vpop.f32.mrf.mxu1 }
 0x2bf   :  { %v3601_v41 = vadd.f32 %v3600_v57, %v3588_v2  ;;  %v9816_v2 = vld [vmem:[#allocation11 + $0x48] sm:$0xf] }
 0x2c0   :  { %v12411_v57 = vld [vmem:[#allocation11 + $0x64] sm:$0xf0] }
 0x2c1   :  { %v3682_v45 = vmax.f32 %v3601_v41, 0.0  ;;  %v10456_v41 = vld [vmem:[#allocation11 + $0x548] sm:$0xf] }
 0x2c2   :  { %v10457_v51 = vor.u32 %v12571_v1, %v10456_v41  ;;  %v12611_v41 = vld [vmem:[#allocation11 + $0x6a4] sm:$0xf0] }
 0x2c3   :  { %v13533_v48 = vpack.c.bf16 %v3682_v45, %v3682_v45  ;;  %v10777_v45 = vor.u32 %v12651_v61, %v10776_v15  ;;  %v9949_v15 = vor.u32 %v12439_v12, %v9946_v8  ;;  %v10328_v61 = vld [vmem:[#allocation11 + $0x448] sm:$0xf]  ;;  %v10746_v12 = vld [vmem:[#allocation11 + $0x7a8] sm:$0xf0] }
 0x2c4   :  { %v3626_v4 = vpop.f32.mrf.mxu3 }
 0x2c5   :  { %v3627_v34 = vadd.f32 %v3626_v4, %v3614_v47  ;;  %5252 = vmatmul.bf16.vlgmr.msra.gmra.mxu0 %v13533_v48  ;;  %v12643_v4 = vld [vmem:[#allocation11 + $0x7a4] sm:$0xf0] }
 0x2c6   :  { %5348 = vmatpush.bf16.msra.mxu0 %v10009_v5  ;;  %v3602_v43 = vpop.f32.mrf.mxu1  ;;  %v10104_v5 = vld [vmem:[#allocation11 + $0x288] sm:$0xf] }
 0x2c7   :  { %v3683_v37 = vmax.f32 %v3627_v34, 0.0  ;;  %v9817_v34 = vor.u32 %v12411_v57, %v9816_v2  ;;  %v12403_v43 = vld [vmem:[#allocation11 + $0x24] sm:$0xf0]  ;;  %v10105_v55 = vor.u32 %v12483_v49, %v10104_v5  ;;  %v9914_v2 = vld [vmem:[#allocation11 + $0x128] sm:$0xf0] }
 0x2c8   :  { %v10296_v49 = vld [vmem:[#allocation11 + $0x408] sm:$0xf] }
 0x2c9   :  { %v13537_v10 = vpack.c.bf16 %v3683_v37, %v3683_v37  ;;  %v12563_v37 = vld [vmem:[#allocation11 + $0x524] sm:$0xf0] }
 0x2ca   :  { %5349 = vmatpush.bf16.msra.mxu0 %v9977_v54  ;;  %v10424_v54 = vld [vmem:[#allocation11 + $0x508] sm:$0xf] }
 0x2cb   :  { %5265 = vmatmul.bf16.vlgmr.msra.gmra.mxu1 %v13537_v10 }
 0x2cc   :  { %5361 = vmatpush.bf16.msra.mxu1 %v10265_v38  ;;  %v3628_v59 = vpop.f32.mrf.mxu3  ;;  %v10745_v38 = vor.u32 %v12643_v4, %v10744_v50  ;;  %v12531_v50 = vld [vmem:[#allocation11 + $0x424] sm:$0xf0]  ;;  %v12423_v4 = vld [vmem:[#allocation11 + $0xcc] sm:$0xf] }
 0x2cd   :  { %v9785_v59 = vor.u32 %v12403_v43, %v9784_v7  ;;  %v12583_v7 = vld [vmem:[#allocation11 + $0x5cc] sm:$0xf] }
 0x2ce   :  { %5350 = vmatpush.bf16.msra.mxu0 %v9945_v18  ;;  %v3652_v22 = vpop.f32.mrf.mxu1  ;;  %v12475_v18 = vld [vmem:[#allocation11 + $0x264] sm:$0xf0]  ;;  %v10522_v43 = vld [vmem:[#allocation11 + $0x5e8] sm:$0xf0] }
 0x2cf   :  { %v3653_v23 = vadd.f32 %v3652_v22, %v3640_v30  ;;  %v10013_v30 = vor.u32 %v12455_v56, %v10010_v40  ;;  %v10073_v31 = vor.u32 %v12475_v18, %v10072_v46  ;;  %v10713_v22 = vor.u32 %v12635_v24, %v10712_v58  ;;  %v10170_v56 = vld [vmem:[#allocation11 + $0x328] sm:$0xf0] }
 0x2d0   :  { %5362 = vmatpush.bf16.msra.mxu1 %v10233_v60  ;;  %v10425_v60 = vor.u32 %v12563_v37, %v10424_v54  ;;  %v10584_v37 = vld [vmem:[#allocation11 + $0x648] sm:$0xf]  ;;  %v10525_v46 = vor.u32 %v12583_v7, %v10522_v43  ;;  %v12415_v18 = vld [vmem:[#allocation11 + $0x8c] sm:$0xf] }
 0x2d1   :  { %v3684_v3 = vmax.f32 %v3653_v23, 0.0  ;;  %v10040_v23 = vld [vmem:[#allocation11 + $0x208] sm:$0xf]  ;;  %v9850_v24 = vld [vmem:[#allocation11 + $0xa8] sm:$0xf0] }
 0x2d2   :  { %5351 = vmatpush.bf16.msra.mxu0 %v9913_v32  ;;  %v12447_v32 = vld [vmem:[#allocation11 + $0x18c] sm:$0xf]  ;;  %v10041_v17 = vor.u32 %v12467_v0, %v10040_v23  ;;  %v9853_v23 = vor.u32 %v12415_v18, %v9850_v24  ;;  %v9952_v18 = vld [vmem:[#allocation11 + $0x150] sm:$0xf] }
 0x2d3   :  { %v13543_v21 = vpack.c.bf16 %v3684_v3, %v3684_v3  ;;  %v12519_v3 = vld [vmem:[#allocation11 + $0x3cc] sm:$0xf]  ;;  %v9981_v11 = vor.u32 %v12447_v32, %v9978_v63 }
 0x2d4   :  { %5363 = vmatpush.bf16.msra.mxu1 %v10201_v27  ;;  %v3678_v29 = vpop.f32.mrf.mxu3  ;;  %v10393_v27 = vor.u32 %v12555_v13, %v10392_v62  ;;  %v10269_v53 = vor.u32 %v12519_v3, %v10266_v6  ;;  %v10552_v62 = vld [vmem:[#allocation11 + $0x608] sm:$0xf]  ;;  %v12647_v32 = vld [vmem:[#allocation11 + $0x7cc] sm:$0xf] }
 0x2d5   :  { %v3679_v9 = vadd.f32 %v3678_v29, %v3666_v16  ;;  %5278 = vmatmul.bf16.vlgmr.msra.gmra.mxu2 %v13543_v21  ;;  %5304 = vmatmul.bf16.vlgmr.msrb.gmra.mxu0 %v13533_v48  ;;  %v10681_v16 = vor.u32 %v12627_v20, %v10680_v19  ;;  %v10648_v29 = vld [vmem:[#allocation11 + $0x6c8] sm:$0xf]  ;;  %v10778_v63 = vld [vmem:[#allocation11 + $0x7e8] sm:$0xf0] }
 0x2d6   :  { %5352 = vmatpush.bf16.msra.mxu0 %v9881_v14  ;;  %5374 = vmatpush.bf16.msra.mxu2 %v10521_v36  ;;  %v3654_v35 = vpop.f32.mrf.mxu1  ;;  %v10360_v14 = vld [vmem:[#allocation11 + $0x488] sm:$0xf]  ;;  %v12407_v19 = vld [vmem:[#allocation11 + $0x4c] sm:$0xf] }
 0x2d7   :  { %v3685_v26 = vmax.f32 %v3679_v9, 0.0  ;;  %v12547_v36 = vld [vmem:[#allocation11 + $0x4a4] sm:$0xf0]  ;;  %v12511_v9 = vld [vmem:[#allocation11 + $0x38c] sm:$0xf] }
 0x2d8   :  { %5364 = vmatpush.bf16.msra.mxu1 %v10169_v44  ;;  %v12619_v44 = vld [vmem:[#allocation11 + $0x6e4] sm:$0xf0]  ;;  %v10361_v52 = vor.u32 %v12547_v36, %v10360_v14  ;;  %v10237_v57 = vor.u32 %v12511_v9, %v10234_v33  ;;  %v12567_v3 = vld [vmem:[#allocation11 + $0x54c] sm:$0xf]  ;;  %v10781_v14 = vor.u32 %v12647_v32, %v10778_v63 }
 0x2d9   :  { %v13547_v47 = vpack.c.bf16 %v3685_v26, %v3685_v26  ;;  %v12539_v35 = vld [vmem:[#allocation11 + $0x464] sm:$0xf0]  ;;  %v10458_v6 = vld [vmem:[#allocation11 + $0x568] sm:$0xf0] }
 0x2da   :  { %5353 = vmatpush.bf16.msra.mxu0 %v9849_v25  ;;  %5375 = vmatpush.bf16.msra.mxu2 %v10489_v39  ;;  %v10649_v25 = vor.u32 %v12619_v44, %v10648_v29  ;;  %v12431_v39 = vld [vmem:[#allocation11 + $0x10c] sm:$0xf]  ;;  %v10616_v26 = vld [vmem:[#allocation11 + $0x688] sm:$0xf]  ;;  %v10329_v1 = vor.u32 %v12539_v35, %v10328_v61  ;;  %v10016_v61 = vld [vmem:[#allocation11 + $0x1d0] sm:$0xf] }
 0x2db   :  { %5291 = vmatmul.bf16.vlgmr.msra.gmra.mxu3 %v13547_v47  ;;  %5317 = vmatmul.bf16.vlgmr.msrb.gmra.mxu1 %v13537_v10  ;;  %v9917_v5 = vor.u32 %v12431_v39, %v9914_v2  ;;  %v12595_v13 = vld [vmem:[#allocation11 + $0x624] sm:$0xf0]  ;;  %v12479_v36 = vld [vmem:[#allocation11 + $0x28c] sm:$0xf]  ;;  %v12460_v35 = vld [vmem:[#allocation11 + $0x1ec] sm:$0xf0] }
 0x2dc   :  { %5365 = vmatpush.bf16.msra.mxu1 %v10137_v42  ;;  %5387 = vmatpush.bf16.msra.mxu3 %v10777_v45  ;;  %v3680_v28 = vpop.f32.mrf.mxu3  ;;  %v12503_v42 = vld [vmem:[#allocation11 + $0x34c] sm:$0xf]  ;;  %v10553_v20 = vor.u32 %v12595_v13, %v10552_v62  ;;  %v10240_v62 = vld [vmem:[#allocation11 + $0x390] sm:$0xf] }
 0x2dd   :  { %v10202_v45 = vld [vmem:[#allocation11 + $0x368] sm:$0xf0]  ;;  %v12603_v28 = vld [vmem:[#allocation11 + $0x664] sm:$0xf0]  ;;  %v12516_v13 = vld [vmem:[#allocation11 + $0x3ac] sm:$0xf0] }
 0x2de   :  { %5354 = vmatpush.bf16.msra.mxu0 %v9817_v34  ;;  %5376 = vmatpush.bf16.msra.mxu2 %v10457_v51  ;;  %v10617_v34 = vor.u32 %v12611_v41, %v10616_v26  ;;  %v9882_v51 = vld [vmem:[#allocation11 + $0xe8] sm:$0xf0]  ;;  %v10205_v54 = vor.u32 %v12503_v42, %v10202_v45  ;;  %v10585_v58 = vor.u32 %v12603_v28, %v10584_v37  ;;  %v10272_v37 = vld [vmem:[#allocation11 + $0x3d0] sm:$0xf] }
 0x2df   :  { %v9885_v40 = vor.u32 %v12423_v4, %v9882_v51  ;;  %v12399_v29 = vld [vmem:[#allocation11 + $0xc] sm:$0xf]  ;;  %v12452_v4 = vld [vmem:[#allocation11 + $0x1ac] sm:$0xf0] }
 0x2e0   :  { %5366 = vmatpush.bf16.msra.mxu1 %v10105_v55  ;;  %5388 = vmatpush.bf16.msra.mxu3 %v10745_v38  ;;  %v10297_v55 = vor.u32 %v12531_v50, %v10296_v49  ;;  %v12495_v38 = vld [vmem:[#allocation11 + $0x30c] sm:$0xf]  ;;  %v9984_v50 = vld [vmem:[#allocation11 + $0x190] sm:$0xf] }
 0x2e1   :  { %v9786_v44 = vld [vmem:[#allocation11 + $0x28] sm:$0xf0]  ;;  %v12524_v28 = vld [vmem:[#allocation11 + $0x3ec] sm:$0xf0] }
 0x2e2   :  { %5355 = vmatpush.bf16.msra.mxu0 %v9785_v59  ;;  %5377 = vmatpush.bf16.msra.mxu2 %v10425_v60  ;;  %v12575_v59 = vld [vmem:[#allocation11 + $0x58c] sm:$0xf]  ;;  %v9789_v26 = vor.u32 %v12399_v29, %v9786_v44  ;;  %v10273_v24 = vor.u32 %v12524_v28, %v10272_v37  ;;  %v12588_v29 = vld [vmem:[#allocation11 + $0x5ec] sm:$0xf0] }
 0x2e3   :  { %v10490_v60 = vld [vmem:[#allocation11 + $0x5a8] sm:$0xf0] }
 0x2e4   :  { %5367 = vmatpush.bf16.msra.mxu1 %v10073_v31  ;;  %5389 = vmatpush.bf16.msra.mxu3 %v10713_v22  ;;  %v12487_v31 = vld [vmem:[#allocation11 + $0x2cc] sm:$0xf]  ;;  %v10493_v0 = vor.u32 %v12575_v59, %v10490_v60 }
 0x2e5   :  { %5330 = vmatmul.bf16.vlgmr.msrb.gmra.mxu2 %v13543_v21  ;;  %5356 = vmatmul.bf16.vlgmr.msra.gmra.mxu0 %v13533_v48  ;;  %v10138_v22 = vld [vmem:[#allocation11 + $0x2e8] sm:$0xf0] }
 0x2e6   :  { %5400 = vmatpush.bf16.msrb.mxu0 %v10013_v30  ;;  %5378 = vmatpush.bf16.msra.mxu2 %v10393_v27  ;;  %v10173_v30 = vor.u32 %v12495_v38, %v10170_v56  ;;  %v9818_v27 = vld [vmem:[#allocation11 + $0x68] sm:$0xf0] }
 0x2e7   :  { %v9821_v8 = vor.u32 %v12407_v19, %v9818_v27  ;;  %v10426_v9 = vld [vmem:[#allocation11 + $0x528] sm:$0xf0]  ;;  %v10241_v19 = vor.u32 %v12516_v13, %v10240_v62  ;;  %v12564_v62 = vld [vmem:[#allocation11 + $0x52c] sm:$0xf0] }
 0x2e8   :  { %5368 = vmatpush.bf16.msra.mxu1 %v10041_v17  ;;  %5390 = vmatpush.bf16.msra.mxu3 %v10681_v16  ;;  %v10106_v17 = vld [vmem:[#allocation11 + $0x2a8] sm:$0xf0] }
 0x2e9   :  { %v12639_v16 = vld [vmem:[#allocation11 + $0x78c] sm:$0xf]  ;;  %v10109_v33 = vor.u32 %v12479_v36, %v10106_v17 }
 0x2ea   :  { %5401 = vmatpush.bf16.msrb.mxu0 %v9981_v11  ;;  %5379 = vmatpush.bf16.msra.mxu2 %v10361_v52  ;;  %v10141_v11 = vor.u32 %v12487_v31, %v10138_v22  ;;  %v12559_v52 = vld [vmem:[#allocation11 + $0x50c] sm:$0xf] }
 0x2eb   :  { %5343 = vmatmul.bf16.vlgmr.msrb.gmra.mxu3 %v13547_v47  ;;  %5369 = vmatmul.bf16.vlgmr.msra.gmra.mxu1 %v13537_v10  ;;  %v10074_v39 = vld [vmem:[#allocation11 + $0x268] sm:$0xf0]  ;;  %v10429_v41 = vor.u32 %v12559_v52, %v10426_v9 }
 0x2ec   :  { %5413 = vmatpush.bf16.msrb.mxu1 %v10269_v53  ;;  %5391 = vmatpush.bf16.msra.mxu3 %v10649_v25  ;;  %v10461_v53 = vor.u32 %v12567_v3, %v10458_v6  ;;  %v12471_v25 = vld [vmem:[#allocation11 + $0x24c] sm:$0xf]  ;;  %v10208_v6 = vld [vmem:[#allocation11 + $0x350] sm:$0xf] }
 0x2ed   :  { %v12631_v2 = vld [vmem:[#allocation11 + $0x74c] sm:$0xf] }
 0x2ee   :  { %5402 = vmatpush.bf16.msrb.mxu0 %v9949_v15  ;;  %5380 = vmatpush.bf16.msra.mxu2 %v10329_v1  ;;  %v10749_v15 = vor.u32 %v12639_v16, %v10746_v12  ;;  %v10017_v1 = vor.u32 %v12460_v35, %v10016_v61  ;;  %v12551_v42 = vld [vmem:[#allocation11 + $0x4cc] sm:$0xf]  ;;  %v9888_v16 = vld [vmem:[#allocation11 + $0xd0] sm:$0xf] }
 0x2ef   :  { %v10394_v45 = vld [vmem:[#allocation11 + $0x4e8] sm:$0xf0]  ;;  %v12500_v61 = vld [vmem:[#allocation11 + $0x32c] sm:$0xf0] }
 0x2f0   :  { %5414 = vmatpush.bf16.msrb.mxu1 %v10237_v57  ;;  %5392 = vmatpush.bf16.msra.mxu3 %v10617_v34  ;;  %v10714_v57 = vld [vmem:[#allocation11 + $0x768] sm:$0xf0] }
 0x2f1   :  { %v10717_v49 = vor.u32 %v12631_v2, %v10714_v57  ;;  %v12463_v34 = vld [vmem:[#allocation11 + $0x20c] sm:$0xf]  ;;  %v12420_v57 = vld [vmem:[#allocation11 + $0xac] sm:$0xf0] }
 0x2f2   :  { %5403 = vmatpush.bf16.msrb.mxu0 %v9917_v5  ;;  %5381 = vmatpush.bf16.msra.mxu2 %v10297_v55  ;;  %v10077_v5 = vor.u32 %v12471_v25, %v10074_v39  ;;  %v10042_v51 = vld [vmem:[#allocation11 + $0x228] sm:$0xf0]  ;;  %v9985_v55 = vor.u32 %v12452_v4, %v9984_v50  ;;  %v9856_v39 = vld [vmem:[#allocation11 + $0x90] sm:$0xf] }
 0x2f3   :  { %v12623_v7 = vld [vmem:[#allocation11 + $0x70c] sm:$0xf]  ;;  %v10784_v50 = vld [vmem:[#allocation11 + $0x7d0] sm:$0xf] }
 0x2f4   :  { %5415 = vmatpush.bf16.msrb.mxu1 %v10205_v54  ;;  %5393 = vmatpush.bf16.msra.mxu3 %v10585_v58  ;;  %v10682_v43 = vld [vmem:[#allocation11 + $0x728] sm:$0xf0]  ;;  %v10397_v54 = vor.u32 %v12551_v42, %v10394_v45  ;;  %v12444_v58 = vld [vmem:[#allocation11 + $0x16c] sm:$0xf0] }
 0x2f5   :  { %5382 = vmatmul.bf16.vlgmr.msra.gmra.mxu2 %v13543_v21  ;;  %v12543_v38 = vld [vmem:[#allocation11 + $0x48c] sm:$0xf]  ;;  %v9953_v31 = vor.u32 %v12444_v58, %v9952_v18  ;;  %v12652_v4 = vld [vmem:[#allocation11 + $0x7ec] sm:$0xf0] }
 0x2f6   :  { %5404 = vmatpush.bf16.msrb.mxu0 %v9885_v40  ;;  %5426 = vmatpush.bf16.msrb.mxu2 %v10525_v46  ;;  %v10362_v56 = vld [vmem:[#allocation11 + $0x4a8] sm:$0xf0]  ;;  %v10045_v40 = vor.u32 %v12463_v34, %v10042_v51  ;;  %v10685_v46 = vor.u32 %v12623_v7, %v10682_v43  ;;  %v9857_v34 = vor.u32 %v12420_v57, %v9856_v39  ;;  %v9824_v43 = vld [vmem:[#allocation11 + $0x50] sm:$0xf]  ;;  %v12440_v39 = vld [vmem:[#allocation11 + $0x154] sm:$0xf] }
 0x2f7   :  { %v12615_v59 = vld [vmem:[#allocation11 + $0x6cc] sm:$0xf]  ;;  %v10785_v28 = vor.u32 %v12652_v4, %v10784_v50  ;;  %v12644_v18 = vld [vmem:[#allocation11 + $0x7ac] sm:$0xf0]  ;;  %v9954_v57 = vld [vmem:[#allocation11 + $0x170] sm:$0xf0] }
 0x2f8   :  { %5416 = vmatpush.bf16.msrb.mxu1 %v10173_v30  ;;  %5394 = vmatpush.bf16.msra.mxu3 %v10553_v20  ;;  %v10650_v60 = vld [vmem:[#allocation11 + $0x6e8] sm:$0xf0]  ;;  %v10365_v30 = vor.u32 %v12543_v38, %v10362_v56  ;;  %v12572_v38 = vld [vmem:[#allocation11 + $0x56c] sm:$0xf0] }
 0x2f9   :  { %v12535_v22 = vld [vmem:[#allocation11 + $0x44c] sm:$0xf]  ;;  %v10653_v63 = vor.u32 %v12615_v59, %v10650_v60  ;;  %v10112_v56 = vld [vmem:[#allocation11 + $0x290] sm:$0xf] }
 0x2fa   :  { %5405 = vmatpush.bf16.msrb.mxu0 %v9853_v23  ;;  %5427 = vmatpush.bf16.msrb.mxu2 %v10493_v0  ;;  %v10330_v32 = vld [vmem:[#allocation11 + $0x468] sm:$0xf0]  ;;  %v9920_v23 = vld [vmem:[#allocation11 + $0x110] sm:$0xf] }
 0x2fb   :  { %5395 = vmatmul.bf16.vlgmr.msra.gmra.mxu3 %v13547_v47  ;;  %v12436_v0 = vld [vmem:[#allocation11 + $0x12c] sm:$0xf0]  ;;  %v12607_v20 = vld [vmem:[#allocation11 + $0x68c] sm:$0xf]  ;;  %v10333_v3 = vor.u32 %v12535_v22, %v10330_v32  ;;  %v12456_v22 = vld [vmem:[#allocation11 + $0x1d4] sm:$0xf] }
 0x2fc   :  { %5417 = vmatpush.bf16.msrb.mxu1 %v10141_v11  ;;  %5439 = vmatpush.bf16.msrb.mxu3 %v10781_v14  ;;  %v10618_v27 = vld [vmem:[#allocation11 + $0x6a8] sm:$0xf0]  ;;  %v12508_v11 = vld [vmem:[#allocation11 + $0x36c] sm:$0xf0]  ;;  %v9921_v14 = vor.u32 %v12436_v0, %v9920_v23  ;;  %v10018_v32 = vld [vmem:[#allocation11 + $0x1f0] sm:$0xf0] }
 0x2fd   :  { %v12527_v36 = vld [vmem:[#allocation11 + $0x40c] sm:$0xf]  ;;  %v10621_v12 = vor.u32 %v12607_v20, %v10618_v27  ;;  %v10209_v44 = vor.u32 %v12508_v11, %v10208_v6  ;;  %v12404_v60 = vld [vmem:[#allocation11 + $0x2c] sm:$0xf0] }
 0x2fe   :  { %5406 = vmatpush.bf16.msrb.mxu0 %v9821_v8  ;;  %5428 = vmatpush.bf16.msrb.mxu2 %v10461_v53  ;;  %v10298_v17 = vld [vmem:[#allocation11 + $0x428] sm:$0xf0]  ;;  %v12428_v8 = vld [vmem:[#allocation11 + $0xec] sm:$0xf0] }
 0x2ff   :  { %v10528_v53 = vld [vmem:[#allocation11 + $0x5d0] sm:$0xf]  ;;  %v12599_v52 = vld [vmem:[#allocation11 + $0x64c] sm:$0xf]  ;;  %v9889_v35 = vor.u32 %v12428_v8, %v9888_v16  ;;  %v9986_v16 = vld [vmem:[#allocation11 + $0x1b0] sm:$0xf0] }
 0x300   :  { %5418 = vmatpush.bf16.msrb.mxu1 %v10109_v33  ;;  %5440 = vmatpush.bf16.msrb.mxu3 %v10749_v15  ;;  %v10586_v9 = vld [vmem:[#allocation11 + $0x668] sm:$0xf0]  ;;  %v10301_v33 = vor.u32 %v12527_v36, %v10298_v17  ;;  %v10176_v15 = vld [vmem:[#allocation11 + $0x310] sm:$0xf]  ;;  %v10529_v25 = vor.u32 %v12588_v29, %v10528_v53  ;;  %v12448_v17 = vld [vmem:[#allocation11 + $0x194] sm:$0xf] }
 0x301   :  { %v10589_v2 = vor.u32 %v12599_v52, %v10586_v9  ;;  %v12591_v42 = vld [vmem:[#allocation11 + $0x60c] sm:$0xf]  ;;  %v12476_v23 = vld [vmem:[#allocation11 + $0x26c] sm:$0xf0]  ;;  %v10274_v52 = vld [vmem:[#allocation11 + $0x3f0] sm:$0xf0] }
 0x302   :  { %5407 = vmatpush.bf16.msrb.mxu0 %v9789_v26  ;;  %5429 = vmatpush.bf16.msrb.mxu2 %v10429_v41  ;;  %v10496_v26 = vld [vmem:[#allocation11 + $0x590] sm:$0xf]  ;;  %v10554_v45 = vld [vmem:[#allocation11 + $0x628] sm:$0xf0] }
 0x303   :  { %v12580_v41 = vld [vmem:[#allocation11 + $0x5ac] sm:$0xf0]  ;;  %v10557_v7 = vor.u32 %v12591_v42, %v10554_v45  ;;  %v10242_v42 = vld [vmem:[#allocation11 + $0x3b0] sm:$0xf0] }
 0x304   :  { %5419 = vmatpush.bf16.msrb.mxu1 %v10077_v5  ;;  %5441 = vmatpush.bf16.msrb.mxu3 %v10717_v49  ;;  %v10144_v5 = vld [vmem:[#allocation11 + $0x2d0] sm:$0xf]  ;;  %v10497_v51 = vor.u32 %v12580_v41, %v10496_v26 }
 0x305   :  { %5408 = vmatmul.bf16.vlgmr.msrb.gmra.mxu0 %v13533_v48  ;;  %v12492_v49 = vld [vmem:[#allocation11 + $0x2ec] sm:$0xf0] }
 0x306   :  { %5452 = vmatpush.bf16.msra.mxu0 %v10017_v1  ;;  %5430 = vmatpush.bf16.msrb.mxu2 %v10397_v54  ;;  %v10177_v1 = vor.u32 %v12500_v61, %v10176_v15  ;;  %v12412_v54 = vld [vmem:[#allocation11 + $0x6c] sm:$0xf0]  ;;  %v10145_v37 = vor.u32 %v12492_v49, %v10144_v5  ;;  %v9957_v5 = vor.u32 %v12440_v39, %v9954_v57  ;;  %v10754_v39 = vld [vmem:[#allocation11 + $0x7b0] sm:$0xf0] }
 0x307   :  { %v9825_v58 = vor.u32 %v12412_v54, %v9824_v43  ;;  %v10720_v0 = vld [vmem:[#allocation11 + $0x750] sm:$0xf]  ;;  %v12400_v57 = vld [vmem:[#allocation11 + $0x14] sm:$0xf] }
 0x308   :  { %5420 = vmatpush.bf16.msrb.mxu1 %v10045_v40  ;;  %5442 = vmatpush.bf16.msrb.mxu3 %v10685_v46  ;;  %v12484_v40 = vld [vmem:[#allocation11 + $0x2ac] sm:$0xf0] }
 0x309   :  { %v10752_v46 = vld [vmem:[#allocation11 + $0x790] sm:$0xf]  ;;  %v10113_v13 = vor.u32 %v12484_v40, %v10112_v56 }
 0x30a   :  { %5453 = vmatpush.bf16.msra.mxu0 %v9985_v55  ;;  %5431 = vmatpush.bf16.msrb.mxu2 %v10365_v30  ;;  %v10464_v55 = vld [vmem:[#allocation11 + $0x550] sm:$0xf] }
 0x30b   :  { %5421 = vmatmul.bf16.vlgmr.msrb.gmra.mxu1 %v13537_v10  ;;  %v10465_v59 = vor.u32 %v12572_v38, %v10464_v55  ;;  %v10432_v30 = vld [vmem:[#allocation11 + $0x510] sm:$0xf] }
 0x30c   :  { %5465 = vmatpush.bf16.msra.mxu1 %v10273_v24  ;;  %5443 = vmatpush.bf16.msrb.mxu3 %v10653_v63  ;;  %v9792_v24 = vld [vmem:[#allocation11 + $0x10] sm:$0xf]  ;;  %v10433_v27 = vor.u32 %v12564_v62, %v10432_v30 }
 0x30d   :  { %v10080_v63 = vld [vmem:[#allocation11 + $0x250] sm:$0xf]  ;;  %v9793_v20 = vor.u32 %v12404_v60, %v9792_v24  ;;  %v10530_v60 = vld [vmem:[#allocation11 + $0x5f0] sm:$0xf0] }
 0x30e   :  { %5454 = vmatpush.bf16.msra.mxu0 %v9953_v31  ;;  %5432 = vmatpush.bf16.msrb.mxu2 %v10333_v3  ;;  %v10753_v31 = vor.u32 %v12644_v18, %v10752_v46  ;;  %v10021_v3 = vor.u32 %v12456_v22, %v10018_v32  ;;  %v10400_v6 = vld [vmem:[#allocation11 + $0x4d0] sm:$0xf]  ;;  %v12424_v18 = vld [vmem:[#allocation11 + $0xd4] sm:$0xf] }
 0x30f   :  { %v12556_v11 = vld [vmem:[#allocation11 + $0x4ec] sm:$0xf0] }
 0x310   :  { %5466 = vmatpush.bf16.msra.mxu1 %v10241_v19  ;;  %5444 = vmatpush.bf16.msrb.mxu3 %v10621_v12  ;;  %v12636_v19 = vld [vmem:[#allocation11 + $0x76c] sm:$0xf0]  ;;  %v10401_v9 = vor.u32 %v12556_v11, %v10400_v6 }
 0x311   :  { %v10721_v36 = vor.u32 %v12636_v19, %v10720_v0  ;;  %v10048_v12 = vld [vmem:[#allocation11 + $0x210] sm:$0xf]  ;;  %v9858_v0 = vld [vmem:[#allocation11 + $0xb0] sm:$0xf0] }
 0x312   :  { %5455 = vmatpush.bf16.msra.mxu0 %v9921_v14  ;;  %5433 = vmatpush.bf16.msrb.mxu2 %v10301_v33  ;;  %v10081_v14 = vor.u32 %v12476_v23, %v10080_v63  ;;  %v12468_v8 = vld [vmem:[#allocation11 + $0x22c] sm:$0xf0]  ;;  %v9989_v33 = vor.u32 %v12448_v17, %v9986_v16  ;;  %v12416_v23 = vld [vmem:[#allocation11 + $0x94] sm:$0xf] }
 0x313   :  { %v10688_v53 = vld [vmem:[#allocation11 + $0x710] sm:$0xf]  ;;  %v10049_v15 = vor.u32 %v12468_v8, %v10048_v12  ;;  %v12648_v17 = vld [vmem:[#allocation11 + $0x7d4] sm:$0xf]  ;;  %v9861_v12 = vor.u32 %v12416_v23, %v9858_v0  ;;  %v9960_v23 = vld [vmem:[#allocation11 + $0x158] sm:$0xf] }
 0x314   :  { %5467 = vmatpush.bf16.msra.mxu1 %v10209_v44  ;;  %5445 = vmatpush.bf16.msrb.mxu3 %v10589_v2  ;;  %v12628_v29 = vld [vmem:[#allocation11 + $0x72c] sm:$0xf0]  ;;  %v12520_v44 = vld [vmem:[#allocation11 + $0x3d4] sm:$0xf] }
 0x315   :  { %5434 = vmatmul.bf16.vlgmr.msrb.gmra.mxu2 %v13543_v21  ;;  %v10689_v61 = vor.u32 %v12628_v29, %v10688_v53  ;;  %v10277_v2 = vor.u32 %v12520_v44, %v10274_v52  ;;  %v10656_v26 = vld [vmem:[#allocation11 + $0x6d0] sm:$0xf]  ;;  %v10786_v16 = vld [vmem:[#allocation11 + $0x7f0] sm:$0xf0] }
 0x316   :  { %5456 = vmatpush.bf16.msra.mxu0 %v9889_v35  ;;  %5478 = vmatpush.bf16.msra.mxu2 %v10529_v25  ;;  %v10368_v35 = vld [vmem:[#allocation11 + $0x490] sm:$0xf]  ;;  %v12408_v44 = vld [vmem:[#allocation11 + $0x54] sm:$0xf] }
 0x317   :  { %v12548_v25 = vld [vmem:[#allocation11 + $0x4ac] sm:$0xf0]  ;;  %v9826_v52 = vld [vmem:[#allocation11 + $0x70] sm:$0xf0] }
 0x318   :  { %5468 = vmatpush.bf16.msra.mxu1 %v10177_v1  ;;  %5446 = vmatpush.bf16.msrb.mxu3 %v10557_v7  ;;  %v12620_v41 = vld [vmem:[#allocation11 + $0x6ec] sm:$0xf0]  ;;  %v12512_v1 = vld [vmem:[#allocation11 + $0x394] sm:$0xf]  ;;  %v10369_v45 = vor.u32 %v12548_v25, %v10368_v35 }
 0x319   :  { %v10657_v49 = vor.u32 %v12620_v41, %v10656_v26  ;;  %v10336_v50 = vld [vmem:[#allocation11 + $0x450] sm:$0xf]  ;;  %v9922_v7 = vld [vmem:[#allocation11 + $0x130] sm:$0xf0] }
 0x31a   :  { %5457 = vmatpush.bf16.msra.mxu0 %v9857_v34  ;;  %5479 = vmatpush.bf16.msra.mxu2 %v10497_v51  ;;  %v12540_v4 = vld [vmem:[#allocation11 + $0x46c] sm:$0xf0]  ;;  %v12432_v34 = vld [vmem:[#allocation11 + $0x114] sm:$0xf]  ;;  %v10245_v51 = vor.u32 %v12512_v1, %v10242_v42 }
 0x31b   :  { %5447 = vmatmul.bf16.vlgmr.msrb.gmra.mxu3 %v13547_v47  ;;  %v10624_v43 = vld [vmem:[#allocation11 + $0x690] sm:$0xf]  ;;  %v10337_v55 = vor.u32 %v12540_v4, %v10336_v50  ;;  %v9925_v56 = vor.u32 %v12432_v34, %v9922_v7  ;;  %v10114_v35 = vld [vmem:[#allocation11 + $0x2b0] sm:$0xf0]  ;;  %v12461_v50 = vld [vmem:[#allocation11 + $0x1f4] sm:$0xf0] }
 0x31c   :  { %5469 = vmatpush.bf16.msra.mxu1 %v10145_v37  ;;  %5491 = vmatpush.bf16.msra.mxu3 %v10785_v28  ;;  %v12612_v54 = vld [vmem:[#allocation11 + $0x6ac] sm:$0xf0]  ;;  %v12504_v37 = vld [vmem:[#allocation11 + $0x354] sm:$0xf] }
 0x31d   :  { %v10210_v28 = vld [vmem:[#allocation11 + $0x370] sm:$0xf0]  ;;  %v10304_v38 = vld [vmem:[#allocation11 + $0x410] sm:$0xf]  ;;  %v10625_v40 = vor.u32 %v12612_v54, %v10624_v43 }
 0x31e   :  { %5458 = vmatpush.bf16.msra.mxu0 %v9825_v58  ;;  %5480 = vmatpush.bf16.msra.mxu2 %v10465_v59  ;;  %v12532_v46 = vld [vmem:[#allocation11 + $0x42c] sm:$0xf0]  ;;  %v9890_v58 = vld [vmem:[#allocation11 + $0xf0] sm:$0xf0]  ;;  %v10213_v24 = vor.u32 %v12504_v37, %v10210_v28 }
 0x31f   :  { %v12584_v59 = vld [vmem:[#allocation11 + $0x5d4] sm:$0xf]  ;;  %v10592_v30 = vld [vmem:[#allocation11 + $0x650] sm:$0xf]  ;;  %v10305_v22 = vor.u32 %v12532_v46, %v10304_v38  ;;  %v9893_v32 = vor.u32 %v12424_v18, %v9890_v58  ;;  %v12453_v46 = vld [vmem:[#allocation11 + $0x1b4] sm:$0xf0] }
 0x320   :  { %5470 = vmatpush.bf16.msra.mxu1 %v10113_v13  ;;  %5492 = vmatpush.bf16.msra.mxu3 %v10753_v31  ;;  %v12604_v62 = vld [vmem:[#allocation11 + $0x66c] sm:$0xf0]  ;;  %v12496_v13 = vld [vmem:[#allocation11 + $0x314] sm:$0xf]  ;;  %v10533_v63 = vor.u32 %v12584_v59, %v10530_v60  ;;  %v10280_v60 = vld [vmem:[#allocation11 + $0x3d8] sm:$0xf] }
 0x321   :  { %v10178_v31 = vld [vmem:[#allocation11 + $0x330] sm:$0xf0]  ;;  %v10593_v19 = vor.u32 %v12604_v62, %v10592_v30  ;;  %v10560_v6 = vld [vmem:[#allocation11 + $0x610] sm:$0xf]  ;;  %v12525_v30 = vld [vmem:[#allocation11 + $0x3f4] sm:$0xf0] }
 0x322   :  { %5459 = vmatpush.bf16.msra.mxu0 %v9793_v20  ;;  %5481 = vmatpush.bf16.msra.mxu2 %v10433_v27  ;;  %v10181_v20 = vor.u32 %v12496_v13, %v10178_v31  ;;  %v12576_v27 = vld [vmem:[#allocation11 + $0x594] sm:$0xf]  ;;  %v12596_v11 = vld [vmem:[#allocation11 + $0x62c] sm:$0xf0]  ;;  %v10281_v0 = vor.u32 %v12525_v30, %v10280_v60  ;;  %v12493_v60 = vld [vmem:[#allocation11 + $0x2f4] sm:$0xf0] }
 0x323   :  { %v10561_v53 = vor.u32 %v12596_v11, %v10560_v6  ;;  %v12640_v25 = vld [vmem:[#allocation11 + $0x794] sm:$0xf]  ;;  %v12517_v6 = vld [vmem:[#allocation11 + $0x3b4] sm:$0xf0] }
 0x324   :  { %5471 = vmatpush.bf16.msra.mxu1 %v10081_v14  ;;  %5493 = vmatpush.bf16.msra.mxu3 %v10721_v36  ;;  %v12488_v14 = vld [vmem:[#allocation11 + $0x2d4] sm:$0xf]  ;;  %v10792_v30 = vld [vmem:[#allocation11 + $0x7d8] sm:$0xf] }
 0x325   :  { %5460 = vmatmul.bf16.vlgmr.msra.gmra.mxu0 %v13533_v48  ;;  %v10146_v36 = vld [vmem:[#allocation11 + $0x2f0] sm:$0xf0] }
 0x326   :  { %5504 = vmatpush.bf16.msrb.mxu0 %v10021_v3  ;;  %5482 = vmatpush.bf16.msra.mxu2 %v10401_v9  ;;  %v10498_v3 = vld [vmem:[#allocation11 + $0x5b0] sm:$0xf0]  ;;  %v10149_v29 = vor.u32 %v12488_v14, %v10146_v36  ;;  %v13566_v14 = vld [vmem:[#allocation13] sm:$0xff] }
 0x327   :  { %v10501_v8 = vor.u32 %v12576_v27, %v10498_v3  ;;  %v12568_v9 = vld [vmem:[#allocation11 + $0x554] sm:$0xf]  ;;  %v10248_v3 = vld [vmem:[#allocation11 + $0x398] sm:$0xf] }
 0x328   :  { %5472 = vmatpush.bf16.msra.mxu1 %v10049_v15  ;;  %5494 = vmatpush.bf16.msra.mxu3 %v10689_v61  ;;  %v10466_v15 = vld [vmem:[#allocation11 + $0x570] sm:$0xf0] }
 0x329   :  { %v12480_v61 = vld [vmem:[#allocation11 + $0x294] sm:$0xf]  ;;  %v10469_v26 = vor.u32 %v12568_v9, %v10466_v15  ;;  %v12509_v15 = vld [vmem:[#allocation11 + $0x374] sm:$0xf0] }
 0x32a   :  { %5505 = vmatpush.bf16.msrb.mxu0 %v9989_v33  ;;  %5483 = vmatpush.bf16.msra.mxu2 %v10369_v45  ;;  %v10789_v33 = vor.u32 %v12648_v17, %v10786_v16  ;;  %v10117_v41 = vor.u32 %v12480_v61, %v10114_v35  ;;  %v9794_v1 = vld [vmem:[#allocation11 + $0x30] sm:$0xf0]  ;;  %v3948_v61 = vperm.slane %v13566_v14, 0 }
 0x32b   :  { %5473 = vmatmul.bf16.vlgmr.msra.gmra.mxu1 %v13537_v10  ;;  %v12560_v42 = vld [vmem:[#allocation11 + $0x514] sm:$0xf]  ;;  %v9797_v43 = vor.u32 %v12400_v57, %v9794_v1 }
 0x32c   :  { %5517 = vmatpush.bf16.msrb.mxu1 %v10277_v2  ;;  %5495 = vmatpush.bf16.msra.mxu3 %v10657_v49  ;;  %v9829_v2 = vor.u32 %v12408_v44, %v9826_v52  ;;  %v10434_v45 = vld [vmem:[#allocation11 + $0x530] sm:$0xf0]  ;;  %v10024_v49 = vld [vmem:[#allocation11 + $0x1d8] sm:$0xf] }
 0x32d   :  { %v12472_v4 = vld [vmem:[#allocation11 + $0x254] sm:$0xf]  ;;  %v10437_v54 = vor.u32 %v12560_v42, %v10434_v45  ;;  %v10025_v37 = vor.u32 %v12461_v50, %v10024_v49  ;;  %v10536_v42 = vld [vmem:[#allocation11 + $0x5d8] sm:$0xf] }
 0x32e   :  { %5506 = vmatpush.bf16.msrb.mxu0 %v9957_v5  ;;  %5484 = vmatpush.bf16.msra.mxu2 %v10337_v55  ;;  %v10757_v5 = vor.u32 %v12640_v25, %v10754_v39  ;;  %v10082_v34 = vld [vmem:[#allocation11 + $0x270] sm:$0xf0]  ;;  %v12589_v45 = vld [vmem:[#allocation11 + $0x5f4] sm:$0xf0] }
 0x32f   :  { %v10722_v7 = vld [vmem:[#allocation11 + $0x770] sm:$0xf0]  ;;  %v10085_v38 = vor.u32 %v12472_v4, %v10082_v34  ;;  %v10184_v50 = vld [vmem:[#allocation11 + $0x318] sm:$0xf] }
 0x330   :  { %5518 = vmatpush.bf16.msrb.mxu1 %v10245_v51  ;;  %5496 = vmatpush.bf16.msra.mxu3 %v10625_v40  ;;  %v12632_v51 = vld [vmem:[#allocation11 + $0x754] sm:$0xf]  ;;  %v9992_v40 = vld [vmem:[#allocation11 + $0x198] sm:$0xf] }
 0x331   :  { %v12552_v28 = vld [vmem:[#allocation11 + $0x4d4] sm:$0xf]  ;;  %v9993_v13 = vor.u32 %v12453_v46, %v9992_v40  ;;  %v12501_v4 = vld [vmem:[#allocation11 + $0x334] sm:$0xf0] }
 0x332   :  { %5507 = vmatpush.bf16.msrb.mxu0 %v9925_v56  ;;  %5485 = vmatpush.bf16.msra.mxu2 %v10305_v22  ;;  %v10402_v55 = vld [vmem:[#allocation11 + $0x4f0] sm:$0xf0]  ;;  %v10725_v56 = vor.u32 %v12632_v51, %v10722_v7  ;;  %v10504_v40 = vld [vmem:[#allocation11 + $0x598] sm:$0xf] }
 0x333   :  { %v12464_v18 = vld [vmem:[#allocation11 + $0x214] sm:$0xf]  ;;  %v10405_v62 = vor.u32 %v12552_v28, %v10402_v55  ;;  %v12421_v28 = vld [vmem:[#allocation11 + $0xb4] sm:$0xf0] }
 0x334   :  { %5519 = vmatpush.bf16.msrb.mxu1 %v10213_v24  ;;  %5497 = vmatpush.bf16.msra.mxu3 %v10593_v19  ;;  %v10050_v58 = vld [vmem:[#allocation11 + $0x230] sm:$0xf0]  ;;  %v12445_v19 = vld [vmem:[#allocation11 + $0x174] sm:$0xf0] }
 0x335   :  { %5486 = vmatmul.bf16.vlgmr.msra.gmra.mxu2 %v13543_v21  ;;  %v12624_v24 = vld [vmem:[#allocation11 + $0x714] sm:$0xf]  ;;  %v10053_v31 = vor.u32 %v12464_v18, %v10050_v58  ;;  %v9961_v36 = vor.u32 %v12445_v19, %v9960_v23  ;;  %v12581_v46 = vld [vmem:[#allocation11 + $0x5b4] sm:$0xf0] }
 0x336   :  { %5508 = vmatpush.bf16.msrb.mxu0 %v9893_v32  ;;  %5530 = vmatpush.bf16.msrb.mxu2 %v10533_v63  ;;  %v10690_v59 = vld [vmem:[#allocation11 + $0x730] sm:$0xf0]  ;;  %v12413_v23 = vld [vmem:[#allocation11 + $0x74] sm:$0xf0] }
 0x337   :  { %v10693_v22 = vor.u32 %v12624_v24, %v10690_v59  ;;  %v12544_v32 = vld [vmem:[#allocation11 + $0x494] sm:$0xf]  ;;  %v10152_v59 = vld [vmem:[#allocation11 + $0x2d8] sm:$0xf] }
 0x338   :  { %5520 = vmatpush.bf16.msrb.mxu1 %v10181_v20  ;;  %5498 = vmatpush.bf16.msra.mxu3 %v10561_v53  ;;  %v10370_v63 = vld [vmem:[#allocation11 + $0x4b0] sm:$0xf0]  ;;  %v10249_v53 = vor.u32 %v12517_v6, %v10248_v3  ;;  %v12485_v3 = vld [vmem:[#allocation11 + $0x2b4] sm:$0xf0] }
 0x339   :  { %v12616_v20 = vld [vmem:[#allocation11 + $0x6d4] sm:$0xf]  ;;  %v10373_v11 = vor.u32 %v12544_v32, %v10370_v63  ;;  %v10153_v32 = vor.u32 %v12493_v60, %v10152_v59  ;;  %v9832_v63 = vld [vmem:[#allocation11 + $0x58] sm:$0xf]  ;;  %v9962_v60 = vld [vmem:[#allocation11 + $0x178] sm:$0xf0] }
 0x33a   :  { %5509 = vmatpush.bf16.msrb.mxu0 %v9861_v12  ;;  %5531 = vmatpush.bf16.msrb.mxu2 %v10501_v8  ;;  %v10658_v27 = vld [vmem:[#allocation11 + $0x6f0] sm:$0xf0]  ;;  %v9928_v8 = vld [vmem:[#allocation11 + $0x118] sm:$0xf] }
 0x33b   :  { %5499 = vmatmul.bf16.vlgmr.msra.gmra.mxu3 %v13547_v47  ;;  %v10661_v17 = vor.u32 %v12616_v20, %v10658_v27  ;;  %v12536_v16 = vld [vmem:[#allocation11 + $0x454] sm:$0xf]  ;;  %v12573_v20 = vld [vmem:[#allocation11 + $0x574] sm:$0xf0] }
 0x33c   :  { %5521 = vmatpush.bf16.msrb.mxu1 %v10149_v29  ;;  %5543 = vmatpush.bf16.msrb.mxu3 %v10789_v33  ;;  %v10338_v12 = vld [vmem:[#allocation11 + $0x470] sm:$0xf0]  ;;  %v12437_v29 = vld [vmem:[#allocation11 + $0x134] sm:$0xf0] }
 0x33d   :  { %v12608_v44 = vld [vmem:[#allocation11 + $0x694] sm:$0xf]  ;;  %v10216_v33 = vld [vmem:[#allocation11 + $0x358] sm:$0xf]  ;;  %v10341_v35 = vor.u32 %v12536_v16, %v10338_v12  ;;  %v9929_v39 = vor.u32 %v12437_v29, %v9928_v8 }
 0x33e   :  { %5510 = vmatpush.bf16.msrb.mxu0 %v9829_v2  ;;  %5532 = vmatpush.bf16.msrb.mxu2 %v10469_v26  ;;  %v10626_v52 = vld [vmem:[#allocation11 + $0x6b0] sm:$0xf0]  ;;  %v9896_v26 = vld [vmem:[#allocation11 + $0xd8] sm:$0xf]  ;;  %v10217_v1 = vor.u32 %v12509_v15, %v10216_v33  ;;  %v12457_v33 = vld [vmem:[#allocation11 + $0x1dc] sm:$0xf] }
 0x33f   :  { %v12528_v25 = vld [vmem:[#allocation11 + $0x414] sm:$0xf]  ;;  %v10629_v2 = vor.u32 %v12608_v44, %v10626_v52  ;;  %v10120_v27 = vld [vmem:[#allocation11 + $0x298] sm:$0xf]  ;;  %v10026_v15 = vld [vmem:[#allocation11 + $0x1f8] sm:$0xf0] }
 0x340   :  { %5522 = vmatpush.bf16.msrb.mxu1 %v10117_v41  ;;  %5544 = vmatpush.bf16.msrb.mxu3 %v10757_v5  ;;  %v10306_v57 = vld [vmem:[#allocation11 + $0x430] sm:$0xf0]  ;;  %v12429_v41 = vld [vmem:[#allocation11 + $0xf4] sm:$0xf0]  ;;  %v10121_v8 = vor.u32 %v12485_v3, %v10120_v27  ;;  %v9930_v3 = vld [vmem:[#allocation11 + $0x138] sm:$0xf0] }
 0x341   :  { %v12600_v5 = vld [vmem:[#allocation11 + $0x654] sm:$0xf]  ;;  %v10309_v51 = vor.u32 %v12528_v25, %v10306_v57  ;;  %v10760_v6 = vld [vmem:[#allocation11 + $0x798] sm:$0xf] }
 0x342   :  { %5511 = vmatpush.bf16.msrb.mxu0 %v9797_v43  ;;  %5533 = vmatpush.bf16.msrb.mxu2 %v10437_v54  ;;  %v5253_v9 = vpop.f32.mrf.mxu0  ;;  %v10594_v49 = vld [vmem:[#allocation11 + $0x670] sm:$0xf0]  ;;  %v9897_v43 = vor.u32 %v12429_v41, %v9896_v26  ;;  %v10537_v54 = vor.u32 %v12589_v45, %v10536_v42  ;;  %v9800_v16 = vld [vmem:[#allocation11 + $0x18] sm:$0xf]  ;;  %v10029_v26 = vor.u32 %v12457_v33, %v10026_v15  ;;  %v12425_v15 = vld [vmem:[#allocation11 + $0xdc] sm:$0xf] }
 0x343   :  { %v5254_v34 = vadd.f32 %v5253_v9, %v3948_v61  ;;  %v12592_v18 = vld [vmem:[#allocation11 + $0x614] sm:$0xf]  ;;  %v10440_v29 = vld [vmem:[#allocation11 + $0x518] sm:$0xf] }
 0x344   :  { %5523 = vmatpush.bf16.msrb.mxu1 %v10085_v38  ;;  %5545 = vmatpush.bf16.msrb.mxu3 %v10725_v56  ;;  %v10597_v38 = vor.u32 %v12600_v5, %v10594_v49  ;;  %v10185_v56 = vor.u32 %v12501_v4, %v10184_v50  ;;  %v10562_v24 = vld [vmem:[#allocation11 + $0x630] sm:$0xf0]  ;;  %v12565_v44 = vld [vmem:[#allocation11 + $0x534] sm:$0xf0]  ;;  %v12449_v5 = vld [vmem:[#allocation11 + $0x19c] sm:$0xf] }
 0x345   :  { %5512 = vmatmul.bf16.vlgmr.msrb.gmra.mxu0 %v13533_v48  ;;  %v10088_v61 = vld [vmem:[#allocation11 + $0x258] sm:$0xf]  ;;  %v10441_v57 = vor.u32 %v12565_v44, %v10440_v29  ;;  %v9994_v49 = vld [vmem:[#allocation11 + $0x1b8] sm:$0xf0] }
 0x346   :  { %5556 = vmatpush.bf16.msra.mxu0 %v10025_v37  ;;  %5534 = vmatpush.bf16.msrb.mxu2 %v10405_v62  ;;  %v9864_v37 = vld [vmem:[#allocation11 + $0x98] sm:$0xf] }
 0x347   :  { %v12653_v62 = vld [vmem:[#allocation11 + $0x7f4] sm:$0xf0] }
 0x348   :  { %5524 = vmatpush.bf16.msrb.mxu1 %v10053_v31  ;;  %5546 = vmatpush.bf16.msrb.mxu3 %v10693_v22  ;;  %v5266_v7 = vpop.f32.mrf.mxu1  ;;  %v10505_v31 = vor.u32 %v12581_v46, %v10504_v40  ;;  %v10565_v22 = vor.u32 %v12592_v18, %v10562_v24  ;;  %v10793_v19 = vor.u32 %v12653_v62, %v10792_v30  ;;  %v10728_v25 = vld [vmem:[#allocation11 + $0x758] sm:$0xf]  ;;  %v12441_v24 = vld [vmem:[#allocation11 + $0x15c] sm:$0xf] }
 0x349   :  { %v13570_v55 = vadd.f32 %v5266_v7, %v5254_v34  ;;  %v10408_v41 = vld [vmem:[#allocation11 + $0x4d8] sm:$0xf] }
 0x34a   :  { %5557 = vmatpush.bf16.msra.mxu0 %v9993_v13  ;;  %5535 = vmatpush.bf16.msrb.mxu2 %v10373_v11  ;;  %v5255_v58 = vpop.f32.mrf.mxu0  ;;  %v9865_v13 = vor.u32 %v12421_v28, %v9864_v37  ;;  %v12645_v11 = vld [vmem:[#allocation11 + $0x7b4] sm:$0xf0]  ;;  %v10282_v37 = vld [vmem:[#allocation11 + $0x3f8] sm:$0xf0] }
 0x34b   :  { %5525 = vmatmul.bf16.vlgmr.msrb.gmra.mxu1 %v13537_v10  ;;  %v10761_v9 = vor.u32 %v12645_v11, %v10760_v6  ;;  %v10056_v50 = vld [vmem:[#allocation11 + $0x218] sm:$0xf] }
 0x34c   :  { %5569 = vmatpush.bf16.msra.mxu1 %v10281_v0  ;;  %5547 = vmatpush.bf16.msrb.mxu3 %v10661_v17  ;;  %v10472_v0 = vld [vmem:[#allocation11 + $0x558] sm:$0xf]  ;;  %v9833_v17 = vor.u32 %v12413_v23, %v9832_v63  ;;  %v9965_v63 = vor.u32 %v12441_v24, %v9962_v60 }
 0x34d   :  { %v10473_v12 = vor.u32 %v12573_v20, %v10472_v0  ;;  %v12469_v4 = vld [vmem:[#allocation11 + $0x234] sm:$0xf0]  ;;  %v12433_v20 = vld [vmem:[#allocation11 + $0x11c] sm:$0xf] }
 0x34e   :  { %5558 = vmatpush.bf16.msra.mxu0 %v9961_v36  ;;  %5536 = vmatpush.bf16.msrb.mxu2 %v10341_v35  ;;  %v12477_v35 = vld [vmem:[#allocation11 + $0x274] sm:$0xf0]  ;;  %v10057_v40 = vor.u32 %v12469_v4, %v10056_v50  ;;  %v9933_v44 = vor.u32 %v12433_v20, %v9930_v3  ;;  %v9866_v50 = vld [vmem:[#allocation11 + $0xb8] sm:$0xf0] }
 0x34f   :  { %v10089_v42 = vor.u32 %v12477_v35, %v10088_v61  ;;  %v10696_v34 = vld [vmem:[#allocation11 + $0x718] sm:$0xf]  ;;  %v9898_v61 = vld [vmem:[#allocation11 + $0xf8] sm:$0xf0] }
 0x350   :  { %5570 = vmatpush.bf16.msra.mxu1 %v10249_v53  ;;  %5548 = vmatpush.bf16.msrb.mxu3 %v10629_v2  ;;  %v5268_v36 = vpop.f32.mrf.mxu1  ;;  %v12405_v53 = vld [vmem:[#allocation11 + $0x34] sm:$0xf0]  ;;  %v12641_v20 = vld [vmem:[#allocation11 + $0x79c] sm:$0xf] }
 0x351   :  { %v9801_v2 = vor.u32 %v12405_v53, %v9800_v16  ;;  %v10376_v18 = vld [vmem:[#allocation11 + $0x498] sm:$0xf]  ;;  %v12505_v16 = vld [vmem:[#allocation11 + $0x35c] sm:$0xf] }
 0x352   :  { %5559 = vmatpush.bf16.msra.mxu0 %v9929_v39  ;;  %5537 = vmatpush.bf16.msrb.mxu2 %v10309_v51  ;;  %v13573_v52 = vpop.f32.mrf.mxu0  ;;  %v12637_v39 = vld [vmem:[#allocation11 + $0x774] sm:$0xf0] }
 0x353   :  { %v10729_v45 = vor.u32 %v12637_v39, %v10728_v25  ;;  %v12629_v51 = vld [vmem:[#allocation11 + $0x734] sm:$0xf0]  ;;  %v12585_v25 = vld [vmem:[#allocation11 + $0x5dc] sm:$0xf] }
 0x354   :  { %5571 = vmatpush.bf16.msra.mxu1 %v10217_v1  ;;  %5549 = vmatpush.bf16.msrb.mxu3 %v10597_v38  ;;  %v12557_v1 = vld [vmem:[#allocation11 + $0x4f4] sm:$0xf0]  ;;  %v9997_v38 = vor.u32 %v12449_v5, %v9994_v49  ;;  %v10697_v46 = vor.u32 %v12629_v51, %v10696_v34  ;;  %v10538_v39 = vld [vmem:[#allocation11 + $0x5f8] sm:$0xf0] }
 0x355   :  { %5538 = vmatmul.bf16.vlgmr.msrb.gmra.mxu2 %v13543_v21  ;;  %v10409_v28 = vor.u32 %v12557_v1, %v10408_v41  ;;  %v12549_v58 = vld [vmem:[#allocation11 + $0x4b4] sm:$0xf0]  ;;  %v10186_v41 = vld [vmem:[#allocation11 + $0x338] sm:$0xf0]  ;;  %v10541_v5 = vor.u32 %v12585_v25, %v10538_v39 }
 0x356   :  { %5560 = vmatpush.bf16.msra.mxu0 %v9897_v43  ;;  %5582 = vmatpush.bf16.msra.mxu2 %v10537_v54  ;;  %v12521_v54 = vld [vmem:[#allocation11 + $0x3dc] sm:$0xf]  ;;  %v10664_v30 = vld [vmem:[#allocation11 + $0x6d8] sm:$0xf] }
 0x357   :  { %v10285_v59 = vor.u32 %v12521_v54, %v10282_v37  ;;  %v12621_v62 = vld [vmem:[#allocation11 + $0x6f4] sm:$0xf0]  ;;  %v12417_v49 = vld [vmem:[#allocation11 + $0x9c] sm:$0xf] }
 0x358   :  { %5572 = vmatpush.bf16.msra.mxu1 %v10185_v56  ;;  %5550 = vmatpush.bf16.msrb.mxu3 %v10565_v22  ;;  %v13576_v7 = vpop.f32.mrf.mxu2  ;;  %v13578_v43 = vpop.f32.mrf.mxu1  ;;  %v10377_v22 = vor.u32 %v12549_v58, %v10376_v18  ;;  %v10665_v23 = vor.u32 %v12621_v62, %v10664_v30  ;;  %v10344_v0 = vld [vmem:[#allocation11 + $0x458] sm:$0xf]  ;;  %v12577_v51 = vld [vmem:[#allocation11 + $0x59c] sm:$0xf] }
 0x359   :  { %v10632_v6 = vld [vmem:[#allocation11 + $0x698] sm:$0xf]  ;;  %v10506_v54 = vld [vmem:[#allocation11 + $0x5b8] sm:$0xf0] }
 0x35a   :  { %5561 = vmatpush.bf16.msra.mxu0 %v9865_v13  ;;  %5583 = vmatpush.bf16.msra.mxu2 %v10505_v31  ;;  %v5307_v56 = vpop.f32.mrf.mxu0  ;;  %v12513_v13 = vld [vmem:[#allocation11 + $0x39c] sm:$0xf]  ;;  %v12613_v11 = vld [vmem:[#allocation11 + $0x6b4] sm:$0xf0]  ;;  %v10509_v60 = vor.u32 %v12577_v51, %v10506_v54 }
 0x35b   :  { %5551 = vmatmul.bf16.vlgmr.msrb.gmra.mxu3 %v13547_v47  ;;  %v10250_v31 = vld [vmem:[#allocation11 + $0x3b8] sm:$0xf0]  ;;  %v10312_v53 = vld [vmem:[#allocation11 + $0x418] sm:$0xf] }
 0x35c   :  { %5573 = vmatpush.bf16.msra.mxu1 %v10153_v32  ;;  %5595 = vmatpush.bf16.msra.mxu3 %v10793_v19  ;;  %v12541_v19 = vld [vmem:[#allocation11 + $0x474] sm:$0xf0]  ;;  %v10253_v27 = vor.u32 %v12513_v13, %v10250_v31  ;;  %v12489_v56 = vld [vmem:[#allocation11 + $0x2dc] sm:$0xf] }
 0x35d   :  { %v12533_v33 = vld [vmem:[#allocation11 + $0x434] sm:$0xf0]  ;;  %v12649_v18 = vld [vmem:[#allocation11 + $0x7dc] sm:$0xf] }
 0x35e   :  { %5562 = vmatpush.bf16.msra.mxu0 %v9833_v17  ;;  %5584 = vmatpush.bf16.msra.mxu2 %v10473_v12  ;;  %v13581_v32 = vpop.f32.mrf.mxu3  ;;  %v10218_v12 = vld [vmem:[#allocation11 + $0x378] sm:$0xf0]  ;;  %v10313_v1 = vor.u32 %v12533_v33, %v10312_v53  ;;  %v10568_v37 = vld [vmem:[#allocation11 + $0x618] sm:$0xf] }
 0x35f   :  { %v10221_v35 = vor.u32 %v12505_v16, %v10218_v12  ;;  %v10794_v58 = vld [vmem:[#allocation11 + $0x7f8] sm:$0xf0]  ;;  %v12684_v33 = vld [vmem:[#allocation14 + $0xec] sm:$0xf0] }
 0x360   :  { %5574 = vmatpush.bf16.msra.mxu1 %v10121_v8  ;;  %5596 = vmatpush.bf16.msra.mxu3 %v10761_v9  ;;  %v5281_v36 = vpop.f32.mrf.mxu2  ;;  %v5320_v17 = vpop.f32.mrf.mxu1  ;;  %v10345_v8 = vor.u32 %v12541_v19, %v10344_v0  ;;  %v10633_v9 = vor.u32 %v12613_v11, %v10632_v6  ;;  %v12409_v13 = vld [vmem:[#allocation11 + $0x5c] sm:$0xf] }
 0x361   :  { %v9834_v31 = vld [vmem:[#allocation11 + $0x78] sm:$0xf0] }
 0x362   :  { %5563 = vmatpush.bf16.msra.mxu0 %v9801_v2  ;;  %5585 = vmatpush.bf16.msra.mxu2 %v10441_v57  ;;  %v13584_v29 = vpop.f32.mrf.mxu0  ;;  %v10600_v2 = vld [vmem:[#allocation11 + $0x658] sm:$0xf]  ;;  %v12481_v0 = vld [vmem:[#allocation11 + $0x29c] sm:$0xf]  ;;  %v9837_v6 = vor.u32 %v12409_v13, %v9834_v31 }
 0x363   :  { %v12605_v57 = vld [vmem:[#allocation11 + $0x674] sm:$0xf0]  ;;  %v10122_v19 = vld [vmem:[#allocation11 + $0x2b8] sm:$0xf0] }
 0x364   :  { %5575 = vmatpush.bf16.msra.mxu1 %v10089_v42  ;;  %5597 = vmatpush.bf16.msra.mxu3 %v10729_v45  ;;  %v9901_v45 = vor.u32 %v12425_v15, %v9898_v61  ;;  %v10601_v4 = vor.u32 %v12605_v57, %v10600_v2  ;;  %v12401_v11 = vld [vmem:[#allocation11 + $0x1c] sm:$0xf]  ;;  %v10125_v17 = vor.u32 %v12481_v0, %v10122_v19  ;;  %v12676_v13 = vld [vmem:[#allocation14 + $0xac] sm:$0xf0] }
 0x365   :  { %5564 = vmatmul.bf16.vlgmr.msra.gmra.mxu0 %v13533_v48  ;;  %v9802_v16 = vld [vmem:[#allocation11 + $0x38] sm:$0xf0] }
 0x366   :  { %5608 = vmatpush.bf16.msrb.mxu0 %v10029_v26  ;;  %5586 = vmatpush.bf16.msra.mxu2 %v10409_v28  ;;  %v12497_v26 = vld [vmem:[#allocation11 + $0x31c] sm:$0xf]  ;;  %v5294_v42 = vpop.f32.mrf.mxu3  ;;  %v9805_v2 = vor.u32 %v12401_v11, %v9802_v16  ;;  %v10864_v11 = vld [vmem:[#allocation14 + $0x80] sm:$0xf] }
 0x367   :  { %v10189_v34 = vor.u32 %v12497_v26, %v10186_v41  ;;  %v12561_v12 = vld [vmem:[#allocation11 + $0x51c] sm:$0xf] }
 0x368   :  { %5576 = vmatpush.bf16.msra.mxu1 %v10057_v40  ;;  %5598 = vmatpush.bf16.msra.mxu3 %v10697_v46  ;;  %v13586_v28 = vpop.f32.mrf.mxu2  ;;  %v10154_v40 = vld [vmem:[#allocation11 + $0x2f8] sm:$0xf0]  ;;  %v13588_v46 = vpop.f32.mrf.mxu1 }
 0x369   :  { %v10157_v62 = vor.u32 %v12489_v56, %v10154_v40  ;;  %v12473_v15 = vld [vmem:[#allocation11 + $0x25c] sm:$0xf] }
 0x36a   :  { %5609 = vmatpush.bf16.msrb.mxu0 %v9997_v38  ;;  %5587 = vmatpush.bf16.msra.mxu2 %v10377_v22  ;;  %v12597_v38 = vld [vmem:[#allocation11 + $0x634] sm:$0xf0]  ;;  %v5359_v24 = vpop.f32.mrf.mxu0  ;;  %v12569_v22 = vld [vmem:[#allocation11 + $0x55c] sm:$0xf] }
 0x36b   :  { %5577 = vmatmul.bf16.vlgmr.msra.gmra.mxu1 %v13537_v10  ;;  %v10569_v30 = vor.u32 %v12597_v38, %v10568_v37  ;;  %v12633_v25 = vld [vmem:[#allocation11 + $0x75c] sm:$0xf]  ;;  %v11040_v37 = vld [vmem:[#allocation14 + $0x1e0] sm:$0xf]  ;;  %v12716_v38 = vld [vmem:[#allocation14 + $0x1ec] sm:$0xf0] }
 0x36c   :  { %5621 = vmatpush.bf16.msrb.mxu1 %v10285_v59  ;;  %5599 = vmatpush.bf16.msra.mxu3 %v10665_v23  ;;  %v9869_v59 = vor.u32 %v12417_v49, %v9866_v50  ;;  %v10474_v23 = vld [vmem:[#allocation11 + $0x578] sm:$0xf0]  ;;  %v12680_v49 = vld [vmem:[#allocation14 + $0xcc] sm:$0xf0] }
 0x36d   :  { %v10477_v36 = vor.u32 %v12569_v22, %v10474_v23  ;;  %v10730_v39 = vld [vmem:[#allocation11 + $0x778] sm:$0xf0]  ;;  %v12712_v23 = vld [vmem:[#allocation14 + $0x1cc] sm:$0xf0] }
 0x36e   :  { %5610 = vmatpush.bf16.msrb.mxu0 %v9965_v63  ;;  %5588 = vmatpush.bf16.msra.mxu2 %v10345_v8  ;;  %v10797_v63 = vor.u32 %v12649_v18, %v10794_v58  ;;  %v13591_v3 = vpop.f32.mrf.mxu3  ;;  %v10442_v8 = vld [vmem:[#allocation11 + $0x538] sm:$0xf0] }
 0x36f   :  { %v10445_v57 = vor.u32 %v12561_v12, %v10442_v8  ;;  %v12553_v41 = vld [vmem:[#allocation11 + $0x4dc] sm:$0xf]  ;;  %v11008_v12 = vld [vmem:[#allocation14 + $0x1a0] sm:$0xf]  ;;  %v12708_v8 = vld [vmem:[#allocation14 + $0x1ac] sm:$0xf0] }
 0x370   :  { %5622 = vmatpush.bf16.msrb.mxu1 %v10253_v27  ;;  %5600 = vmatpush.bf16.msra.mxu3 %v10633_v9  ;;  %v10762_v27 = vld [vmem:[#allocation11 + $0x7b8] sm:$0xf0]  ;;  %v5333_v53 = vpop.f32.mrf.mxu2  ;;  %v10912_v9 = vld [vmem:[#allocation14 + $0xe0] sm:$0xf]  ;;  %v5372_v61 = vpop.f32.mrf.mxu1 }
 0x371   :  { %v10913_v26 = vor.u32 %v12684_v33, %v10912_v9  ;;  %v12465_v50 = vld [vmem:[#allocation11 + $0x21c] sm:$0xf] }
 0x372   :  { %5611 = vmatpush.bf16.msrb.mxu0 %v9933_v44  ;;  %5589 = vmatpush.bf16.msra.mxu2 %v10313_v1  ;;  %v10765_v44 = vor.u32 %v12641_v20, %v10762_v27  ;;  %v10410_v1 = vld [vmem:[#allocation11 + $0x4f8] sm:$0xf0] }
 0x373   :  { %v10698_v51 = vld [vmem:[#allocation11 + $0x738] sm:$0xf0]  ;;  %v10413_v56 = vor.u32 %v12553_v41, %v10410_v1  ;;  %v12748_v41 = vld [vmem:[#allocation14 + $0x2ec] sm:$0xf0] }
 0x374   :  { %5623 = vmatpush.bf16.msrb.mxu1 %v10221_v35  ;;  %5601 = vmatpush.bf16.msra.mxu3 %v10601_v4  ;;  %v10090_v35 = vld [vmem:[#allocation11 + $0x278] sm:$0xf0] }
 0x375   :  { %5590 = vmatmul.bf16.vlgmr.msra.gmra.mxu2 %v13543_v21  ;;  %v10093_v42 = vor.u32 %v12473_v15, %v10090_v35  ;;  %v10058_v4 = vld [vmem:[#allocation11 + $0x238] sm:$0xf0] }
 0x376   :  { %5612 = vmatpush.bf16.msrb.mxu0 %v9901_v45  ;;  %5634 = vmatpush.bf16.msrb.mxu2 %v10541_v5  ;;  %v10733_v45 = vor.u32 %v12633_v25, %v10730_v39  ;;  %v10896_v5 = vld [vmem:[#allocation14 + $0xc0] sm:$0xf]  ;;  %v5346_v54 = vpop.f32.mrf.mxu3  ;;  %v10061_v58 = vor.u32 %v12465_v50, %v10058_v4  ;;  %v12617_v31 = vld [vmem:[#allocation11 + $0x6dc] sm:$0xf] }
 0x377   :  { %v10897_v40 = vor.u32 %v12680_v49, %v10896_v5  ;;  %v10666_v22 = vld [vmem:[#allocation11 + $0x6f8] sm:$0xf0]  ;;  %v10848_v39 = vld [vmem:[#allocation14 + $0x60] sm:$0xf]  ;;  %v3949_v49 = vperm.slane %v13566_v14, 1 }
 0x378   :  { %5624 = vmatpush.bf16.msrb.mxu1 %v10189_v34  ;;  %5602 = vmatpush.bf16.msra.mxu3 %v10569_v30  ;;  %v12625_v34 = vld [vmem:[#allocation11 + $0x71c] sm:$0xf]  ;;  %v13594_v18 = vpop.f32.mrf.mxu2  ;;  %v10880_v30 = vld [vmem:[#allocation14 + $0xa0] sm:$0xf]  ;;  %v10669_v20 = vor.u32 %v12617_v31, %v10666_v22  ;;  %v12780_v31 = vld [vmem:[#allocation14 + $0x3ec] sm:$0xf0] }
 0x379   :  { %v10701_v24 = vor.u32 %v12625_v34, %v10698_v51  ;;  %v10881_v19 = vor.u32 %v12676_v13, %v10880_v30  ;;  %v12537_v27 = vld [vmem:[#allocation11 + $0x45c] sm:$0xf]  ;;  %v10832_v34 = vld [vmem:[#allocation14 + $0x40] sm:$0xf]  ;;  %v12664_v51 = vld [vmem:[#allocation14 + $0x4c] sm:$0xf0] }
 0x37a   :  { %5613 = vmatpush.bf16.msrb.mxu0 %v9869_v59  ;;  %5635 = vmatpush.bf16.msrb.mxu2 %v10509_v60  ;;  %v12545_v59 = vld [vmem:[#allocation11 + $0x49c] sm:$0xf]  ;;  %v11296_v13 = vld [vmem:[#allocation14 + $0x3e0] sm:$0xf]  ;;  %v10833_v22 = vor.u32 %v12664_v51, %v10832_v34 }
 0x37b   :  { %5603 = vmatmul.bf16.vlgmr.msra.gmra.mxu3 %v13547_v47  ;;  %v10378_v60 = vld [vmem:[#allocation11 + $0x4b8] sm:$0xf0] }
 0x37c   :  { %5625 = vmatpush.bf16.msrb.mxu1 %v10157_v62  ;;  %5647 = vmatpush.bf16.msrb.mxu3 %v10797_v63  ;;  %v11041_v62 = vor.u32 %v12716_v38, %v11040_v37  ;;  %v11024_v63 = vld [vmem:[#allocation14 + $0x1c0] sm:$0xf]  ;;  %v10381_v0 = vor.u32 %v12545_v59, %v10378_v60  ;;  %v10634_v16 = vld [vmem:[#allocation11 + $0x6b8] sm:$0xf0]  ;;  %v12700_v60 = vld [vmem:[#allocation14 + $0x16c] sm:$0xf0] }
 0x37d   :  { %v12529_v33 = vld [vmem:[#allocation11 + $0x41c] sm:$0xf]  ;;  %v10976_v59 = vld [vmem:[#allocation14 + $0x160] sm:$0xf] }
 0x37e   :  { %5614 = vmatpush.bf16.msrb.mxu0 %v9837_v6  ;;  %5636 = vmatpush.bf16.msrb.mxu2 %v10477_v36  ;;  %v10346_v6 = vld [vmem:[#allocation11 + $0x478] sm:$0xf0]  ;;  %v11025_v36 = vor.u32 %v12712_v23, %v11024_v63  ;;  %v13598_v53 = vpop.f32.mrf.mxu3 }
 0x37f   :  { %v10349_v9 = vor.u32 %v12537_v27, %v10346_v6  ;;  %v10314_v25 = vld [vmem:[#allocation11 + $0x438] sm:$0xf0]  ;;  %v11136_v27 = vld [vmem:[#allocation14 + $0x2a0] sm:$0xf]  ;;  %v5306_v6 = vadd.f32 %v13573_v52, %v3949_v49 }
 0x380   :  { %5626 = vmatpush.bf16.msrb.mxu1 %v10125_v17  ;;  %5648 = vmatpush.bf16.msrb.mxu3 %v10765_v44  ;;  %v12672_v17 = vld [vmem:[#allocation14 + $0x8c] sm:$0xf0]  ;;  %v5385_v61 = vpop.f32.mrf.mxu2  ;;  %v12601_v1 = vld [vmem:[#allocation11 + $0x65c] sm:$0xf]  ;;  %v10317_v5 = vor.u32 %v12529_v33, %v10314_v25 }
 0x381   :  { %v10865_v15 = vor.u32 %v12672_v17, %v10864_v11  ;;  %v11297_v11 = vor.u32 %v12780_v31, %v11296_v13  ;;  %v10960_v17 = vld [vmem:[#allocation14 + $0x140] sm:$0xf]  ;;  %v12656_v25 = vld [vmem:[#allocation14 + $0xc] sm:$0xf0] }
 0x382   :  { %5615 = vmatpush.bf16.msrb.mxu0 %v9805_v2  ;;  %5637 = vmatpush.bf16.msrb.mxu2 %v10445_v57  ;;  %v13600_v44 = vpop.f32.mrf.mxu0  ;;  %v12668_v2 = vld [vmem:[#allocation14 + $0x6c] sm:$0xf0]  ;;  %v11009_v57 = vor.u32 %v12708_v8, %v11008_v12  ;;  %v11280_v12 = vld [vmem:[#allocation14 + $0x3c0] sm:$0xf] }
 0x383   :  { %v10849_v50 = vor.u32 %v12668_v2, %v10848_v39  ;;  %v12776_v8 = vld [vmem:[#allocation14 + $0x3cc] sm:$0xf0]  ;;  %v11120_v39 = vld [vmem:[#allocation14 + $0x280] sm:$0xf] }
 0x384   :  { %5627 = vmatpush.bf16.msrb.mxu1 %v10093_v42  ;;  %5649 = vmatpush.bf16.msrb.mxu3 %v10733_v45  ;;  %v10992_v42 = vld [vmem:[#allocation14 + $0x180] sm:$0xf]  ;;  %v12704_v45 = vld [vmem:[#allocation14 + $0x18c] sm:$0xf0] }
 0x385   :  { %5616 = vmatmul.bf16.vlgmr.msrb.gmra.mxu0 %v13533_v48  ;;  %v12609_v48 = vld [vmem:[#allocation11 + $0x69c] sm:$0xf]  ;;  %v10993_v38 = vor.u32 %v12704_v45, %v10992_v42  ;;  %v12736_v2 = vld [vmem:[#allocation14 + $0x28c] sm:$0xf0] }
 0x386   :  { %7222 = vmatpush.bf16.msra.mxu0 %v10913_v26  ;;  %5638 = vmatpush.bf16.msrb.mxu2 %v10413_v56  ;;  %v10637_v35 = vor.u32 %v12609_v48, %v10634_v16  ;;  %v11168_v26 = vld [vmem:[#allocation14 + $0x2e0] sm:$0xf]  ;;  %v5398_v30 = vpop.f32.mrf.mxu3  ;;  %v12696_v48 = vld [vmem:[#allocation14 + $0x14c] sm:$0xf0]  ;;  %v5280_v16 = vadd.f32 %v13576_v7, %v13570_v55  ;;  %v11281_v55 = vor.u32 %v12776_v8, %v11280_v12 }
 0x387   :  { %v11169_v4 = vor.u32 %v12748_v41, %v11168_v26  ;;  %v11152_v56 = vld [vmem:[#allocation14 + $0x2c0] sm:$0xf]  ;;  %v12692_v41 = vld [vmem:[#allocation14 + $0x12c] sm:$0xf0] }
 0x388   :  { %5628 = vmatpush.bf16.msrb.mxu1 %v10061_v58  ;;  %5650 = vmatpush.bf16.msrb.mxu3 %v10701_v24  ;;  %v13603_v54 = vpop.f32.mrf.mxu1  ;;  %v12593_v58 = vld [vmem:[#allocation11 + $0x61c] sm:$0xf]  ;;  %v5293_v61 = vadd.f32 %v13581_v32, %v5280_v16  ;;  %v11424_v7 = vld [vmem:[#allocation14 + $0x4e0] sm:$0xf] }
 0x389   :  { %v10570_v24 = vld [vmem:[#allocation11 + $0x638] sm:$0xf0]  ;;  %v10944_v26 = vld [vmem:[#allocation14 + $0x120] sm:$0xf] }
 0x38a   :  { %7223 = vmatpush.bf16.msra.mxu0 %v10897_v40  ;;  %5639 = vmatpush.bf16.msrb.mxu2 %v10381_v0  ;;  %v12744_v40 = vld [vmem:[#allocation14 + $0x2cc] sm:$0xf0]  ;;  %v10573_v23 = vor.u32 %v12593_v58, %v10570_v24  ;;  %v10977_v0 = vor.u32 %v12700_v60, %v10976_v59  ;;  %v5660_v42 = vmax.f32 %v5293_v61, 0.0  ;;  %v10945_v34 = vor.u32 %v12692_v41, %v10944_v26  ;;  %v11552_v24 = vld [vmem:[#allocation14 + $0x5e0] sm:$0xf] }
 0x38b   :  { %5629 = vmatmul.bf16.vlgmr.msrb.gmra.mxu1 %v13537_v10  ;;  %v10602_v10 = vld [vmem:[#allocation11 + $0x678] sm:$0xf0]  ;;  %v11153_v63 = vor.u32 %v12744_v40, %v11152_v56  ;;  %v12688_v56 = vld [vmem:[#allocation14 + $0x10c] sm:$0xf0]  ;;  %v11248_v40 = vld [vmem:[#allocation14 + $0x380] sm:$0xf] }
 0x38c   :  { %7235 = vmatpush.bf16.msra.mxu1 %v11041_v62  ;;  %5651 = vmatpush.bf16.msrb.mxu3 %v10669_v20  ;;  %v10605_v37 = vor.u32 %v12601_v1, %v10602_v10  ;;  %v5411_v62 = vpop.f32.mrf.mxu0  ;;  %v12660_v20 = vld [vmem:[#allocation14 + $0x2c] sm:$0xf0]  ;;  %v11264_v1 = vld [vmem:[#allocation14 + $0x3a0] sm:$0xf]  ;;  %v3950_v58 = vperm.slane %v13566_v14, 2  ;;  %v13615_v59 = vpack.c.bf16 %v5660_v42, %v5660_v42 }
 0x38d   :  { %v12772_v10 = vld [vmem:[#allocation14 + $0x3ac] sm:$0xf0]  ;;  %v11376_v61 = vld [vmem:[#allocation14 + $0x480] sm:$0xf] }
 0x38e   :  { %7224 = vmatpush.bf16.msra.mxu0 %v10881_v19  ;;  %5640 = vmatpush.bf16.msrb.mxu2 %v10349_v9  ;;  %v10816_v19 = vld [vmem:[#allocation14 + $0x20] sm:$0xf]  ;;  %v5319_v9 = vadd.f32 %v13578_v43, %v5306_v6  ;;  %v11265_v51 = vor.u32 %v12772_v10, %v11264_v1 }
 0x38f   :  { %v10817_v33 = vor.u32 %v12660_v20, %v10816_v19  ;;  %v12804_v19 = vld [vmem:[#allocation14 + $0x4ac] sm:$0xf0]  ;;  %v11232_v20 = vld [vmem:[#allocation14 + $0x360] sm:$0xf] }
 0x390   :  { %7236 = vmatpush.bf16.msra.mxu1 %v11025_v36  ;;  %5652 = vmatpush.bf16.msrb.mxu3 %v10637_v35  ;;  %v12740_v36 = vld [vmem:[#allocation14 + $0x2ac] sm:$0xf0]  ;;  %v5424_v52 = vpop.f32.mrf.mxu1  ;;  %v10961_v35 = vor.u32 %v12696_v48, %v10960_v17  ;;  %v5332_v43 = vadd.f32 %v13586_v28, %v5319_v9  ;;  %v11408_v28 = vld [vmem:[#allocation14 + $0x4c0] sm:$0xf]  ;;  %v3951_v48 = vperm.slane %v13566_v14, 3 }
 0x391   :  { %v12840_v17 = vld [vmem:[#allocation14 + $0x5cc] sm:$0xf0]  ;;  %v11056_v10 = vld [vmem:[#allocation14 + $0x200] sm:$0xf] }
 0x392   :  { %7225 = vmatpush.bf16.msra.mxu0 %v10865_v15  ;;  %5641 = vmatpush.bf16.msrb.mxu2 %v10317_v5  ;;  %v10800_v15 = vld [vmem:[#allocation14] sm:$0xf]  ;;  %v5345_v45 = vadd.f32 %v13591_v3, %v5332_v43  ;;  %v11121_v5 = vor.u32 %v12736_v2, %v11120_v39  ;;  %v12844_v3 = vld [vmem:[#allocation14 + $0x5ec] sm:$0xf0] }
 0x393   :  { %v10801_v32 = vor.u32 %v12656_v25, %v10800_v15  ;;  %v11553_v6 = vor.u32 %v12844_v3, %v11552_v24  ;;  %v12724_v15 = vld [vmem:[#allocation14 + $0x22c] sm:$0xf0]  ;;  %v11184_v3 = vld [vmem:[#allocation14 + $0x300] sm:$0xf] }
 0x394   :  { %7237 = vmatpush.bf16.msra.mxu1 %v11009_v57  ;;  %5653 = vmatpush.bf16.msrb.mxu3 %v10605_v37  ;;  %v12812_v57 = vld [vmem:[#allocation14 + $0x4ec] sm:$0xf0]  ;;  %v5661_v60 = vmax.f32 %v5345_v45, 0.0 }
 0x395   :  { %5642 = vmatmul.bf16.vlgmr.msrb.gmra.mxu2 %v13543_v21  ;;  %v11137_v21 = vor.u32 %v12740_v36, %v11136_v27  ;;  %v11425_v49 = vor.u32 %v12812_v57, %v11424_v7  ;;  %v12808_v37 = vld [vmem:[#allocation14 + $0x4cc] sm:$0xf0]  ;;  %v11536_v36 = vld [vmem:[#allocation14 + $0x5c0] sm:$0xf]  ;;  %v5410_v7 = vadd.f32 %v13600_v44, %v3951_v48 }
 0x396   :  { %7226 = vmatpush.bf16.msra.mxu0 %v10849_v50  ;;  %7248 = vmatpush.bf16.msra.mxu2 %v11169_v4  ;;  %v11104_v50 = vld [vmem:[#allocation14 + $0x260] sm:$0xf]  ;;  %v12732_v4 = vld [vmem:[#allocation14 + $0x26c] sm:$0xf0]  ;;  %v11409_v13 = vor.u32 %v12808_v37, %v11408_v28  ;;  %v11537_v14 = vor.u32 %v12840_v17, %v11536_v36 }
 0x397   :  { %v11105_v30 = vor.u32 %v12732_v4, %v11104_v50  ;;  %v12764_v27 = vld [vmem:[#allocation14 + $0x36c] sm:$0xf0]  ;;  %v5423_v42 = vadd.f32 %v13603_v54, %v5410_v7  ;;  %v11504_v50 = vld [vmem:[#allocation14 + $0x580] sm:$0xf] }
 0x398   :  { %7238 = vmatpush.bf16.msra.mxu1 %v10993_v38  ;;  %5654 = vmatpush.bf16.msrb.mxu3 %v10573_v23  ;;  %v10928_v38 = vld [vmem:[#allocation14 + $0x100] sm:$0xf]  ;;  %v5435_v62 = vpop.f32.mrf.mxu2  ;;  %v12728_v23 = vld [vmem:[#allocation14 + $0x24c] sm:$0xf0]  ;;  %v11233_v9 = vor.u32 %v12764_v27, %v11232_v20 }
 0x399   :  { %v10929_v31 = vor.u32 %v12688_v56, %v10928_v38  ;;  %v12760_v25 = vld [vmem:[#allocation14 + $0x34c] sm:$0xf0]  ;;  %v11344_v54 = vld [vmem:[#allocation14 + $0x440] sm:$0xf] }
 0x39a   :  { %7227 = vmatpush.bf16.msra.mxu0 %v10833_v22  ;;  %7249 = vmatpush.bf16.msra.mxu2 %v11153_v63  ;;  %v11088_v63 = vld [vmem:[#allocation14 + $0x240] sm:$0xf]  ;;  %v12796_v45 = vld [vmem:[#allocation14 + $0x46c] sm:$0xf0] }
 0x39b   :  { %5655 = vmatmul.bf16.vlgmr.msrb.gmra.mxu3 %v13547_v47  ;;  %v12768_v47 = vld [vmem:[#allocation14 + $0x38c] sm:$0xf0]  ;;  %v11089_v16 = vor.u32 %v12728_v23, %v11088_v63  ;;  %v11664_v63 = vld [vmem:[#allocation14 + $0x6c0] sm:$0xf] }
 0x39c   :  { %7239 = vmatpush.bf16.msra.mxu1 %v10977_v0  ;;  %7261 = vmatpush.bf16.msra.mxu3 %v11297_v11  ;;  %v11249_v22 = vor.u32 %v12768_v47, %v11248_v40  ;;  %v11392_v0 = vld [vmem:[#allocation14 + $0x4a0] sm:$0xf]  ;;  %v5358_v11 = vadd.f32 %v13584_v29, %v3950_v58  ;;  %v12800_v29 = vld [vmem:[#allocation14 + $0x48c] sm:$0xf0] }
 0x39d   :  { %v11393_v8 = vor.u32 %v12804_v19, %v11392_v0  ;;  %v11377_v41 = vor.u32 %v12800_v29, %v11376_v61  ;;  %v12832_v4 = vld [vmem:[#allocation14 + $0x58c] sm:$0xf0]  ;;  %v11472_v48 = vld [vmem:[#allocation14 + $0x540] sm:$0xf]  ;;  %v12682_v29 = vld [vmem:[#allocation14 + $0xe4] sm:$0xf] }
 0x39e   :  { %7228 = vmatpush.bf16.msra.mxu0 %v10817_v33  ;;  %7250 = vmatpush.bf16.msra.mxu2 %v11137_v21  ;;  %v5371_v12 = vadd.f32 %v13588_v46, %v5358_v11  ;;  %v11072_v33 = vld [vmem:[#allocation14 + $0x220] sm:$0xf]  ;;  %v13621_v21 = vpack.c.bf16 %v5661_v60, %v5661_v60  ;;  %v5448_v52 = vpop.f32.mrf.mxu3  ;;  %v12876_v28 = vld [vmem:[#allocation14 + $0x6ec] sm:$0xf0] }
 0x39f   :  { %v11520_v46 = vld [vmem:[#allocation14 + $0x5a0] sm:$0xf]  ;;  %v11073_v57 = vor.u32 %v12724_v15, %v11072_v33  ;;  %v12792_v24 = vld [vmem:[#allocation14 + $0x44c] sm:$0xf0] }
 0x3a0   :  { %7240 = vmatpush.bf16.msra.mxu1 %v10961_v35  ;;  %7262 = vmatpush.bf16.msra.mxu3 %v11281_v55  ;;  %v11216_v35 = vld [vmem:[#allocation14 + $0x340] sm:$0xf]  ;;  %v5384_v39 = vadd.f32 %v13594_v18, %v5371_v12  ;;  %v12836_v55 = vld [vmem:[#allocation14 + $0x5ac] sm:$0xf0]  ;;  %v5437_v26 = vpop.f32.mrf.mxu2  ;;  %v11345_v19 = vor.u32 %v12792_v24, %v11344_v54 }
 0x3a1   :  { %v11217_v1 = vor.u32 %v12760_v25, %v11216_v35  ;;  %v11360_v18 = vld [vmem:[#allocation14 + $0x460] sm:$0xf]  ;;  %v11521_v44 = vor.u32 %v12836_v55, %v11520_v46  ;;  %v12752_v60 = vld [vmem:[#allocation14 + $0x30c] sm:$0xf0]  ;;  %v13638_v26 = vld [vmem:[#allocation13] sm:$0xff] }
 0x3a2   :  { %7229 = vmatpush.bf16.msra.mxu0 %v10801_v32  ;;  %7251 = vmatpush.bf16.msra.mxu2 %v11121_v5  ;;  %v13624_v2 = vpop.f32.mrf.mxu0  ;;  %v5397_v43 = vadd.f32 %v13598_v53, %v5384_v39  ;;  %v12720_v32 = vld [vmem:[#allocation14 + $0x20c] sm:$0xf0]  ;;  %v11200_v5 = vld [vmem:[#allocation14 + $0x320] sm:$0xf]  ;;  %v11361_v38 = vor.u32 %v12796_v45, %v11360_v18  ;;  %v11185_v20 = vor.u32 %v12752_v60, %v11184_v3  ;;  %v12714_v45 = vld [vmem:[#allocation14 + $0x1e4] sm:$0xf] }
 0x3a3   :  { %v11680_v53 = vld [vmem:[#allocation14 + $0x6e0] sm:$0xf]  ;;  %v12872_v23 = vld [vmem:[#allocation14 + $0x6cc] sm:$0xf0] }
 0x3a4   :  { %7241 = vmatpush.bf16.msra.mxu1 %v10945_v34  ;;  %7263 = vmatpush.bf16.msra.mxu3 %v11265_v51  ;;  %v5436_v34 = vadd.f32 %v5435_v62, %v5423_v42  ;;  %v11057_v51 = vor.u32 %v12720_v32, %v11056_v10  ;;  %v5662_v37 = vmax.f32 %v5397_v43, 0.0  ;;  %v11681_v62 = vor.u32 %v12876_v28, %v11680_v53  ;;  %v12788_v11 = vld [vmem:[#allocation14 + $0x42c] sm:$0xf0]  ;;  %v11648_v12 = vld [vmem:[#allocation14 + $0x6a0] sm:$0xf] }
 0x3a5   :  { %7230 = vmatmul.bf16.vlgmr.msra.gmra.mxu0 %v13615_v59  ;;  %v11665_v17 = vor.u32 %v12872_v23, %v11664_v63  ;;  %v11312_v61 = vld [vmem:[#allocation14 + $0x400] sm:$0xf]  ;;  %v12820_v46 = vld [vmem:[#allocation14 + $0x52c] sm:$0xf0]  ;;  %v3952_v43 = vperm.slane %v13638_v26, 4 }
 0x3a6   :  { %7274 = vmatpush.bf16.msrb.mxu0 %v11425_v49  ;;  %7252 = vmatpush.bf16.msra.mxu2 %v11105_v30  ;;  %v12756_v49 = vld [vmem:[#allocation14 + $0x32c] sm:$0xf0]  ;;  %v5449_v47 = vadd.f32 %v5448_v52, %v5436_v34  ;;  %v5450_v58 = vpop.f32.mrf.mxu3  ;;  %v11505_v30 = vor.u32 %v12832_v4, %v11504_v50  ;;  %v13632_v0 = vpack.c.bf16 %v5662_v37, %v5662_v37  ;;  %v11456_v39 = vld [vmem:[#allocation14 + $0x520] sm:$0xf]  ;;  %v10898_v10 = vld [vmem:[#allocation14 + $0xd0] sm:$0xf0] }
 0x3a7   :  { %v11201_v40 = vor.u32 %v12756_v49, %v11200_v5  ;;  %v12784_v52 = vld [vmem:[#allocation14 + $0x40c] sm:$0xf0]  ;;  %v11632_v55 = vld [vmem:[#allocation14 + $0x680] sm:$0xf]  ;;  %v11457_v32 = vor.u32 %v12820_v46, %v11456_v39  ;;  %v11042_v49 = vld [vmem:[#allocation14 + $0x1f0] sm:$0xf0]  ;;  %v5462_v53 = vadd.f32 %v13624_v2, %v3952_v43 }
 0x3a8   :  { %7242 = vmatpush.bf16.msra.mxu1 %v10929_v31  ;;  %7264 = vmatpush.bf16.msra.mxu3 %v11249_v22  ;;  %v13630_v56 = vpop.f32.mrf.mxu1  ;;  %v11488_v31 = vld [vmem:[#allocation14 + $0x560] sm:$0xf]  ;;  %v12828_v22 = vld [vmem:[#allocation14 + $0x56c] sm:$0xf0]  ;;  %v5663_v27 = vmax.f32 %v5449_v47, 0.0 }
 0x3a9   :  { %v11489_v36 = vor.u32 %v12828_v22, %v11488_v31  ;;  %v12864_v7 = vld [vmem:[#allocation14 + $0x68c] sm:$0xf0]  ;;  %v11440_v18 = vld [vmem:[#allocation14 + $0x500] sm:$0xf]  ;;  %v12674_v28 = vld [vmem:[#allocation14 + $0xa4] sm:$0xf]  ;;  %v5475_v3 = vadd.f32 %v13630_v56, %v5462_v53 }
 0x3aa   :  { %7275 = vmatpush.bf16.msrb.mxu0 %v11409_v13  ;;  %7253 = vmatpush.bf16.msra.mxu2 %v11089_v16  ;;  %v5463_v13 = vpop.f32.mrf.mxu0  ;;  %v12824_v16 = vld [vmem:[#allocation14 + $0x54c] sm:$0xf0]  ;;  %v13635_v15 = vpack.c.bf16 %v5663_v27, %v5663_v27  ;;  %v11633_v5 = vor.u32 %v12864_v7, %v11632_v55  ;;  %v10882_v37 = vld [vmem:[#allocation14 + $0xb0] sm:$0xf0]  ;;  %v11600_v58 = vld [vmem:[#allocation14 + $0x640] sm:$0xf] }
 0x3ab   :  { %7243 = vmatmul.bf16.vlgmr.msra.gmra.mxu1 %v13621_v21  ;;  %v11473_v35 = vor.u32 %v12824_v16, %v11472_v48  ;;  %v12816_v42 = vld [vmem:[#allocation14 + $0x50c] sm:$0xf0]  ;;  %v11026_v47 = vld [vmem:[#allocation14 + $0x1d0] sm:$0xf0]  ;;  %v10885_v60 = vor.u32 %v12674_v28, %v10882_v37  ;;  %v12706_v63 = vld [vmem:[#allocation14 + $0x1a4] sm:$0xf] }
 0x3ac   :  { %7287 = vmatpush.bf16.msrb.mxu1 %v11553_v6  ;;  %7265 = vmatpush.bf16.msra.mxu3 %v11233_v9  ;;  %v11328_v6 = vld [vmem:[#allocation14 + $0x420] sm:$0xf]  ;;  %v12860_v50 = vld [vmem:[#allocation14 + $0x66c] sm:$0xf0]  ;;  %v10866_v13 = vld [vmem:[#allocation14 + $0x90] sm:$0xf0] }
 0x3ad   :  { %v11329_v9 = vor.u32 %v12788_v11, %v11328_v6  ;;  %v12856_v24 = vld [vmem:[#allocation14 + $0x64c] sm:$0xf0]  ;;  %v11010_v23 = vld [vmem:[#allocation14 + $0x1b0] sm:$0xf0]  ;;  %v11584_v27 = vld [vmem:[#allocation14 + $0x620] sm:$0xf] }
 0x3ae   :  { %7276 = vmatpush.bf16.msrb.mxu0 %v11393_v8  ;;  %7254 = vmatpush.bf16.msra.mxu2 %v11073_v57  ;;  %v12868_v8 = vld [vmem:[#allocation14 + $0x6ac] sm:$0xf0]  ;;  %v11313_v57 = vor.u32 %v12784_v52, %v11312_v61  ;;  %v11601_v2 = vor.u32 %v12856_v24, %v11600_v58  ;;  %v10850_v48 = vld [vmem:[#allocation14 + $0x70] sm:$0xf0]  ;;  %v11013_v16 = vor.u32 %v12706_v63, %v11010_v23  ;;  %v12746_v39 = vld [vmem:[#allocation14 + $0x2e4] sm:$0xf] }
 0x3af   :  { %v11649_v25 = vor.u32 %v12868_v8, %v11648_v12  ;;  %v12852_v6 = vld [vmem:[#allocation14 + $0x62c] sm:$0xf0]  ;;  %v12702_v12 = vld [vmem:[#allocation14 + $0x184] sm:$0xf]  ;;  %v10994_v8 = vld [vmem:[#allocation14 + $0x190] sm:$0xf0] }
 0x3b0   :  { %7288 = vmatpush.bf16.msrb.mxu1 %v11537_v14  ;;  %7266 = vmatpush.bf16.msra.mxu3 %v11217_v1  ;;  %v5476_v33 = vpop.f32.mrf.mxu1  ;;  %v10914_v14 = vld [vmem:[#allocation14 + $0xf0] sm:$0xf0]  ;;  %v12678_v1 = vld [vmem:[#allocation14 + $0xc4] sm:$0xf]  ;;  %v12848_v52 = vld [vmem:[#allocation14 + $0x60c] sm:$0xf0]  ;;  %v10997_v43 = vor.u32 %v12702_v12, %v10994_v8 }
 0x3b1   :  { %v10901_v34 = vor.u32 %v12678_v1, %v10898_v10  ;;  %v11568_v33 = vld [vmem:[#allocation14 + $0x600] sm:$0xf]  ;;  %v11170_v46 = vld [vmem:[#allocation14 + $0x2f0] sm:$0xf0]  ;;  %v12662_v7 = vld [vmem:[#allocation14 + $0x44] sm:$0xf] }
 0x3b2   :  { %7277 = vmatpush.bf16.msrb.mxu0 %v11377_v41  ;;  %7255 = vmatpush.bf16.msra.mxu2 %v11057_v51  ;;  %v10917_v41 = vor.u32 %v12682_v29, %v10914_v14  ;;  %v11441_v51 = vor.u32 %v12816_v42, %v11440_v18  ;;  %v11808_v29 = vld [vmem:[#allocation14 + $0x7e0] sm:$0xf]  ;;  %v12698_v1 = vld [vmem:[#allocation14 + $0x164] sm:$0xf]  ;;  %v10978_v10 = vld [vmem:[#allocation14 + $0x170] sm:$0xf0]  ;;  %v11173_v42 = vor.u32 %v12746_v39, %v11170_v46 }
 0x3b3   :  { %v10981_v53 = vor.u32 %v12698_v1, %v10978_v10  ;;  %v12694_v28 = vld [vmem:[#allocation14 + $0x144] sm:$0xf]  ;;  %v10962_v37 = vld [vmem:[#allocation14 + $0x150] sm:$0xf0]  ;;  %v11728_v1 = vld [vmem:[#allocation14 + $0x740] sm:$0xf] }
 0x3b4   :  { %7289 = vmatpush.bf16.msrb.mxu1 %v11521_v44  ;;  %7267 = vmatpush.bf16.msra.mxu3 %v11201_v40  ;;  %v11616_v44 = vld [vmem:[#allocation14 + $0x660] sm:$0xf]  ;;  %v12710_v40 = vld [vmem:[#allocation14 + $0x1c4] sm:$0xf]  ;;  %v10946_v63 = vld [vmem:[#allocation14 + $0x130] sm:$0xf0] }
 0x3b5   :  { %7256 = vmatmul.bf16.vlgmr.msra.gmra.mxu2 %v13632_v0  ;;  %v11617_v54 = vor.u32 %v12860_v50, %v11616_v44  ;;  %v11029_v31 = vor.u32 %v12710_v40, %v11026_v47  ;;  %v12742_v50 = vld [vmem:[#allocation14 + $0x2c4] sm:$0xf]  ;;  %v11776_v40 = vld [vmem:[#allocation14 + $0x7a0] sm:$0xf]  ;;  %v11410_v12 = vld [vmem:[#allocation14 + $0x4d0] sm:$0xf0] }
 0x3b6   :  { %7278 = vmatpush.bf16.msrb.mxu0 %v11361_v38  ;;  %7300 = vmatpush.bf16.msrb.mxu2 %v11681_v62  ;;  %v11045_v38 = vor.u32 %v12714_v45, %v11042_v49  ;;  %v12670_v62 = vld [vmem:[#allocation14 + $0x84] sm:$0xf]  ;;  %v11792_v45 = vld [vmem:[#allocation14 + $0x7c0] sm:$0xf]  ;;  %v11106_v39 = vld [vmem:[#allocation14 + $0x270] sm:$0xf0] }
 0x3b7   :  { %v10869_v11 = vor.u32 %v12670_v62, %v10866_v13  ;;  %v12738_v24 = vld [vmem:[#allocation14 + $0x2a4] sm:$0xf]  ;;  %v10802_v62 = vld [vmem:[#allocation14 + $0x10] sm:$0xf0]  ;;  %v12888_v10 = vld [vmem:[#allocation14 + $0x74c] sm:$0xf0] }
 0x3b8   :  { %7290 = vmatpush.bf16.msrb.mxu1 %v11505_v30  ;;  %7268 = vmatpush.bf16.msra.mxu3 %v11185_v20  ;;  %v5487_v4 = vpop.f32.mrf.mxu2  ;;  %v12810_v13 = vld [vmem:[#allocation14 + $0x4e4] sm:$0xf] }
 0x3b9   :  { %v5488_v30 = vadd.f32 %v5487_v4, %v5475_v3  ;;  %v11154_v4 = vld [vmem:[#allocation14 + $0x2d0] sm:$0xf0]  ;;  %v12686_v8 = vld [vmem:[#allocation14 + $0x104] sm:$0xf] }
 0x3ba   :  { %7279 = vmatpush.bf16.msrb.mxu0 %v11345_v19  ;;  %7301 = vmatpush.bf16.msrb.mxu2 %v11665_v17  ;;  %v12666_v17 = vld [vmem:[#allocation14 + $0x64] sm:$0xf]  ;;  %v11138_v3 = vld [vmem:[#allocation14 + $0x2b0] sm:$0xf0] }
 0x3bb   :  { %7269 = vmatmul.bf16.vlgmr.msra.gmra.mxu3 %v13635_v15  ;;  %v11141_v23 = vor.u32 %v12738_v24, %v11138_v3  ;;  %v11554_v24 = vld [vmem:[#allocation14 + $0x5f0] sm:$0xf0] }
 0x3bc   :  { %7291 = vmatpush.bf16.msrb.mxu1 %v11489_v36 }
 0x3be   :  { %7280 = vmatpush.bf16.msrb.mxu0 %v11329_v9  ;;  %7302 = vmatpush.bf16.msrb.mxu2 %v11649_v25  ;;  %v5500_v22 = vpop.f32.mrf.mxu3  ;;  %v11585_v9 = vor.u32 %v12852_v6, %v11584_v27  ;;  %v10853_v25 = vor.u32 %v12666_v17, %v10850_v48  ;;  %v12896_v27 = vld [vmem:[#allocation14 + $0x78c] sm:$0xf0]  ;;  %v12806_v48 = vld [vmem:[#allocation14 + $0x4c4] sm:$0xf] }
 0x3bf   :  { %v5501_v19 = vadd.f32 %v5500_v22, %v5488_v30  ;;  %v12654_v30 = vld [vmem:[#allocation14 + $0x4] sm:$0xf]  ;;  %v11413_v46 = vor.u32 %v12806_v48, %v11410_v12 }
 0x3c0   :  { %7292 = vmatpush.bf16.msrb.mxu1 %v11473_v35  ;;  %v5489_v56 = vpop.f32.mrf.mxu2  ;;  %v12908_v35 = vld [vmem:[#allocation14 + $0x7ec] sm:$0xf0]  ;;  %v12690_v22 = vld [vmem:[#allocation14 + $0x124] sm:$0xf]  ;;  %v10805_v6 = vor.u32 %v12654_v30, %v10802_v62  ;;  %v11362_v30 = vld [vmem:[#allocation14 + $0x470] sm:$0xf0] }
 0x3c1   :  { %v5664_v36 = vmax.f32 %v5501_v19, 0.0  ;;  %v11809_v14 = vor.u32 %v12908_v35, %v11808_v29  ;;  %v11760_v19 = vld [vmem:[#allocation14 + $0x780] sm:$0xf]  ;;  %v12892_v35 = vld [vmem:[#allocation14 + $0x76c] sm:$0xf0] }
 0x3c2   :  { %7281 = vmatpush.bf16.msrb.mxu0 %v11313_v57  ;;  %7303 = vmatpush.bf16.msrb.mxu2 %v11633_v5  ;;  %v13643_v20 = vpop.f32.mrf.mxu0  ;;  %v10834_v57 = vld [vmem:[#allocation14 + $0x50] sm:$0xf0]  ;;  %v12904_v5 = vld [vmem:[#allocation14 + $0x7cc] sm:$0xf0]  ;;  %v11761_v56 = vor.u32 %v12896_v27, %v11760_v19  ;;  %v11744_v29 = vld [vmem:[#allocation14 + $0x760] sm:$0xf] }
 0x3c3   :  { %v13645_v61 = vpack.c.bf16 %v5664_v36, %v5664_v36  ;;  %7313 = vmatpush.bf16.msrb.mxu3 %v11809_v14  ;;  %v10837_v49 = vor.u32 %v12662_v7, %v10834_v57  ;;  %v11793_v44 = vor.u32 %v12904_v5, %v11792_v45  ;;  %v11122_v36 = vld [vmem:[#allocation14 + $0x290] sm:$0xf0]  ;;  %v12730_v14 = vld [vmem:[#allocation14 + $0x264] sm:$0xf] }
 0x3c4   :  { %7293 = vmatpush.bf16.msrb.mxu1 %v11457_v32  ;;  %v11569_v32 = vor.u32 %v12848_v52, %v11568_v33  ;;  %v3953_v33 = vperm.slane %v13638_v26, 5  ;;  %v12802_v7 = vld [vmem:[#allocation14 + $0x4a4] sm:$0xf]  ;;  %v11090_v5 = vld [vmem:[#allocation14 + $0x250] sm:$0xf0] }
 0x3c5   :  { %7282 = vmatmul.bf16.vlgmr.msrb.gmra.mxu0 %v13645_v61  ;;  %v12726_v45 = vld [vmem:[#allocation14 + $0x244] sm:$0xf]  ;;  %v11058_v19 = vld [vmem:[#allocation14 + $0x210] sm:$0xf0] }
 0x3c6   :  { %7326 = vmatpush.bf16.msra.mxu0 %v10917_v41  ;;  %7304 = vmatpush.bf16.msrb.mxu2 %v11617_v54  ;;  %v5502_v41 = vpop.f32.mrf.mxu3  ;;  %v12900_v54 = vld [vmem:[#allocation14 + $0x7ac] sm:$0xf0]  ;;  %v12778_v48 = vld [vmem:[#allocation14 + $0x3e4] sm:$0xf] }
 0x3c7   :  { %7314 = vmatpush.bf16.msrb.mxu3 %v11793_v44  ;;  %v11777_v58 = vor.u32 %v12900_v54, %v11776_v40  ;;  %v11394_v41 = vld [vmem:[#allocation14 + $0x4b0] sm:$0xf0] }
 0x3c8   :  { %7294 = vmatpush.bf16.msrb.mxu1 %v11441_v51  ;;  %v13647_v55 = vpop.f32.mrf.mxu1  ;;  %v10818_v51 = vld [vmem:[#allocation14 + $0x30] sm:$0xf0]  ;;  %v11397_v44 = vor.u32 %v12802_v7, %v11394_v41  ;;  %v12786_v7 = vld [vmem:[#allocation14 + $0x424] sm:$0xf] }
 0x3c9   :  { %v11074_v40 = vld [vmem:[#allocation14 + $0x230] sm:$0xf0] }
 0x3ca   :  { %7327 = vmatpush.bf16.msra.mxu0 %v10901_v34  ;;  %7305 = vmatpush.bf16.msrb.mxu2 %v11601_v2  ;;  %v5515_v18 = vpop.f32.mrf.mxu0  ;;  %v12658_v34 = vld [vmem:[#allocation14 + $0x24] sm:$0xf]  ;;  %v11426_v2 = vld [vmem:[#allocation14 + $0x4f0] sm:$0xf0] }
 0x3cb   :  { %v10821_v47 = vor.u32 %v12658_v34, %v10818_v51  ;;  %7315 = vmatpush.bf16.msrb.mxu3 %v11777_v58  ;;  %v11429_v17 = vor.u32 %v12810_v13, %v11426_v2  ;;  %v11109_v18 = vor.u32 %v12730_v14, %v11106_v39  ;;  %v11093_v51 = vor.u32 %v12726_v45, %v11090_v5  ;;  %v12842_v58 = vld [vmem:[#allocation14 + $0x5e4] sm:$0xf]  ;;  %v12880_v2 = vld [vmem:[#allocation14 + $0x70c] sm:$0xf0]  ;;  %v11522_v39 = vld [vmem:[#allocation14 + $0x5b0] sm:$0xf0] }
 0x3cc   :  { %7339 = vmatpush.bf16.msra.mxu1 %v11045_v38  ;;  %v11157_v38 = vor.u32 %v12742_v50, %v11154_v4  ;;  %v12798_v50 = vld [vmem:[#allocation14 + $0x484] sm:$0xf]  ;;  %v11378_v4 = vld [vmem:[#allocation14 + $0x490] sm:$0xf0] }
 0x3cd   :  { %v12834_v14 = vld [vmem:[#allocation14 + $0x5a4] sm:$0xf] }
 0x3ce   :  { %7328 = vmatpush.bf16.msra.mxu0 %v10885_v60  ;;  %7306 = vmatpush.bf16.msrb.mxu2 %v11585_v9  ;;  %v10930_v9 = vld [vmem:[#allocation14 + $0x110] sm:$0xf0]  ;;  %v11525_v41 = vor.u32 %v12834_v14, %v11522_v39  ;;  %v12782_v5 = vld [vmem:[#allocation14 + $0x404] sm:$0xf] }
 0x3cf   :  { %7316 = vmatpush.bf16.msrb.mxu3 %v11761_v56  ;;  %v10933_v57 = vor.u32 %v12686_v8, %v10930_v9  ;;  %v12790_v56 = vld [vmem:[#allocation14 + $0x444] sm:$0xf]  ;;  %v11442_v14 = vld [vmem:[#allocation14 + $0x510] sm:$0xf0] }
 0x3d0   :  { %7340 = vmatpush.bf16.msra.mxu1 %v11029_v31  ;;  %v5528_v60 = vpop.f32.mrf.mxu1  ;;  %v10965_v31 = vor.u32 %v12694_v28, %v10962_v37 }
 0x3d1   :  { %v12794_v60 = vld [vmem:[#allocation14 + $0x464] sm:$0xf] }
 0x3d2   :  { %7329 = vmatpush.bf16.msra.mxu0 %v10869_v11  ;;  %7307 = vmatpush.bf16.msrb.mxu2 %v11569_v32  ;;  %v12734_v11 = vld [vmem:[#allocation14 + $0x284] sm:$0xf]  ;;  %v5514_v32 = vadd.f32 %v13643_v20, %v3953_v33  ;;  %v12884_v20 = vld [vmem:[#allocation14 + $0x72c] sm:$0xf0] }
 0x3d3   :  { %v11125_v52 = vor.u32 %v12734_v11, %v11122_v36  ;;  %v12838_v11 = vld [vmem:[#allocation14 + $0x5c4] sm:$0xf]  ;;  %v11538_v36 = vld [vmem:[#allocation14 + $0x5d0] sm:$0xf0] }
 0x3d4   :  { %7341 = vmatpush.bf16.msra.mxu1 %v11013_v16  ;;  %v10949_v16 = vor.u32 %v12690_v22, %v10946_v63  ;;  %v11557_v22 = vor.u32 %v12842_v58, %v11554_v24  ;;  %v12762_v24 = vld [vmem:[#allocation14 + $0x364] sm:$0xf] }
 0x3d6   :  { %7330 = vmatpush.bf16.msra.mxu0 %v10853_v25  ;;  %7352 = vmatpush.bf16.msra.mxu2 %v11173_v42  ;;  %v11745_v25 = vor.u32 %v12892_v35, %v11744_v29  ;;  %v11729_v42 = vor.u32 %v12888_v10, %v11728_v1  ;;  %v12774_v29 = vld [vmem:[#allocation14 + $0x3c4] sm:$0xf]  ;;  %v11266_v10 = vld [vmem:[#allocation14 + $0x3b0] sm:$0xf0] }
 0x3d7   :  { %v12770_v1 = vld [vmem:[#allocation14 + $0x3a4] sm:$0xf] }
 0x3d8   :  { %7342 = vmatpush.bf16.msra.mxu1 %v10997_v43  ;;  %v5539_v43 = vpop.f32.mrf.mxu2  ;;  %7317 = vmatpush.bf16.msrb.mxu3 %v11745_v25  ;;  %v11269_v45 = vor.u32 %v12770_v1, %v11266_v10  ;;  %v12874_v10 = vld [vmem:[#allocation14 + $0x6e4] sm:$0xf] }
 0x3da   :  { %7331 = vmatpush.bf16.msra.mxu0 %v10837_v49  ;;  %7353 = vmatpush.bf16.msra.mxu2 %v11157_v38  ;;  %v5527_v49 = vadd.f32 %v13647_v55, %v5514_v32  ;;  %v12722_v38 = vld [vmem:[#allocation14 + $0x224] sm:$0xf]  ;;  %v11381_v55 = vor.u32 %v12798_v50, %v11378_v4  ;;  %v10920_v50 = vld [vmem:[#allocation14 + $0xe8] sm:$0xf]  ;;  %v12685_v4 = vld [vmem:[#allocation14 + $0xf4] sm:$0xf0] }
 0x3db   :  { %v11077_v13 = vor.u32 %v12722_v38, %v11074_v40  ;;  %v10921_v40 = vor.u32 %v12685_v4, %v10920_v50 }
 0x3dc   :  { %7343 = vmatpush.bf16.msra.mxu1 %v10981_v53  ;;  %7318 = vmatpush.bf16.msrb.mxu3 %v11729_v42  ;;  %v5540_v34 = vadd.f32 %v5539_v43, %v5527_v49  ;;  %v11712_v53 = vld [vmem:[#allocation14 + $0x720] sm:$0xf]  ;;  %v11506_v42 = vld [vmem:[#allocation14 + $0x590] sm:$0xf0] }
 0x3dd   :  { %v11713_v37 = vor.u32 %v12884_v20, %v11712_v53  ;;  %v11314_v49 = vld [vmem:[#allocation14 + $0x410] sm:$0xf0] }
 0x3de   :  { %7332 = vmatpush.bf16.msra.mxu0 %v10821_v47  ;;  %7354 = vmatpush.bf16.msra.mxu2 %v11141_v23  ;;  %v5552_v28 = vpop.f32.mrf.mxu3  ;;  %v12718_v23 = vld [vmem:[#allocation14 + $0x204] sm:$0xf]  ;;  %v11250_v53 = vld [vmem:[#allocation14 + $0x390] sm:$0xf0]  ;;  %v11317_v20 = vor.u32 %v12782_v5, %v11314_v49 }
 0x3df   :  { %v5553_v54 = vadd.f32 %v5552_v28, %v5540_v34  ;;  %v11061_v8 = vor.u32 %v12718_v23, %v11058_v19  ;;  %v12826_v28 = vld [vmem:[#allocation14 + $0x564] sm:$0xf]  ;;  %v11218_v23 = vld [vmem:[#allocation14 + $0x350] sm:$0xf0] }
 0x3e0   :  { %7344 = vmatpush.bf16.msra.mxu1 %v10965_v31  ;;  %v5541_v3 = vpop.f32.mrf.mxu2  ;;  %7319 = vmatpush.bf16.msrb.mxu3 %v11713_v37  ;;  %v11696_v31 = vld [vmem:[#allocation14 + $0x700] sm:$0xf]  ;;  %v11490_v37 = vld [vmem:[#allocation14 + $0x570] sm:$0xf0] }
 0x3e1   :  { %v5665_v62 = vmax.f32 %v5553_v54, 0.0  ;;  %v11697_v63 = vor.u32 %v12880_v2, %v11696_v31  ;;  %v10904_v54 = vld [vmem:[#allocation14 + $0xc8] sm:$0xf]  ;;  %v11493_v58 = vor.u32 %v12826_v28, %v11490_v37  ;;  %v11234_v3 = vld [vmem:[#allocation14 + $0x370] sm:$0xf0] }
 0x3e2   :  { %7333 = vmatpush.bf16.msra.mxu0 %v10805_v6  ;;  %7355 = vmatpush.bf16.msra.mxu2 %v11125_v52  ;;  %v13654_v47 = vpop.f32.mrf.mxu0  ;;  %v11365_v6 = vor.u32 %v12794_v60, %v11362_v30  ;;  %v11541_v52 = vor.u32 %v12838_v11, %v11538_v36  ;;  %v3954_v60 = vperm.slane %v13638_v26, 6  ;;  %v12822_v30 = vld [vmem:[#allocation14 + $0x544] sm:$0xf]  ;;  %v10888_v2 = vld [vmem:[#allocation14 + $0xa8] sm:$0xf] }
 0x3e3   :  { %v13656_v27 = vpack.c.bf16 %v5665_v62, %v5665_v62  ;;  %v11474_v62 = vld [vmem:[#allocation14 + $0x550] sm:$0xf0]  ;;  %v12818_v11 = vld [vmem:[#allocation14 + $0x524] sm:$0xf]  ;;  %v12665_v28 = vld [vmem:[#allocation14 + $0x54] sm:$0xf0] }
 0x3e4   :  { %7345 = vmatpush.bf16.msra.mxu1 %v10949_v16  ;;  %7320 = vmatpush.bf16.msrb.mxu3 %v11697_v63  ;;  %v11298_v16 = vld [vmem:[#allocation14 + $0x3f0] sm:$0xf0]  ;;  %v12758_v63 = vld [vmem:[#allocation14 + $0x344] sm:$0xf] }
 0x3e5   :  { %7334 = vmatmul.bf16.vlgmr.msra.gmra.mxu0 %v13615_v59  ;;  %7295 = vmatmul.bf16.vlgmr.msrb.gmra.mxu1 %v13656_v27  ;;  %v11301_v9 = vor.u32 %v12778_v48, %v11298_v16  ;;  %v11458_v36 = vld [vmem:[#allocation14 + $0x530] sm:$0xf0]  ;;  %v12870_v37 = vld [vmem:[#allocation14 + $0x6c4] sm:$0xf] }
 0x3e6   :  { %7378 = vmatpush.bf16.msrb.mxu0 %v11429_v17  ;;  %7356 = vmatpush.bf16.msra.mxu2 %v11109_v18  ;;  %v11346_v17 = vld [vmem:[#allocation14 + $0x450] sm:$0xf0]  ;;  %v5554_v33 = vpop.f32.mrf.mxu3  ;;  %v12830_v18 = vld [vmem:[#allocation14 + $0x584] sm:$0xf] }
 0x3e7   :  { %v11349_v25 = vor.u32 %v12790_v56, %v11346_v17  ;;  %v11509_v34 = vor.u32 %v12830_v18, %v11506_v42  ;;  %v5566_v56 = vadd.f32 %v13654_v47, %v3954_v60  ;;  %v11221_v17 = vor.u32 %v12758_v63, %v11218_v23  ;;  %v11186_v5 = vld [vmem:[#allocation14 + $0x310] sm:$0xf0]  ;;  %v10824_v60 = vld [vmem:[#allocation14 + $0x28] sm:$0xf] }
 0x3e8   :  { %7346 = vmatpush.bf16.msra.mxu1 %v10933_v57  ;;  %v13658_v12 = vpop.f32.mrf.mxu1  ;;  %7365 = vmatpush.bf16.msra.mxu3 %v11301_v9  ;;  %v11330_v57 = vld [vmem:[#allocation14 + $0x430] sm:$0xf0]  ;;  %v12673_v9 = vld [vmem:[#allocation14 + $0x94] sm:$0xf0]  ;;  %v11461_v33 = vor.u32 %v12818_v11, %v11458_v36 }
 0x3e9   :  { %v11333_v32 = vor.u32 %v12786_v7, %v11330_v57  ;;  %v5579_v16 = vadd.f32 %v13658_v12, %v5566_v56  ;;  %v10856_v7 = vld [vmem:[#allocation14 + $0x68] sm:$0xf]  ;;  %v12669_v12 = vld [vmem:[#allocation14 + $0x74] sm:$0xf0] }
 0x3ea   :  { %7379 = vmatpush.bf16.msrb.mxu0 %v11413_v46  ;;  %7357 = vmatpush.bf16.msra.mxu2 %v11093_v51  ;;  %v5567_v35 = vpop.f32.mrf.mxu0  ;;  %v11282_v46 = vld [vmem:[#allocation14 + $0x3d0] sm:$0xf0]  ;;  %v12766_v51 = vld [vmem:[#allocation14 + $0x384] sm:$0xf]  ;;  %v11048_v57 = vld [vmem:[#allocation14 + $0x1e8] sm:$0xf]  ;;  %v10857_v50 = vor.u32 %v12669_v12, %v10856_v7 }
 0x3eb   :  { %v11285_v43 = vor.u32 %v12774_v29, %v11282_v46  ;;  %v11253_v38 = vor.u32 %v12766_v51, %v11250_v53  ;;  %v11202_v29 = vld [vmem:[#allocation14 + $0x330] sm:$0xf0]  ;;  %v11032_v51 = vld [vmem:[#allocation14 + $0x1c8] sm:$0xf]  ;;  %v12713_v53 = vld [vmem:[#allocation14 + $0x1d4] sm:$0xf0] }
 0x3ec   :  { %7391 = vmatpush.bf16.msrb.mxu1 %v11557_v22  ;;  %v12677_v22 = vld [vmem:[#allocation14 + $0xb4] sm:$0xf0]  ;;  %v11000_v56 = vld [vmem:[#allocation14 + $0x188] sm:$0xf]  ;;  %v12854_v12 = vld [vmem:[#allocation14 + $0x644] sm:$0xf] }
 0x3ed   :  { %7366 = vmatpush.bf16.msra.mxu3 %v11285_v43  ;;  %v10889_v48 = vor.u32 %v12677_v22, %v10888_v2  ;;  %v12717_v43 = vld [vmem:[#allocation14 + $0x1f4] sm:$0xf0]  ;;  %v12866_v2 = vld [vmem:[#allocation14 + $0x6a4] sm:$0xf]  ;;  %v11650_v22 = vld [vmem:[#allocation14 + $0x6b0] sm:$0xf0] }
 0x3ee   :  { %7380 = vmatpush.bf16.msrb.mxu0 %v11397_v44  ;;  %7358 = vmatpush.bf16.msra.mxu2 %v11077_v13  ;;  %v11237_v13 = vor.u32 %v12762_v24, %v11234_v3  ;;  %v12705_v11 = vld [vmem:[#allocation14 + $0x194] sm:$0xf0] }
 0x3ef   :  { %v12657_v36 = vld [vmem:[#allocation14 + $0x14] sm:$0xf0] }
 0x3f0   :  { %7392 = vmatpush.bf16.msrb.mxu1 %v11541_v52  ;;  %v5580_v44 = vpop.f32.mrf.mxu1  ;;  %v12754_v52 = vld [vmem:[#allocation14 + $0x324] sm:$0xf]  ;;  %v12809_v7 = vld [vmem:[#allocation14 + $0x4d4] sm:$0xf0] }
 0x3f1   :  { %7367 = vmatpush.bf16.msra.mxu3 %v11269_v45  ;;  %v11205_v39 = vor.u32 %v12754_v52, %v11202_v29  ;;  %v12750_v45 = vld [vmem:[#allocation14 + $0x304] sm:$0xf]  ;;  %v11049_v44 = vor.u32 %v12717_v43, %v11048_v57  ;;  %v3955_v57 = vperm.slane %v13638_v26, 7 }
 0x3f2   :  { %7381 = vmatpush.bf16.msrb.mxu0 %v11381_v55  ;;  %7359 = vmatpush.bf16.msra.mxu2 %v11061_v8  ;;  %v12681_v55 = vld [vmem:[#allocation14 + $0xd4] sm:$0xf0]  ;;  %v10872_v8 = vld [vmem:[#allocation14 + $0x88] sm:$0xf] }
 0x3f3   :  { %v10905_v31 = vor.u32 %v12681_v55, %v10904_v54  ;;  %v10873_v46 = vor.u32 %v12673_v9, %v10872_v8  ;;  %v11033_v55 = vor.u32 %v12713_v53, %v11032_v51  ;;  %v12813_v8 = vld [vmem:[#allocation14 + $0x4f4] sm:$0xf0]  ;;  %v11586_v51 = vld [vmem:[#allocation14 + $0x630] sm:$0xf0]  ;;  %v10952_v53 = vld [vmem:[#allocation14 + $0x128] sm:$0xf] }
 0x3f4   :  { %7393 = vmatpush.bf16.msrb.mxu1 %v11525_v41 }
 0x3f5   :  { %7368 = vmatpush.bf16.msra.mxu3 %v11253_v38  ;;  %7347 = vmatmul.bf16.vlgmr.msra.gmra.mxu1 %v13621_v21  ;;  %v11666_v38 = vld [vmem:[#allocation14 + $0x6d0] sm:$0xf0] }
 0x3f6   :  { %7382 = vmatpush.bf16.msrb.mxu0 %v11365_v6  ;;  %v11477_v6 = vor.u32 %v12822_v30, %v11474_v62  ;;  %v11669_v3 = vor.u32 %v12870_v37, %v11666_v38  ;;  %v11016_v30 = vld [vmem:[#allocation14 + $0x1a8] sm:$0xf]  ;;  %v12709_v62 = vld [vmem:[#allocation14 + $0x1b4] sm:$0xf0] }
 0x3f7   :  { %v11017_v63 = vor.u32 %v12709_v62, %v11016_v30  ;;  %v11384_v37 = vld [vmem:[#allocation14 + $0x488] sm:$0xf]  ;;  %v12801_v38 = vld [vmem:[#allocation14 + $0x494] sm:$0xf0] }
 0x3f8   :  { %7394 = vmatpush.bf16.msrb.mxu1 %v11509_v34  ;;  %v5591_v19 = vpop.f32.mrf.mxu2  ;;  %v10840_v34 = vld [vmem:[#allocation14 + $0x48] sm:$0xf]  ;;  %v11385_v30 = vor.u32 %v12801_v38, %v11384_v37  ;;  %v12837_v37 = vld [vmem:[#allocation14 + $0x5b4] sm:$0xf0] }
 0x3f9   :  { %7369 = vmatpush.bf16.msra.mxu3 %v11237_v13  ;;  %v5592_v35 = vadd.f32 %v5591_v19, %v5579_v16  ;;  %v10841_v24 = vor.u32 %v12665_v28, %v10840_v34  ;;  %v11653_v19 = vor.u32 %v12866_v2, %v11650_v22  ;;  %v11432_v16 = vld [vmem:[#allocation14 + $0x4e8] sm:$0xf]  ;;  %v12693_v28 = vld [vmem:[#allocation14 + $0x134] sm:$0xf0] }
 0x3fa   :  { %7383 = vmatpush.bf16.msrb.mxu0 %v11349_v25  ;;  %v12814_v25 = vld [vmem:[#allocation14 + $0x504] sm:$0xf]  ;;  %v10936_v62 = vld [vmem:[#allocation14 + $0x108] sm:$0xf]  ;;  %v12797_v22 = vld [vmem:[#allocation14 + $0x474] sm:$0xf0] }
 0x3fb   :  { %v11445_v42 = vor.u32 %v12814_v25, %v11442_v14  ;;  %v11433_v25 = vor.u32 %v12813_v8, %v11432_v16  ;;  %v11618_v14 = vld [vmem:[#allocation14 + $0x670] sm:$0xf0]  ;;  %v11368_v2 = vld [vmem:[#allocation14 + $0x468] sm:$0xf]  ;;  %v12845_v8 = vld [vmem:[#allocation14 + $0x5f4] sm:$0xf0] }
 0x3fc   :  { %7395 = vmatpush.bf16.msrb.mxu1 %v11493_v58  ;;  %v11560_v16 = vld [vmem:[#allocation14 + $0x5e8] sm:$0xf] }
 0x3fd   :  { %7370 = vmatpush.bf16.msra.mxu3 %v11221_v17  ;;  %v12862_v17 = vld [vmem:[#allocation14 + $0x684] sm:$0xf] }
 0x3fe   :  { %7384 = vmatpush.bf16.msrb.mxu0 %v11333_v32  ;;  %v5604_v47 = vpop.f32.mrf.mxu3  ;;  %v11682_v32 = vld [vmem:[#allocation14 + $0x6f0] sm:$0xf0] }
 0x3ff   :  { %v5605_v41 = vadd.f32 %v5604_v47, %v5592_v35  ;;  %v11685_v4 = vor.u32 %v12874_v10, %v11682_v32  ;;  %v12858_v35 = vld [vmem:[#allocation14 + $0x664] sm:$0xf]  ;;  %v12701_v47 = vld [vmem:[#allocation14 + $0x174] sm:$0xf0]  ;;  %v11602_v32 = vld [vmem:[#allocation14 + $0x650] sm:$0xf0] }
 0x400   :  { %7396 = vmatpush.bf16.msrb.mxu1 %v11477_v6  ;;  %v5593_v18 = vpop.f32.mrf.mxu2  ;;  %v10808_v6 = vld [vmem:[#allocation14 + $0x8] sm:$0xf]  ;;  %v11621_v43 = vor.u32 %v12858_v35, %v11618_v14  ;;  %v11605_v26 = vor.u32 %v12854_v12, %v11602_v32  ;;  %v12902_v14 = vld [vmem:[#allocation14 + $0x7c4] sm:$0xf]  ;;  %v12841_v12 = vld [vmem:[#allocation14 + $0x5d4] sm:$0xf0] }
 0x401   :  { %v5666_v49 = vmax.f32 %v5605_v41, 0.0  ;;  %7371 = vmatpush.bf16.msra.mxu3 %v11205_v39  ;;  %v10809_v52 = vor.u32 %v12657_v36, %v10808_v6  ;;  %v10984_v39 = vld [vmem:[#allocation14 + $0x168] sm:$0xf] }
 0x402   :  { %7385 = vmatpush.bf16.msrb.mxu0 %v11317_v20  ;;  %v13666_v1 = vpop.f32.mrf.mxu0  ;;  %v10985_v41 = vor.u32 %v12701_v47, %v10984_v39  ;;  %v10968_v18 = vld [vmem:[#allocation14 + $0x148] sm:$0xf]  ;;  %v11561_v47 = vor.u32 %v12845_v8, %v11560_v16  ;;  %v12733_v16 = vld [vmem:[#allocation14 + $0x274] sm:$0xf0] }
 0x403   :  { %v13668_v20 = vpack.c.bf16 %v5666_v49, %v5666_v49  ;;  %v11176_v6 = vld [vmem:[#allocation14 + $0x2e8] sm:$0xf] }
 0x404   :  { %7397 = vmatpush.bf16.msrb.mxu1 %v11461_v33  ;;  %v11001_v33 = vor.u32 %v12705_v11, %v11000_v56  ;;  %v12749_v56 = vld [vmem:[#allocation14 + $0x2f4] sm:$0xf0]  ;;  %v11352_v35 = vld [vmem:[#allocation14 + $0x448] sm:$0xf] }
 0x405   :  { %7386 = vmatmul.bf16.vlgmr.msrb.gmra.mxu0 %v13645_v61  ;;  %7308 = vmatmul.bf16.vlgmr.msrb.gmra.mxu2 %v13668_v20  ;;  %v11496_v8 = vld [vmem:[#allocation14 + $0x568] sm:$0xf] }
 0x406   :  { %7430 = vmatpush.bf16.msra.mxu0 %v10921_v40  ;;  %v11189_v40 = vor.u32 %v12750_v45, %v11186_v5  ;;  %7404 = vmatpush.bf16.msrb.mxu2 %v11685_v4  ;;  %v5606_v58 = vpop.f32.mrf.mxu3  ;;  %v11400_v45 = vld [vmem:[#allocation14 + $0x4a8] sm:$0xf]  ;;  %v12805_v5 = vld [vmem:[#allocation14 + $0x4b4] sm:$0xf0]  ;;  %v5618_v4 = vadd.f32 %v13666_v1, %v3955_v57  ;;  %v11570_v1 = vld [vmem:[#allocation14 + $0x610] sm:$0xf0] }
 0x407   :  { %v11401_v34 = vor.u32 %v12805_v5, %v11400_v45  ;;  %v12745_v57 = vld [vmem:[#allocation14 + $0x2d4] sm:$0xf0] }
 0x408   :  { %7398 = vmatpush.bf16.msrb.mxu1 %v11445_v42  ;;  %v13670_v54 = vpop.f32.mrf.mxu1  ;;  %7372 = vmatpush.bf16.msra.mxu3 %v11189_v40  ;;  %v12697_v42 = vld [vmem:[#allocation14 + $0x154] sm:$0xf0] }
 0x409   :  { %v5631_v40 = vadd.f32 %v13670_v54, %v5618_v4  ;;  %v11810_v54 = vld [vmem:[#allocation14 + $0x7f0] sm:$0xf0] }
 0x40a   :  { %7431 = vmatpush.bf16.msra.mxu0 %v10905_v31  ;;  %v5619_v13 = vpop.f32.mrf.mxu0  ;;  %v12661_v31 = vld [vmem:[#allocation14 + $0x34] sm:$0xf0]  ;;  %7405 = vmatpush.bf16.msrb.mxu2 %v11669_v3  ;;  %v12846_v3 = vld [vmem:[#allocation14 + $0x604] sm:$0xf] }
 0x40b   :  { %7399 = vmatmul.bf16.vlgmr.msrb.gmra.mxu1 %v13656_v27  ;;  %v10825_v23 = vor.u32 %v12661_v31, %v10824_v60  ;;  %v12689_v13 = vld [vmem:[#allocation14 + $0x114] sm:$0xf0] }
 0x40c   :  { %7443 = vmatpush.bf16.msra.mxu1 %v11049_v44  ;;  %v10969_v44 = vor.u32 %v12697_v42, %v10968_v18 }
 0x40e   :  { %7432 = vmatpush.bf16.msra.mxu0 %v10889_v48  ;;  %v11634_v48 = vld [vmem:[#allocation14 + $0x690] sm:$0xf0]  ;;  %7406 = vmatpush.bf16.msrb.mxu2 %v11653_v19 }
 0x40f   :  { %v11637_v29 = vor.u32 %v12862_v17, %v11634_v48  ;;  %v11573_v17 = vor.u32 %v12846_v3, %v11570_v1  ;;  %v10937_v48 = vor.u32 %v12689_v13, %v10936_v62  ;;  %v12785_v3 = vld [vmem:[#allocation14 + $0x414] sm:$0xf0]  ;;  %v11128_v62 = vld [vmem:[#allocation14 + $0x288] sm:$0xf] }
 0x410   :  { %7444 = vmatpush.bf16.msra.mxu1 %v11033_v55  ;;  %v5632_v9 = vpop.f32.mrf.mxu1  ;;  %v13679_v55 = vld [vmem:[#allocation16] sm:$0xf]  ;;  %v12737_v13 = vld [vmem:[#allocation14 + $0x294] sm:$0xf0] }
 0x411   :  { %v5934_v11 = vperm.slane %v13679_v55, 0 }
 0x412   :  { %7433 = vmatpush.bf16.msra.mxu0 %v10873_v46  ;;  %v11416_v46 = vld [vmem:[#allocation14 + $0x4c8] sm:$0xf]  ;;  %7407 = vmatpush.bf16.msrb.mxu2 %v11637_v29  ;;  %v11177_v29 = vor.u32 %v12749_v56, %v11176_v6  ;;  %v11129_v6 = vor.u32 %v12737_v13, %v11128_v62  ;;  %v12890_v56 = vld [vmem:[#allocation14 + $0x764] sm:$0xf]  ;;  %v12817_v13 = vld [vmem:[#allocation14 + $0x514] sm:$0xf0] }
 0x413   :  { %v11417_v10 = vor.u32 %v12809_v7, %v11416_v46  ;;  %v11794_v46 = vld [vmem:[#allocation14 + $0x7d0] sm:$0xf0]  ;;  %v11160_v7 = vld [vmem:[#allocation14 + $0x2c8] sm:$0xf] }
 0x414   :  { %7445 = vmatpush.bf16.msra.mxu1 %v11017_v63  ;;  %v12906_v63 = vld [vmem:[#allocation14 + $0x7e4] sm:$0xf]  ;;  %v11797_v45 = vor.u32 %v12902_v14, %v11794_v46  ;;  %v11161_v5 = vor.u32 %v12745_v57, %v11160_v7  ;;  %v11730_v14 = vld [vmem:[#allocation14 + $0x750] sm:$0xf0]  ;;  %v11096_v7 = vld [vmem:[#allocation14 + $0x248] sm:$0xf] }
 0x415   :  { %7360 = vmatmul.bf16.vlgmr.msra.gmra.mxu2 %v13632_v0  ;;  %v12729_v57 = vld [vmem:[#allocation14 + $0x254] sm:$0xf0]  ;;  %v11448_v62 = vld [vmem:[#allocation14 + $0x508] sm:$0xf] }
 0x416   :  { %7434 = vmatpush.bf16.msra.mxu0 %v10857_v50  ;;  %7408 = vmatpush.bf16.msrb.mxu2 %v11621_v43  ;;  %v12850_v50 = vld [vmem:[#allocation14 + $0x624] sm:$0xf] }
 0x417   :  { %v11589_v58 = vor.u32 %v12850_v50, %v11586_v51  ;;  %v11144_v51 = vld [vmem:[#allocation14 + $0x2a8] sm:$0xf] }
 0x418   :  { %7446 = vmatpush.bf16.msra.mxu1 %v11001_v33  ;;  %v5643_v49 = vpop.f32.mrf.mxu2  ;;  %v11369_v33 = vor.u32 %v12797_v22, %v11368_v2  ;;  %v12833_v2 = vld [vmem:[#allocation14 + $0x594] sm:$0xf0]  ;;  %v12683_v22 = vld [vmem:[#allocation14 + $0xec] sm:$0xf] }
 0x419   :  { %v5644_v60 = vadd.f32 %v5643_v49, %v5631_v40  ;;  %v11336_v49 = vld [vmem:[#allocation14 + $0x428] sm:$0xf] }
 0x41a   :  { %7435 = vmatpush.bf16.msra.mxu0 %v10841_v24  ;;  %7409 = vmatpush.bf16.msrb.mxu2 %v11605_v26  ;;  %v10953_v24 = vor.u32 %v12693_v28, %v10952_v53  ;;  %v12789_v26 = vld [vmem:[#allocation14 + $0x434] sm:$0xf0]  ;;  %v11528_v28 = vld [vmem:[#allocation14 + $0x5a8] sm:$0xf] }
 0x41b   :  { %v12741_v53 = vld [vmem:[#allocation14 + $0x2b4] sm:$0xf0]  ;;  %v11337_v38 = vor.u32 %v12789_v26, %v11336_v49  ;;  %v11320_v40 = vld [vmem:[#allocation14 + $0x408] sm:$0xf]  ;;  %v11529_v1 = vor.u32 %v12837_v37, %v11528_v28  ;;  %v11714_v49 = vld [vmem:[#allocation14 + $0x730] sm:$0xf0] }
 0x41c   :  { %7447 = vmatpush.bf16.msra.mxu1 %v10985_v41  ;;  %v11544_v41 = vld [vmem:[#allocation14 + $0x5c8] sm:$0xf]  ;;  %v12671_v28 = vld [vmem:[#allocation14 + $0x8c] sm:$0xf]  ;;  %v10874_v37 = vld [vmem:[#allocation14 + $0x98] sm:$0xf0] }
 0x41d   :  { %v11545_v4 = vor.u32 %v12841_v12, %v11544_v41  ;;  %v12825_v41 = vld [vmem:[#allocation14 + $0x554] sm:$0xf0]  ;;  %v12675_v12 = vld [vmem:[#allocation14 + $0xac] sm:$0xf] }
 0x41e   :  { %7436 = vmatpush.bf16.msra.mxu0 %v10825_v23  ;;  %v5656_v31 = vpop.f32.mrf.mxu3  ;;  %7410 = vmatpush.bf16.msrb.mxu2 %v11589_v58 }
 0x41f   :  { %v5657_v23 = vadd.f32 %v5656_v31, %v5644_v60  ;;  %v12894_v60 = vld [vmem:[#allocation14 + $0x784] sm:$0xf]  ;;  %v11512_v31 = vld [vmem:[#allocation14 + $0x588] sm:$0xf] }
 0x420   :  { %7448 = vmatpush.bf16.msra.mxu1 %v10969_v44  ;;  %v5645_v36 = vpop.f32.mrf.mxu2  ;;  %v12898_v44 = vld [vmem:[#allocation14 + $0x7a4] sm:$0xf] }
 0x421   :  { %v5667_v9 = vmax.f32 %v5657_v23, 0.0  ;;  %v11513_v36 = vor.u32 %v12833_v2, %v11512_v31  ;;  %v12667_v2 = vld [vmem:[#allocation14 + $0x6c] sm:$0xf] }
 0x422   :  { %7437 = vmatpush.bf16.msra.mxu0 %v10809_v52  ;;  %v7231_v19 = vpop.f32.mrf.mxu0  ;;  %v11813_v52 = vor.u32 %v12906_v63, %v11810_v54  ;;  %7411 = vmatpush.bf16.msrb.mxu2 %v11573_v17  ;;  %v10922_v63 = vld [vmem:[#allocation14 + $0xf8] sm:$0xf0] }
 0x423   :  { %v13682_v39 = vpack.c.bf16 %v5667_v9, %v5667_v9  ;;  %v7232_v43 = vadd.f32 %v7231_v19, %v5934_v11  ;;  %v11321_v19 = vor.u32 %v12785_v3, %v11320_v40  ;;  %v11746_v11 = vld [vmem:[#allocation14 + $0x770] sm:$0xf0]  ;;  %v10925_v17 = vor.u32 %v12683_v22, %v10922_v63  ;;  %v12829_v9 = vld [vmem:[#allocation14 + $0x574] sm:$0xf0]  ;;  %v11064_v3 = vld [vmem:[#allocation14 + $0x208] sm:$0xf] }
 0x424   :  { %7449 = vmatpush.bf16.msra.mxu1 %v10953_v24  ;;  %v11145_v24 = vor.u32 %v12741_v53, %v11144_v51  ;;  %v11464_v51 = vld [vmem:[#allocation14 + $0x528] sm:$0xf]  ;;  %v12821_v53 = vld [vmem:[#allocation14 + $0x534] sm:$0xf0]  ;;  %v10858_v22 = vld [vmem:[#allocation14 + $0x78] sm:$0xf0] }
 0x425   :  { %7438 = vmatmul.bf16.vlgmr.msra.gmra.mxu0 %v13615_v59  ;;  %7321 = vmatmul.bf16.vlgmr.msrb.gmra.mxu3 %v13682_v39  ;;  %v11304_v63 = vld [vmem:[#allocation14 + $0x3e8] sm:$0xf] }
 0x426   :  { %7482 = vmatpush.bf16.msrb.mxu0 %v11433_v25  ;;  %v12793_v25 = vld [vmem:[#allocation14 + $0x454] sm:$0xf0]  ;;  %7417 = vmatpush.bf16.msrb.mxu3 %v11813_v52  ;;  %v5658_v42 = vpop.f32.mrf.mxu3  ;;  %v10906_v52 = vld [vmem:[#allocation14 + $0xd8] sm:$0xf0] }
 0x427   :  { %v11353_v32 = vor.u32 %v12793_v25, %v11352_v35  ;;  %7456 = vmatpush.bf16.msra.mxu2 %v11177_v29  ;;  %v11749_v29 = vor.u32 %v12890_v56, %v11746_v11  ;;  %v12886_v25 = vld [vmem:[#allocation14 + $0x744] sm:$0xf] }
 0x428   :  { %7450 = vmatpush.bf16.msra.mxu1 %v10937_v48  ;;  %7412 = vmatmul.bf16.vlgmr.msrb.gmra.mxu2 %v13668_v20  ;;  %v11112_v48 = vld [vmem:[#allocation14 + $0x268] sm:$0xf]  ;;  %v11733_v42 = vor.u32 %v12886_v25, %v11730_v14  ;;  %v12777_v25 = vld [vmem:[#allocation14 + $0x3d4] sm:$0xf0] }
 0x429   :  { %v11113_v35 = vor.u32 %v12733_v16, %v11112_v48  ;;  %v11449_v48 = vor.u32 %v12817_v13, %v11448_v62  ;;  %v10861_v16 = vor.u32 %v12667_v2, %v10858_v22  ;;  %v11672_v14 = vld [vmem:[#allocation14 + $0x6c8] sm:$0xf]  ;;  %v11434_v62 = vld [vmem:[#allocation14 + $0x4f8] sm:$0xf0] }
 0x42a   :  { %7483 = vmatpush.bf16.msrb.mxu0 %v11417_v10  ;;  %v7244_v10 = vpop.f32.mrf.mxu1  ;;  %v7233_v50 = vpop.f32.mrf.mxu0  ;;  %7418 = vmatpush.bf16.msrb.mxu3 %v11797_v45  ;;  %v11097_v45 = vor.u32 %v12729_v57, %v11096_v7  ;;  %v11034_v7 = vld [vmem:[#allocation14 + $0x1d8] sm:$0xf0] }
 0x42b   :  { %v13685_v18 = vadd.f32 %v7244_v10, %v7232_v43  ;;  %7451 = vmatmul.bf16.vlgmr.msra.gmra.mxu1 %v13621_v21  ;;  %7457 = vmatpush.bf16.msra.mxu2 %v11161_v5  ;;  %v11480_v43 = vld [vmem:[#allocation14 + $0x548] sm:$0xf]  ;;  %v10890_v10 = vld [vmem:[#allocation14 + $0xb8] sm:$0xf0]  ;;  %v12882_v5 = vld [vmem:[#allocation14 + $0x724] sm:$0xf] }
 0x42c   :  { %7495 = vmatpush.bf16.msrb.mxu1 %v11561_v47  ;;  %v11497_v47 = vor.u32 %v12829_v9, %v11496_v8  ;;  %v10893_v50 = vor.u32 %v12675_v12, %v10890_v10  ;;  %v12659_v10 = vld [vmem:[#allocation14 + $0x2c] sm:$0xf] }
 0x42e   :  { %7484 = vmatpush.bf16.msrb.mxu0 %v11401_v34  ;;  %v11778_v34 = vld [vmem:[#allocation14 + $0x7b0] sm:$0xf0] }
 0x42f   :  { %v11781_v58 = vor.u32 %v12898_v44, %v11778_v34  ;;  %7458 = vmatpush.bf16.msra.mxu2 %v11145_v24  ;;  %v11481_v44 = vor.u32 %v12825_v41, %v11480_v43  ;;  %v12725_v34 = vld [vmem:[#allocation14 + $0x234] sm:$0xf0]  ;;  %v11698_v24 = vld [vmem:[#allocation14 + $0x710] sm:$0xf0] }
 0x430   :  { %7496 = vmatpush.bf16.msrb.mxu1 %v11545_v4  ;;  %v11080_v4 = vld [vmem:[#allocation14 + $0x228] sm:$0xf] }
 0x431   :  { %7419 = vmatpush.bf16.msrb.mxu3 %v11781_v58  ;;  %v11081_v40 = vor.u32 %v12725_v34, %v11080_v4  ;;  %v12878_v58 = vld [vmem:[#allocation14 + $0x704] sm:$0xf]  ;;  %v12655_v34 = vld [vmem:[#allocation14 + $0xc] sm:$0xf] }
 0x432   :  { %7485 = vmatpush.bf16.msrb.mxu0 %v11385_v30  ;;  %v11762_v30 = vld [vmem:[#allocation14 + $0x790] sm:$0xf0]  ;;  %v7246_v23 = vpop.f32.mrf.mxu1  ;;  %v11701_v56 = vor.u32 %v12878_v58, %v11698_v24 }
 0x433   :  { %v11765_v54 = vor.u32 %v12894_v60, %v11762_v30  ;;  %7459 = vmatpush.bf16.msra.mxu2 %v11129_v6  ;;  %v11465_v60 = vor.u32 %v12821_v53, %v11464_v51  ;;  %v10877_v30 = vor.u32 %v12671_v28, %v10874_v37  ;;  %v12781_v23 = vld [vmem:[#allocation14 + $0x3f4] sm:$0xf0]  ;;  %v10810_v37 = vld [vmem:[#allocation14 + $0x18] sm:$0xf0] }
 0x434   :  { %7497 = vmatpush.bf16.msrb.mxu1 %v11529_v1  ;;  %v12721_v1 = vld [vmem:[#allocation14 + $0x214] sm:$0xf0]  ;;  %v11305_v8 = vor.u32 %v12781_v23, %v11304_v63  ;;  %v10813_v13 = vor.u32 %v12655_v34, %v10810_v37  ;;  %v11240_v63 = vld [vmem:[#allocation14 + $0x368] sm:$0xf] }
 0x435   :  { %7420 = vmatpush.bf16.msrb.mxu3 %v11765_v54  ;;  %v12877_v54 = vld [vmem:[#allocation14 + $0x6f4] sm:$0xf0]  ;;  %v11065_v11 = vor.u32 %v12721_v1, %v11064_v3  ;;  %v11640_v3 = vld [vmem:[#allocation14 + $0x688] sm:$0xf]  ;;  %v12811_v1 = vld [vmem:[#allocation14 + $0x4ec] sm:$0xf] }
 0x436   :  { %7486 = vmatpush.bf16.msrb.mxu0 %v11369_v33  ;;  %v12679_v33 = vld [vmem:[#allocation14 + $0xcc] sm:$0xf]  ;;  %7373 = vmatmul.bf16.vlgmr.msra.gmra.mxu3 %v13635_v15  ;;  %v12765_v23 = vld [vmem:[#allocation14 + $0x374] sm:$0xf0] }
 0x437   :  { %v10909_v46 = vor.u32 %v12679_v33, %v10906_v52  ;;  %7460 = vmatpush.bf16.msra.mxu2 %v11113_v35  ;;  %v12663_v33 = vld [vmem:[#allocation14 + $0x4c] sm:$0xf]  ;;  %v10842_v52 = vld [vmem:[#allocation14 + $0x58] sm:$0xf0]  ;;  %v12753_v34 = vld [vmem:[#allocation14 + $0x314] sm:$0xf0] }
 0x438   :  { %7498 = vmatpush.bf16.msrb.mxu1 %v11513_v36  ;;  %v12715_v36 = vld [vmem:[#allocation14 + $0x1ec] sm:$0xf]  ;;  %v10845_v43 = vor.u32 %v12663_v33, %v10842_v52  ;;  %v12761_v33 = vld [vmem:[#allocation14 + $0x354] sm:$0xf0] }
 0x439   :  { %7421 = vmatpush.bf16.msrb.mxu3 %v11749_v29  ;;  %v11288_v29 = vld [vmem:[#allocation14 + $0x3c8] sm:$0xf]  ;;  %v12849_v37 = vld [vmem:[#allocation14 + $0x614] sm:$0xf0] }
 0x43a   :  { %7487 = vmatpush.bf16.msrb.mxu0 %v11353_v32  ;;  %v7257_v32 = vpop.f32.mrf.mxu2  ;;  %v11289_v41 = vor.u32 %v12777_v25, %v11288_v29  ;;  %v12857_v25 = vld [vmem:[#allocation14 + $0x654] sm:$0xf0] }
 0x43b   :  { %v7258_v26 = vadd.f32 %v7257_v32, %v13685_v18  ;;  %7461 = vmatpush.bf16.msra.mxu2 %v11097_v45  ;;  %v10826_v32 = vld [vmem:[#allocation14 + $0x38] sm:$0xf0] }
 0x43c   :  { %7499 = vmatpush.bf16.msrb.mxu1 %v11497_v47  ;;  %v12873_v47 = vld [vmem:[#allocation14 + $0x6d4] sm:$0xf0]  ;;  %v10829_v4 = vor.u32 %v12659_v10, %v10826_v32 }
 0x43d   :  { %7422 = vmatpush.bf16.msrb.mxu3 %v11733_v42  ;;  %v11673_v12 = vor.u32 %v12873_v47, %v11672_v14  ;;  %v11272_v42 = vld [vmem:[#allocation14 + $0x3a8] sm:$0xf]  ;;  %v12695_v14 = vld [vmem:[#allocation14 + $0x14c] sm:$0xf]  ;;  %v10970_v47 = vld [vmem:[#allocation14 + $0x158] sm:$0xf0] }
 0x43e   :  { %7488 = vmatpush.bf16.msrb.mxu0 %v11337_v38  ;;  %v11717_v38 = vor.u32 %v12882_v5, %v11714_v49  ;;  %v7270_v18 = vpop.f32.mrf.mxu3  ;;  %v12773_v5 = vld [vmem:[#allocation14 + $0x3b4] sm:$0xf0]  ;;  %v11656_v49 = vld [vmem:[#allocation14 + $0x6a8] sm:$0xf]  ;;  %v10973_v10 = vor.u32 %v12695_v14, %v10970_v47  ;;  %v11338_v14 = vld [vmem:[#allocation14 + $0x438] sm:$0xf0] }
 0x43f   :  { %v13692_v31 = vadd.f32 %v7270_v18, %v7258_v26  ;;  %7462 = vmatpush.bf16.msra.mxu2 %v11081_v40  ;;  %v12869_v26 = vld [vmem:[#allocation14 + $0x6b4] sm:$0xf0]  ;;  %v11273_v51 = vor.u32 %v12773_v5, %v11272_v42  ;;  %v11592_v42 = vld [vmem:[#allocation14 + $0x628] sm:$0xf]  ;;  %v12691_v5 = vld [vmem:[#allocation14 + $0x12c] sm:$0xf] }
 0x440   :  { %7500 = vmatpush.bf16.msrb.mxu1 %v11481_v44  ;;  %v12707_v44 = vld [vmem:[#allocation14 + $0x1ac] sm:$0xf]  ;;  %v11657_v53 = vor.u32 %v12869_v26, %v11656_v49  ;;  %v12769_v40 = vld [vmem:[#allocation14 + $0x394] sm:$0xf0]  ;;  %v10954_v49 = vld [vmem:[#allocation14 + $0x138] sm:$0xf0] }
 0x441   :  { %7423 = vmatpush.bf16.msrb.mxu3 %v11717_v38  ;;  %v11256_v38 = vld [vmem:[#allocation14 + $0x388] sm:$0xf]  ;;  %v12865_v18 = vld [vmem:[#allocation14 + $0x694] sm:$0xf0]  ;;  %v12799_v26 = vld [vmem:[#allocation14 + $0x48c] sm:$0xf] }
 0x442   :  { %7489 = vmatpush.bf16.msrb.mxu0 %v11321_v19  ;;  %v11688_v19 = vld [vmem:[#allocation14 + $0x6e8] sm:$0xf]  ;;  %v7259_v6 = vpop.f32.mrf.mxu2  ;;  %v7283_v28 = vpop.f32.mrf.mxu0  ;;  %v11257_v2 = vor.u32 %v12769_v40, %v11256_v38  ;;  %v11641_v22 = vor.u32 %v12865_v18, %v11640_v3  ;;  %v12687_v38 = vld [vmem:[#allocation14 + $0x10c] sm:$0xf]  ;;  %v10938_v40 = vld [vmem:[#allocation14 + $0x118] sm:$0xf0] }
 0x443   :  { %v11689_v9 = vor.u32 %v12877_v54, %v11688_v19  ;;  %7463 = vmatpush.bf16.msra.mxu2 %v11065_v11  ;;  %v13698_v24 = vadd.f32 %v7283_v28, %v13692_v31  ;;  %v11437_v54 = vor.u32 %v12811_v1, %v11434_v62  ;;  %v11624_v6 = vld [vmem:[#allocation14 + $0x668] sm:$0xf]  ;;  %v12861_v31 = vld [vmem:[#allocation14 + $0x674] sm:$0xf0]  ;;  %v10986_v11 = vld [vmem:[#allocation14 + $0x178] sm:$0xf0] }
 0x444   :  { %7501 = vmatpush.bf16.msrb.mxu1 %v11465_v60  ;;  %v12703_v60 = vld [vmem:[#allocation14 + $0x18c] sm:$0xf]  ;;  %v11370_v18 = vld [vmem:[#allocation14 + $0x478] sm:$0xf0]  ;;  %v11784_v47 = vld [vmem:[#allocation14 + $0x7a8] sm:$0xf] }
 0x445   :  { %7490 = vmatmul.bf16.vlgmr.msrb.gmra.mxu0 %v13645_v61  ;;  %7424 = vmatpush.bf16.msrb.mxu3 %v11701_v56  ;;  %v12699_v56 = vld [vmem:[#allocation14 + $0x16c] sm:$0xf]  ;;  %v11178_v62 = vld [vmem:[#allocation14 + $0x2f8] sm:$0xf0] }
 0x446   :  { %7534 = vmatpush.bf16.msra.mxu0 %v10925_v17  ;;  %v11050_v17 = vld [vmem:[#allocation14 + $0x1f8] sm:$0xf0]  ;;  %v7272_v57 = vpop.f32.mrf.mxu3  ;;  %7464 = vmatmul.bf16.vlgmr.msra.gmra.mxu2 %v13632_v0  ;;  %v10989_v52 = vor.u32 %v12699_v56, %v10986_v11  ;;  %v12795_v3 = vld [vmem:[#allocation14 + $0x46c] sm:$0xf]  ;;  %v11800_v11 = vld [vmem:[#allocation14 + $0x7c8] sm:$0xf] }
 0x447   :  { %v11053_v35 = vor.u32 %v12715_v36, %v11050_v17  ;;  %7508 = vmatpush.bf16.msrb.mxu2 %v11689_v9  ;;  %v12807_v36 = vld [vmem:[#allocation14 + $0x4cc] sm:$0xf]  ;;  %v11418_v17 = vld [vmem:[#allocation14 + $0x4d8] sm:$0xf0]  ;;  %v11224_v9 = vld [vmem:[#allocation14 + $0x348] sm:$0xf] }
 0x448   :  { %7502 = vmatpush.bf16.msrb.mxu1 %v11449_v48  ;;  %7425 = vmatmul.bf16.vlgmr.msrb.gmra.mxu3 %v13682_v39  ;;  %v11241_v48 = vor.u32 %v12765_v23, %v11240_v63  ;;  %v11421_v29 = vor.u32 %v12807_v36, %v11418_v17  ;;  %v11225_v57 = vor.u32 %v12761_v33, %v11224_v9  ;;  %v12747_v1 = vld [vmem:[#allocation14 + $0x2ec] sm:$0xf]  ;;  %v11562_v63 = vld [vmem:[#allocation14 + $0x5f8] sm:$0xf0]  ;;  %v12905_v17 = vld [vmem:[#allocation14 + $0x7d4] sm:$0xf0] }
 0x449   :  { %7469 = vmatpush.bf16.msra.mxu3 %v11305_v8  ;;  %v10941_v23 = vor.u32 %v12687_v38, %v10938_v40  ;;  %v11354_v56 = vld [vmem:[#allocation14 + $0x458] sm:$0xf0]  ;;  %v12893_v40 = vld [vmem:[#allocation14 + $0x774] sm:$0xf0] }
 0x44a   :  { %7535 = vmatpush.bf16.msra.mxu0 %v10909_v46  ;;  %v12711_v46 = vld [vmem:[#allocation14 + $0x1cc] sm:$0xf]  ;;  %v7285_v8 = vpop.f32.mrf.mxu0  ;;  %v11546_v9 = vld [vmem:[#allocation14 + $0x5d8] sm:$0xf0] }
 0x44b   :  { %v11037_v45 = vor.u32 %v12711_v46, %v11034_v7  ;;  %7503 = vmatmul.bf16.vlgmr.msrb.gmra.mxu1 %v13656_v27  ;;  %7509 = vmatpush.bf16.msrb.mxu2 %v11673_v12  ;;  %v12803_v46 = vld [vmem:[#allocation14 + $0x4ac] sm:$0xf]  ;;  %v11402_v7 = vld [vmem:[#allocation14 + $0x4b8] sm:$0xf0]  ;;  %v12757_v12 = vld [vmem:[#allocation14 + $0x334] sm:$0xf0] }
 0x44c   :  { %7547 = vmatpush.bf16.msra.mxu1 %v11053_v35  ;;  %v11608_v35 = vld [vmem:[#allocation14 + $0x648] sm:$0xf]  ;;  %v11405_v32 = vor.u32 %v12803_v46, %v11402_v7  ;;  %v12839_v8 = vld [vmem:[#allocation14 + $0x5cc] sm:$0xf]  ;;  %v12901_v7 = vld [vmem:[#allocation14 + $0x7b4] sm:$0xf0] }
 0x44d   :  { %7470 = vmatpush.bf16.msra.mxu3 %v11289_v41  ;;  %v11208_v41 = vld [vmem:[#allocation14 + $0x328] sm:$0xf]  ;;  %v11549_v46 = vor.u32 %v12839_v8, %v11546_v9  ;;  %v12723_v8 = vld [vmem:[#allocation14 + $0x22c] sm:$0xf]  ;;  %v11082_v9 = vld [vmem:[#allocation14 + $0x238] sm:$0xf0] }
 0x44e   :  { %7536 = vmatpush.bf16.msra.mxu0 %v10893_v50  ;;  %v11018_v50 = vld [vmem:[#allocation14 + $0x1b8] sm:$0xf0] }
 0x44f   :  { %v11021_v58 = vor.u32 %v12707_v44, %v11018_v50  ;;  %7510 = vmatpush.bf16.msrb.mxu2 %v11657_v53  ;;  %v11386_v44 = vld [vmem:[#allocation14 + $0x498] sm:$0xf0]  ;;  %v10957_v53 = vor.u32 %v12691_v5, %v10954_v49  ;;  %v12783_v5 = vld [vmem:[#allocation14 + $0x40c] sm:$0xf] }
 0x450   :  { %7548 = vmatpush.bf16.msra.mxu1 %v11037_v45  ;;  %v12853_v45 = vld [vmem:[#allocation14 + $0x634] sm:$0xf0]  ;;  %v11389_v28 = vor.u32 %v12799_v26, %v11386_v44  ;;  %v11322_v49 = vld [vmem:[#allocation14 + $0x418] sm:$0xf0]  ;;  %v11768_v26 = vld [vmem:[#allocation14 + $0x788] sm:$0xf] }
 0x451   :  { %7471 = vmatpush.bf16.msra.mxu3 %v11273_v51  ;;  %v11593_v50 = vor.u32 %v12853_v45, %v11592_v42  ;;  %v11576_v51 = vld [vmem:[#allocation14 + $0x608] sm:$0xf] }
 0x452   :  { %7537 = vmatpush.bf16.msra.mxu0 %v10877_v30  ;;  %v11002_v30 = vld [vmem:[#allocation14 + $0x198] sm:$0xf0] }
 0x453   :  { %v11005_v19 = vor.u32 %v12703_v60, %v11002_v30  ;;  %7511 = vmatpush.bf16.msrb.mxu2 %v11641_v22  ;;  %v11816_v60 = vld [vmem:[#allocation14 + $0x7e8] sm:$0xf]  ;;  %v12909_v30 = vld [vmem:[#allocation14 + $0x7f4] sm:$0xf0]  ;;  %v12843_v22 = vld [vmem:[#allocation14 + $0x5ec] sm:$0xf] }
 0x454   :  { %7549 = vmatpush.bf16.msra.mxu1 %v11021_v58  ;;  %v11565_v36 = vor.u32 %v12843_v22, %v11562_v63  ;;  %v12889_v63 = vld [vmem:[#allocation14 + $0x754] sm:$0xf0] }
 0x455   :  { %7472 = vmatpush.bf16.msra.mxu3 %v11257_v2  ;;  %v11577_v2 = vor.u32 %v12849_v37, %v11576_v51  ;;  %v11325_v51 = vor.u32 %v12783_v5, %v11322_v49  ;;  %v11752_v37 = vld [vmem:[#allocation14 + $0x768] sm:$0xf]  ;;  %v11690_v5 = vld [vmem:[#allocation14 + $0x6f8] sm:$0xf0] }
 0x456   :  { %7538 = vmatpush.bf16.msra.mxu0 %v10861_v16  ;;  %v11625_v16 = vor.u32 %v12861_v31, %v11624_v6  ;;  %v11181_v6 = vor.u32 %v12747_v1, %v11178_v62  ;;  %v12791_v31 = vld [vmem:[#allocation14 + $0x44c] sm:$0xf]  ;;  %v11753_v1 = vor.u32 %v12893_v40, %v11752_v37  ;;  %v12914_v37 = vld [vmem:[#allocation17 + $0x20] sm:$0xff] }
 0x457   :  { %v11357_v33 = vor.u32 %v12791_v31, %v11354_v56  ;;  %v5935_v31 = vperm.slane %v13679_v55, 1  ;;  %v11085_v55 = vor.u32 %v12723_v8, %v11082_v9  ;;  %v12759_v9 = vld [vmem:[#allocation14 + $0x34c] sm:$0xf] }
 0x458   :  { %7550 = vmatpush.bf16.msra.mxu1 %v11005_v19  ;;  %7512 = vmatpush.bf16.msrb.mxu2 %v11625_v16  ;;  %v11373_v19 = vor.u32 %v12795_v3, %v11370_v18  ;;  %v11162_v16 = vld [vmem:[#allocation14 + $0x2d8] sm:$0xf0]  ;;  %v12731_v3 = vld [vmem:[#allocation14 + $0x26c] sm:$0xf] }
 0x459   :  { %7473 = vmatpush.bf16.msra.mxu3 %v11241_v48  ;;  %v12743_v48 = vld [vmem:[#allocation14 + $0x2cc] sm:$0xf]  ;;  %v11114_v18 = vld [vmem:[#allocation14 + $0x278] sm:$0xf0] }
 0x45a   :  { %7539 = vmatpush.bf16.msra.mxu0 %v10845_v43  ;;  %v11609_v43 = vor.u32 %v12857_v25, %v11608_v35  ;;  %v11165_v35 = vor.u32 %v12743_v48, %v11162_v16  ;;  %v12787_v25 = vld [vmem:[#allocation14 + $0x42c] sm:$0xf]  ;;  %v11117_v62 = vor.u32 %v12731_v3, %v11114_v18  ;;  %v12885_v16 = vld [vmem:[#allocation14 + $0x734] sm:$0xf0] }
 0x45b   :  { %v12771_v18 = vld [vmem:[#allocation14 + $0x3ac] sm:$0xf] }
 0x45c   :  { %7551 = vmatpush.bf16.msra.mxu1 %v10989_v52  ;;  %7513 = vmatpush.bf16.msrb.mxu2 %v11609_v43  ;;  %v11146_v43 = vld [vmem:[#allocation14 + $0x2b8] sm:$0xf0] }
 0x45d   :  { %7474 = vmatpush.bf16.msra.mxu3 %v11225_v57  ;;  %v12739_v57 = vld [vmem:[#allocation14 + $0x2ac] sm:$0xf] }
 0x45e   :  { %7540 = vmatpush.bf16.msra.mxu0 %v10829_v4  ;;  %v11192_v4 = vld [vmem:[#allocation14 + $0x308] sm:$0xf]  ;;  %v11149_v42 = vor.u32 %v12739_v57, %v11146_v43  ;;  %v12719_v43 = vld [vmem:[#allocation14 + $0x20c] sm:$0xf] }
 0x460   :  { %7552 = vmatpush.bf16.msra.mxu1 %v10973_v10  ;;  %7514 = vmatpush.bf16.msrb.mxu2 %v11593_v50  ;;  %v11341_v10 = vor.u32 %v12787_v25, %v11338_v14  ;;  %v12735_v50 = vld [vmem:[#allocation14 + $0x28c] sm:$0xf]  ;;  %v11704_v25 = vld [vmem:[#allocation14 + $0x708] sm:$0xf]  ;;  %v12881_v14 = vld [vmem:[#allocation14 + $0x714] sm:$0xf0] }
 0x461   :  { %v11705_v49 = vor.u32 %v12881_v14, %v11704_v25  ;;  %v12755_v14 = vld [vmem:[#allocation14 + $0x32c] sm:$0xf] }
 0x462   :  { %7541 = vmatpush.bf16.msra.mxu0 %v10813_v13  ;;  %v13701_v58 = vpop.f32.mrf.mxu0  ;;  %v11193_v13 = vor.u32 %v12753_v34, %v11192_v4  ;;  %v13706_v45 = vpop.f32.mrf.mxu1  ;;  %v11130_v4 = vld [vmem:[#allocation14 + $0x298] sm:$0xf0]  ;;  %v12831_v34 = vld [vmem:[#allocation14 + $0x58c] sm:$0xf] }
 0x464   :  { %7553 = vmatpush.bf16.msra.mxu1 %v10957_v53  ;;  %7515 = vmatpush.bf16.msrb.mxu2 %v11577_v2  ;;  %v11736_v2 = vld [vmem:[#allocation14 + $0x748] sm:$0xf] }
 0x465   :  { %7542 = vmatmul.bf16.vlgmr.msra.gmra.mxu0 %v13615_v59  ;;  %v11209_v59 = vor.u32 %v12757_v12, %v11208_v41  ;;  %v12835_v41 = vld [vmem:[#allocation14 + $0x5ac] sm:$0xf]  ;;  %v11530_v12 = vld [vmem:[#allocation14 + $0x5b8] sm:$0xf0]  ;;  %v11737_v56 = vor.u32 %v12889_v63, %v11736_v2 }
 0x466   :  { %7586 = vmatpush.bf16.msrb.mxu0 %v11437_v54  ;;  %v11817_v54 = vor.u32 %v12909_v30, %v11816_v60  ;;  %v11533_v44 = vor.u32 %v12835_v41, %v11530_v12  ;;  %v12827_v60 = vld [vmem:[#allocation14 + $0x56c] sm:$0xf]  ;;  %v11498_v30 = vld [vmem:[#allocation14 + $0x578] sm:$0xf0] }
 0x467   :  { %7475 = vmatpush.bf16.msra.mxu3 %v11209_v59  ;;  %7516 = vmatmul.bf16.vlgmr.msrb.gmra.mxu2 %v13668_v20  ;;  %v12897_v59 = vld [vmem:[#allocation14 + $0x794] sm:$0xf0]  ;;  %v11501_v22 = vor.u32 %v12827_v60, %v11498_v30  ;;  %v11066_v41 = vld [vmem:[#allocation14 + $0x218] sm:$0xf0]  ;;  %v12815_v12 = vld [vmem:[#allocation14 + $0x50c] sm:$0xf] }
 0x468   :  { %7554 = vmatpush.bf16.msra.mxu1 %v10941_v23  ;;  %7560 = vmatpush.bf16.msra.mxu2 %v11181_v6  ;;  %v11769_v53 = vor.u32 %v12897_v59, %v11768_v26  ;;  %v12727_v23 = vld [vmem:[#allocation14 + $0x24c] sm:$0xf]  ;;  %v11482_v6 = vld [vmem:[#allocation14 + $0x558] sm:$0xf0]  ;;  %v11069_v26 = vor.u32 %v12719_v43, %v11066_v41 }
 0x469   :  { %v11274_v60 = vld [vmem:[#allocation14 + $0x3b8] sm:$0xf0] }
 0x46a   :  { %7587 = vmatpush.bf16.msrb.mxu0 %v11421_v29  ;;  %v7337_v52 = vpop.f32.mrf.mxu0  ;;  %v11801_v29 = vor.u32 %v12905_v17, %v11800_v11  ;;  %v12917_v17 = vld [vmem:[#allocation17 + $0x38] sm:$0xff] }
 0x46b   :  { %7476 = vmatpush.bf16.msra.mxu3 %v11193_v13  ;;  %7555 = vmatmul.bf16.vlgmr.msra.gmra.mxu1 %v13621_v21  ;;  %v11514_v21 = vld [vmem:[#allocation14 + $0x598] sm:$0xf0]  ;;  %v7298_v13 = vpop.f32.mrf.mxu1 }
 0x46c   :  { %7599 = vmatpush.bf16.msrb.mxu1 %v11565_v36  ;;  %7561 = vmatpush.bf16.msra.mxu2 %v11165_v35  ;;  %v11517_v38 = vor.u32 %v12831_v34, %v11514_v21  ;;  %v11720_v36 = vld [vmem:[#allocation14 + $0x728] sm:$0xf]  ;;  %v11466_v52 = vld [vmem:[#allocation14 + $0x538] sm:$0xf0]  ;;  %v12775_v34 = vld [vmem:[#allocation14 + $0x3cc] sm:$0xf]  ;;  %v11277_v13 = vor.u32 %v12771_v18, %v11274_v60 }
 0x46d   :  { %v11290_v21 = vld [vmem:[#allocation14 + $0x3d8] sm:$0xf0]  ;;  %v12922_v60 = vld [vmem:[#allocation17 + $0x60] sm:$0xff] }
 0x46e   :  { %7588 = vmatpush.bf16.msrb.mxu0 %v11405_v32  ;;  %7477 = vmatmul.bf16.vlgmr.msra.gmra.mxu3 %v13635_v15  ;;  %v11785_v32 = vor.u32 %v12901_v7, %v11784_v47  ;;  %v12916_v47 = vld [vmem:[#allocation17 + $0x30] sm:$0xff]  ;;  %v11293_v40 = vor.u32 %v12775_v34, %v11290_v21  ;;  %v12913_v30 = vld [vmem:[#allocation17 + $0x18] sm:$0xff] }
 0x46f   :  { %7521 = vmatpush.bf16.msrb.mxu3 %v11817_v54  ;;  %v12823_v54 = vld [vmem:[#allocation14 + $0x54c] sm:$0xf]  ;;  %v11258_v63 = vld [vmem:[#allocation14 + $0x398] sm:$0xf0] }
 0x470   :  { %7600 = vmatpush.bf16.msrb.mxu1 %v11549_v46  ;;  %7562 = vmatpush.bf16.msra.mxu2 %v11149_v42  ;;  %v11485_v48 = vor.u32 %v12823_v54, %v11482_v6  ;;  %v12875_v42 = vld [vmem:[#allocation14 + $0x6ec] sm:$0xf]  ;;  %v12912_v6 = vld [vmem:[#allocation17 + $0x10] sm:$0xff]  ;;  %v11594_v43 = vld [vmem:[#allocation14 + $0x638] sm:$0xf0] }
 0x471   :  { %v12925_v41 = vld [vmem:[#allocation17 + $0x78] sm:$0xff] }
 0x472   :  { %7589 = vmatpush.bf16.msrb.mxu0 %v11389_v28  ;;  %v11133_v28 = vor.u32 %v12735_v50, %v11130_v4  ;;  %v11693_v4 = vor.u32 %v12875_v42, %v11690_v5  ;;  %v11194_v5 = vld [vmem:[#allocation14 + $0x318] sm:$0xf0] }
 0x473   :  { %7522 = vmatpush.bf16.msrb.mxu3 %v11801_v29  ;;  %v11721_v29 = vor.u32 %v12885_v16, %v11720_v36  ;;  %v7348_v35 = vpop.f32.mrf.mxu1  ;;  %v11626_v36 = vld [vmem:[#allocation14 + $0x678] sm:$0xf0] }
 0x474   :  { %7601 = vmatpush.bf16.msrb.mxu1 %v11533_v44  ;;  %7563 = vmatpush.bf16.msra.mxu2 %v11133_v28  ;;  %v12915_v44 = vld [vmem:[#allocation17 + $0x28] sm:$0xff]  ;;  %v11786_v18 = vld [vmem:[#allocation14 + $0x7b8] sm:$0xf0] }
 0x476   :  { %7590 = vmatpush.bf16.msrb.mxu0 %v11373_v19  ;;  %v11098_v19 = vld [vmem:[#allocation14 + $0x258] sm:$0xf0] }
 0x477   :  { %7523 = vmatpush.bf16.msrb.mxu3 %v11785_v32  ;;  %v11101_v11 = vor.u32 %v12727_v23, %v11098_v19  ;;  %v12779_v32 = vld [vmem:[#allocation14 + $0x3ec] sm:$0xf]  ;;  %v11642_v19 = vld [vmem:[#allocation14 + $0x698] sm:$0xf0] }
 0x478   :  { %7602 = vmatpush.bf16.msrb.mxu1 %v11517_v38  ;;  %7564 = vmatpush.bf16.msra.mxu2 %v11117_v62  ;;  %v11658_v62 = vld [vmem:[#allocation14 + $0x6b8] sm:$0xf0]  ;;  %v12863_v23 = vld [vmem:[#allocation14 + $0x68c] sm:$0xf] }
 0x47a   :  { %7591 = vmatpush.bf16.msrb.mxu0 %v11357_v33  ;;  %v12819_v33 = vld [vmem:[#allocation14 + $0x52c] sm:$0xf] }
 0x47b   :  { %7524 = vmatpush.bf16.msrb.mxu3 %v11769_v53  ;;  %v11469_v7 = vor.u32 %v12819_v33, %v11466_v52  ;;  %v11674_v53 = vld [vmem:[#allocation14 + $0x6d8] sm:$0xf0]  ;;  %v7350_v28 = vpop.f32.mrf.mxu1  ;;  %v12855_v52 = vld [vmem:[#allocation14 + $0x64c] sm:$0xf] }
 0x47c   :  { %7603 = vmatpush.bf16.msrb.mxu1 %v11501_v22  ;;  %7565 = vmatpush.bf16.msra.mxu2 %v11101_v11  ;;  %v12767_v22 = vld [vmem:[#allocation14 + $0x38c] sm:$0xf]  ;;  %v11242_v11 = vld [vmem:[#allocation14 + $0x378] sm:$0xf0] }
 0x47d   :  { %v11226_v33 = vld [vmem:[#allocation14 + $0x358] sm:$0xf0] }
 0x47e   :  { %7592 = vmatpush.bf16.msrb.mxu0 %v11341_v10  ;;  %v11450_v10 = vld [vmem:[#allocation14 + $0x518] sm:$0xf0] }
 0x47f   :  { %7525 = vmatpush.bf16.msrb.mxu3 %v11753_v1  ;;  %v11453_v59 = vor.u32 %v12815_v12, %v11450_v10  ;;  %v12867_v1 = vld [vmem:[#allocation14 + $0x6ac] sm:$0xf] }
 0x480   :  { %7604 = vmatpush.bf16.msrb.mxu1 %v11485_v48  ;;  %7566 = vmatpush.bf16.msra.mxu2 %v11085_v55  ;;  %v11661_v2 = vor.u32 %v12867_v1, %v11658_v62  ;;  %v12911_v48 = vld [vmem:[#allocation17 + $0x8] sm:$0xff] }
 0x482   :  { %7593 = vmatpush.bf16.msrb.mxu0 %v11325_v51  ;;  %v13711_v46 = vpop.f32.mrf.mxu0  ;;  %v12871_v51 = vld [vmem:[#allocation14 + $0x6cc] sm:$0xf] }
 0x483   :  { %7526 = vmatpush.bf16.msrb.mxu3 %v11737_v56  ;;  %v11677_v3 = vor.u32 %v12871_v51, %v11674_v53  ;;  %v12763_v56 = vld [vmem:[#allocation14 + $0x36c] sm:$0xf]  ;;  %v11802_v53 = vld [vmem:[#allocation14 + $0x7d8] sm:$0xf0] }
 0x484   :  { %7605 = vmatpush.bf16.msrb.mxu1 %v11469_v7  ;;  %7567 = vmatpush.bf16.msra.mxu2 %v11069_v26  ;;  %v11245_v16 = vor.u32 %v12763_v56, %v11242_v11  ;;  %v12851_v7 = vld [vmem:[#allocation14 + $0x62c] sm:$0xf]  ;;  %v12924_v26 = vld [vmem:[#allocation17 + $0x70] sm:$0xff] }
 0x485   :  { %7594 = vmatmul.bf16.vlgmr.msrb.gmra.mxu0 %v13645_v61  ;;  %v7336_v61 = vadd.f32 %v13701_v58, %v5935_v31  ;;  %v11306_v58 = vld [vmem:[#allocation14 + $0x3f8] sm:$0xf0]  ;;  %v11261_v31 = vor.u32 %v12767_v22, %v11258_v63  ;;  %v11597_v42 = vor.u32 %v12851_v7, %v11594_v43  ;;  %v12903_v51 = vld [vmem:[#allocation14 + $0x7cc] sm:$0xf] }
 0x486   :  { %7906 = vmatpush.bf16.msra.mxu0 %v12917_v17  ;;  %v11309_v50 = vor.u32 %v12779_v32, %v11306_v58  ;;  %v12751_v32 = vld [vmem:[#allocation14 + $0x30c] sm:$0xf]  ;;  %v12921_v22 = vld [vmem:[#allocation17 + $0x58] sm:$0xff] }
 0x487   :  { %v13713_v57 = vadd.f32 %v7348_v35, %v7336_v61  ;;  %7527 = vmatpush.bf16.msrb.mxu3 %v11721_v29  ;;  %7568 = vmatmul.bf16.vlgmr.msra.gmra.mxu2 %v13632_v0  ;;  %v11645_v0 = vor.u32 %v12863_v23, %v11642_v19  ;;  %v11610_v61 = vld [vmem:[#allocation14 + $0x658] sm:$0xf0]  ;;  %v12910_v29 = vld [vmem:[#allocation17] sm:$0xff]  ;;  %v11229_v35 = vor.u32 %v12759_v9, %v11226_v33  ;;  %v12919_v33 = vld [vmem:[#allocation17 + $0x48] sm:$0xff] }
 0x488   :  { %7606 = vmatpush.bf16.msrb.mxu1 %v11453_v59  ;;  %7612 = vmatpush.bf16.msrb.mxu2 %v11693_v4  ;;  %v13718_v54 = vpop.f32.mrf.mxu1  ;;  %v13720_v17 = vpop.f32.mrf.mxu2  ;;  %v11613_v25 = vor.u32 %v12855_v52, %v11610_v61  ;;  %v12907_v59 = vld [vmem:[#allocation14 + $0x7ec] sm:$0xf]  ;;  %v11197_v4 = vor.u32 %v12751_v32, %v11194_v5  ;;  %v11706_v7 = vld [vmem:[#allocation14 + $0x718] sm:$0xf0] }
 0x48a   :  { %7907 = vmatpush.bf16.msra.mxu0 %v12916_v47  ;;  %v7389_v38 = vpop.f32.mrf.mxu0  ;;  %v11210_v47 = vld [vmem:[#allocation14 + $0x338] sm:$0xf0] }
 0x48b   :  { %7528 = vmatpush.bf16.msrb.mxu3 %v11705_v49  ;;  %7607 = vmatmul.bf16.vlgmr.msrb.gmra.mxu1 %v13656_v27  ;;  %v12859_v27 = vld [vmem:[#allocation14 + $0x66c] sm:$0xf]  ;;  %v11213_v10 = vor.u32 %v12755_v14, %v11210_v47 }
 0x48c   :  { %7613 = vmatpush.bf16.msrb.mxu2 %v11677_v3  ;;  %v11629_v8 = vor.u32 %v12859_v27, %v11626_v36  ;;  %7919 = vmatpush.bf16.msra.mxu1 %v12925_v41  ;;  %v12847_v49 = vld [vmem:[#allocation14 + $0x60c] sm:$0xf] }
 0x48d   :  { %v12899_v3 = vld [vmem:[#allocation14 + $0x7ac] sm:$0xf] }
 0x48e   :  { %7908 = vmatpush.bf16.msra.mxu0 %v12915_v44  ;;  %7529 = vmatmul.bf16.vlgmr.msrb.gmra.mxu3 %v13682_v39  ;;  %v11578_v44 = vld [vmem:[#allocation14 + $0x618] sm:$0xf0]  ;;  %v11789_v62 = vor.u32 %v12899_v3, %v11786_v18  ;;  %v12879_v47 = vld [vmem:[#allocation14 + $0x70c] sm:$0xf]  ;;  %v12928_v18 = vld [vmem:[#allocation17 + $0x90] sm:$0xff] }
 0x48f   :  { %7573 = vmatpush.bf16.msra.mxu3 %v11309_v50  ;;  %v11818_v50 = vld [vmem:[#allocation14 + $0x7f8] sm:$0xf0]  ;;  %v11581_v34 = vor.u32 %v12847_v49, %v11578_v44  ;;  %v11709_v41 = vor.u32 %v12879_v47, %v11706_v7  ;;  %v12934_v7 = vld [vmem:[#allocation17 + $0xc0] sm:$0xff] }
 0x490   :  { %7614 = vmatpush.bf16.msrb.mxu2 %v11661_v2  ;;  %v7402_v55 = vpop.f32.mrf.mxu1  ;;  %v7311_v12 = vpop.f32.mrf.mxu2  ;;  %7920 = vmatpush.bf16.msra.mxu1 %v12924_v26  ;;  %v11821_v21 = vor.u32 %v12907_v59, %v11818_v50  ;;  %v11770_v2 = vld [vmem:[#allocation14 + $0x798] sm:$0xf0] }
 0x491   :  { %v11722_v55 = vld [vmem:[#allocation14 + $0x738] sm:$0xf0] }
 0x492   :  { %7909 = vmatpush.bf16.msra.mxu0 %v12914_v37  ;;  %v12923_v37 = vld [vmem:[#allocation17 + $0x68] sm:$0xff] }
 0x493   :  { %7574 = vmatpush.bf16.msra.mxu3 %v11293_v40  ;;  %v11805_v40 = vor.u32 %v12903_v51, %v11802_v53 }
 0x494   :  { %7615 = vmatpush.bf16.msrb.mxu2 %v11645_v0  ;;  %7921 = vmatpush.bf16.msra.mxu1 %v12923_v37  ;;  %v12920_v0 = vld [vmem:[#allocation17 + $0x50] sm:$0xff] }
 0x496   :  { %7910 = vmatpush.bf16.msra.mxu0 %v12913_v30  ;;  %v13724_v30 = vld [vmem:[#allocation16] sm:$0xf] }
 0x497   :  { %7575 = vmatpush.bf16.msra.mxu3 %v11277_v13  ;;  %v5936_v1 = vperm.slane %v13724_v30, 2  ;;  %v12895_v13 = vld [vmem:[#allocation14 + $0x78c] sm:$0xf]  ;;  %v5937_v3 = vperm.slane %v13724_v30, 3 }
 0x498   :  { %7616 = vmatpush.bf16.msrb.mxu2 %v11629_v8  ;;  %v7361_v28 = vpop.f32.mrf.mxu2  ;;  %7922 = vmatpush.bf16.msra.mxu1 %v12922_v60  ;;  %v11773_v19 = vor.u32 %v12895_v13, %v11770_v2  ;;  %v11738_v8 = vld [vmem:[#allocation14 + $0x758] sm:$0xf0]  ;;  %v12927_v13 = vld [vmem:[#allocation17 + $0x88] sm:$0xff] }
 0x499   :  { %v7362_v12 = vadd.f32 %v7361_v28, %v13713_v57  ;;  %v12932_v28 = vld [vmem:[#allocation17 + $0xb0] sm:$0xff] }
 0x49a   :  { %7911 = vmatpush.bf16.msra.mxu0 %v12912_v6  ;;  %v7297_v6 = vadd.f32 %v13706_v45, %v13698_v24 }
 0x49b   :  { %7576 = vmatpush.bf16.msra.mxu3 %v11261_v31  ;;  %v12891_v31 = vld [vmem:[#allocation14 + $0x76c] sm:$0xf] }
 0x49c   :  { %7617 = vmatpush.bf16.msrb.mxu2 %v11613_v25  ;;  %7923 = vmatpush.bf16.msra.mxu1 %v12921_v22  ;;  %v7310_v11 = vadd.f32 %v13720_v17, %v7297_v6 }
 0x49e   :  { %7912 = vmatpush.bf16.msra.mxu0 %v12911_v48 }
 0x49f   :  { %7577 = vmatpush.bf16.msra.mxu3 %v11245_v16  ;;  %v12887_v16 = vld [vmem:[#allocation14 + $0x74c] sm:$0xf] }
 0x4a0   :  { %7618 = vmatpush.bf16.msrb.mxu2 %v11597_v42  ;;  %v7363_v63 = vpop.f32.mrf.mxu2  ;;  %7924 = vmatpush.bf16.msra.mxu1 %v12920_v0  ;;  %v11741_v24 = vor.u32 %v12887_v16, %v11738_v8 }
 0x4a2   :  { %7913 = vmatpush.bf16.msra.mxu0 %v12910_v29  ;;  %v7439_v58 = vpop.f32.mrf.mxu0  ;;  %v12883_v29 = vld [vmem:[#allocation14 + $0x72c] sm:$0xf] }
 0x4a3   :  { %7578 = vmatpush.bf16.msra.mxu3 %v11229_v35  ;;  %v7440_v23 = vadd.f32 %v7439_v58, %v5936_v1  ;;  %v12918_v35 = vld [vmem:[#allocation17 + $0x40] sm:$0xff]  ;;  %v11725_v25 = vor.u32 %v12883_v29, %v11722_v55 }
 0x4a4   :  { %7619 = vmatpush.bf16.msrb.mxu2 %v11581_v34  ;;  %7925 = vmatpush.bf16.msra.mxu1 %v12919_v33  ;;  %v12938_v55 = vld [vmem:[#allocation17 + $0xe0] sm:$0xff] }
 0x4a7   :  { %7579 = vmatpush.bf16.msra.mxu3 %v11213_v10  ;;  %7620 = vmatmul.bf16.vlgmr.msrb.gmra.mxu2 %v13668_v20  ;;  %v11754_v20 = vld [vmem:[#allocation14 + $0x778] sm:$0xf0] }
 0x4a8   :  { %v7322_v27 = vpop.f32.mrf.mxu3  ;;  %v11757_v36 = vor.u32 %v12891_v31, %v11754_v20  ;;  %7926 = vmatpush.bf16.msra.mxu1 %v12918_v35  ;;  %v12937_v35 = vld [vmem:[#allocation17 + $0xd8] sm:$0xff] }
 0x4a9   :  { %v7323_v48 = vadd.f32 %v7322_v27, %v7310_v11 }
 0x4aa   :  { %v7441_v38 = vpop.f32.mrf.mxu0 }
 0x4ab   :  { %7580 = vmatpush.bf16.msra.mxu3 %v11197_v4  ;;  %v7413_v9 = vpop.f32.mrf.mxu2  ;;  %v7638_v52 = vmax.f32 %v7323_v48, 0.0  ;;  %v12930_v38 = vld [vmem:[#allocation17 + $0xa0] sm:$0xff] }
 0x4ad   :  { %v7642_v45 = vpack.c.bf16 %v7638_v52, %v7638_v52 }
 0x4ae   :  { %7581 = vmatmul.bf16.vlgmr.msra.gmra.mxu3 %v13635_v15  ;;  %v7452_v15 = vpop.f32.mrf.mxu1 }
 0x4af   :  { %7625 = vmatpush.bf16.msrb.mxu3 %v11821_v21  ;;  %v13729_v56 = vadd.f32 %v7452_v15, %v7440_v23  ;;  %7914 = vmatmul.bf16.vlgmr.msra.gmra.mxu0 %v7642_v45  ;;  %v12933_v21 = vld [vmem:[#allocation17 + $0xb8] sm:$0xff]  ;;  %v12939_v45 = vld [vmem:[#allocation17 + $0xe8] sm:$0xff] }
 0x4b0   :  { %v7324_v17 = vpop.f32.mrf.mxu3  ;;  %7932 = vmatpush.bf16.msra.mxu2 %v12933_v21 }
 0x4b1   :  { %v12936_v17 = vld [vmem:[#allocation17 + $0xd0] sm:$0xff] }
 0x4b3   :  { %7626 = vmatpush.bf16.msrb.mxu3 %v11805_v40  ;;  %v7415_v43 = vpop.f32.mrf.mxu2 }
 0x4b4   :  { %7933 = vmatpush.bf16.msra.mxu2 %v12932_v28 }
 0x4b6   :  { %v7454_v61 = vpop.f32.mrf.mxu1 }
 0x4b7   :  { %7627 = vmatpush.bf16.msrb.mxu3 %v11789_v62 }
 0x4b9   :  { %v7374_v10 = vpop.f32.mrf.mxu3 }
 0x4ba   :  { %v7375_v32 = vadd.f32 %v7374_v10, %v7362_v12 }
 0x4bb   :  { %7628 = vmatpush.bf16.msrb.mxu3 %v11773_v19  ;;  %v12926_v19 = vld [vmem:[#allocation17 + $0x80] sm:$0xff] }
 0x4bc   :  { %v7388_v42 = vadd.f32 %v13711_v46, %v7375_v32 }
 0x4be   :  { %v7401_v26 = vadd.f32 %v13718_v54, %v7388_v42  ;;  %v12929_v54 = vld [vmem:[#allocation17 + $0x98] sm:$0xff] }
 0x4bf   :  { %7629 = vmatpush.bf16.msrb.mxu3 %v11757_v36 }
 0x4c0   :  { %v7414_v59 = vadd.f32 %v7413_v9, %v7401_v26  ;;  %v12941_v9 = vld [vmem:[#allocation17 + $0xf8] sm:$0xff] }
 0x4c1   :  { %v7376_v5 = vpop.f32.mrf.mxu3 }
 0x4c2   :  { %v7491_v14 = vpop.f32.mrf.mxu0 }
 0x4c3   :  { %7630 = vmatpush.bf16.msrb.mxu3 %v11741_v24  ;;  %v12940_v24 = vld [vmem:[#allocation17 + $0xf0] sm:$0xff] }
 0x4c7   :  { %7631 = vmatpush.bf16.msrb.mxu3 %v11725_v25  ;;  %v12935_v25 = vld [vmem:[#allocation17 + $0xc8] sm:$0xff] }
 0x4c8   :  { %v7504_v49 = vpop.f32.mrf.mxu1 }
 0x4c9   :  { %v7465_v44 = vpop.f32.mrf.mxu2 }
 0x4ca   :  { %v7493_v58 = vpop.f32.mrf.mxu0  ;;  %v7466_v2 = vadd.f32 %v7465_v44, %v13729_v56 }
 0x4cb   :  { %7632 = vmatpush.bf16.msrb.mxu3 %v11709_v41  ;;  %v7426_v50 = vpop.f32.mrf.mxu3 }
 0x4cc   :  { %v7427_v4 = vadd.f32 %v7426_v50, %v7414_v59 }
 0x4ce   :  { %7633 = vmatmul.bf16.vlgmr.msrb.gmra.mxu3 %v13682_v39  ;;  %v7639_v51 = vmax.f32 %v7427_v4, 0.0  ;;  %v12931_v39 = vld [vmem:[#allocation17 + $0xa8] sm:$0xff] }
 0x4cf   :  { %7934 = vmatpush.bf16.msra.mxu2 %v12931_v39  ;;  %7945 = vmatpush.bf16.msra.mxu3 %v12941_v9 }
 0x4d0   :  { %v7506_v34 = vpop.f32.mrf.mxu1  ;;  %v7643_v57 = vpack.c.bf16 %v7639_v51, %v7639_v51 }
 0x4d1   :  { %v7467_v37 = vpop.f32.mrf.mxu2  ;;  %v12962_v34 = vld [vmem:[#allocation19] ss:$0 sm:$0xff] }
 0x4d2   :  { %7927 = vmatmul.bf16.vlgmr.msra.gmra.mxu1 %v7643_v57 }
 0x4d3   :  { %v7428_v46 = vpop.f32.mrf.mxu3  ;;  %7935 = vmatpush.bf16.msra.mxu2 %v12930_v38  ;;  %7946 = vmatpush.bf16.msra.mxu3 %v12940_v24 }
 0x4d7   :  { %7936 = vmatpush.bf16.msra.mxu2 %v12929_v54  ;;  %7947 = vmatpush.bf16.msra.mxu3 %v12939_v45 }
 0x4db   :  { %7937 = vmatpush.bf16.msra.mxu2 %v12928_v18  ;;  %7948 = vmatpush.bf16.msra.mxu3 %v12938_v55 }
 0x4df   :  { %7938 = vmatpush.bf16.msra.mxu2 %v12927_v13  ;;  %7949 = vmatpush.bf16.msra.mxu3 %v12937_v35 }
 0x4e2   :  { %v7543_v53 = vpop.f32.mrf.mxu0 }
 0x4e3   :  { %v7544_v60 = vadd.f32 %v7543_v53, %v5937_v3  ;;  %7939 = vmatpush.bf16.msra.mxu2 %v12926_v19  ;;  %7950 = vmatpush.bf16.msra.mxu3 %v12936_v17 }
 0x4e7   :  { %7951 = vmatpush.bf16.msra.mxu3 %v12935_v25 }
 0x4e8   :  { %v7556_v1 = vpop.f32.mrf.mxu1 }
 0x4e9   :  { %v7557_v62 = vadd.f32 %v7556_v1, %v7544_v60 }
 0x4ea   :  { %v7545_v40 = vpop.f32.mrf.mxu0  ;;  %v7517_v23 = vpop.f32.mrf.mxu2 }
 0x4eb   :  { %7952 = vmatpush.bf16.msra.mxu3 %v12934_v7 }
 0x4f0   :  { %v7558_v15 = vpop.f32.mrf.mxu1 }
 0x4f1   :  { %v7478_v22 = vpop.f32.mrf.mxu3 }
 0x4f2   :  { %v7479_v63 = vadd.f32 %v7478_v22, %v7466_v2  ;;  %v7519_v30 = vpop.f32.mrf.mxu2 }
 0x4f4   :  { %v7492_v6 = vadd.f32 %v7491_v14, %v7479_v63 }
 0x4f6   :  { %v7505_v11 = vadd.f32 %v7504_v49, %v7492_v6 }
 0x4f8   :  { %v7518_v36 = vadd.f32 %v7517_v23, %v7505_v11 }
 0x4f9   :  { %v7480_v20 = vpop.f32.mrf.mxu3 }
 0x502   :  { %v7595_v31 = vpop.f32.mrf.mxu0 }
 0x508   :  { %v7608_v27 = vpop.f32.mrf.mxu1 }
 0x50a   :  { %v7597_v0 = vpop.f32.mrf.mxu0  ;;  %v7569_v16 = vpop.f32.mrf.mxu2 }
 0x50b   :  { %v7570_v14 = vadd.f32 %v7569_v16, %v7557_v62 }
 0x510   :  { %v7610_v33 = vpop.f32.mrf.mxu1 }
 0x511   :  { %v7530_v48 = vpop.f32.mrf.mxu3 }
 0x512   :  { %v7531_v8 = vadd.f32 %v7530_v48, %v7518_v36  ;;  %v7571_v29 = vpop.f32.mrf.mxu2 }
 0x514   :  { %v7640_v56 = vmax.f32 %v7531_v8, 0.0 }
 0x516   :  { %v7644_v52 = vpack.c.bf16 %v7640_v56, %v7640_v56 }
 0x518   :  { %7940 = vmatmul.bf16.vlgmr.msra.gmra.mxu2 %v7644_v52 }
 0x519   :  { %v7532_v61 = vpop.f32.mrf.mxu3 }
 0x52a   :  { %v7621_v41 = vpop.f32.mrf.mxu2 }
 0x52c   :  { %v7915_v58 = vpop.f32.mrf.mxu0 }
 0x52d   :  { %v7916_v21 = vadd.f32 %v12962_v34, %v7915_v58 }
 0x531   :  { %v7582_v47 = vpop.f32.mrf.mxu3 }
 0x532   :  { %v7583_v43 = vadd.f32 %v7582_v47, %v7570_v14  ;;  %v7623_v32 = vpop.f32.mrf.mxu2 }
 0x534   :  { %v7596_v12 = vadd.f32 %v7595_v31, %v7583_v43  ;;  %v7917_v42 = vpop.f32.mrf.mxu0 }
 0x536   :  { %v7609_v5 = vadd.f32 %v7608_v27, %v7596_v12 }
 0x538   :  { %v7622_v49 = vadd.f32 %v7621_v41, %v7609_v5 }
 0x539   :  { %v7584_v10 = vpop.f32.mrf.mxu3 }
 0x54f   :  { %v7928_v51 = vpop.f32.mrf.mxu1 }
 0x550   :  { %v7929_v57 = vadd.f32 %v7928_v51, %v7916_v21 }
 0x551   :  { %v7634_v26 = vpop.f32.mrf.mxu3 }
 0x552   :  { %v7635_v44 = vadd.f32 %v7634_v26, %v7622_v49 }
 0x554   :  { %v7641_v59 = vmax.f32 %v7635_v44, 0.0 }
 0x556   :  { %v7645_v50 = vpack.c.bf16 %v7641_v59, %v7641_v59 }
 0x557   :  { %v7930_v53 = vpop.f32.mrf.mxu1 }
 0x558   :  { %7953 = vmatmul.bf16.vlgmr.msra.gmra.mxu3 %v7645_v50 }
 0x559   :  { %v7636_v4 = vpop.f32.mrf.mxu3 }
 0x59b   :  { %v7941_v28 = vpop.f32.mrf.mxu2 }
 0x59c   :  { %v7942_v46 = vadd.f32 %v7941_v28, %v7929_v57 }
 0x5a3   :  { %v7943_v37 = vpop.f32.mrf.mxu2 }
 0x5db   :  { %v7954_v39 = vpop.f32.mrf.mxu3 }
 0x5dc   :  { %v7955_v38 = vadd.f32 %v7954_v39, %v7942_v46 }
 0x5de   :  { %v7958_v40 = vmax.f32 %v7955_v38, 0.0 }
 0x5e0   :  { %7959 = vst [vmem:[#allocation20] sm:$0xff] %v7958_v40 }
 0x5e1   :  { %7970 = dma.vmem_to_hbm [thread:$0]  %s7966_s10, 128, %s7968_s13, [#allocation4]  }
 0x5e3   :  { %v7956_v54 = vpop.f32.mrf.mxu3 }
 0x5e4   :  { %13266 = dma.done.wait [#allocation4], 128  }
 0x5e5   :  { %13267 = vsyncadd [#allocation4], 4294967168 }
 0x5e6   :  { %7975 = vsyncpa [#allocation3], 1 }
 0x5e7   :  { %7976 = vsyncpa [#allocation6], 1 }
 0x5e8   :  { %7977 = vsyncpa [#allocation9], 1 }
 0x5e9   :  { %7978 = vsyncpa [#allocation12], 1 }
 0x5ea   :  { %7979 = vsyncpa [#allocation15], 1 }
 0x5eb   :  { %7980 = vsyncpa [#allocation18], 1 }
 0x5ec   :  { %7981 = vsyncpa [#allocation4], 1 }

</bundles_post_ra>
